<compile_context>
chip_gen: v5e
topology: v5e:2x2
jax: 0.10.0
libtpu: 0.0.40
codegen_flags: <defaults>
</compile_context>

<pallas_src>
import functools

import numpy as np
import jax
import jax.numpy as jnp
from jax.experimental import pallas as pl
from jax.experimental.pallas import tpu as pltpu

_QUANT = 16  # bf16 sublane tile height: keeps every channel / K offset tile-aligned


def _pad_ch(c):
    return ((int(c) + _QUANT - 1) // _QUANT) * _QUANT


def _geom(H, W):
    Wp = W + 2                                 # row width incl. the 2 zero pad columns
    Lo = H * Wp                                # lane-dense slab length
    lead = ((W + 3 + 127) // 128) * 128        # lane-aligned interior offset of padded slab
    Lp = lead + Lo + W + 3                     # padded-slab length (taps fit exactly)
    return Wp, Lo, lead, Lp


# ---------------------------------------------------------------------------
# Fused conv-block Pallas kernel
# ---------------------------------------------------------------------------

def _block_kernel(*refs, n_inputs, n_conv, H, W, mode, softmax, cout_real):
    """Fused conv_block (+ optional ConvTranspose GEMM / softmax / 1x1-conv+sigmoid).

    Activations are (C_pad, H*(W+2)) tiles: channels in sublanes, spatial in lanes.
    """
    Wp, Lo, lead, _ = _geom(H, W)

    idx = 0
    mask_ref = refs[idx]; idx += 1
    x_refs = refs[idx:idx + n_inputs]; idx += n_inputs
    w_refs = refs[idx:idx + n_conv]; idx += n_conv
    aux_refs = refs[idx:idx + n_conv]; idx += n_conv
    ep_w_ref = ep_b_ref = None
    if mode in ("up", "head"):
        ep_w_ref, ep_b_ref = refs[idx], refs[idx + 1]; idx += 2
    out_ref = refs[idx]
    pad_ref, x9_ref = refs[idx + 1], refs[idx + 2]

    # Valid-column mask for the (H, W+2) lane layout (precomputed on host; one multiply
    # per layer replaces the previous 6 per-tap border-mask multiplies).
    lane_mask = mask_ref[...]                              # (1, Lo) f32

    # Zero the padded slab once; the pad lanes then stay zero for the whole block.
    pad_ref[...] = jnp.zeros_like(pad_ref)

    # Drop the input slab(s) into the interior (lane-aligned bf16 store; two slabs stacked
    # along channel rows reproduce torch.cat([up, skip], dim=1) with no HBM concat).
    row = 0
    for r in x_refs:
        cp_in = r.shape[1]
        pad_ref[row:row + cp_in, lead:lead + Lo] = r[0]
        row += cp_in

    yf = None
    for l in range(n_conv):
        w_l = w_refs[l][...]                               # (cout_pad, 9*cin_pad) bf16
        K = w_l.shape[1]
        cp = K // 9
        # Stage the 9 shifted tap views stacked along K.  All offsets are static; sublane
        # offsets are bf16-tile aligned, only the lane reads are (cheaply) shifted.
        for t in range(9):
            dy, dx = t // 3, t % 3
            s = lead - (W + 3) + dy * Wp + dx
            x9_ref[t * cp:(t + 1) * cp, :] = pad_ref[0:cp, s:s + Lo]
        # One MXU contraction per conv layer (K = 9*cin_pad), f32 accumulation.
        yf = jnp.dot(w_l, x9_ref[0:K, :], preferred_element_type=jnp.float32)
        # Conv bias -> LeakyReLU(0.01) -> BatchNorm2d (eval) folded affine, all in f32
        # (v5e has no bf16 VPU path).  Dropout2d(0.25) is identity in eval mode.
        a = aux_refs[l][...]                               # (cout_pad, 3) f32
        yf = yf + a[:, 0:1]
        yf = jnp.where(yf >= 0.0, yf, 0.01 * yf)
        yf = yf * a[:, 1:2] + a[:, 2:3]
        if l + 1 < n_conv:
            cpo = yf.shape[0]
            pad_ref[0:cpo, lead:lead + Lo] = (yf * lane_mask).astype(pad_ref.dtype)

    if mode == "up":
        # Fused ConvTranspose2d(k=2, s=2) GEMM; sub-pixel interleave done in XLA glue.
        ua = jnp.dot(ep_w_ref[...], yf.astype(jnp.bfloat16),
                     preferred_element_type=jnp.float32) + ep_b_ref[...]
        out_ref[0] = ua.astype(out_ref.dtype)
    elif mode == "head":
        # Fused 1x1 conv + sigmoid classifier.
        ha = jnp.dot(ep_w_ref[...], yf.astype(jnp.bfloat16),
                     preferred_element_type=jnp.float32) + ep_b_ref[...]
        out_ref[0] = (1.0 / (1.0 + jnp.exp(-ha))).astype(out_ref.dtype)
    else:
        if softmax:
            # nn.Softmax() on an NCHW tensor -> dim=1 (channels = sublanes).  Padded
            # channels are masked to -inf so they contribute 0; exact divide (no approx
            # reciprocal) for parity with PyTorch softmax.
            ch = jax.lax.broadcasted_iota(jnp.int32, (yf.shape[0], 1), 0)
            yf = jnp.where(ch < cout_real, yf, -1e30)
            e = jnp.exp(yf - jnp.max(yf, axis=0, keepdims=True))
            yf = e / jnp.sum(e, axis=0, keepdims=True)
        out_ref[0] = (yf * lane_mask).astype(out_ref.dtype)


def fused_conv_block(xs, block, H, W, *, mode="main", softmax=False,
                     up=None, head=None, cout_real=0):
    """Run one fused conv_block pallas_call.

    xs    : 1 or 2 lane-dense activations (N, Cin_pad, H*(W+2)) bf16.
    block : {"ws": [per-layer (Cout_pad, 9*Cin_pad) bf16], "auxs": [(Cout_pad, 3) f32]}.
    mode  : "main" (store activation, optional fused channel softmax),
            "up"   (store only the fused ConvTranspose2d(k=2,s=2) GEMM),
            "head" (store only the fused 1x1 conv + sigmoid).
    """
    N = int(xs[0].shape[0])
    Wp, Lo, lead, Lp = _geom(H, W)
    cins = [int(x.shape[1]) for x in xs]
    cin_tot = sum(cins)
    ws, auxs = block["ws"], block["auxs"]
    n_conv = len(ws)
    cout_pad = int(ws[0].shape[0])
    assert int(ws[0].shape[1]) == 9 * cin_tot
    for x in xs:
        assert int(x.shape[2]) == Lo

    C_scr = max(cin_tot, cout_pad)
    K_max = 9 * C_scr

    # Host-precomputed valid-column mask (no in-kernel integer mod needed).
    mask_np = np.zeros((H, Wp), np.float32)
    mask_np[:, :W] = 1.0
    mask = jnp.asarray(mask_np.reshape(1, Lo))

    inputs = [mask] + list(xs) + list(ws) + list(auxs)
    in_specs = [pl.BlockSpec((1, Lo), lambda n: (0, 0))]
    in_specs += [pl.BlockSpec((1, int(c), Lo), lambda n: (n, 0, 0)) for c in cins]
    in_specs += [pl.BlockSpec(tuple(w.shape), lambda n: (0, 0)) for w in ws]
    in_specs += [pl.BlockSpec(tuple(a.shape), lambda n: (0, 0)) for a in auxs]

    ep = up if mode == "up" else (head if mode == "head" else None)
    if ep is not None:
        inputs += [ep["w"], ep["b"]]
        in_specs += [pl.BlockSpec(tuple(ep["w"].shape), lambda n: (0, 0)),
                     pl.BlockSpec(tuple(ep["b"].shape), lambda n: (0, 0))]

    if mode == "head":
        rows_out, out_dtype = int(head["w"].shape[0]), jnp.float32
    elif mode == "up":
        rows_out, out_dtype = int(up["w"].shape[0]), jnp.bfloat16
    else:
        rows_out, out_dtype = cout_pad, jnp.bfloat16

    out_shape = jax.ShapeDtypeStruct((N, rows_out, Lo), out_dtype)
    out_spec = pl.BlockSpec((1, rows_out, Lo), lambda n: (n, 0, 0))

    scratch_shapes = [pltpu.VMEM((C_scr, Lp), jnp.bfloat16),   # zero-padded slab
                      pltpu.VMEM((K_max, Lo), jnp.bfloat16)]   # K-stacked 3x3 taps

    # Advisory cost estimate (many small kernels -> helps XLA schedule around them).
    flops = sum(2 * Lo * int(w.shape[1]) * cout_pad for w in ws)
    if ep is not None:
        flops += 2 * Lo * cout_pad * rows_out
    flops *= N
    transc = N * Lo * (cout_pad if softmax else 0)
    if mode == "head":
        transc += N * Lo * rows_out
    param_bytes = sum(int(np.prod(a.shape)) * jnp.dtype(a.dtype).itemsize
                      for a in inputs[1 + len(xs):]) + Lo * 4
    bytes_acc = N * (sum(int(c) * Lo * 2 for c in cins)
                     + rows_out * Lo * jnp.dtype(out_dtype).itemsize) + param_bytes

    # VMEM budget computed from the actual tile bytes (double-buffered IO) + scratch,
    # clamped so it is valid on v5e / v6e / v7x instead of a hard-coded 32 MiB cap.
    io_bytes = (sum(int(c) * Lo * 2 for c in cins)
                + rows_out * Lo * jnp.dtype(out_dtype).itemsize + param_bytes)
    scr_bytes = (C_scr * Lp + K_max * Lo) * 2
    vmem_limit = int(min(max(4 * io_bytes + scr_bytes + (4 << 20), 16 << 20), 64 << 20))

    kern = functools.partial(_block_kernel, n_inputs=len(xs), n_conv=n_conv, H=H, W=W,
                             mode=mode, softmax=softmax, cout_real=int(cout_real))

    return pl.pallas_call(
        kern,
        out_shape=out_shape,
        grid=(N,),
        in_specs=in_specs,
        out_specs=out_spec,
        scratch_shapes=scratch_shapes,
        compiler_params=pltpu.CompilerParams(
            dimension_semantics=("parallel",),        # batch axis -> megacore sharding
            vmem_limit_bytes=vmem_limit),
        cost_estimate=pl.CostEstimate(flops=int(flops), transcendentals=int(transc),
                                      bytes_accessed=int(bytes_acc)),
    )(*inputs)


# ---------------------------------------------------------------------------
# Plain-JAX glue (O(H*W), tiny tensors, no dense matrices)
# ---------------------------------------------------------------------------

def _to_lanes(x_nchw, c_pad):
    """(N, C, H, W) -> lane-dense zero-padded layout (N, c_pad, H*(W+2)) bf16."""
    N, C, H, W = x_nchw.shape
    x = jnp.pad(x_nchw, ((0, 0), (0, c_pad - C), (0, 0), (0, 2)))
    return x.reshape(N, c_pad, H * (W + 2)).astype(jnp.bfloat16)


def _from_lanes(y, H, W):
    """(N, C, H*(W+2)) -> (N, C, H, W)."""
    N, C, _ = y.shape
    return y.reshape(N, C, H, W + 2)[:, :, :, :W]


def _avgpool_glue(s, H, W):
    # AvgPool2d(2,2) as a reshape-mean.
    # TODO(synk): emit the pooled slab as a second output of the encoder block kernel.
    N, C, _ = s.shape
    x = _from_lanes(s, H, W).astype(jnp.float32)
    p = x.reshape(N, C, H // 2, 2, W // 2, 2).mean(axis=(3, 5))
    p = jnp.pad(p, ((0, 0), (0, 0), (0, 0), (0, 2)))
    return p.reshape(N, C, (H // 2) * (W // 2 + 2)).astype(jnp.bfloat16)


def _interleave_up_glue(uraw, Hc, Wc, cup):
    # Sub-pixel interleave of the in-kernel ConvTranspose2d(k=2,s=2) GEMM result.
    # TODO(synk): do this with in-kernel strided stores for large activations.
    N = uraw.shape[0]
    u = uraw.reshape(N, 2, 2, cup, Hc, Wc + 2)[:, :, :, :, :, :Wc]
    u = u.transpose(0, 3, 4, 1, 5, 2).reshape(N, cup, 2 * Hc, 2 * Wc)
    return _to_lanes(u, _pad_ch(cup))


# ---------------------------------------------------------------------------
# Deterministic synthetic parameters (channel-padded, lane-dense packing)
# ---------------------------------------------------------------------------

def _init_conv_block(key, cins_real, cout_real, n_conv):
    cins_pad = [_pad_ch(c) for c in cins_real]
    cout_pad = _pad_ch(cout_real)
    ws, auxs = [], []
    keys = jax.random.split(key, 2 * n_conv)
    for l in range(n_conv):
        if l == 0:
            srl, spd = list(cins_real), list(cins_pad)
        else:
            srl, spd = [cout_real], [cout_pad]
        cin_pad_tot = sum(spd)
        fan_in = 9 * sum(srl)
        wfull = np.zeros((cout_pad, 9, cin_pad_tot), np.float32)
        kr = jax.random.split(keys[2 * l], len(srl))
        off = 0
        for s, (cr, cp) in enumerate(zip(srl, spd)):
            wr = jax.random.normal(kr[s], (cout_real, 9, cr), jnp.float32) / np.sqrt(fan_in)
            wfull[:cout_real, :, off:off + cr] = np.asarray(wr)
            off += cp
        ws.append(jnp.asarray(wfull.reshape(cout_pad, 9 * cin_pad_tot), dtype=jnp.bfloat16))

        kb, kg, kbe, km, kv = jax.random.split(keys[2 * l + 1], 5)
        b = 0.05 * jax.random.normal(kb, (cout_real,), jnp.float32)
        gamma = 1.0 + 0.1 * jax.random.normal(kg, (cout_real,), jnp.float32)
        beta = 0.1 * jax.random.normal(kbe, (cout_real,), jnp.float32)
        mean = 0.1 * jax.random.normal(km, (cout_real,), jnp.float32)
        var = 1.0 + 0.1 * jnp.abs(jax.random.normal(kv, (cout_real,), jnp.float32))
        scale = gamma / jnp.sqrt(var + 1e-5)
        shift = beta - mean * scale
        aux = np.zeros((cout_pad, 3), np.float32)
        aux[:cout_real, 0] = np.asarray(b)
        aux[:cout_real, 1] = np.asarray(scale)
        aux[:cout_real, 2] = np.asarray(shift)
        auxs.append(jnp.asarray(aux))
    return {"ws": ws, "auxs": auxs}


def _init_up(key, cin_real, cup_real):
    cin_pad = _pad_ch(cin_real)
    kw, kb = jax.random.split(key)
    w = np.zeros((4 * cup_real, cin_pad), np.float32)
    w[:, :cin_real] = np.asarray(
        jax.random.normal(kw, (4 * cup_real, cin_real), jnp.float32) / np.sqrt(4 * cin_real))
    b = 0.05 * jax.random.normal(kb, (cup_real,), jnp.float32)
    return {"w": jnp.asarray(w, dtype=jnp.bfloat16),
            "b": jnp.tile(b, 4).reshape(4 * cup_real, 1)}


def _init_head(key, cin_real, f_channels):
    cin_pad = _pad_ch(cin_real)
    kw, kb = jax.random.split(key)
    w = np.zeros((f_channels, cin_pad), np.float32)
    w[:, :cin_real] = np.asarray(
        jax.random.normal(kw, (f_channels, cin_real), jnp.float32) / np.sqrt(cin_real))
    b = 0.05 * jax.random.normal(kb, (f_channels, 1), jnp.float32)
    return {"w": jnp.asarray(w, dtype=jnp.bfloat16), "b": b}


def _init_basenet(key, C, i_ch, L, n_conv):
    keys = jax.random.split(key, 2 * L)
    enc, cin = [], i_ch
    for i in range(L - 1):
        cout = C * 2 ** i
        enc.append(_init_conv_block(keys[i], [cin], cout, n_conv))
        cin = cout
    bott = _init_conv_block(keys[L - 1], [cin], C * 2 ** (L - 1), n_conv)
    dec = []
    for j, lev in enumerate(range(L - 1, 0, -1)):
        k1, k2 = jax.random.split(keys[L + j])
        dec.append({"up": _init_up(k1, C * 2 ** lev, C * 2 ** (lev - 1)),
                    "conv": _init_conv_block(k2, [C * 2 ** (lev - 1)] * 2,
                                             C * 2 ** (lev - 1), n_conv)})
    return {"enc": enc, "bott": bott, "dec": dec}


def init_wnet(key, n_channels, i_channels, f_channels, n_levels, n_conv):
    k1, k2, k3 = jax.random.split(key, 3)
    return {"encoder": _init_basenet(k1, n_channels, i_channels, n_levels, n_conv),
            "decoder": _init_basenet(k2, n_channels, n_channels, n_levels, n_conv),
            "head": _init_head(k3, n_channels, f_channels)}


# ---------------------------------------------------------------------------
# Forward pass (eval semantics: Dropout2d identity, BatchNorm running stats)
# ---------------------------------------------------------------------------

def _basenet_apply(p, x, H, W, C, L, *, softmax=False, head=None):
    skips, cur, curH, curW = [], x, H, W
    for i in range(L - 1):                                   # encoder levels
        s = fused_conv_block([cur], p["enc"][i], curH, curW, mode="main")
        skips.append((s, curH, curW))
        cur = _avgpool_glue(s, curH, curW)
        curH //= 2; curW //= 2
    # Bottleneck: its only HBM output is the fused first-decoder ConvTranspose GEMM.
    up_raw = fused_conv_block([cur], p["bott"], curH, curW, mode="up",
                              up=p["dec"][0]["up"])
    y = None
    for j in range(L - 1):                                   # decoder levels
        cup = C * 2 ** (L - 2 - j)
        up_in = _interleave_up_glue(up_raw, curH, curW, cup)
        curH *= 2; curW *= 2
        skip, sH, sW = skips[L - 2 - j]
        assert (sH, sW) == (curH, curW)
        blk = p["dec"][j]["conv"]
        if j < L - 2:
            # Intermediate decoder block: only its fused up-GEMM is consumed downstream.
            up_raw = fused_conv_block([up_in, skip], blk, curH, curW,
                                      mode="up", up=p["dec"][j + 1]["up"])
        elif head is not None:
            y = fused_conv_block([up_in, skip], blk, curH, curW, mode="head", head=head)
        else:
            y = fused_conv_block([up_in, skip], blk, curH, curW, mode="main",
                                 softmax=softmax, cout_real=C)
    return y


def wnet_forward(params, x_nchw, *, cfg):
    C, L = cfg["n_channels"], cfg["n_levels"]
    N, Ci, H, W = x_nchw.shape
    x = _to_lanes(x_nchw, _pad_ch(Ci))
    # Encoder basenet with the channel softmax fused into its final block.
    x = _basenet_apply(params["encoder"], x, H, W, C, L, softmax=True)
    # Decoder basenet with the 1x1 conv + sigmoid classifier fused into its final block.
    out = _basenet_apply(params["decoder"], x, H, W, C, L, head=params["head"])
    return _from_lanes(out, H, W)                            # NCHW f32, matches PyTorch


# ---------------------------------------------------------------------------
if __name__ == "__main__":
    cfg = dict(n_channels=4, i_channels=1, f_channels=2, n_levels=3, n_conv=2)
    N, H, W = 2, 16, 16

    key = jax.random.PRNGKey(0)
    kp, kx = jax.random.split(key)
    params = init_wnet(kp, cfg["n_channels"], cfg["i_channels"], cfg["f_channels"],
                       cfg["n_levels"], cfg["n_conv"])
    x = jax.random.normal(kx, (N, cfg["i_channels"], H, W), jnp.float32)

    fwd = jax.jit(functools.partial(wnet_forward, cfg=cfg))
    out = jax.block_until_ready(fwd(params, x))

    assert out.shape == (N, cfg["f_channels"], H, W), out.shape
    assert bool(jnp.all(jnp.isfinite(out)))
    assert bool(jnp.all((out >= 0.0) & (out <= 1.0)))   # sigmoid range
    print("KERNEL_OK")
</pallas_src>

<mosaic_0001>
module attributes {stable_mosaic.version = 11 : i64} {
  func.func @_block_kernel(%arg0: i32, %arg1: memref<1x288xf32, #tpu.memory_space<vmem>>, %arg2: memref<1x16x288xbf16, #tpu.memory_space<vmem>>, %arg3: memref<16x144xbf16, #tpu.memory_space<vmem>>, %arg4: memref<16x144xbf16, #tpu.memory_space<vmem>>, %arg5: memref<16x3xf32, #tpu.memory_space<vmem>>, %arg6: memref<16x3xf32, #tpu.memory_space<vmem>>, %arg7: memref<1x16x288xbf16, #tpu.memory_space<vmem>>, %arg8: memref<16x435xbf16, #tpu.memory_space<vmem>>, %arg9: memref<144x288xbf16, #tpu.memory_space<vmem>>) attributes {dimension_semantics = [#tpu.dimension_semantics<parallel>], iteration_bounds = array<i64: 2>, scalar_prefetch = 0 : i64, scratch_operands = 2 : i64, tpu.core_type = #tpu.core_type<tc>, window_params = [{pipeline_mode = #tpu.pipeline_mode<synchronous>, transform_indices = @transform_0, window_bounds = array<i64: 1, 288>}, {transform_indices = @transform_1, window_bounds = array<i64: 1, 16, 288>}, {pipeline_mode = #tpu.pipeline_mode<synchronous>, transform_indices = @transform_2, window_bounds = array<i64: 16, 144>}, {pipeline_mode = #tpu.pipeline_mode<synchronous>, transform_indices = @transform_3, window_bounds = array<i64: 16, 144>}, {pipeline_mode = #tpu.pipeline_mode<synchronous>, transform_indices = @transform_4, window_bounds = array<i64: 16, 3>}, {pipeline_mode = #tpu.pipeline_mode<synchronous>, transform_indices = @transform_5, window_bounds = array<i64: 16, 3>}, {transform_indices = @transform_6, window_bounds = array<i64: 1, 16, 288>}]} {
    %c0 = arith.constant 0 : index
    %c0_0 = arith.constant 0 : index
    %0 = vector.load %arg1[%c0, %c0_0] : memref<1x288xf32, #tpu.memory_space<vmem>>, vector<1x288xf32>
    %cst = arith.constant 0.000000e+00 : bf16
    %1 = vector.broadcast %cst : bf16 to vector<16x435xbf16>
    %c0_1 = arith.constant 0 : index
    %c0_2 = arith.constant 0 : index
    %2 = vector.load %arg8[%c0_1, %c0_2] : memref<16x435xbf16, #tpu.memory_space<vmem>>, vector<16x435xbf16>
    tpu.vector_store %arg8[%c0_1, %c0_2], %1 {strides = array<i32>} : memref<16x435xbf16, #tpu.memory_space<vmem>>, vector<16x435xbf16>,
    %c0_3 = arith.constant 0 : index
    %c0_4 = arith.constant 0 : index
    %c0_5 = arith.constant 0 : index
    %3 = vector.load %arg2[%c0_3, %c0_4, %c0_5] : memref<1x16x288xbf16, #tpu.memory_space<vmem>>, vector<1x16x288xbf16>
    %4 = vector.shape_cast %3 : vector<1x16x288xbf16> to vector<16x288xbf16>
    %c0_6 = arith.constant 0 : index
    %c128 = arith.constant 128 : index
    %5 = vector.load %arg8[%c0_6, %c128] : memref<16x435xbf16, #tpu.memory_space<vmem>>, vector<16x288xbf16>
    tpu.vector_store %arg8[%c0_6, %c128], %4 {strides = array<i32>} : memref<16x435xbf16, #tpu.memory_space<vmem>>, vector<16x288xbf16>,
    %c0_7 = arith.constant 0 : index
    %c0_8 = arith.constant 0 : index
    %6 = vector.load %arg3[%c0_7, %c0_8] : memref<16x144xbf16, #tpu.memory_space<vmem>>, vector<16x144xbf16>
    %c0_9 = arith.constant 0 : index
    %c109 = arith.constant 109 : index
    %7 = vector.load %arg8[%c0_9, %c109] : memref<16x435xbf16, #tpu.memory_space<vmem>>, vector<16x288xbf16>
    %c0_10 = arith.constant 0 : index
    %c0_11 = arith.constant 0 : index
    %8 = vector.load %arg9[%c0_10, %c0_11] : memref<144x288xbf16, #tpu.memory_space<vmem>>, vector<16x288xbf16>
    tpu.vector_store %arg9[%c0_10, %c0_11], %7 {strides = array<i32>} : memref<144x288xbf16, #tpu.memory_space<vmem>>, vector<16x288xbf16>,
    %c0_12 = arith.constant 0 : index
    %c110 = arith.constant 110 : index
    %9 = vector.load %arg8[%c0_12, %c110] : memref<16x435xbf16, #tpu.memory_space<vmem>>, vector<16x288xbf16>
    %c16 = arith.constant 16 : index
    %c0_13 = arith.constant 0 : index
    %10 = vector.load %arg9[%c16, %c0_13] : memref<144x288xbf16, #tpu.memory_space<vmem>>, vector<16x288xbf16>
    tpu.vector_store %arg9[%c16, %c0_13], %9 {strides = array<i32>} : memref<144x288xbf16, #tpu.memory_space<vmem>>, vector<16x288xbf16>,
    %c0_14 = arith.constant 0 : index
    %c111 = arith.constant 111 : index
    %11 = vector.load %arg8[%c0_14, %c111] : memref<16x435xbf16, #tpu.memory_space<vmem>>, vector<16x288xbf16>
    %c32 = arith.constant 32 : index
    %c0_15 = arith.constant 0 : index
    %12 = vector.load %arg9[%c32, %c0_15] : memref<144x288xbf16, #tpu.memory_space<vmem>>, vector<16x288xbf16>
    tpu.vector_store %arg9[%c32, %c0_15], %11 {strides = array<i32>} : memref<144x288xbf16, #tpu.memory_space<vmem>>, vector<16x288xbf16>,
    %c0_16 = arith.constant 0 : index
    %c127 = arith.constant 127 : index
    %13 = vector.load %arg8[%c0_16, %c127] : memref<16x435xbf16, #tpu.memory_space<vmem>>, vector<16x288xbf16>
    %c48 = arith.constant 48 : index
    %c0_17 = arith.constant 0 : index
    %14 = vector.load %arg9[%c48, %c0_17] : memref<144x288xbf16, #tpu.memory_space<vmem>>, vector<16x288xbf16>
    tpu.vector_store %arg9[%c48, %c0_17], %13 {strides = array<i32>} : memref<144x288xbf16, #tpu.memory_space<vmem>>, vector<16x288xbf16>,
    %c0_18 = arith.constant 0 : index
    %c128_19 = arith.constant 128 : index
    %15 = vector.load %arg8[%c0_18, %c128_19] : memref<16x435xbf16, #tpu.memory_space<vmem>>, vector<16x288xbf16>
    %c64 = arith.constant 64 : index
    %c0_20 = arith.constant 0 : index
    %16 = vector.load %arg9[%c64, %c0_20] : memref<144x288xbf16, #tpu.memory_space<vmem>>, vector<16x288xbf16>
    tpu.vector_store %arg9[%c64, %c0_20], %15 {strides = array<i32>} : memref<144x288xbf16, #tpu.memory_space<vmem>>, vector<16x288xbf16>,
    %c0_21 = arith.constant 0 : index
    %c129 = arith.constant 129 : index
    %17 = vector.load %arg8[%c0_21, %c129] : memref<16x435xbf16, #tpu.memory_space<vmem>>, vector<16x288xbf16>
    %c80 = arith.constant 80 : index
    %c0_22 = arith.constant 0 : index
    %18 = vector.load %arg9[%c80, %c0_22] : memref<144x288xbf16, #tpu.memory_space<vmem>>, vector<16x288xbf16>
    tpu.vector_store %arg9[%c80, %c0_22], %17 {strides = array<i32>} : memref<144x288xbf16, #tpu.memory_space<vmem>>, vector<16x288xbf16>,
    %c0_23 = arith.constant 0 : index
    %c145 = arith.constant 145 : index
    %19 = vector.load %arg8[%c0_23, %c145] : memref<16x435xbf16, #tpu.memory_space<vmem>>, vector<16x288xbf16>
    %c96 = arith.constant 96 : index
    %c0_24 = arith.constant 0 : index
    %20 = vector.load %arg9[%c96, %c0_24] : memref<144x288xbf16, #tpu.memory_space<vmem>>, vector<16x288xbf16>
    tpu.vector_store %arg9[%c96, %c0_24], %19 {strides = array<i32>} : memref<144x288xbf16, #tpu.memory_space<vmem>>, vector<16x288xbf16>,
    %c0_25 = arith.constant 0 : index
    %c146 = arith.constant 146 : index
    %21 = vector.load %arg8[%c0_25, %c146] : memref<16x435xbf16, #tpu.memory_space<vmem>>, vector<16x288xbf16>
    %c112 = arith.constant 112 : index
    %c0_26 = arith.constant 0 : index
    %22 = vector.load %arg9[%c112, %c0_26] : memref<144x288xbf16, #tpu.memory_space<vmem>>, vector<16x288xbf16>
    tpu.vector_store %arg9[%c112, %c0_26], %21 {strides = array<i32>} : memref<144x288xbf16, #tpu.memory_space<vmem>>, vector<16x288xbf16>,
    %c0_27 = arith.constant 0 : index
    %c147 = arith.constant 147 : index
    %23 = vector.load %arg8[%c0_27, %c147] : memref<16x435xbf16, #tpu.memory_space<vmem>>, vector<16x288xbf16>
    %c128_28 = arith.constant 128 : index
    %c0_29 = arith.constant 0 : index
    %24 = vector.load %arg9[%c128_28, %c0_29] : memref<144x288xbf16, #tpu.memory_space<vmem>>, vector<16x288xbf16>
    tpu.vector_store %arg9[%c128_28, %c0_29], %23 {strides = array<i32>} : memref<144x288xbf16, #tpu.memory_space<vmem>>, vector<16x288xbf16>,
    %c0_30 = arith.constant 0 : index
    %c0_31 = arith.constant 0 : index
    %25 = vector.load %arg9[%c0_30, %c0_31] : memref<144x288xbf16, #tpu.memory_space<vmem>>, vector<144x288xbf16>
    %cst_32 = arith.constant dense<0.000000e+00> : vector<16x288xf32>
    %26 = tpu.matmul %6, %25, %cst_32 {dimension_numbers = #tpu.dot_dimension_numbers<[1], [0], [0], [1], [0, 0, 1, 1], [], []>} : vector<16x144xbf16>, vector<144x288xbf16>, vector<16x288xf32> -> vector<16x288xf32>
    %c0_33 = arith.constant 0 : index
    %c0_34 = arith.constant 0 : index
    %27 = vector.load %arg5[%c0_33, %c0_34] : memref<16x3xf32, #tpu.memory_space<vmem>>, vector<16x3xf32>
    %28 = vector.extract_strided_slice %27 {offsets = [0, 0], sizes = [16, 1], strides = [1, 1]} : vector<16x3xf32> to vector<16x1xf32>
    %29 = vector.broadcast %28 : vector<16x1xf32> to vector<16x288xf32>
    %30 = arith.addf %26, %29 : vector<16x288xf32>
    %cst_35 = arith.constant 0.000000e+00 : f32
    %31 = vector.broadcast %cst_35 : f32 to vector<16x288xf32>
    %32 = arith.cmpf oge, %30, %31 : vector<16x288xf32>
    %cst_36 = arith.constant 0.00999999977 : f32
    %33 = vector.broadcast %cst_36 : f32 to vector<16x288xf32>
    %34 = arith.mulf %33, %30 : vector<16x288xf32>
    %35 = arith.select %32, %30, %34 : vector<16x288xi1>, vector<16x288xf32>
    %36 = vector.extract_strided_slice %27 {offsets = [0, 1], sizes = [16, 1], strides = [1, 1]} : vector<16x3xf32> to vector<16x1xf32>
    %37 = vector.broadcast %36 : vector<16x1xf32> to vector<16x288xf32>
    %38 = arith.mulf %35, %37 : vector<16x288xf32>
    %39 = vector.extract_strided_slice %27 {offsets = [0, 2], sizes = [16, 1], strides = [1, 1]} : vector<16x3xf32> to vector<16x1xf32>
    %40 = vector.broadcast %39 : vector<16x1xf32> to vector<16x288xf32>
    %41 = arith.addf %38, %40 : vector<16x288xf32>
    %42 = vector.broadcast %0 : vector<1x288xf32> to vector<16x288xf32>
    %43 = arith.mulf %41, %42 : vector<16x288xf32>
    %44 = arith.truncf %43 : vector<16x288xf32> to vector<16x288xbf16>
    %c0_37 = arith.constant 0 : index
    %c128_38 = arith.constant 128 : index
    %45 = vector.load %arg8[%c0_37, %c128_38] : memref<16x435xbf16, #tpu.memory_space<vmem>>, vector<16x288xbf16>
    tpu.vector_store %arg8[%c0_37, %c128_38], %44 {strides = array<i32>} : memref<16x435xbf16, #tpu.memory_space<vmem>>, vector<16x288xbf16>,
    %c0_39 = arith.constant 0 : index
    %c0_40 = arith.constant 0 : index
    %46 = vector.load %arg4[%c0_39, %c0_40] : memref<16x144xbf16, #tpu.memory_space<vmem>>, vector<16x144xbf16>
    %c0_41 = arith.constant 0 : index
    %c109_42 = arith.constant 109 : index
    %47 = vector.load %arg8[%c0_41, %c109_42] : memref<16x435xbf16, #tpu.memory_space<vmem>>, vector<16x288xbf16>
    %c0_43 = arith.constant 0 : index
    %c0_44 = arith.constant 0 : index
    %48 = vector.load %arg9[%c0_43, %c0_44] : memref<144x288xbf16, #tpu.memory_space<vmem>>, vector<16x288xbf16>
    tpu.vector_store %arg9[%c0_43, %c0_44], %47 {strides = array<i32>} : memref<144x288xbf16, #tpu.memory_space<vmem>>, vector<16x288xbf16>,
    %c0_45 = arith.constant 0 : index
    %c110_46 = arith.constant 110 : index
    %49 = vector.load %arg8[%c0_45, %c110_46] : memref<16x435xbf16, #tpu.memory_space<vmem>>, vector<16x288xbf16>
    %c16_47 = arith.constant 16 : index
    %c0_48 = arith.constant 0 : index
    %50 = vector.load %arg9[%c16_47, %c0_48] : memref<144x288xbf16, #tpu.memory_space<vmem>>, vector<16x288xbf16>
    tpu.vector_store %arg9[%c16_47, %c0_48], %49 {strides = array<i32>} : memref<144x288xbf16, #tpu.memory_space<vmem>>, vector<16x288xbf16>,
    %c0_49 = arith.constant 0 : index
    %c111_50 = arith.constant 111 : index
    %51 = vector.load %arg8[%c0_49, %c111_50] : memref<16x435xbf16, #tpu.memory_space<vmem>>, vector<16x288xbf16>
    %c32_51 = arith.constant 32 : index
    %c0_52 = arith.constant 0 : index
    %52 = vector.load %arg9[%c32_51, %c0_52] : memref<144x288xbf16, #tpu.memory_space<vmem>>, vector<16x288xbf16>
    tpu.vector_store %arg9[%c32_51, %c0_52], %51 {strides = array<i32>} : memref<144x288xbf16, #tpu.memory_space<vmem>>, vector<16x288xbf16>,
    %c0_53 = arith.constant 0 : index
    %c127_54 = arith.constant 127 : index
    %53 = vector.load %arg8[%c0_53, %c127_54] : memref<16x435xbf16, #tpu.memory_space<vmem>>, vector<16x288xbf16>
    %c48_55 = arith.constant 48 : index
    %c0_56 = arith.constant 0 : index
    %54 = vector.load %arg9[%c48_55, %c0_56] : memref<144x288xbf16, #tpu.memory_space<vmem>>, vector<16x288xbf16>
    tpu.vector_store %arg9[%c48_55, %c0_56], %53 {strides = array<i32>} : memref<144x288xbf16, #tpu.memory_space<vmem>>, vector<16x288xbf16>,
    %c0_57 = arith.constant 0 : index
    %c128_58 = arith.constant 128 : index
    %55 = vector.load %arg8[%c0_57, %c128_58] : memref<16x435xbf16, #tpu.memory_space<vmem>>, vector<16x288xbf16>
    %c64_59 = arith.constant 64 : index
    %c0_60 = arith.constant 0 : index
    %56 = vector.load %arg9[%c64_59, %c0_60] : memref<144x288xbf16, #tpu.memory_space<vmem>>, vector<16x288xbf16>
    tpu.vector_store %arg9[%c64_59, %c0_60], %55 {strides = array<i32>} : memref<144x288xbf16, #tpu.memory_space<vmem>>, vector<16x288xbf16>,
    %c0_61 = arith.constant 0 : index
    %c129_62 = arith.constant 129 : index
    %57 = vector.load %arg8[%c0_61, %c129_62] : memref<16x435xbf16, #tpu.memory_space<vmem>>, vector<16x288xbf16>
    %c80_63 = arith.constant 80 : index
    %c0_64 = arith.constant 0 : index
    %58 = vector.load %arg9[%c80_63, %c0_64] : memref<144x288xbf16, #tpu.memory_space<vmem>>, vector<16x288xbf16>
    tpu.vector_store %arg9[%c80_63, %c0_64], %57 {strides = array<i32>} : memref<144x288xbf16, #tpu.memory_space<vmem>>, vector<16x288xbf16>,
    %c0_65 = arith.constant 0 : index
    %c145_66 = arith.constant 145 : index
    %59 = vector.load %arg8[%c0_65, %c145_66] : memref<16x435xbf16, #tpu.memory_space<vmem>>, vector<16x288xbf16>
    %c96_67 = arith.constant 96 : index
    %c0_68 = arith.constant 0 : index
    %60 = vector.load %arg9[%c96_67, %c0_68] : memref<144x288xbf16, #tpu.memory_space<vmem>>, vector<16x288xbf16>
    tpu.vector_store %arg9[%c96_67, %c0_68], %59 {strides = array<i32>} : memref<144x288xbf16, #tpu.memory_space<vmem>>, vector<16x288xbf16>,
    %c0_69 = arith.constant 0 : index
    %c146_70 = arith.constant 146 : index
    %61 = vector.load %arg8[%c0_69, %c146_70] : memref<16x435xbf16, #tpu.memory_space<vmem>>, vector<16x288xbf16>
    %c112_71 = arith.constant 112 : index
    %c0_72 = arith.constant 0 : index
    %62 = vector.load %arg9[%c112_71, %c0_72] : memref<144x288xbf16, #tpu.memory_space<vmem>>, vector<16x288xbf16>
    tpu.vector_store %arg9[%c112_71, %c0_72], %61 {strides = array<i32>} : memref<144x288xbf16, #tpu.memory_space<vmem>>, vector<16x288xbf16>,
    %c0_73 = arith.constant 0 : index
    %c147_74 = arith.constant 147 : index
    %63 = vector.load %arg8[%c0_73, %c147_74] : memref<16x435xbf16, #tpu.memory_space<vmem>>, vector<16x288xbf16>
    %c128_75 = arith.constant 128 : index
    %c0_76 = arith.constant 0 : index
    %64 = vector.load %arg9[%c128_75, %c0_76] : memref<144x288xbf16, #tpu.memory_space<vmem>>, vector<16x288xbf16>
    tpu.vector_store %arg9[%c128_75, %c0_76], %63 {strides = array<i32>} : memref<144x288xbf16, #tpu.memory_space<vmem>>, vector<16x288xbf16>,
    %c0_77 = arith.constant 0 : index
    %c0_78 = arith.constant 0 : index
    %65 = vector.load %arg9[%c0_77, %c0_78] : memref<144x288xbf16, #tpu.memory_space<vmem>>, vector<144x288xbf16>
    %cst_79 = arith.constant dense<0.000000e+00> : vector<16x288xf32>
    %66 = tpu.matmul %46, %65, %cst_79 {dimension_numbers = #tpu.dot_dimension_numbers<[1], [0], [0], [1], [0, 0, 1, 1], [], []>} : vector<16x144xbf16>, vector<144x288xbf16>, vector<16x288xf32> -> vector<16x288xf32>
    %c0_80 = arith.constant 0 : index
    %c0_81 = arith.constant 0 : index
    %67 = vector.load %arg6[%c0_80, %c0_81] : memref<16x3xf32, #tpu.memory_space<vmem>>, vector<16x3xf32>
    %68 = vector.extract_strided_slice %67 {offsets = [0, 0], sizes = [16, 1], strides = [1, 1]} : vector<16x3xf32> to vector<16x1xf32>
    %69 = vector.broadcast %68 : vector<16x1xf32> to vector<16x288xf32>
    %70 = arith.addf %66, %69 : vector<16x288xf32>
    %cst_82 = arith.constant 0.000000e+00 : f32
    %71 = vector.broadcast %cst_82 : f32 to vector<16x288xf32>
    %72 = arith.cmpf oge, %70, %71 : vector<16x288xf32>
    %cst_83 = arith.constant 0.00999999977 : f32
    %73 = vector.broadcast %cst_83 : f32 to vector<16x288xf32>
    %74 = arith.mulf %73, %70 : vector<16x288xf32>
    %75 = arith.select %72, %70, %74 : vector<16x288xi1>, vector<16x288xf32>
    %76 = vector.extract_strided_slice %67 {offsets = [0, 1], sizes = [16, 1], strides = [1, 1]} : vector<16x3xf32> to vector<16x1xf32>
    %77 = vector.broadcast %76 : vector<16x1xf32> to vector<16x288xf32>
    %78 = arith.mulf %75, %77 : vector<16x288xf32>
    %79 = vector.extract_strided_slice %67 {offsets = [0, 2], sizes = [16, 1], strides = [1, 1]} : vector<16x3xf32> to vector<16x1xf32>
    %80 = vector.broadcast %79 : vector<16x1xf32> to vector<16x288xf32>
    %81 = arith.addf %78, %80 : vector<16x288xf32>
    %82 = vector.broadcast %0 : vector<1x288xf32> to vector<16x288xf32>
    %83 = arith.mulf %81, %82 : vector<16x288xf32>
    %84 = arith.truncf %83 : vector<16x288xf32> to vector<16x288xbf16>
    %c0_84 = arith.constant 0 : index
    %c0_85 = arith.constant 0 : index
    %c0_86 = arith.constant 0 : index
    %85 = vector.load %arg7[%c0_84, %c0_85, %c0_86] : memref<1x16x288xbf16, #tpu.memory_space<vmem>>, vector<1x16x288xbf16>
    %86 = vector.shape_cast %85 : vector<1x16x288xbf16> to vector<16x288xbf16>
    %87 = vector.shape_cast %84 : vector<16x288xbf16> to vector<1x16x288xbf16>
    tpu.vector_store %arg7[%c0_84, %c0_85, %c0_86], %87 {strides = array<i32>} : memref<1x16x288xbf16, #tpu.memory_space<vmem>>, vector<1x16x288xbf16>,
    return
  }
  func.func @transform_0(%arg0: i32) -> (i32, i32) {
    %c0_i32 = arith.constant 0 : i32
    %c0_i32_0 = arith.constant 0 : i32
    %c0_i32_1 = arith.constant 0 : i32
    return %c0_i32, %c0_i32_0 : i32, i32
  }
  func.func @transform_1(%arg0: i32) -> (i32, i32, i32) {
    %c0_i32 = arith.constant 0 : i32
    %c0_i32_0 = arith.constant 0 : i32
    %c0_i32_1 = arith.constant 0 : i32
    return %arg0, %c0_i32, %c0_i32_0 : i32, i32, i32
  }
  func.func @transform_2(%arg0: i32) -> (i32, i32) {
    %c0_i32 = arith.constant 0 : i32
    %c0_i32_0 = arith.constant 0 : i32
    %c0_i32_1 = arith.constant 0 : i32
    return %c0_i32, %c0_i32_0 : i32, i32
  }
  func.func @transform_3(%arg0: i32) -> (i32, i32) {
    %c0_i32 = arith.constant 0 : i32
    %c0_i32_0 = arith.constant 0 : i32
    %c0_i32_1 = arith.constant 0 : i32
    return %c0_i32, %c0_i32_0 : i32, i32
  }
  func.func @transform_4(%arg0: i32) -> (i32, i32) {
    %c0_i32 = arith.constant 0 : i32
    %c0_i32_0 = arith.constant 0 : i32
    %c0_i32_1 = arith.constant 0 : i32
    return %c0_i32, %c0_i32_0 : i32, i32
  }
  func.func @transform_5(%arg0: i32) -> (i32, i32) {
    %c0_i32 = arith.constant 0 : i32
    %c0_i32_0 = arith.constant 0 : i32
    %c0_i32_1 = arith.constant 0 : i32
    return %c0_i32, %c0_i32_0 : i32, i32
  }
  func.func @transform_6(%arg0: i32) -> (i32, i32, i32) {
    %c0_i32 = arith.constant 0 : i32
    %c0_i32_0 = arith.constant 0 : i32
    %c0_i32_1 = arith.constant 0 : i32
    return %arg0, %c0_i32, %c0_i32_0 : i32, i32, i32
  }
}

module attributes {stable_mosaic.version = 11 : i64} {
  func.func @_block_kernel(%arg0: i32, %arg1: memref<1x80xf32, #tpu.memory_space<vmem>>, %arg2: memref<1x16x80xbf16, #tpu.memory_space<vmem>>, %arg3: memref<16x144xbf16, #tpu.memory_space<vmem>>, %arg4: memref<16x144xbf16, #tpu.memory_space<vmem>>, %arg5: memref<16x3xf32, #tpu.memory_space<vmem>>, %arg6: memref<16x3xf32, #tpu.memory_space<vmem>>, %arg7: memref<1x16x80xbf16, #tpu.memory_space<vmem>>, %arg8: memref<16x219xbf16, #tpu.memory_space<vmem>>, %arg9: memref<144x80xbf16, #tpu.memory_space<vmem>>) attributes {dimension_semantics = [#tpu.dimension_semantics<parallel>], iteration_bounds = array<i64: 2>, scalar_prefetch = 0 : i64, scratch_operands = 2 : i64, tpu.core_type = #tpu.core_type<tc>, window_params = [{pipeline_mode = #tpu.pipeline_mode<synchronous>, transform_indices = @transform_0, window_bounds = array<i64: 1, 80>}, {transform_indices = @transform_1, window_bounds = array<i64: 1, 16, 80>}, {pipeline_mode = #tpu.pipeline_mode<synchronous>, transform_indices = @transform_2, window_bounds = array<i64: 16, 144>}, {pipeline_mode = #tpu.pipeline_mode<synchronous>, transform_indices = @transform_3, window_bounds = array<i64: 16, 144>}, {pipeline_mode = #tpu.pipeline_mode<synchronous>, transform_indices = @transform_4, window_bounds = array<i64: 16, 3>}, {pipeline_mode = #tpu.pipeline_mode<synchronous>, transform_indices = @transform_5, window_bounds = array<i64: 16, 3>}, {transform_indices = @transform_6, window_bounds = array<i64: 1, 16, 80>}]} {
    %c0 = arith.constant 0 : index
    %c0_0 = arith.constant 0 : index
    %0 = vector.load %arg1[%c0, %c0_0] : memref<1x80xf32, #tpu.memory_space<vmem>>, vector<1x80xf32>
    %cst = arith.constant 0.000000e+00 : bf16
    %1 = vector.broadcast %cst : bf16 to vector<16x219xbf16>
    %c0_1 = arith.constant 0 : index
    %c0_2 = arith.constant 0 : index
    %2 = vector.load %arg8[%c0_1, %c0_2] : memref<16x219xbf16, #tpu.memory_space<vmem>>, vector<16x219xbf16>
    tpu.vector_store %arg8[%c0_1, %c0_2], %1 {strides = array<i32>} : memref<16x219xbf16, #tpu.memory_space<vmem>>, vector<16x219xbf16>,
    %c0_3 = arith.constant 0 : index
    %c0_4 = arith.constant 0 : index
    %c0_5 = arith.constant 0 : index
    %3 = vector.load %arg2[%c0_3, %c0_4, %c0_5] : memref<1x16x80xbf16, #tpu.memory_space<vmem>>, vector<1x16x80xbf16>
    %4 = vector.shape_cast %3 : vector<1x16x80xbf16> to vector<16x80xbf16>
    %c0_6 = arith.constant 0 : index
    %c128 = arith.constant 128 : index
    %5 = vector.load %arg8[%c0_6, %c128] : memref<16x219xbf16, #tpu.memory_space<vmem>>, vector<16x80xbf16>
    tpu.vector_store %arg8[%c0_6, %c128], %4 {strides = array<i32>} : memref<16x219xbf16, #tpu.memory_space<vmem>>, vector<16x80xbf16>,
    %c0_7 = arith.constant 0 : index
    %c0_8 = arith.constant 0 : index
    %6 = vector.load %arg3[%c0_7, %c0_8] : memref<16x144xbf16, #tpu.memory_space<vmem>>, vector<16x144xbf16>
    %c0_9 = arith.constant 0 : index
    %c117 = arith.constant 117 : index
    %7 = vector.load %arg8[%c0_9, %c117] : memref<16x219xbf16, #tpu.memory_space<vmem>>, vector<16x80xbf16>
    %c0_10 = arith.constant 0 : index
    %c0_11 = arith.constant 0 : index
    %8 = vector.load %arg9[%c0_10, %c0_11] : memref<144x80xbf16, #tpu.memory_space<vmem>>, vector<16x80xbf16>
    tpu.vector_store %arg9[%c0_10, %c0_11], %7 {strides = array<i32>} : memref<144x80xbf16, #tpu.memory_space<vmem>>, vector<16x80xbf16>,
    %c0_12 = arith.constant 0 : index
    %c118 = arith.constant 118 : index
    %9 = vector.load %arg8[%c0_12, %c118] : memref<16x219xbf16, #tpu.memory_space<vmem>>, vector<16x80xbf16>
    %c16 = arith.constant 16 : index
    %c0_13 = arith.constant 0 : index
    %10 = vector.load %arg9[%c16, %c0_13] : memref<144x80xbf16, #tpu.memory_space<vmem>>, vector<16x80xbf16>
    tpu.vector_store %arg9[%c16, %c0_13], %9 {strides = array<i32>} : memref<144x80xbf16, #tpu.memory_space<vmem>>, vector<16x80xbf16>,
    %c0_14 = arith.constant 0 : index
    %c119 = arith.constant 119 : index
    %11 = vector.load %arg8[%c0_14, %c119] : memref<16x219xbf16, #tpu.memory_space<vmem>>, vector<16x80xbf16>
    %c32 = arith.constant 32 : index
    %c0_15 = arith.constant 0 : index
    %12 = vector.load %arg9[%c32, %c0_15] : memref<144x80xbf16, #tpu.memory_space<vmem>>, vector<16x80xbf16>
    tpu.vector_store %arg9[%c32, %c0_15], %11 {strides = array<i32>} : memref<144x80xbf16, #tpu.memory_space<vmem>>, vector<16x80xbf16>,
    %c0_16 = arith.constant 0 : index
    %c127 = arith.constant 127 : index
    %13 = vector.load %arg8[%c0_16, %c127] : memref<16x219xbf16, #tpu.memory_space<vmem>>, vector<16x80xbf16>
    %c48 = arith.constant 48 : index
    %c0_17 = arith.constant 0 : index
    %14 = vector.load %arg9[%c48, %c0_17] : memref<144x80xbf16, #tpu.memory_space<vmem>>, vector<16x80xbf16>
    tpu.vector_store %arg9[%c48, %c0_17], %13 {strides = array<i32>} : memref<144x80xbf16, #tpu.memory_space<vmem>>, vector<16x80xbf16>,
    %c0_18 = arith.constant 0 : index
    %c128_19 = arith.constant 128 : index
    %15 = vector.load %arg8[%c0_18, %c128_19] : memref<16x219xbf16, #tpu.memory_space<vmem>>, vector<16x80xbf16>
    %c64 = arith.constant 64 : index
    %c0_20 = arith.constant 0 : index
    %16 = vector.load %arg9[%c64, %c0_20] : memref<144x80xbf16, #tpu.memory_space<vmem>>, vector<16x80xbf16>
    tpu.vector_store %arg9[%c64, %c0_20], %15 {strides = array<i32>} : memref<144x80xbf16, #tpu.memory_space<vmem>>, vector<16x80xbf16>,
    %c0_21 = arith.constant 0 : index
    %c129 = arith.constant 129 : index
    %17 = vector.load %arg8[%c0_21, %c129] : memref<16x219xbf16, #tpu.memory_space<vmem>>, vector<16x80xbf16>
    %c80 = arith.constant 80 : index
    %c0_22 = arith.constant 0 : index
    %18 = vector.load %arg9[%c80, %c0_22] : memref<144x80xbf16, #tpu.memory_space<vmem>>, vector<16x80xbf16>
    tpu.vector_store %arg9[%c80, %c0_22], %17 {strides = array<i32>} : memref<144x80xbf16, #tpu.memory_space<vmem>>, vector<16x80xbf16>,
    %c0_23 = arith.constant 0 : index
    %c137 = arith.constant 137 : index
    %19 = vector.load %arg8[%c0_23, %c137] : memref<16x219xbf16, #tpu.memory_space<vmem>>, vector<16x80xbf16>
    %c96 = arith.constant 96 : index
    %c0_24 = arith.constant 0 : index
    %20 = vector.load %arg9[%c96, %c0_24] : memref<144x80xbf16, #tpu.memory_space<vmem>>, vector<16x80xbf16>
    tpu.vector_store %arg9[%c96, %c0_24], %19 {strides = array<i32>} : memref<144x80xbf16, #tpu.memory_space<vmem>>, vector<16x80xbf16>,
    %c0_25 = arith.constant 0 : index
    %c138 = arith.constant 138 : index
    %21 = vector.load %arg8[%c0_25, %c138] : memref<16x219xbf16, #tpu.memory_space<vmem>>, vector<16x80xbf16>
    %c112 = arith.constant 112 : index
    %c0_26 = arith.constant 0 : index
    %22 = vector.load %arg9[%c112, %c0_26] : memref<144x80xbf16, #tpu.memory_space<vmem>>, vector<16x80xbf16>
    tpu.vector_store %arg9[%c112, %c0_26], %21 {strides = array<i32>} : memref<144x80xbf16, #tpu.memory_space<vmem>>, vector<16x80xbf16>,
    %c0_27 = arith.constant 0 : index
    %c139 = arith.constant 139 : index
    %23 = vector.load %arg8[%c0_27, %c139] : memref<16x219xbf16, #tpu.memory_space<vmem>>, vector<16x80xbf16>
    %c128_28 = arith.constant 128 : index
    %c0_29 = arith.constant 0 : index
    %24 = vector.load %arg9[%c128_28, %c0_29] : memref<144x80xbf16, #tpu.memory_space<vmem>>, vector<16x80xbf16>
    tpu.vector_store %arg9[%c128_28, %c0_29], %23 {strides = array<i32>} : memref<144x80xbf16, #tpu.memory_space<vmem>>, vector<16x80xbf16>,
    %c0_30 = arith.constant 0 : index
    %c0_31 = arith.constant 0 : index
    %25 = vector.load %arg9[%c0_30, %c0_31] : memref<144x80xbf16, #tpu.memory_space<vmem>>, vector<144x80xbf16>
    %cst_32 = arith.constant dense<0.000000e+00> : vector<16x80xf32>
    %26 = tpu.matmul %6, %25, %cst_32 {dimension_numbers = #tpu.dot_dimension_numbers<[1], [0], [0], [1], [0, 0, 1, 1], [], []>} : vector<16x144xbf16>, vector<144x80xbf16>, vector<16x80xf32> -> vector<16x80xf32>
    %c0_33 = arith.constant 0 : index
    %c0_34 = arith.constant 0 : index
    %27 = vector.load %arg5[%c0_33, %c0_34] : memref<16x3xf32, #tpu.memory_space<vmem>>, vector<16x3xf32>
    %28 = vector.extract_strided_slice %27 {offsets = [0, 0], sizes = [16, 1], strides = [1, 1]} : vector<16x3xf32> to vector<16x1xf32>
    %29 = vector.broadcast %28 : vector<16x1xf32> to vector<16x80xf32>
    %30 = arith.addf %26, %29 : vector<16x80xf32>
    %cst_35 = arith.constant 0.000000e+00 : f32
    %31 = vector.broadcast %cst_35 : f32 to vector<16x80xf32>
    %32 = arith.cmpf oge, %30, %31 : vector<16x80xf32>
    %cst_36 = arith.constant 0.00999999977 : f32
    %33 = vector.broadcast %cst_36 : f32 to vector<16x80xf32>
    %34 = arith.mulf %33, %30 : vector<16x80xf32>
    %35 = arith.select %32, %30, %34 : vector<16x80xi1>, vector<16x80xf32>
    %36 = vector.extract_strided_slice %27 {offsets = [0, 1], sizes = [16, 1], strides = [1, 1]} : vector<16x3xf32> to vector<16x1xf32>
    %37 = vector.broadcast %36 : vector<16x1xf32> to vector<16x80xf32>
    %38 = arith.mulf %35, %37 : vector<16x80xf32>
    %39 = vector.extract_strided_slice %27 {offsets = [0, 2], sizes = [16, 1], strides = [1, 1]} : vector<16x3xf32> to vector<16x1xf32>
    %40 = vector.broadcast %39 : vector<16x1xf32> to vector<16x80xf32>
    %41 = arith.addf %38, %40 : vector<16x80xf32>
    %42 = vector.broadcast %0 : vector<1x80xf32> to vector<16x80xf32>
    %43 = arith.mulf %41, %42 : vector<16x80xf32>
    %44 = arith.truncf %43 : vector<16x80xf32> to vector<16x80xbf16>
    %c0_37 = arith.constant 0 : index
    %c128_38 = arith.constant 128 : index
    %45 = vector.load %arg8[%c0_37, %c128_38] : memref<16x219xbf16, #tpu.memory_space<vmem>>, vector<16x80xbf16>
    tpu.vector_store %arg8[%c0_37, %c128_38], %44 {strides = array<i32>} : memref<16x219xbf16, #tpu.memory_space<vmem>>, vector<16x80xbf16>,
    %c0_39 = arith.constant 0 : index
    %c0_40 = arith.constant 0 : index
    %46 = vector.load %arg4[%c0_39, %c0_40] : memref<16x144xbf16, #tpu.memory_space<vmem>>, vector<16x144xbf16>
    %c0_41 = arith.constant 0 : index
    %c117_42 = arith.constant 117 : index
    %47 = vector.load %arg8[%c0_41, %c117_42] : memref<16x219xbf16, #tpu.memory_space<vmem>>, vector<16x80xbf16>
    %c0_43 = arith.constant 0 : index
    %c0_44 = arith.constant 0 : index
    %48 = vector.load %arg9[%c0_43, %c0_44] : memref<144x80xbf16, #tpu.memory_space<vmem>>, vector<16x80xbf16>
    tpu.vector_store %arg9[%c0_43, %c0_44], %47 {strides = array<i32>} : memref<144x80xbf16, #tpu.memory_space<vmem>>, vector<16x80xbf16>,
    %c0_45 = arith.constant 0 : index
    %c118_46 = arith.constant 118 : index
    %49 = vector.load %arg8[%c0_45, %c118_46] : memref<16x219xbf16, #tpu.memory_space<vmem>>, vector<16x80xbf16>
    %c16_47 = arith.constant 16 : index
    %c0_48 = arith.constant 0 : index
    %50 = vector.load %arg9[%c16_47, %c0_48] : memref<144x80xbf16, #tpu.memory_space<vmem>>, vector<16x80xbf16>
    tpu.vector_store %arg9[%c16_47, %c0_48], %49 {strides = array<i32>} : memref<144x80xbf16, #tpu.memory_space<vmem>>, vector<16x80xbf16>,
    %c0_49 = arith.constant 0 : index
    %c119_50 = arith.constant 119 : index
    %51 = vector.load %arg8[%c0_49, %c119_50] : memref<16x219xbf16, #tpu.memory_space<vmem>>, vector<16x80xbf16>
    %c32_51 = arith.constant 32 : index
    %c0_52 = arith.constant 0 : index
    %52 = vector.load %arg9[%c32_51, %c0_52] : memref<144x80xbf16, #tpu.memory_space<vmem>>, vector<16x80xbf16>
    tpu.vector_store %arg9[%c32_51, %c0_52], %51 {strides = array<i32>} : memref<144x80xbf16, #tpu.memory_space<vmem>>, vector<16x80xbf16>,
    %c0_53 = arith.constant 0 : index
    %c127_54 = arith.constant 127 : index
    %53 = vector.load %arg8[%c0_53, %c127_54] : memref<16x219xbf16, #tpu.memory_space<vmem>>, vector<16x80xbf16>
    %c48_55 = arith.constant 48 : index
    %c0_56 = arith.constant 0 : index
    %54 = vector.load %arg9[%c48_55, %c0_56] : memref<144x80xbf16, #tpu.memory_space<vmem>>, vector<16x80xbf16>
    tpu.vector_store %arg9[%c48_55, %c0_56], %53 {strides = array<i32>} : memref<144x80xbf16, #tpu.memory_space<vmem>>, vector<16x80xbf16>,
    %c0_57 = arith.constant 0 : index
    %c128_58 = arith.constant 128 : index
    %55 = vector.load %arg8[%c0_57, %c128_58] : memref<16x219xbf16, #tpu.memory_space<vmem>>, vector<16x80xbf16>
    %c64_59 = arith.constant 64 : index
    %c0_60 = arith.constant 0 : index
    %56 = vector.load %arg9[%c64_59, %c0_60] : memref<144x80xbf16, #tpu.memory_space<vmem>>, vector<16x80xbf16>
    tpu.vector_store %arg9[%c64_59, %c0_60], %55 {strides = array<i32>} : memref<144x80xbf16, #tpu.memory_space<vmem>>, vector<16x80xbf16>,
    %c0_61 = arith.constant 0 : index
    %c129_62 = arith.constant 129 : index
    %57 = vector.load %arg8[%c0_61, %c129_62] : memref<16x219xbf16, #tpu.memory_space<vmem>>, vector<16x80xbf16>
    %c80_63 = arith.constant 80 : index
    %c0_64 = arith.constant 0 : index
    %58 = vector.load %arg9[%c80_63, %c0_64] : memref<144x80xbf16, #tpu.memory_space<vmem>>, vector<16x80xbf16>
    tpu.vector_store %arg9[%c80_63, %c0_64], %57 {strides = array<i32>} : memref<144x80xbf16, #tpu.memory_space<vmem>>, vector<16x80xbf16>,
    %c0_65 = arith.constant 0 : index
    %c137_66 = arith.constant 137 : index
    %59 = vector.load %arg8[%c0_65, %c137_66] : memref<16x219xbf16, #tpu.memory_space<vmem>>, vector<16x80xbf16>
    %c96_67 = arith.constant 96 : index
    %c0_68 = arith.constant 0 : index
    %60 = vector.load %arg9[%c96_67, %c0_68] : memref<144x80xbf16, #tpu.memory_space<vmem>>, vector<16x80xbf16>
    tpu.vector_store %arg9[%c96_67, %c0_68], %59 {strides = array<i32>} : memref<144x80xbf16, #tpu.memory_space<vmem>>, vector<16x80xbf16>,
    %c0_69 = arith.constant 0 : index
    %c138_70 = arith.constant 138 : index
    %61 = vector.load %arg8[%c0_69, %c138_70] : memref<16x219xbf16, #tpu.memory_space<vmem>>, vector<16x80xbf16>
    %c112_71 = arith.constant 112 : index
    %c0_72 = arith.constant 0 : index
    %62 = vector.load %arg9[%c112_71, %c0_72] : memref<144x80xbf16, #tpu.memory_space<vmem>>, vector<16x80xbf16>
    tpu.vector_store %arg9[%c112_71, %c0_72], %61 {strides = array<i32>} : memref<144x80xbf16, #tpu.memory_space<vmem>>, vector<16x80xbf16>,
    %c0_73 = arith.constant 0 : index
    %c139_74 = arith.constant 139 : index
    %63 = vector.load %arg8[%c0_73, %c139_74] : memref<16x219xbf16, #tpu.memory_space<vmem>>, vector<16x80xbf16>
    %c128_75 = arith.constant 128 : index
    %c0_76 = arith.constant 0 : index
    %64 = vector.load %arg9[%c128_75, %c0_76] : memref<144x80xbf16, #tpu.memory_space<vmem>>, vector<16x80xbf16>
    tpu.vector_store %arg9[%c128_75, %c0_76], %63 {strides = array<i32>} : memref<144x80xbf16, #tpu.memory_space<vmem>>, vector<16x80xbf16>,
    %c0_77 = arith.constant 0 : index
    %c0_78 = arith.constant 0 : index
    %65 = vector.load %arg9[%c0_77, %c0_78] : memref<144x80xbf16, #tpu.memory_space<vmem>>, vector<144x80xbf16>
    %cst_79 = arith.constant dense<0.000000e+00> : vector<16x80xf32>
    %66 = tpu.matmul %46, %65, %cst_79 {dimension_numbers = #tpu.dot_dimension_numbers<[1], [0], [0], [1], [0, 0, 1, 1], [], []>} : vector<16x144xbf16>, vector<144x80xbf16>, vector<16x80xf32> -> vector<16x80xf32>
    %c0_80 = arith.constant 0 : index
    %c0_81 = arith.constant 0 : index
    %67 = vector.load %arg6[%c0_80, %c0_81] : memref<16x3xf32, #tpu.memory_space<vmem>>, vector<16x3xf32>
    %68 = vector.extract_strided_slice %67 {offsets = [0, 0], sizes = [16, 1], strides = [1, 1]} : vector<16x3xf32> to vector<16x1xf32>
    %69 = vector.broadcast %68 : vector<16x1xf32> to vector<16x80xf32>
    %70 = arith.addf %66, %69 : vector<16x80xf32>
    %cst_82 = arith.constant 0.000000e+00 : f32
    %71 = vector.broadcast %cst_82 : f32 to vector<16x80xf32>
    %72 = arith.cmpf oge, %70, %71 : vector<16x80xf32>
    %cst_83 = arith.constant 0.00999999977 : f32
    %73 = vector.broadcast %cst_83 : f32 to vector<16x80xf32>
    %74 = arith.mulf %73, %70 : vector<16x80xf32>
    %75 = arith.select %72, %70, %74 : vector<16x80xi1>, vector<16x80xf32>
    %76 = vector.extract_strided_slice %67 {offsets = [0, 1], sizes = [16, 1], strides = [1, 1]} : vector<16x3xf32> to vector<16x1xf32>
    %77 = vector.broadcast %76 : vector<16x1xf32> to vector<16x80xf32>
    %78 = arith.mulf %75, %77 : vector<16x80xf32>
    %79 = vector.extract_strided_slice %67 {offsets = [0, 2], sizes = [16, 1], strides = [1, 1]} : vector<16x3xf32> to vector<16x1xf32>
    %80 = vector.broadcast %79 : vector<16x1xf32> to vector<16x80xf32>
    %81 = arith.addf %78, %80 : vector<16x80xf32>
    %82 = vector.broadcast %0 : vector<1x80xf32> to vector<16x80xf32>
    %83 = arith.mulf %81, %82 : vector<16x80xf32>
    %84 = arith.truncf %83 : vector<16x80xf32> to vector<16x80xbf16>
    %c0_84 = arith.constant 0 : index
    %c0_85 = arith.constant 0 : index
    %c0_86 = arith.constant 0 : index
    %85 = vector.load %arg7[%c0_84, %c0_85, %c0_86] : memref<1x16x80xbf16, #tpu.memory_space<vmem>>, vector<1x16x80xbf16>
    %86 = vector.shape_cast %85 : vector<1x16x80xbf16> to vector<16x80xbf16>
    %87 = vector.shape_cast %84 : vector<16x80xbf16> to vector<1x16x80xbf16>
    tpu.vector_store %arg7[%c0_84, %c0_85, %c0_86], %87 {strides = array<i32>} : memref<1x16x80xbf16, #tpu.memory_space<vmem>>, vector<1x16x80xbf16>,
    return
  }
  func.func @transform_0(%arg0: i32) -> (i32, i32) {
    %c0_i32 = arith.constant 0 : i32
    %c0_i32_0 = arith.constant 0 : i32
    %c0_i32_1 = arith.constant 0 : i32
    return %c0_i32, %c0_i32_0 : i32, i32
  }
  func.func @transform_1(%arg0: i32) -> (i32, i32, i32) {
    %c0_i32 = arith.constant 0 : i32
    %c0_i32_0 = arith.constant 0 : i32
    %c0_i32_1 = arith.constant 0 : i32
    return %arg0, %c0_i32, %c0_i32_0 : i32, i32, i32
  }
  func.func @transform_2(%arg0: i32) -> (i32, i32) {
    %c0_i32 = arith.constant 0 : i32
    %c0_i32_0 = arith.constant 0 : i32
    %c0_i32_1 = arith.constant 0 : i32
    return %c0_i32, %c0_i32_0 : i32, i32
  }
  func.func @transform_3(%arg0: i32) -> (i32, i32) {
    %c0_i32 = arith.constant 0 : i32
    %c0_i32_0 = arith.constant 0 : i32
    %c0_i32_1 = arith.constant 0 : i32
    return %c0_i32, %c0_i32_0 : i32, i32
  }
  func.func @transform_4(%arg0: i32) -> (i32, i32) {
    %c0_i32 = arith.constant 0 : i32
    %c0_i32_0 = arith.constant 0 : i32
    %c0_i32_1 = arith.constant 0 : i32
    return %c0_i32, %c0_i32_0 : i32, i32
  }
  func.func @transform_5(%arg0: i32) -> (i32, i32) {
    %c0_i32 = arith.constant 0 : i32
    %c0_i32_0 = arith.constant 0 : i32
    %c0_i32_1 = arith.constant 0 : i32
    return %c0_i32, %c0_i32_0 : i32, i32
  }
  func.func @transform_6(%arg0: i32) -> (i32, i32, i32) {
    %c0_i32 = arith.constant 0 : i32
    %c0_i32_0 = arith.constant 0 : i32
    %c0_i32_1 = arith.constant 0 : i32
    return %arg0, %c0_i32, %c0_i32_0 : i32, i32, i32
  }
}

module attributes {stable_mosaic.version = 11 : i64} {
  func.func @_block_kernel(%arg0: i32, %arg1: memref<1x24xf32, #tpu.memory_space<vmem>>, %arg2: memref<1x16x24xbf16, #tpu.memory_space<vmem>>, %arg3: memref<16x144xbf16, #tpu.memory_space<vmem>>, %arg4: memref<16x144xbf16, #tpu.memory_space<vmem>>, %arg5: memref<16x3xf32, #tpu.memory_space<vmem>>, %arg6: memref<16x3xf32, #tpu.memory_space<vmem>>, %arg7: memref<32x16xbf16, #tpu.memory_space<vmem>>, %arg8: memref<32x1xf32, #tpu.memory_space<vmem>>, %arg9: memref<1x32x24xbf16, #tpu.memory_space<vmem>>, %arg10: memref<16x159xbf16, #tpu.memory_space<vmem>>, %arg11: memref<144x24xbf16, #tpu.memory_space<vmem>>) attributes {dimension_semantics = [#tpu.dimension_semantics<parallel>], iteration_bounds = array<i64: 2>, scalar_prefetch = 0 : i64, scratch_operands = 2 : i64, tpu.core_type = #tpu.core_type<tc>, window_params = [{pipeline_mode = #tpu.pipeline_mode<synchronous>, transform_indices = @transform_0, window_bounds = array<i64: 1, 24>}, {transform_indices = @transform_1, window_bounds = array<i64: 1, 16, 24>}, {pipeline_mode = #tpu.pipeline_mode<synchronous>, transform_indices = @transform_2, window_bounds = array<i64: 16, 144>}, {pipeline_mode = #tpu.pipeline_mode<synchronous>, transform_indices = @transform_3, window_bounds = array<i64: 16, 144>}, {pipeline_mode = #tpu.pipeline_mode<synchronous>, transform_indices = @transform_4, window_bounds = array<i64: 16, 3>}, {pipeline_mode = #tpu.pipeline_mode<synchronous>, transform_indices = @transform_5, window_bounds = array<i64: 16, 3>}, {pipeline_mode = #tpu.pipeline_mode<synchronous>, transform_indices = @transform_6, window_bounds = array<i64: 32, 16>}, {pipeline_mode = #tpu.pipeline_mode<synchronous>, transform_indices = @transform_7, window_bounds = array<i64: 32, 1>}, {transform_indices = @transform_8, window_bounds = array<i64: 1, 32, 24>}]} {
    %c0 = arith.constant 0 : index
    %c0_0 = arith.constant 0 : index
    %0 = vector.load %arg1[%c0, %c0_0] : memref<1x24xf32, #tpu.memory_space<vmem>>, vector<1x24xf32>
    %cst = arith.constant 0.000000e+00 : bf16
    %1 = vector.broadcast %cst : bf16 to vector<16x159xbf16>
    %c0_1 = arith.constant 0 : index
    %c0_2 = arith.constant 0 : index
    %2 = vector.load %arg10[%c0_1, %c0_2] : memref<16x159xbf16, #tpu.memory_space<vmem>>, vector<16x159xbf16>
    tpu.vector_store %arg10[%c0_1, %c0_2], %1 {strides = array<i32>} : memref<16x159xbf16, #tpu.memory_space<vmem>>, vector<16x159xbf16>,
    %c0_3 = arith.constant 0 : index
    %c0_4 = arith.constant 0 : index
    %c0_5 = arith.constant 0 : index
    %3 = vector.load %arg2[%c0_3, %c0_4, %c0_5] : memref<1x16x24xbf16, #tpu.memory_space<vmem>>, vector<1x16x24xbf16>
    %4 = vector.shape_cast %3 : vector<1x16x24xbf16> to vector<16x24xbf16>
    %c0_6 = arith.constant 0 : index
    %c128 = arith.constant 128 : index
    %5 = vector.load %arg10[%c0_6, %c128] : memref<16x159xbf16, #tpu.memory_space<vmem>>, vector<16x24xbf16>
    tpu.vector_store %arg10[%c0_6, %c128], %4 {strides = array<i32>} : memref<16x159xbf16, #tpu.memory_space<vmem>>, vector<16x24xbf16>,
    %c0_7 = arith.constant 0 : index
    %c0_8 = arith.constant 0 : index
    %6 = vector.load %arg3[%c0_7, %c0_8] : memref<16x144xbf16, #tpu.memory_space<vmem>>, vector<16x144xbf16>
    %c0_9 = arith.constant 0 : index
    %c121 = arith.constant 121 : index
    %7 = vector.load %arg10[%c0_9, %c121] : memref<16x159xbf16, #tpu.memory_space<vmem>>, vector<16x24xbf16>
    %c0_10 = arith.constant 0 : index
    %c0_11 = arith.constant 0 : index
    %8 = vector.load %arg11[%c0_10, %c0_11] : memref<144x24xbf16, #tpu.memory_space<vmem>>, vector<16x24xbf16>
    tpu.vector_store %arg11[%c0_10, %c0_11], %7 {strides = array<i32>} : memref<144x24xbf16, #tpu.memory_space<vmem>>, vector<16x24xbf16>,
    %c0_12 = arith.constant 0 : index
    %c122 = arith.constant 122 : index
    %9 = vector.load %arg10[%c0_12, %c122] : memref<16x159xbf16, #tpu.memory_space<vmem>>, vector<16x24xbf16>
    %c16 = arith.constant 16 : index
    %c0_13 = arith.constant 0 : index
    %10 = vector.load %arg11[%c16, %c0_13] : memref<144x24xbf16, #tpu.memory_space<vmem>>, vector<16x24xbf16>
    tpu.vector_store %arg11[%c16, %c0_13], %9 {strides = array<i32>} : memref<144x24xbf16, #tpu.memory_space<vmem>>, vector<16x24xbf16>,
    %c0_14 = arith.constant 0 : index
    %c123 = arith.constant 123 : index
    %11 = vector.load %arg10[%c0_14, %c123] : memref<16x159xbf16, #tpu.memory_space<vmem>>, vector<16x24xbf16>
    %c32 = arith.constant 32 : index
    %c0_15 = arith.constant 0 : index
    %12 = vector.load %arg11[%c32, %c0_15] : memref<144x24xbf16, #tpu.memory_space<vmem>>, vector<16x24xbf16>
    tpu.vector_store %arg11[%c32, %c0_15], %11 {strides = array<i32>} : memref<144x24xbf16, #tpu.memory_space<vmem>>, vector<16x24xbf16>,
    %c0_16 = arith.constant 0 : index
    %c127 = arith.constant 127 : index
    %13 = vector.load %arg10[%c0_16, %c127] : memref<16x159xbf16, #tpu.memory_space<vmem>>, vector<16x24xbf16>
    %c48 = arith.constant 48 : index
    %c0_17 = arith.constant 0 : index
    %14 = vector.load %arg11[%c48, %c0_17] : memref<144x24xbf16, #tpu.memory_space<vmem>>, vector<16x24xbf16>
    tpu.vector_store %arg11[%c48, %c0_17], %13 {strides = array<i32>} : memref<144x24xbf16, #tpu.memory_space<vmem>>, vector<16x24xbf16>,
    %c0_18 = arith.constant 0 : index
    %c128_19 = arith.constant 128 : index
    %15 = vector.load %arg10[%c0_18, %c128_19] : memref<16x159xbf16, #tpu.memory_space<vmem>>, vector<16x24xbf16>
    %c64 = arith.constant 64 : index
    %c0_20 = arith.constant 0 : index
    %16 = vector.load %arg11[%c64, %c0_20] : memref<144x24xbf16, #tpu.memory_space<vmem>>, vector<16x24xbf16>
    tpu.vector_store %arg11[%c64, %c0_20], %15 {strides = array<i32>} : memref<144x24xbf16, #tpu.memory_space<vmem>>, vector<16x24xbf16>,
    %c0_21 = arith.constant 0 : index
    %c129 = arith.constant 129 : index
    %17 = vector.load %arg10[%c0_21, %c129] : memref<16x159xbf16, #tpu.memory_space<vmem>>, vector<16x24xbf16>
    %c80 = arith.constant 80 : index
    %c0_22 = arith.constant 0 : index
    %18 = vector.load %arg11[%c80, %c0_22] : memref<144x24xbf16, #tpu.memory_space<vmem>>, vector<16x24xbf16>
    tpu.vector_store %arg11[%c80, %c0_22], %17 {strides = array<i32>} : memref<144x24xbf16, #tpu.memory_space<vmem>>, vector<16x24xbf16>,
    %c0_23 = arith.constant 0 : index
    %c133 = arith.constant 133 : index
    %19 = vector.load %arg10[%c0_23, %c133] : memref<16x159xbf16, #tpu.memory_space<vmem>>, vector<16x24xbf16>
    %c96 = arith.constant 96 : index
    %c0_24 = arith.constant 0 : index
    %20 = vector.load %arg11[%c96, %c0_24] : memref<144x24xbf16, #tpu.memory_space<vmem>>, vector<16x24xbf16>
    tpu.vector_store %arg11[%c96, %c0_24], %19 {strides = array<i32>} : memref<144x24xbf16, #tpu.memory_space<vmem>>, vector<16x24xbf16>,
    %c0_25 = arith.constant 0 : index
    %c134 = arith.constant 134 : index
    %21 = vector.load %arg10[%c0_25, %c134] : memref<16x159xbf16, #tpu.memory_space<vmem>>, vector<16x24xbf16>
    %c112 = arith.constant 112 : index
    %c0_26 = arith.constant 0 : index
    %22 = vector.load %arg11[%c112, %c0_26] : memref<144x24xbf16, #tpu.memory_space<vmem>>, vector<16x24xbf16>
    tpu.vector_store %arg11[%c112, %c0_26], %21 {strides = array<i32>} : memref<144x24xbf16, #tpu.memory_space<vmem>>, vector<16x24xbf16>,
    %c0_27 = arith.constant 0 : index
    %c135 = arith.constant 135 : index
    %23 = vector.load %arg10[%c0_27, %c135] : memref<16x159xbf16, #tpu.memory_space<vmem>>, vector<16x24xbf16>
    %c128_28 = arith.constant 128 : index
    %c0_29 = arith.constant 0 : index
    %24 = vector.load %arg11[%c128_28, %c0_29] : memref<144x24xbf16, #tpu.memory_space<vmem>>, vector<16x24xbf16>
    tpu.vector_store %arg11[%c128_28, %c0_29], %23 {strides = array<i32>} : memref<144x24xbf16, #tpu.memory_space<vmem>>, vector<16x24xbf16>,
    %c0_30 = arith.constant 0 : index
    %c0_31 = arith.constant 0 : index
    %25 = vector.load %arg11[%c0_30, %c0_31] : memref<144x24xbf16, #tpu.memory_space<vmem>>, vector<144x24xbf16>
    %cst_32 = arith.constant dense<0.000000e+00> : vector<16x24xf32>
    %26 = tpu.matmul %6, %25, %cst_32 {dimension_numbers = #tpu.dot_dimension_numbers<[1], [0], [0], [1], [0, 0, 1, 1], [], []>} : vector<16x144xbf16>, vector<144x24xbf16>, vector<16x24xf32> -> vector<16x24xf32>
    %c0_33 = arith.constant 0 : index
    %c0_34 = arith.constant 0 : index
    %27 = vector.load %arg5[%c0_33, %c0_34] : memref<16x3xf32, #tpu.memory_space<vmem>>, vector<16x3xf32>
    %28 = vector.extract_strided_slice %27 {offsets = [0, 0], sizes = [16, 1], strides = [1, 1]} : vector<16x3xf32> to vector<16x1xf32>
    %29 = vector.broadcast %28 : vector<16x1xf32> to vector<16x24xf32>
    %30 = arith.addf %26, %29 : vector<16x24xf32>
    %cst_35 = arith.constant 0.000000e+00 : f32
    %31 = vector.broadcast %cst_35 : f32 to vector<16x24xf32>
    %32 = arith.cmpf oge, %30, %31 : vector<16x24xf32>
    %cst_36 = arith.constant 0.00999999977 : f32
    %33 = vector.broadcast %cst_36 : f32 to vector<16x24xf32>
    %34 = arith.mulf %33, %30 : vector<16x24xf32>
    %35 = arith.select %32, %30, %34 : vector<16x24xi1>, vector<16x24xf32>
    %36 = vector.extract_strided_slice %27 {offsets = [0, 1], sizes = [16, 1], strides = [1, 1]} : vector<16x3xf32> to vector<16x1xf32>
    %37 = vector.broadcast %36 : vector<16x1xf32> to vector<16x24xf32>
    %38 = arith.mulf %35, %37 : vector<16x24xf32>
    %39 = vector.extract_strided_slice %27 {offsets = [0, 2], sizes = [16, 1], strides = [1, 1]} : vector<16x3xf32> to vector<16x1xf32>
    %40 = vector.broadcast %39 : vector<16x1xf32> to vector<16x24xf32>
    %41 = arith.addf %38, %40 : vector<16x24xf32>
    %42 = vector.broadcast %0 : vector<1x24xf32> to vector<16x24xf32>
    %43 = arith.mulf %41, %42 : vector<16x24xf32>
    %44 = arith.truncf %43 : vector<16x24xf32> to vector<16x24xbf16>
    %c0_37 = arith.constant 0 : index
    %c128_38 = arith.constant 128 : index
    %45 = vector.load %arg10[%c0_37, %c128_38] : memref<16x159xbf16, #tpu.memory_space<vmem>>, vector<16x24xbf16>
    tpu.vector_store %arg10[%c0_37, %c128_38], %44 {strides = array<i32>} : memref<16x159xbf16, #tpu.memory_space<vmem>>, vector<16x24xbf16>,
    %c0_39 = arith.constant 0 : index
    %c0_40 = arith.constant 0 : index
    %46 = vector.load %arg4[%c0_39, %c0_40] : memref<16x144xbf16, #tpu.memory_space<vmem>>, vector<16x144xbf16>
    %c0_41 = arith.constant 0 : index
    %c121_42 = arith.constant 121 : index
    %47 = vector.load %arg10[%c0_41, %c121_42] : memref<16x159xbf16, #tpu.memory_space<vmem>>, vector<16x24xbf16>
    %c0_43 = arith.constant 0 : index
    %c0_44 = arith.constant 0 : index
    %48 = vector.load %arg11[%c0_43, %c0_44] : memref<144x24xbf16, #tpu.memory_space<vmem>>, vector<16x24xbf16>
    tpu.vector_store %arg11[%c0_43, %c0_44], %47 {strides = array<i32>} : memref<144x24xbf16, #tpu.memory_space<vmem>>, vector<16x24xbf16>,
    %c0_45 = arith.constant 0 : index
    %c122_46 = arith.constant 122 : index
    %49 = vector.load %arg10[%c0_45, %c122_46] : memref<16x159xbf16, #tpu.memory_space<vmem>>, vector<16x24xbf16>
    %c16_47 = arith.constant 16 : index
    %c0_48 = arith.constant 0 : index
    %50 = vector.load %arg11[%c16_47, %c0_48] : memref<144x24xbf16, #tpu.memory_space<vmem>>, vector<16x24xbf16>
    tpu.vector_store %arg11[%c16_47, %c0_48], %49 {strides = array<i32>} : memref<144x24xbf16, #tpu.memory_space<vmem>>, vector<16x24xbf16>,
    %c0_49 = arith.constant 0 : index
    %c123_50 = arith.constant 123 : index
    %51 = vector.load %arg10[%c0_49, %c123_50] : memref<16x159xbf16, #tpu.memory_space<vmem>>, vector<16x24xbf16>
    %c32_51 = arith.constant 32 : index
    %c0_52 = arith.constant 0 : index
    %52 = vector.load %arg11[%c32_51, %c0_52] : memref<144x24xbf16, #tpu.memory_space<vmem>>, vector<16x24xbf16>
    tpu.vector_store %arg11[%c32_51, %c0_52], %51 {strides = array<i32>} : memref<144x24xbf16, #tpu.memory_space<vmem>>, vector<16x24xbf16>,
    %c0_53 = arith.constant 0 : index
    %c127_54 = arith.constant 127 : index
    %53 = vector.load %arg10[%c0_53, %c127_54] : memref<16x159xbf16, #tpu.memory_space<vmem>>, vector<16x24xbf16>
    %c48_55 = arith.constant 48 : index
    %c0_56 = arith.constant 0 : index
    %54 = vector.load %arg11[%c48_55, %c0_56] : memref<144x24xbf16, #tpu.memory_space<vmem>>, vector<16x24xbf16>
    tpu.vector_store %arg11[%c48_55, %c0_56], %53 {strides = array<i32>} : memref<144x24xbf16, #tpu.memory_space<vmem>>, vector<16x24xbf16>,
    %c0_57 = arith.constant 0 : index
    %c128_58 = arith.constant 128 : index
    %55 = vector.load %arg10[%c0_57, %c128_58] : memref<16x159xbf16, #tpu.memory_space<vmem>>, vector<16x24xbf16>
    %c64_59 = arith.constant 64 : index
    %c0_60 = arith.constant 0 : index
    %56 = vector.load %arg11[%c64_59, %c0_60] : memref<144x24xbf16, #tpu.memory_space<vmem>>, vector<16x24xbf16>
    tpu.vector_store %arg11[%c64_59, %c0_60], %55 {strides = array<i32>} : memref<144x24xbf16, #tpu.memory_space<vmem>>, vector<16x24xbf16>,
    %c0_61 = arith.constant 0 : index
    %c129_62 = arith.constant 129 : index
    %57 = vector.load %arg10[%c0_61, %c129_62] : memref<16x159xbf16, #tpu.memory_space<vmem>>, vector<16x24xbf16>
    %c80_63 = arith.constant 80 : index
    %c0_64 = arith.constant 0 : index
    %58 = vector.load %arg11[%c80_63, %c0_64] : memref<144x24xbf16, #tpu.memory_space<vmem>>, vector<16x24xbf16>
    tpu.vector_store %arg11[%c80_63, %c0_64], %57 {strides = array<i32>} : memref<144x24xbf16, #tpu.memory_space<vmem>>, vector<16x24xbf16>,
    %c0_65 = arith.constant 0 : index
    %c133_66 = arith.constant 133 : index
    %59 = vector.load %arg10[%c0_65, %c133_66] : memref<16x159xbf16, #tpu.memory_space<vmem>>, vector<16x24xbf16>
    %c96_67 = arith.constant 96 : index
    %c0_68 = arith.constant 0 : index
    %60 = vector.load %arg11[%c96_67, %c0_68] : memref<144x24xbf16, #tpu.memory_space<vmem>>, vector<16x24xbf16>
    tpu.vector_store %arg11[%c96_67, %c0_68], %59 {strides = array<i32>} : memref<144x24xbf16, #tpu.memory_space<vmem>>, vector<16x24xbf16>,
    %c0_69 = arith.constant 0 : index
    %c134_70 = arith.constant 134 : index
    %61 = vector.load %arg10[%c0_69, %c134_70] : memref<16x159xbf16, #tpu.memory_space<vmem>>, vector<16x24xbf16>
    %c112_71 = arith.constant 112 : index
    %c0_72 = arith.constant 0 : index
    %62 = vector.load %arg11[%c112_71, %c0_72] : memref<144x24xbf16, #tpu.memory_space<vmem>>, vector<16x24xbf16>
    tpu.vector_store %arg11[%c112_71, %c0_72], %61 {strides = array<i32>} : memref<144x24xbf16, #tpu.memory_space<vmem>>, vector<16x24xbf16>,
    %c0_73 = arith.constant 0 : index
    %c135_74 = arith.constant 135 : index
    %63 = vector.load %arg10[%c0_73, %c135_74] : memref<16x159xbf16, #tpu.memory_space<vmem>>, vector<16x24xbf16>
    %c128_75 = arith.constant 128 : index
    %c0_76 = arith.constant 0 : index
    %64 = vector.load %arg11[%c128_75, %c0_76] : memref<144x24xbf16, #tpu.memory_space<vmem>>, vector<16x24xbf16>
    tpu.vector_store %arg11[%c128_75, %c0_76], %63 {strides = array<i32>} : memref<144x24xbf16, #tpu.memory_space<vmem>>, vector<16x24xbf16>,
    %c0_77 = arith.constant 0 : index
    %c0_78 = arith.constant 0 : index
    %65 = vector.load %arg11[%c0_77, %c0_78] : memref<144x24xbf16, #tpu.memory_space<vmem>>, vector<144x24xbf16>
    %cst_79 = arith.constant dense<0.000000e+00> : vector<16x24xf32>
    %66 = tpu.matmul %46, %65, %cst_79 {dimension_numbers = #tpu.dot_dimension_numbers<[1], [0], [0], [1], [0, 0, 1, 1], [], []>} : vector<16x144xbf16>, vector<144x24xbf16>, vector<16x24xf32> -> vector<16x24xf32>
    %c0_80 = arith.constant 0 : index
    %c0_81 = arith.constant 0 : index
    %67 = vector.load %arg6[%c0_80, %c0_81] : memref<16x3xf32, #tpu.memory_space<vmem>>, vector<16x3xf32>
    %68 = vector.extract_strided_slice %67 {offsets = [0, 0], sizes = [16, 1], strides = [1, 1]} : vector<16x3xf32> to vector<16x1xf32>
    %69 = vector.broadcast %68 : vector<16x1xf32> to vector<16x24xf32>
    %70 = arith.addf %66, %69 : vector<16x24xf32>
    %cst_82 = arith.constant 0.000000e+00 : f32
    %71 = vector.broadcast %cst_82 : f32 to vector<16x24xf32>
    %72 = arith.cmpf oge, %70, %71 : vector<16x24xf32>
    %cst_83 = arith.constant 0.00999999977 : f32
    %73 = vector.broadcast %cst_83 : f32 to vector<16x24xf32>
    %74 = arith.mulf %73, %70 : vector<16x24xf32>
    %75 = arith.select %72, %70, %74 : vector<16x24xi1>, vector<16x24xf32>
    %76 = vector.extract_strided_slice %67 {offsets = [0, 1], sizes = [16, 1], strides = [1, 1]} : vector<16x3xf32> to vector<16x1xf32>
    %77 = vector.broadcast %76 : vector<16x1xf32> to vector<16x24xf32>
    %78 = arith.mulf %75, %77 : vector<16x24xf32>
    %79 = vector.extract_strided_slice %67 {offsets = [0, 2], sizes = [16, 1], strides = [1, 1]} : vector<16x3xf32> to vector<16x1xf32>
    %80 = vector.broadcast %79 : vector<16x1xf32> to vector<16x24xf32>
    %81 = arith.addf %78, %80 : vector<16x24xf32>
    %c0_84 = arith.constant 0 : index
    %c0_85 = arith.constant 0 : index
    %82 = vector.load %arg7[%c0_84, %c0_85] : memref<32x16xbf16, #tpu.memory_space<vmem>>, vector<32x16xbf16>
    %83 = arith.truncf %81 : vector<16x24xf32> to vector<16x24xbf16>
    %cst_86 = arith.constant dense<0.000000e+00> : vector<32x24xf32>
    %84 = tpu.matmul %82, %83, %cst_86 {dimension_numbers = #tpu.dot_dimension_numbers<[1], [0], [0], [1], [0, 0, 1, 1], [], []>} : vector<32x16xbf16>, vector<16x24xbf16>, vector<32x24xf32> -> vector<32x24xf32>
    %c0_87 = arith.constant 0 : index
    %c0_88 = arith.constant 0 : index
    %85 = vector.load %arg8[%c0_87, %c0_88] : memref<32x1xf32, #tpu.memory_space<vmem>>, vector<32x1xf32>
    %86 = vector.broadcast %85 : vector<32x1xf32> to vector<32x24xf32>
    %87 = arith.addf %84, %86 : vector<32x24xf32>
    %88 = arith.truncf %87 : vector<32x24xf32> to vector<32x24xbf16>
    %c0_89 = arith.constant 0 : index
    %c0_90 = arith.constant 0 : index
    %c0_91 = arith.constant 0 : index
    %89 = vector.load %arg9[%c0_89, %c0_90, %c0_91] : memref<1x32x24xbf16, #tpu.memory_space<vmem>>, vector<1x32x24xbf16>
    %90 = vector.shape_cast %89 : vector<1x32x24xbf16> to vector<32x24xbf16>
    %91 = vector.shape_cast %88 : vector<32x24xbf16> to vector<1x32x24xbf16>
    tpu.vector_store %arg9[%c0_89, %c0_90, %c0_91], %91 {strides = array<i32>} : memref<1x32x24xbf16, #tpu.memory_space<vmem>>, vector<1x32x24xbf16>,
    return
  }
  func.func @transform_0(%arg0: i32) -> (i32, i32) {
    %c0_i32 = arith.constant 0 : i32
    %c0_i32_0 = arith.constant 0 : i32
    %c0_i32_1 = arith.constant 0 : i32
    return %c0_i32, %c0_i32_0 : i32, i32
  }
  func.func @transform_1(%arg0: i32) -> (i32, i32, i32) {
    %c0_i32 = arith.constant 0 : i32
    %c0_i32_0 = arith.constant 0 : i32
    %c0_i32_1 = arith.constant 0 : i32
    return %arg0, %c0_i32, %c0_i32_0 : i32, i32, i32
  }
  func.func @transform_2(%arg0: i32) -> (i32, i32) {
    %c0_i32 = arith.constant 0 : i32
    %c0_i32_0 = arith.constant 0 : i32
    %c0_i32_1 = arith.constant 0 : i32
    return %c0_i32, %c0_i32_0 : i32, i32
  }
  func.func @transform_3(%arg0: i32) -> (i32, i32) {
    %c0_i32 = arith.constant 0 : i32
    %c0_i32_0 = arith.constant 0 : i32
    %c0_i32_1 = arith.constant 0 : i32
    return %c0_i32, %c0_i32_0 : i32, i32
  }
  func.func @transform_4(%arg0: i32) -> (i32, i32) {
    %c0_i32 = arith.constant 0 : i32
    %c0_i32_0 = arith.constant 0 : i32
    %c0_i32_1 = arith.constant 0 : i32
    return %c0_i32, %c0_i32_0 : i32, i32
  }
  func.func @transform_5(%arg0: i32) -> (i32, i32) {
    %c0_i32 = arith.constant 0 : i32
    %c0_i32_0 = arith.constant 0 : i32
    %c0_i32_1 = arith.constant 0 : i32
    return %c0_i32, %c0_i32_0 : i32, i32
  }
  func.func @transform_6(%arg0: i32) -> (i32, i32) {
    %c0_i32 = arith.constant 0 : i32
    %c0_i32_0 = arith.constant 0 : i32
    %c0_i32_1 = arith.constant 0 : i32
    return %c0_i32, %c0_i32_0 : i32, i32
  }
  func.func @transform_7(%arg0: i32) -> (i32, i32) {
    %c0_i32 = arith.constant 0 : i32
    %c0_i32_0 = arith.constant 0 : i32
    %c0_i32_1 = arith.constant 0 : i32
    return %c0_i32, %c0_i32_0 : i32, i32
  }
  func.func @transform_8(%arg0: i32) -> (i32, i32, i32) {
    %c0_i32 = arith.constant 0 : i32
    %c0_i32_0 = arith.constant 0 : i32
    %c0_i32_1 = arith.constant 0 : i32
    return %arg0, %c0_i32, %c0_i32_0 : i32, i32, i32
  }
}

module attributes {stable_mosaic.version = 11 : i64} {
  func.func @_block_kernel(%arg0: i32, %arg1: memref<1x80xf32, #tpu.memory_space<vmem>>, %arg2: memref<1x16x80xbf16, #tpu.memory_space<vmem>>, %arg3: memref<1x16x80xbf16, #tpu.memory_space<vmem>>, %arg4: memref<16x288xbf16, #tpu.memory_space<vmem>>, %arg5: memref<16x144xbf16, #tpu.memory_space<vmem>>, %arg6: memref<16x3xf32, #tpu.memory_space<vmem>>, %arg7: memref<16x3xf32, #tpu.memory_space<vmem>>, %arg8: memref<16x16xbf16, #tpu.memory_space<vmem>>, %arg9: memref<16x1xf32, #tpu.memory_space<vmem>>, %arg10: memref<1x16x80xbf16, #tpu.memory_space<vmem>>, %arg11: memref<32x219xbf16, #tpu.memory_space<vmem>>, %arg12: memref<288x80xbf16, #tpu.memory_space<vmem>>) attributes {dimension_semantics = [#tpu.dimension_semantics<parallel>], iteration_bounds = array<i64: 2>, scalar_prefetch = 0 : i64, scratch_operands = 2 : i64, tpu.core_type = #tpu.core_type<tc>, window_params = [{pipeline_mode = #tpu.pipeline_mode<synchronous>, transform_indices = @transform_0, window_bounds = array<i64: 1, 80>}, {transform_indices = @transform_1, window_bounds = array<i64: 1, 16, 80>}, {transform_indices = @transform_2, window_bounds = array<i64: 1, 16, 80>}, {pipeline_mode = #tpu.pipeline_mode<synchronous>, transform_indices = @transform_3, window_bounds = array<i64: 16, 288>}, {pipeline_mode = #tpu.pipeline_mode<synchronous>, transform_indices = @transform_4, window_bounds = array<i64: 16, 144>}, {pipeline_mode = #tpu.pipeline_mode<synchronous>, transform_indices = @transform_5, window_bounds = array<i64: 16, 3>}, {pipeline_mode = #tpu.pipeline_mode<synchronous>, transform_indices = @transform_6, window_bounds = array<i64: 16, 3>}, {pipeline_mode = #tpu.pipeline_mode<synchronous>, transform_indices = @transform_7, window_bounds = array<i64: 16, 16>}, {pipeline_mode = #tpu.pipeline_mode<synchronous>, transform_indices = @transform_8, window_bounds = array<i64: 16, 1>}, {transform_indices = @transform_9, window_bounds = array<i64: 1, 16, 80>}]} {
    %c0 = arith.constant 0 : index
    %c0_0 = arith.constant 0 : index
    %0 = vector.load %arg1[%c0, %c0_0] : memref<1x80xf32, #tpu.memory_space<vmem>>, vector<1x80xf32>
    %cst = arith.constant 0.000000e+00 : bf16
    %1 = vector.broadcast %cst : bf16 to vector<32x219xbf16>
    %c0_1 = arith.constant 0 : index
    %c0_2 = arith.constant 0 : index
    %2 = vector.load %arg11[%c0_1, %c0_2] : memref<32x219xbf16, #tpu.memory_space<vmem>>, vector<32x219xbf16>
    tpu.vector_store %arg11[%c0_1, %c0_2], %1 {strides = array<i32>} : memref<32x219xbf16, #tpu.memory_space<vmem>>, vector<32x219xbf16>,
    %c0_3 = arith.constant 0 : index
    %c0_4 = arith.constant 0 : index
    %c0_5 = arith.constant 0 : index
    %3 = vector.load %arg2[%c0_3, %c0_4, %c0_5] : memref<1x16x80xbf16, #tpu.memory_space<vmem>>, vector<1x16x80xbf16>
    %4 = vector.shape_cast %3 : vector<1x16x80xbf16> to vector<16x80xbf16>
    %c0_6 = arith.constant 0 : index
    %c128 = arith.constant 128 : index
    %5 = vector.load %arg11[%c0_6, %c128] : memref<32x219xbf16, #tpu.memory_space<vmem>>, vector<16x80xbf16>
    tpu.vector_store %arg11[%c0_6, %c128], %4 {strides = array<i32>} : memref<32x219xbf16, #tpu.memory_space<vmem>>, vector<16x80xbf16>,
    %c0_7 = arith.constant 0 : index
    %c0_8 = arith.constant 0 : index
    %c0_9 = arith.constant 0 : index
    %6 = vector.load %arg3[%c0_7, %c0_8, %c0_9] : memref<1x16x80xbf16, #tpu.memory_space<vmem>>, vector<1x16x80xbf16>
    %7 = vector.shape_cast %6 : vector<1x16x80xbf16> to vector<16x80xbf16>
    %c16 = arith.constant 16 : index
    %c128_10 = arith.constant 128 : index
    %8 = vector.load %arg11[%c16, %c128_10] : memref<32x219xbf16, #tpu.memory_space<vmem>>, vector<16x80xbf16>
    tpu.vector_store %arg11[%c16, %c128_10], %7 {strides = array<i32>} : memref<32x219xbf16, #tpu.memory_space<vmem>>, vector<16x80xbf16>,
    %c0_11 = arith.constant 0 : index
    %c0_12 = arith.constant 0 : index
    %9 = vector.load %arg4[%c0_11, %c0_12] : memref<16x288xbf16, #tpu.memory_space<vmem>>, vector<16x288xbf16>
    %c0_13 = arith.constant 0 : index
    %c117 = arith.constant 117 : index
    %10 = vector.load %arg11[%c0_13, %c117] : memref<32x219xbf16, #tpu.memory_space<vmem>>, vector<32x80xbf16>
    %c0_14 = arith.constant 0 : index
    %c0_15 = arith.constant 0 : index
    %11 = vector.load %arg12[%c0_14, %c0_15] : memref<288x80xbf16, #tpu.memory_space<vmem>>, vector<32x80xbf16>
    tpu.vector_store %arg12[%c0_14, %c0_15], %10 {strides = array<i32>} : memref<288x80xbf16, #tpu.memory_space<vmem>>, vector<32x80xbf16>,
    %c0_16 = arith.constant 0 : index
    %c118 = arith.constant 118 : index
    %12 = vector.load %arg11[%c0_16, %c118] : memref<32x219xbf16, #tpu.memory_space<vmem>>, vector<32x80xbf16>
    %c32 = arith.constant 32 : index
    %c0_17 = arith.constant 0 : index
    %13 = vector.load %arg12[%c32, %c0_17] : memref<288x80xbf16, #tpu.memory_space<vmem>>, vector<32x80xbf16>
    tpu.vector_store %arg12[%c32, %c0_17], %12 {strides = array<i32>} : memref<288x80xbf16, #tpu.memory_space<vmem>>, vector<32x80xbf16>,
    %c0_18 = arith.constant 0 : index
    %c119 = arith.constant 119 : index
    %14 = vector.load %arg11[%c0_18, %c119] : memref<32x219xbf16, #tpu.memory_space<vmem>>, vector<32x80xbf16>
    %c64 = arith.constant 64 : index
    %c0_19 = arith.constant 0 : index
    %15 = vector.load %arg12[%c64, %c0_19] : memref<288x80xbf16, #tpu.memory_space<vmem>>, vector<32x80xbf16>
    tpu.vector_store %arg12[%c64, %c0_19], %14 {strides = array<i32>} : memref<288x80xbf16, #tpu.memory_space<vmem>>, vector<32x80xbf16>,
    %c0_20 = arith.constant 0 : index
    %c127 = arith.constant 127 : index
    %16 = vector.load %arg11[%c0_20, %c127] : memref<32x219xbf16, #tpu.memory_space<vmem>>, vector<32x80xbf16>
    %c96 = arith.constant 96 : index
    %c0_21 = arith.constant 0 : index
    %17 = vector.load %arg12[%c96, %c0_21] : memref<288x80xbf16, #tpu.memory_space<vmem>>, vector<32x80xbf16>
    tpu.vector_store %arg12[%c96, %c0_21], %16 {strides = array<i32>} : memref<288x80xbf16, #tpu.memory_space<vmem>>, vector<32x80xbf16>,
    %c0_22 = arith.constant 0 : index
    %c128_23 = arith.constant 128 : index
    %18 = vector.load %arg11[%c0_22, %c128_23] : memref<32x219xbf16, #tpu.memory_space<vmem>>, vector<32x80xbf16>
    %c128_24 = arith.constant 128 : index
    %c0_25 = arith.constant 0 : index
    %19 = vector.load %arg12[%c128_24, %c0_25] : memref<288x80xbf16, #tpu.memory_space<vmem>>, vector<32x80xbf16>
    tpu.vector_store %arg12[%c128_24, %c0_25], %18 {strides = array<i32>} : memref<288x80xbf16, #tpu.memory_space<vmem>>, vector<32x80xbf16>,
    %c0_26 = arith.constant 0 : index
    %c129 = arith.constant 129 : index
    %20 = vector.load %arg11[%c0_26, %c129] : memref<32x219xbf16, #tpu.memory_space<vmem>>, vector<32x80xbf16>
    %c160 = arith.constant 160 : index
    %c0_27 = arith.constant 0 : index
    %21 = vector.load %arg12[%c160, %c0_27] : memref<288x80xbf16, #tpu.memory_space<vmem>>, vector<32x80xbf16>
    tpu.vector_store %arg12[%c160, %c0_27], %20 {strides = array<i32>} : memref<288x80xbf16, #tpu.memory_space<vmem>>, vector<32x80xbf16>,
    %c0_28 = arith.constant 0 : index
    %c137 = arith.constant 137 : index
    %22 = vector.load %arg11[%c0_28, %c137] : memref<32x219xbf16, #tpu.memory_space<vmem>>, vector<32x80xbf16>
    %c192 = arith.constant 192 : index
    %c0_29 = arith.constant 0 : index
    %23 = vector.load %arg12[%c192, %c0_29] : memref<288x80xbf16, #tpu.memory_space<vmem>>, vector<32x80xbf16>
    tpu.vector_store %arg12[%c192, %c0_29], %22 {strides = array<i32>} : memref<288x80xbf16, #tpu.memory_space<vmem>>, vector<32x80xbf16>,
    %c0_30 = arith.constant 0 : index
    %c138 = arith.constant 138 : index
    %24 = vector.load %arg11[%c0_30, %c138] : memref<32x219xbf16, #tpu.memory_space<vmem>>, vector<32x80xbf16>
    %c224 = arith.constant 224 : index
    %c0_31 = arith.constant 0 : index
    %25 = vector.load %arg12[%c224, %c0_31] : memref<288x80xbf16, #tpu.memory_space<vmem>>, vector<32x80xbf16>
    tpu.vector_store %arg12[%c224, %c0_31], %24 {strides = array<i32>} : memref<288x80xbf16, #tpu.memory_space<vmem>>, vector<32x80xbf16>,
    %c0_32 = arith.constant 0 : index
    %c139 = arith.constant 139 : index
    %26 = vector.load %arg11[%c0_32, %c139] : memref<32x219xbf16, #tpu.memory_space<vmem>>, vector<32x80xbf16>
    %c256 = arith.constant 256 : index
    %c0_33 = arith.constant 0 : index
    %27 = vector.load %arg12[%c256, %c0_33] : memref<288x80xbf16, #tpu.memory_space<vmem>>, vector<32x80xbf16>
    tpu.vector_store %arg12[%c256, %c0_33], %26 {strides = array<i32>} : memref<288x80xbf16, #tpu.memory_space<vmem>>, vector<32x80xbf16>,
    %c0_34 = arith.constant 0 : index
    %c0_35 = arith.constant 0 : index
    %28 = vector.load %arg12[%c0_34, %c0_35] : memref<288x80xbf16, #tpu.memory_space<vmem>>, vector<288x80xbf16>
    %cst_36 = arith.constant dense<0.000000e+00> : vector<16x80xf32>
    %29 = tpu.matmul %9, %28, %cst_36 {dimension_numbers = #tpu.dot_dimension_numbers<[1], [0], [0], [1], [0, 0, 1, 1], [], []>} : vector<16x288xbf16>, vector<288x80xbf16>, vector<16x80xf32> -> vector<16x80xf32>
    %c0_37 = arith.constant 0 : index
    %c0_38 = arith.constant 0 : index
    %30 = vector.load %arg6[%c0_37, %c0_38] : memref<16x3xf32, #tpu.memory_space<vmem>>, vector<16x3xf32>
    %31 = vector.extract_strided_slice %30 {offsets = [0, 0], sizes = [16, 1], strides = [1, 1]} : vector<16x3xf32> to vector<16x1xf32>
    %32 = vector.broadcast %31 : vector<16x1xf32> to vector<16x80xf32>
    %33 = arith.addf %29, %32 : vector<16x80xf32>
    %cst_39 = arith.constant 0.000000e+00 : f32
    %34 = vector.broadcast %cst_39 : f32 to vector<16x80xf32>
    %35 = arith.cmpf oge, %33, %34 : vector<16x80xf32>
    %cst_40 = arith.constant 0.00999999977 : f32
    %36 = vector.broadcast %cst_40 : f32 to vector<16x80xf32>
    %37 = arith.mulf %36, %33 : vector<16x80xf32>
    %38 = arith.select %35, %33, %37 : vector<16x80xi1>, vector<16x80xf32>
    %39 = vector.extract_strided_slice %30 {offsets = [0, 1], sizes = [16, 1], strides = [1, 1]} : vector<16x3xf32> to vector<16x1xf32>
    %40 = vector.broadcast %39 : vector<16x1xf32> to vector<16x80xf32>
    %41 = arith.mulf %38, %40 : vector<16x80xf32>
    %42 = vector.extract_strided_slice %30 {offsets = [0, 2], sizes = [16, 1], strides = [1, 1]} : vector<16x3xf32> to vector<16x1xf32>
    %43 = vector.broadcast %42 : vector<16x1xf32> to vector<16x80xf32>
    %44 = arith.addf %41, %43 : vector<16x80xf32>
    %45 = vector.broadcast %0 : vector<1x80xf32> to vector<16x80xf32>
    %46 = arith.mulf %44, %45 : vector<16x80xf32>
    %47 = arith.truncf %46 : vector<16x80xf32> to vector<16x80xbf16>
    %c0_41 = arith.constant 0 : index
    %c128_42 = arith.constant 128 : index
    %48 = vector.load %arg11[%c0_41, %c128_42] : memref<32x219xbf16, #tpu.memory_space<vmem>>, vector<16x80xbf16>
    tpu.vector_store %arg11[%c0_41, %c128_42], %47 {strides = array<i32>} : memref<32x219xbf16, #tpu.memory_space<vmem>>, vector<16x80xbf16>,
    %c0_43 = arith.constant 0 : index
    %c0_44 = arith.constant 0 : index
    %49 = vector.load %arg5[%c0_43, %c0_44] : memref<16x144xbf16, #tpu.memory_space<vmem>>, vector<16x144xbf16>
    %c0_45 = arith.constant 0 : index
    %c117_46 = arith.constant 117 : index
    %50 = vector.load %arg11[%c0_45, %c117_46] : memref<32x219xbf16, #tpu.memory_space<vmem>>, vector<16x80xbf16>
    %c0_47 = arith.constant 0 : index
    %c0_48 = arith.constant 0 : index
    %51 = vector.load %arg12[%c0_47, %c0_48] : memref<288x80xbf16, #tpu.memory_space<vmem>>, vector<16x80xbf16>
    tpu.vector_store %arg12[%c0_47, %c0_48], %50 {strides = array<i32>} : memref<288x80xbf16, #tpu.memory_space<vmem>>, vector<16x80xbf16>,
    %c0_49 = arith.constant 0 : index
    %c118_50 = arith.constant 118 : index
    %52 = vector.load %arg11[%c0_49, %c118_50] : memref<32x219xbf16, #tpu.memory_space<vmem>>, vector<16x80xbf16>
    %c16_51 = arith.constant 16 : index
    %c0_52 = arith.constant 0 : index
    %53 = vector.load %arg12[%c16_51, %c0_52] : memref<288x80xbf16, #tpu.memory_space<vmem>>, vector<16x80xbf16>
    tpu.vector_store %arg12[%c16_51, %c0_52], %52 {strides = array<i32>} : memref<288x80xbf16, #tpu.memory_space<vmem>>, vector<16x80xbf16>,
    %c0_53 = arith.constant 0 : index
    %c119_54 = arith.constant 119 : index
    %54 = vector.load %arg11[%c0_53, %c119_54] : memref<32x219xbf16, #tpu.memory_space<vmem>>, vector<16x80xbf16>
    %c32_55 = arith.constant 32 : index
    %c0_56 = arith.constant 0 : index
    %55 = vector.load %arg12[%c32_55, %c0_56] : memref<288x80xbf16, #tpu.memory_space<vmem>>, vector<16x80xbf16>
    tpu.vector_store %arg12[%c32_55, %c0_56], %54 {strides = array<i32>} : memref<288x80xbf16, #tpu.memory_space<vmem>>, vector<16x80xbf16>,
    %c0_57 = arith.constant 0 : index
    %c127_58 = arith.constant 127 : index
    %56 = vector.load %arg11[%c0_57, %c127_58] : memref<32x219xbf16, #tpu.memory_space<vmem>>, vector<16x80xbf16>
    %c48 = arith.constant 48 : index
    %c0_59 = arith.constant 0 : index
    %57 = vector.load %arg12[%c48, %c0_59] : memref<288x80xbf16, #tpu.memory_space<vmem>>, vector<16x80xbf16>
    tpu.vector_store %arg12[%c48, %c0_59], %56 {strides = array<i32>} : memref<288x80xbf16, #tpu.memory_space<vmem>>, vector<16x80xbf16>,
    %c0_60 = arith.constant 0 : index
    %c128_61 = arith.constant 128 : index
    %58 = vector.load %arg11[%c0_60, %c128_61] : memref<32x219xbf16, #tpu.memory_space<vmem>>, vector<16x80xbf16>
    %c64_62 = arith.constant 64 : index
    %c0_63 = arith.constant 0 : index
    %59 = vector.load %arg12[%c64_62, %c0_63] : memref<288x80xbf16, #tpu.memory_space<vmem>>, vector<16x80xbf16>
    tpu.vector_store %arg12[%c64_62, %c0_63], %58 {strides = array<i32>} : memref<288x80xbf16, #tpu.memory_space<vmem>>, vector<16x80xbf16>,
    %c0_64 = arith.constant 0 : index
    %c129_65 = arith.constant 129 : index
    %60 = vector.load %arg11[%c0_64, %c129_65] : memref<32x219xbf16, #tpu.memory_space<vmem>>, vector<16x80xbf16>
    %c80 = arith.constant 80 : index
    %c0_66 = arith.constant 0 : index
    %61 = vector.load %arg12[%c80, %c0_66] : memref<288x80xbf16, #tpu.memory_space<vmem>>, vector<16x80xbf16>
    tpu.vector_store %arg12[%c80, %c0_66], %60 {strides = array<i32>} : memref<288x80xbf16, #tpu.memory_space<vmem>>, vector<16x80xbf16>,
    %c0_67 = arith.constant 0 : index
    %c137_68 = arith.constant 137 : index
    %62 = vector.load %arg11[%c0_67, %c137_68] : memref<32x219xbf16, #tpu.memory_space<vmem>>, vector<16x80xbf16>
    %c96_69 = arith.constant 96 : index
    %c0_70 = arith.constant 0 : index
    %63 = vector.load %arg12[%c96_69, %c0_70] : memref<288x80xbf16, #tpu.memory_space<vmem>>, vector<16x80xbf16>
    tpu.vector_store %arg12[%c96_69, %c0_70], %62 {strides = array<i32>} : memref<288x80xbf16, #tpu.memory_space<vmem>>, vector<16x80xbf16>,
    %c0_71 = arith.constant 0 : index
    %c138_72 = arith.constant 138 : index
    %64 = vector.load %arg11[%c0_71, %c138_72] : memref<32x219xbf16, #tpu.memory_space<vmem>>, vector<16x80xbf16>
    %c112 = arith.constant 112 : index
    %c0_73 = arith.constant 0 : index
    %65 = vector.load %arg12[%c112, %c0_73] : memref<288x80xbf16, #tpu.memory_space<vmem>>, vector<16x80xbf16>
    tpu.vector_store %arg12[%c112, %c0_73], %64 {strides = array<i32>} : memref<288x80xbf16, #tpu.memory_space<vmem>>, vector<16x80xbf16>,
    %c0_74 = arith.constant 0 : index
    %c139_75 = arith.constant 139 : index
    %66 = vector.load %arg11[%c0_74, %c139_75] : memref<32x219xbf16, #tpu.memory_space<vmem>>, vector<16x80xbf16>
    %c128_76 = arith.constant 128 : index
    %c0_77 = arith.constant 0 : index
    %67 = vector.load %arg12[%c128_76, %c0_77] : memref<288x80xbf16, #tpu.memory_space<vmem>>, vector<16x80xbf16>
    tpu.vector_store %arg12[%c128_76, %c0_77], %66 {strides = array<i32>} : memref<288x80xbf16, #tpu.memory_space<vmem>>, vector<16x80xbf16>,
    %c0_78 = arith.constant 0 : index
    %c0_79 = arith.constant 0 : index
    %68 = vector.load %arg12[%c0_78, %c0_79] : memref<288x80xbf16, #tpu.memory_space<vmem>>, vector<144x80xbf16>
    %cst_80 = arith.constant dense<0.000000e+00> : vector<16x80xf32>
    %69 = tpu.matmul %49, %68, %cst_80 {dimension_numbers = #tpu.dot_dimension_numbers<[1], [0], [0], [1], [0, 0, 1, 1], [], []>} : vector<16x144xbf16>, vector<144x80xbf16>, vector<16x80xf32> -> vector<16x80xf32>
    %c0_81 = arith.constant 0 : index
    %c0_82 = arith.constant 0 : index
    %70 = vector.load %arg7[%c0_81, %c0_82] : memref<16x3xf32, #tpu.memory_space<vmem>>, vector<16x3xf32>
    %71 = vector.extract_strided_slice %70 {offsets = [0, 0], sizes = [16, 1], strides = [1, 1]} : vector<16x3xf32> to vector<16x1xf32>
    %72 = vector.broadcast %71 : vector<16x1xf32> to vector<16x80xf32>
    %73 = arith.addf %69, %72 : vector<16x80xf32>
    %cst_83 = arith.constant 0.000000e+00 : f32
    %74 = vector.broadcast %cst_83 : f32 to vector<16x80xf32>
    %75 = arith.cmpf oge, %73, %74 : vector<16x80xf32>
    %cst_84 = arith.constant 0.00999999977 : f32
    %76 = vector.broadcast %cst_84 : f32 to vector<16x80xf32>
    %77 = arith.mulf %76, %73 : vector<16x80xf32>
    %78 = arith.select %75, %73, %77 : vector<16x80xi1>, vector<16x80xf32>
    %79 = vector.extract_strided_slice %70 {offsets = [0, 1], sizes = [16, 1], strides = [1, 1]} : vector<16x3xf32> to vector<16x1xf32>
    %80 = vector.broadcast %79 : vector<16x1xf32> to vector<16x80xf32>
    %81 = arith.mulf %78, %80 : vector<16x80xf32>
    %82 = vector.extract_strided_slice %70 {offsets = [0, 2], sizes = [16, 1], strides = [1, 1]} : vector<16x3xf32> to vector<16x1xf32>
    %83 = vector.broadcast %82 : vector<16x1xf32> to vector<16x80xf32>
    %84 = arith.addf %81, %83 : vector<16x80xf32>
    %c0_85 = arith.constant 0 : index
    %c0_86 = arith.constant 0 : index
    %85 = vector.load %arg8[%c0_85, %c0_86] : memref<16x16xbf16, #tpu.memory_space<vmem>>, vector<16x16xbf16>
    %86 = arith.truncf %84 : vector<16x80xf32> to vector<16x80xbf16>
    %cst_87 = arith.constant dense<0.000000e+00> : vector<16x80xf32>
    %87 = tpu.matmul %85, %86, %cst_87 {dimension_numbers = #tpu.dot_dimension_numbers<[1], [0], [0], [1], [0, 0, 1, 1], [], []>} : vector<16x16xbf16>, vector<16x80xbf16>, vector<16x80xf32> -> vector<16x80xf32>
    %c0_88 = arith.constant 0 : index
    %c0_89 = arith.constant 0 : index
    %88 = vector.load %arg9[%c0_88, %c0_89] : memref<16x1xf32, #tpu.memory_space<vmem>>, vector<16x1xf32>
    %89 = vector.broadcast %88 : vector<16x1xf32> to vector<16x80xf32>
    %90 = arith.addf %87, %89 : vector<16x80xf32>
    %91 = arith.truncf %90 : vector<16x80xf32> to vector<16x80xbf16>
    %c0_90 = arith.constant 0 : index
    %c0_91 = arith.constant 0 : index
    %c0_92 = arith.constant 0 : index
    %92 = vector.load %arg10[%c0_90, %c0_91, %c0_92] : memref<1x16x80xbf16, #tpu.memory_space<vmem>>, vector<1x16x80xbf16>
    %93 = vector.shape_cast %92 : vector<1x16x80xbf16> to vector<16x80xbf16>
    %94 = vector.shape_cast %91 : vector<16x80xbf16> to vector<1x16x80xbf16>
    tpu.vector_store %arg10[%c0_90, %c0_91, %c0_92], %94 {strides = array<i32>} : memref<1x16x80xbf16, #tpu.memory_space<vmem>>, vector<1x16x80xbf16>,
    return
  }
  func.func @transform_0(%arg0: i32) -> (i32, i32) {
    %c0_i32 = arith.constant 0 : i32
    %c0_i32_0 = arith.constant 0 : i32
    %c0_i32_1 = arith.constant 0 : i32
    return %c0_i32, %c0_i32_0 : i32, i32
  }
  func.func @transform_1(%arg0: i32) -> (i32, i32, i32) {
    %c0_i32 = arith.constant 0 : i32
    %c0_i32_0 = arith.constant 0 : i32
    %c0_i32_1 = arith.constant 0 : i32
    return %arg0, %c0_i32, %c0_i32_0 : i32, i32, i32
  }
  func.func @transform_2(%arg0: i32) -> (i32, i32, i32) {
    %c0_i32 = arith.constant 0 : i32
    %c0_i32_0 = arith.constant 0 : i32
    %c0_i32_1 = arith.constant 0 : i32
    return %arg0, %c0_i32, %c0_i32_0 : i32, i32, i32
  }
  func.func @transform_3(%arg0: i32) -> (i32, i32) {
    %c0_i32 = arith.constant 0 : i32
    %c0_i32_0 = arith.constant 0 : i32
    %c0_i32_1 = arith.constant 0 : i32
    return %c0_i32, %c0_i32_0 : i32, i32
  }
  func.func @transform_4(%arg0: i32) -> (i32, i32) {
    %c0_i32 = arith.constant 0 : i32
    %c0_i32_0 = arith.constant 0 : i32
    %c0_i32_1 = arith.constant 0 : i32
    return %c0_i32, %c0_i32_0 : i32, i32
  }
  func.func @transform_5(%arg0: i32) -> (i32, i32) {
    %c0_i32 = arith.constant 0 : i32
    %c0_i32_0 = arith.constant 0 : i32
    %c0_i32_1 = arith.constant 0 : i32
    return %c0_i32, %c0_i32_0 : i32, i32
  }
  func.func @transform_6(%arg0: i32) -> (i32, i32) {
    %c0_i32 = arith.constant 0 : i32
    %c0_i32_0 = arith.constant 0 : i32
    %c0_i32_1 = arith.constant 0 : i32
    return %c0_i32, %c0_i32_0 : i32, i32
  }
  func.func @transform_7(%arg0: i32) -> (i32, i32) {
    %c0_i32 = arith.constant 0 : i32
    %c0_i32_0 = arith.constant 0 : i32
    %c0_i32_1 = arith.constant 0 : i32
    return %c0_i32, %c0_i32_0 : i32, i32
  }
  func.func @transform_8(%arg0: i32) -> (i32, i32) {
    %c0_i32 = arith.constant 0 : i32
    %c0_i32_0 = arith.constant 0 : i32
    %c0_i32_1 = arith.constant 0 : i32
    return %c0_i32, %c0_i32_0 : i32, i32
  }
  func.func @transform_9(%arg0: i32) -> (i32, i32, i32) {
    %c0_i32 = arith.constant 0 : i32
    %c0_i32_0 = arith.constant 0 : i32
    %c0_i32_1 = arith.constant 0 : i32
    return %arg0, %c0_i32, %c0_i32_0 : i32, i32, i32
  }
}

module attributes {stable_mosaic.version = 11 : i64} {
  func.func @_block_kernel(%arg0: i32, %arg1: memref<1x288xf32, #tpu.memory_space<vmem>>, %arg2: memref<1x16x288xbf16, #tpu.memory_space<vmem>>, %arg3: memref<1x16x288xbf16, #tpu.memory_space<vmem>>, %arg4: memref<16x288xbf16, #tpu.memory_space<vmem>>, %arg5: memref<16x144xbf16, #tpu.memory_space<vmem>>, %arg6: memref<16x3xf32, #tpu.memory_space<vmem>>, %arg7: memref<16x3xf32, #tpu.memory_space<vmem>>, %arg8: memref<1x16x288xbf16, #tpu.memory_space<vmem>>, %arg9: memref<32x435xbf16, #tpu.memory_space<vmem>>, %arg10: memref<288x288xbf16, #tpu.memory_space<vmem>>) attributes {dimension_semantics = [#tpu.dimension_semantics<parallel>], iteration_bounds = array<i64: 2>, scalar_prefetch = 0 : i64, scratch_operands = 2 : i64, tpu.core_type = #tpu.core_type<tc>, window_params = [{pipeline_mode = #tpu.pipeline_mode<synchronous>, transform_indices = @transform_0, window_bounds = array<i64: 1, 288>}, {transform_indices = @transform_1, window_bounds = array<i64: 1, 16, 288>}, {transform_indices = @transform_2, window_bounds = array<i64: 1, 16, 288>}, {pipeline_mode = #tpu.pipeline_mode<synchronous>, transform_indices = @transform_3, window_bounds = array<i64: 16, 288>}, {pipeline_mode = #tpu.pipeline_mode<synchronous>, transform_indices = @transform_4, window_bounds = array<i64: 16, 144>}, {pipeline_mode = #tpu.pipeline_mode<synchronous>, transform_indices = @transform_5, window_bounds = array<i64: 16, 3>}, {pipeline_mode = #tpu.pipeline_mode<synchronous>, transform_indices = @transform_6, window_bounds = array<i64: 16, 3>}, {transform_indices = @transform_7, window_bounds = array<i64: 1, 16, 288>}]} {
    %c0 = arith.constant 0 : index
    %c0_0 = arith.constant 0 : index
    %0 = vector.load %arg1[%c0, %c0_0] : memref<1x288xf32, #tpu.memory_space<vmem>>, vector<1x288xf32>
    %cst = arith.constant 0.000000e+00 : bf16
    %1 = vector.broadcast %cst : bf16 to vector<32x435xbf16>
    %c0_1 = arith.constant 0 : index
    %c0_2 = arith.constant 0 : index
    %2 = vector.load %arg9[%c0_1, %c0_2] : memref<32x435xbf16, #tpu.memory_space<vmem>>, vector<32x435xbf16>
    tpu.vector_store %arg9[%c0_1, %c0_2], %1 {strides = array<i32>} : memref<32x435xbf16, #tpu.memory_space<vmem>>, vector<32x435xbf16>,
    %c0_3 = arith.constant 0 : index
    %c0_4 = arith.constant 0 : index
    %c0_5 = arith.constant 0 : index
    %3 = vector.load %arg2[%c0_3, %c0_4, %c0_5] : memref<1x16x288xbf16, #tpu.memory_space<vmem>>, vector<1x16x288xbf16>
    %4 = vector.shape_cast %3 : vector<1x16x288xbf16> to vector<16x288xbf16>
    %c0_6 = arith.constant 0 : index
    %c128 = arith.constant 128 : index
    %5 = vector.load %arg9[%c0_6, %c128] : memref<32x435xbf16, #tpu.memory_space<vmem>>, vector<16x288xbf16>
    tpu.vector_store %arg9[%c0_6, %c128], %4 {strides = array<i32>} : memref<32x435xbf16, #tpu.memory_space<vmem>>, vector<16x288xbf16>,
    %c0_7 = arith.constant 0 : index
    %c0_8 = arith.constant 0 : index
    %c0_9 = arith.constant 0 : index
    %6 = vector.load %arg3[%c0_7, %c0_8, %c0_9] : memref<1x16x288xbf16, #tpu.memory_space<vmem>>, vector<1x16x288xbf16>
    %7 = vector.shape_cast %6 : vector<1x16x288xbf16> to vector<16x288xbf16>
    %c16 = arith.constant 16 : index
    %c128_10 = arith.constant 128 : index
    %8 = vector.load %arg9[%c16, %c128_10] : memref<32x435xbf16, #tpu.memory_space<vmem>>, vector<16x288xbf16>
    tpu.vector_store %arg9[%c16, %c128_10], %7 {strides = array<i32>} : memref<32x435xbf16, #tpu.memory_space<vmem>>, vector<16x288xbf16>,
    %c0_11 = arith.constant 0 : index
    %c0_12 = arith.constant 0 : index
    %9 = vector.load %arg4[%c0_11, %c0_12] : memref<16x288xbf16, #tpu.memory_space<vmem>>, vector<16x288xbf16>
    %c0_13 = arith.constant 0 : index
    %c109 = arith.constant 109 : index
    %10 = vector.load %arg9[%c0_13, %c109] : memref<32x435xbf16, #tpu.memory_space<vmem>>, vector<32x288xbf16>
    %c0_14 = arith.constant 0 : index
    %c0_15 = arith.constant 0 : index
    %11 = vector.load %arg10[%c0_14, %c0_15] : memref<288x288xbf16, #tpu.memory_space<vmem>>, vector<32x288xbf16>
    tpu.vector_store %arg10[%c0_14, %c0_15], %10 {strides = array<i32>} : memref<288x288xbf16, #tpu.memory_space<vmem>>, vector<32x288xbf16>,
    %c0_16 = arith.constant 0 : index
    %c110 = arith.constant 110 : index
    %12 = vector.load %arg9[%c0_16, %c110] : memref<32x435xbf16, #tpu.memory_space<vmem>>, vector<32x288xbf16>
    %c32 = arith.constant 32 : index
    %c0_17 = arith.constant 0 : index
    %13 = vector.load %arg10[%c32, %c0_17] : memref<288x288xbf16, #tpu.memory_space<vmem>>, vector<32x288xbf16>
    tpu.vector_store %arg10[%c32, %c0_17], %12 {strides = array<i32>} : memref<288x288xbf16, #tpu.memory_space<vmem>>, vector<32x288xbf16>,
    %c0_18 = arith.constant 0 : index
    %c111 = arith.constant 111 : index
    %14 = vector.load %arg9[%c0_18, %c111] : memref<32x435xbf16, #tpu.memory_space<vmem>>, vector<32x288xbf16>
    %c64 = arith.constant 64 : index
    %c0_19 = arith.constant 0 : index
    %15 = vector.load %arg10[%c64, %c0_19] : memref<288x288xbf16, #tpu.memory_space<vmem>>, vector<32x288xbf16>
    tpu.vector_store %arg10[%c64, %c0_19], %14 {strides = array<i32>} : memref<288x288xbf16, #tpu.memory_space<vmem>>, vector<32x288xbf16>,
    %c0_20 = arith.constant 0 : index
    %c127 = arith.constant 127 : index
    %16 = vector.load %arg9[%c0_20, %c127] : memref<32x435xbf16, #tpu.memory_space<vmem>>, vector<32x288xbf16>
    %c96 = arith.constant 96 : index
    %c0_21 = arith.constant 0 : index
    %17 = vector.load %arg10[%c96, %c0_21] : memref<288x288xbf16, #tpu.memory_space<vmem>>, vector<32x288xbf16>
    tpu.vector_store %arg10[%c96, %c0_21], %16 {strides = array<i32>} : memref<288x288xbf16, #tpu.memory_space<vmem>>, vector<32x288xbf16>,
    %c0_22 = arith.constant 0 : index
    %c128_23 = arith.constant 128 : index
    %18 = vector.load %arg9[%c0_22, %c128_23] : memref<32x435xbf16, #tpu.memory_space<vmem>>, vector<32x288xbf16>
    %c128_24 = arith.constant 128 : index
    %c0_25 = arith.constant 0 : index
    %19 = vector.load %arg10[%c128_24, %c0_25] : memref<288x288xbf16, #tpu.memory_space<vmem>>, vector<32x288xbf16>
    tpu.vector_store %arg10[%c128_24, %c0_25], %18 {strides = array<i32>} : memref<288x288xbf16, #tpu.memory_space<vmem>>, vector<32x288xbf16>,
    %c0_26 = arith.constant 0 : index
    %c129 = arith.constant 129 : index
    %20 = vector.load %arg9[%c0_26, %c129] : memref<32x435xbf16, #tpu.memory_space<vmem>>, vector<32x288xbf16>
    %c160 = arith.constant 160 : index
    %c0_27 = arith.constant 0 : index
    %21 = vector.load %arg10[%c160, %c0_27] : memref<288x288xbf16, #tpu.memory_space<vmem>>, vector<32x288xbf16>
    tpu.vector_store %arg10[%c160, %c0_27], %20 {strides = array<i32>} : memref<288x288xbf16, #tpu.memory_space<vmem>>, vector<32x288xbf16>,
    %c0_28 = arith.constant 0 : index
    %c145 = arith.constant 145 : index
    %22 = vector.load %arg9[%c0_28, %c145] : memref<32x435xbf16, #tpu.memory_space<vmem>>, vector<32x288xbf16>
    %c192 = arith.constant 192 : index
    %c0_29 = arith.constant 0 : index
    %23 = vector.load %arg10[%c192, %c0_29] : memref<288x288xbf16, #tpu.memory_space<vmem>>, vector<32x288xbf16>
    tpu.vector_store %arg10[%c192, %c0_29], %22 {strides = array<i32>} : memref<288x288xbf16, #tpu.memory_space<vmem>>, vector<32x288xbf16>,
    %c0_30 = arith.constant 0 : index
    %c146 = arith.constant 146 : index
    %24 = vector.load %arg9[%c0_30, %c146] : memref<32x435xbf16, #tpu.memory_space<vmem>>, vector<32x288xbf16>
    %c224 = arith.constant 224 : index
    %c0_31 = arith.constant 0 : index
    %25 = vector.load %arg10[%c224, %c0_31] : memref<288x288xbf16, #tpu.memory_space<vmem>>, vector<32x288xbf16>
    tpu.vector_store %arg10[%c224, %c0_31], %24 {strides = array<i32>} : memref<288x288xbf16, #tpu.memory_space<vmem>>, vector<32x288xbf16>,
    %c0_32 = arith.constant 0 : index
    %c147 = arith.constant 147 : index
    %26 = vector.load %arg9[%c0_32, %c147] : memref<32x435xbf16, #tpu.memory_space<vmem>>, vector<32x288xbf16>
    %c256 = arith.constant 256 : index
    %c0_33 = arith.constant 0 : index
    %27 = vector.load %arg10[%c256, %c0_33] : memref<288x288xbf16, #tpu.memory_space<vmem>>, vector<32x288xbf16>
    tpu.vector_store %arg10[%c256, %c0_33], %26 {strides = array<i32>} : memref<288x288xbf16, #tpu.memory_space<vmem>>, vector<32x288xbf16>,
    %c0_34 = arith.constant 0 : index
    %c0_35 = arith.constant 0 : index
    %28 = vector.load %arg10[%c0_34, %c0_35] : memref<288x288xbf16, #tpu.memory_space<vmem>>, vector<288x288xbf16>
    %cst_36 = arith.constant dense<0.000000e+00> : vector<16x288xf32>
    %29 = tpu.matmul %9, %28, %cst_36 {dimension_numbers = #tpu.dot_dimension_numbers<[1], [0], [0], [1], [0, 0, 1, 1], [], []>} : vector<16x288xbf16>, vector<288x288xbf16>, vector<16x288xf32> -> vector<16x288xf32>
    %c0_37 = arith.constant 0 : index
    %c0_38 = arith.constant 0 : index
    %30 = vector.load %arg6[%c0_37, %c0_38] : memref<16x3xf32, #tpu.memory_space<vmem>>, vector<16x3xf32>
    %31 = vector.extract_strided_slice %30 {offsets = [0, 0], sizes = [16, 1], strides = [1, 1]} : vector<16x3xf32> to vector<16x1xf32>
    %32 = vector.broadcast %31 : vector<16x1xf32> to vector<16x288xf32>
    %33 = arith.addf %29, %32 : vector<16x288xf32>
    %cst_39 = arith.constant 0.000000e+00 : f32
    %34 = vector.broadcast %cst_39 : f32 to vector<16x288xf32>
    %35 = arith.cmpf oge, %33, %34 : vector<16x288xf32>
    %cst_40 = arith.constant 0.00999999977 : f32
    %36 = vector.broadcast %cst_40 : f32 to vector<16x288xf32>
    %37 = arith.mulf %36, %33 : vector<16x288xf32>
    %38 = arith.select %35, %33, %37 : vector<16x288xi1>, vector<16x288xf32>
    %39 = vector.extract_strided_slice %30 {offsets = [0, 1], sizes = [16, 1], strides = [1, 1]} : vector<16x3xf32> to vector<16x1xf32>
    %40 = vector.broadcast %39 : vector<16x1xf32> to vector<16x288xf32>
    %41 = arith.mulf %38, %40 : vector<16x288xf32>
    %42 = vector.extract_strided_slice %30 {offsets = [0, 2], sizes = [16, 1], strides = [1, 1]} : vector<16x3xf32> to vector<16x1xf32>
    %43 = vector.broadcast %42 : vector<16x1xf32> to vector<16x288xf32>
    %44 = arith.addf %41, %43 : vector<16x288xf32>
    %45 = vector.broadcast %0 : vector<1x288xf32> to vector<16x288xf32>
    %46 = arith.mulf %44, %45 : vector<16x288xf32>
    %47 = arith.truncf %46 : vector<16x288xf32> to vector<16x288xbf16>
    %c0_41 = arith.constant 0 : index
    %c128_42 = arith.constant 128 : index
    %48 = vector.load %arg9[%c0_41, %c128_42] : memref<32x435xbf16, #tpu.memory_space<vmem>>, vector<16x288xbf16>
    tpu.vector_store %arg9[%c0_41, %c128_42], %47 {strides = array<i32>} : memref<32x435xbf16, #tpu.memory_space<vmem>>, vector<16x288xbf16>,
    %c0_43 = arith.constant 0 : index
    %c0_44 = arith.constant 0 : index
    %49 = vector.load %arg5[%c0_43, %c0_44] : memref<16x144xbf16, #tpu.memory_space<vmem>>, vector<16x144xbf16>
    %c0_45 = arith.constant 0 : index
    %c109_46 = arith.constant 109 : index
    %50 = vector.load %arg9[%c0_45, %c109_46] : memref<32x435xbf16, #tpu.memory_space<vmem>>, vector<16x288xbf16>
    %c0_47 = arith.constant 0 : index
    %c0_48 = arith.constant 0 : index
    %51 = vector.load %arg10[%c0_47, %c0_48] : memref<288x288xbf16, #tpu.memory_space<vmem>>, vector<16x288xbf16>
    tpu.vector_store %arg10[%c0_47, %c0_48], %50 {strides = array<i32>} : memref<288x288xbf16, #tpu.memory_space<vmem>>, vector<16x288xbf16>,
    %c0_49 = arith.constant 0 : index
    %c110_50 = arith.constant 110 : index
    %52 = vector.load %arg9[%c0_49, %c110_50] : memref<32x435xbf16, #tpu.memory_space<vmem>>, vector<16x288xbf16>
    %c16_51 = arith.constant 16 : index
    %c0_52 = arith.constant 0 : index
    %53 = vector.load %arg10[%c16_51, %c0_52] : memref<288x288xbf16, #tpu.memory_space<vmem>>, vector<16x288xbf16>
    tpu.vector_store %arg10[%c16_51, %c0_52], %52 {strides = array<i32>} : memref<288x288xbf16, #tpu.memory_space<vmem>>, vector<16x288xbf16>,
    %c0_53 = arith.constant 0 : index
    %c111_54 = arith.constant 111 : index
    %54 = vector.load %arg9[%c0_53, %c111_54] : memref<32x435xbf16, #tpu.memory_space<vmem>>, vector<16x288xbf16>
    %c32_55 = arith.constant 32 : index
    %c0_56 = arith.constant 0 : index
    %55 = vector.load %arg10[%c32_55, %c0_56] : memref<288x288xbf16, #tpu.memory_space<vmem>>, vector<16x288xbf16>
    tpu.vector_store %arg10[%c32_55, %c0_56], %54 {strides = array<i32>} : memref<288x288xbf16, #tpu.memory_space<vmem>>, vector<16x288xbf16>,
    %c0_57 = arith.constant 0 : index
    %c127_58 = arith.constant 127 : index
    %56 = vector.load %arg9[%c0_57, %c127_58] : memref<32x435xbf16, #tpu.memory_space<vmem>>, vector<16x288xbf16>
    %c48 = arith.constant 48 : index
    %c0_59 = arith.constant 0 : index
    %57 = vector.load %arg10[%c48, %c0_59] : memref<288x288xbf16, #tpu.memory_space<vmem>>, vector<16x288xbf16>
    tpu.vector_store %arg10[%c48, %c0_59], %56 {strides = array<i32>} : memref<288x288xbf16, #tpu.memory_space<vmem>>, vector<16x288xbf16>,
    %c0_60 = arith.constant 0 : index
    %c128_61 = arith.constant 128 : index
    %58 = vector.load %arg9[%c0_60, %c128_61] : memref<32x435xbf16, #tpu.memory_space<vmem>>, vector<16x288xbf16>
    %c64_62 = arith.constant 64 : index
    %c0_63 = arith.constant 0 : index
    %59 = vector.load %arg10[%c64_62, %c0_63] : memref<288x288xbf16, #tpu.memory_space<vmem>>, vector<16x288xbf16>
    tpu.vector_store %arg10[%c64_62, %c0_63], %58 {strides = array<i32>} : memref<288x288xbf16, #tpu.memory_space<vmem>>, vector<16x288xbf16>,
    %c0_64 = arith.constant 0 : index
    %c129_65 = arith.constant 129 : index
    %60 = vector.load %arg9[%c0_64, %c129_65] : memref<32x435xbf16, #tpu.memory_space<vmem>>, vector<16x288xbf16>
    %c80 = arith.constant 80 : index
    %c0_66 = arith.constant 0 : index
    %61 = vector.load %arg10[%c80, %c0_66] : memref<288x288xbf16, #tpu.memory_space<vmem>>, vector<16x288xbf16>
    tpu.vector_store %arg10[%c80, %c0_66], %60 {strides = array<i32>} : memref<288x288xbf16, #tpu.memory_space<vmem>>, vector<16x288xbf16>,
    %c0_67 = arith.constant 0 : index
    %c145_68 = arith.constant 145 : index
    %62 = vector.load %arg9[%c0_67, %c145_68] : memref<32x435xbf16, #tpu.memory_space<vmem>>, vector<16x288xbf16>
    %c96_69 = arith.constant 96 : index
    %c0_70 = arith.constant 0 : index
    %63 = vector.load %arg10[%c96_69, %c0_70] : memref<288x288xbf16, #tpu.memory_space<vmem>>, vector<16x288xbf16>
    tpu.vector_store %arg10[%c96_69, %c0_70], %62 {strides = array<i32>} : memref<288x288xbf16, #tpu.memory_space<vmem>>, vector<16x288xbf16>,
    %c0_71 = arith.constant 0 : index
    %c146_72 = arith.constant 146 : index
    %64 = vector.load %arg9[%c0_71, %c146_72] : memref<32x435xbf16, #tpu.memory_space<vmem>>, vector<16x288xbf16>
    %c112 = arith.constant 112 : index
    %c0_73 = arith.constant 0 : index
    %65 = vector.load %arg10[%c112, %c0_73] : memref<288x288xbf16, #tpu.memory_space<vmem>>, vector<16x288xbf16>
    tpu.vector_store %arg10[%c112, %c0_73], %64 {strides = array<i32>} : memref<288x288xbf16, #tpu.memory_space<vmem>>, vector<16x288xbf16>,
    %c0_74 = arith.constant 0 : index
    %c147_75 = arith.constant 147 : index
    %66 = vector.load %arg9[%c0_74, %c147_75] : memref<32x435xbf16, #tpu.memory_space<vmem>>, vector<16x288xbf16>
    %c128_76 = arith.constant 128 : index
    %c0_77 = arith.constant 0 : index
    %67 = vector.load %arg10[%c128_76, %c0_77] : memref<288x288xbf16, #tpu.memory_space<vmem>>, vector<16x288xbf16>
    tpu.vector_store %arg10[%c128_76, %c0_77], %66 {strides = array<i32>} : memref<288x288xbf16, #tpu.memory_space<vmem>>, vector<16x288xbf16>,
    %c0_78 = arith.constant 0 : index
    %c0_79 = arith.constant 0 : index
    %68 = vector.load %arg10[%c0_78, %c0_79] : memref<288x288xbf16, #tpu.memory_space<vmem>>, vector<144x288xbf16>
    %cst_80 = arith.constant dense<0.000000e+00> : vector<16x288xf32>
    %69 = tpu.matmul %49, %68, %cst_80 {dimension_numbers = #tpu.dot_dimension_numbers<[1], [0], [0], [1], [0, 0, 1, 1], [], []>} : vector<16x144xbf16>, vector<144x288xbf16>, vector<16x288xf32> -> vector<16x288xf32>
    %c0_81 = arith.constant 0 : index
    %c0_82 = arith.constant 0 : index
    %70 = vector.load %arg7[%c0_81, %c0_82] : memref<16x3xf32, #tpu.memory_space<vmem>>, vector<16x3xf32>
    %71 = vector.extract_strided_slice %70 {offsets = [0, 0], sizes = [16, 1], strides = [1, 1]} : vector<16x3xf32> to vector<16x1xf32>
    %72 = vector.broadcast %71 : vector<16x1xf32> to vector<16x288xf32>
    %73 = arith.addf %69, %72 : vector<16x288xf32>
    %cst_83 = arith.constant 0.000000e+00 : f32
    %74 = vector.broadcast %cst_83 : f32 to vector<16x288xf32>
    %75 = arith.cmpf oge, %73, %74 : vector<16x288xf32>
    %cst_84 = arith.constant 0.00999999977 : f32
    %76 = vector.broadcast %cst_84 : f32 to vector<16x288xf32>
    %77 = arith.mulf %76, %73 : vector<16x288xf32>
    %78 = arith.select %75, %73, %77 : vector<16x288xi1>, vector<16x288xf32>
    %79 = vector.extract_strided_slice %70 {offsets = [0, 1], sizes = [16, 1], strides = [1, 1]} : vector<16x3xf32> to vector<16x1xf32>
    %80 = vector.broadcast %79 : vector<16x1xf32> to vector<16x288xf32>
    %81 = arith.mulf %78, %80 : vector<16x288xf32>
    %82 = vector.extract_strided_slice %70 {offsets = [0, 2], sizes = [16, 1], strides = [1, 1]} : vector<16x3xf32> to vector<16x1xf32>
    %83 = vector.broadcast %82 : vector<16x1xf32> to vector<16x288xf32>
    %84 = arith.addf %81, %83 : vector<16x288xf32>
    %85 = tpu.iota {dimensions = array<i32: 0>} : vector<16x1xi32>
    %c4_i32 = arith.constant 4 : i32
    %86 = vector.broadcast %c4_i32 : i32 to vector<16x1xi32>
    %87 = arith.cmpi slt, %85, %86 : vector<16x1xi32>
    %cst_85 = arith.constant -1.000000e+30 : f32
    %88 = vector.shape_cast %87 : vector<16x1xi1> to vector<16x1xi1>
    %89 = vector.broadcast %88 : vector<16x1xi1> to vector<16x288xi1>
    %90 = vector.broadcast %cst_85 : f32 to vector<16x288xf32>
    %91 = arith.select %89, %84, %90 : vector<16x288xi1>, vector<16x288xf32>
    %cst_86 = arith.constant dense<0xFF800000> : vector<288xf32>
    %92 = vector.multi_reduction <maximumf>, %91, %cst_86 [0] : vector<16x288xf32> to vector<288xf32>
    %93 = vector.shape_cast %92 : vector<288xf32> to vector<1x288xf32>
    %94 = vector.broadcast %93 : vector<1x288xf32> to vector<16x288xf32>
    %95 = arith.subf %91, %94 : vector<16x288xf32>
    %96 = math.exp %95 : vector<16x288xf32>
    %cst_87 = arith.constant dense<0.000000e+00> : vector<288xf32>
    %97 = vector.multi_reduction <add>, %96, %cst_87 [0] : vector<16x288xf32> to vector<288xf32>
    %98 = vector.shape_cast %97 : vector<288xf32> to vector<1x288xf32>
    %99 = vector.broadcast %98 : vector<1x288xf32> to vector<16x288xf32>
    %100 = arith.divf %96, %99 : vector<16x288xf32>
    %101 = vector.broadcast %0 : vector<1x288xf32> to vector<16x288xf32>
    %102 = arith.mulf %100, %101 : vector<16x288xf32>
    %103 = arith.truncf %102 : vector<16x288xf32> to vector<16x288xbf16>
    %c0_88 = arith.constant 0 : index
    %c0_89 = arith.constant 0 : index
    %c0_90 = arith.constant 0 : index
    %104 = vector.load %arg8[%c0_88, %c0_89, %c0_90] : memref<1x16x288xbf16, #tpu.memory_space<vmem>>, vector<1x16x288xbf16>
    %105 = vector.shape_cast %104 : vector<1x16x288xbf16> to vector<16x288xbf16>
    %106 = vector.shape_cast %103 : vector<16x288xbf16> to vector<1x16x288xbf16>
    tpu.vector_store %arg8[%c0_88, %c0_89, %c0_90], %106 {strides = array<i32>} : memref<1x16x288xbf16, #tpu.memory_space<vmem>>, vector<1x16x288xbf16>,
    return
  }
  func.func @transform_0(%arg0: i32) -> (i32, i32) {
    %c0_i32 = arith.constant 0 : i32
    %c0_i32_0 = arith.constant 0 : i32
    %c0_i32_1 = arith.constant 0 : i32
    return %c0_i32, %c0_i32_0 : i32, i32
  }
  func.func @transform_1(%arg0: i32) -> (i32, i32, i32) {
    %c0_i32 = arith.constant 0 : i32
    %c0_i32_0 = arith.constant 0 : i32
    %c0_i32_1 = arith.constant 0 : i32
    return %arg0, %c0_i32, %c0_i32_0 : i32, i32, i32
  }
  func.func @transform_2(%arg0: i32) -> (i32, i32, i32) {
    %c0_i32 = arith.constant 0 : i32
    %c0_i32_0 = arith.constant 0 : i32
    %c0_i32_1 = arith.constant 0 : i32
    return %arg0, %c0_i32, %c0_i32_0 : i32, i32, i32
  }
  func.func @transform_3(%arg0: i32) -> (i32, i32) {
    %c0_i32 = arith.constant 0 : i32
    %c0_i32_0 = arith.constant 0 : i32
    %c0_i32_1 = arith.constant 0 : i32
    return %c0_i32, %c0_i32_0 : i32, i32
  }
  func.func @transform_4(%arg0: i32) -> (i32, i32) {
    %c0_i32 = arith.constant 0 : i32
    %c0_i32_0 = arith.constant 0 : i32
    %c0_i32_1 = arith.constant 0 : i32
    return %c0_i32, %c0_i32_0 : i32, i32
  }
  func.func @transform_5(%arg0: i32) -> (i32, i32) {
    %c0_i32 = arith.constant 0 : i32
    %c0_i32_0 = arith.constant 0 : i32
    %c0_i32_1 = arith.constant 0 : i32
    return %c0_i32, %c0_i32_0 : i32, i32
  }
  func.func @transform_6(%arg0: i32) -> (i32, i32) {
    %c0_i32 = arith.constant 0 : i32
    %c0_i32_0 = arith.constant 0 : i32
    %c0_i32_1 = arith.constant 0 : i32
    return %c0_i32, %c0_i32_0 : i32, i32
  }
  func.func @transform_7(%arg0: i32) -> (i32, i32, i32) {
    %c0_i32 = arith.constant 0 : i32
    %c0_i32_0 = arith.constant 0 : i32
    %c0_i32_1 = arith.constant 0 : i32
    return %arg0, %c0_i32, %c0_i32_0 : i32, i32, i32
  }
}

module attributes {stable_mosaic.version = 11 : i64} {
  func.func @_block_kernel(%arg0: i32, %arg1: memref<1x288xf32, #tpu.memory_space<vmem>>, %arg2: memref<1x16x288xbf16, #tpu.memory_space<vmem>>, %arg3: memref<1x16x288xbf16, #tpu.memory_space<vmem>>, %arg4: memref<16x288xbf16, #tpu.memory_space<vmem>>, %arg5: memref<16x144xbf16, #tpu.memory_space<vmem>>, %arg6: memref<16x3xf32, #tpu.memory_space<vmem>>, %arg7: memref<16x3xf32, #tpu.memory_space<vmem>>, %arg8: memref<2x16xbf16, #tpu.memory_space<vmem>>, %arg9: memref<2x1xf32, #tpu.memory_space<vmem>>, %arg10: memref<1x2x288xf32, #tpu.memory_space<vmem>>, %arg11: memref<32x435xbf16, #tpu.memory_space<vmem>>, %arg12: memref<288x288xbf16, #tpu.memory_space<vmem>>) attributes {dimension_semantics = [#tpu.dimension_semantics<parallel>], iteration_bounds = array<i64: 2>, scalar_prefetch = 0 : i64, scratch_operands = 2 : i64, tpu.core_type = #tpu.core_type<tc>, window_params = [{pipeline_mode = #tpu.pipeline_mode<synchronous>, transform_indices = @transform_0, window_bounds = array<i64: 1, 288>}, {transform_indices = @transform_1, window_bounds = array<i64: 1, 16, 288>}, {transform_indices = @transform_2, window_bounds = array<i64: 1, 16, 288>}, {pipeline_mode = #tpu.pipeline_mode<synchronous>, transform_indices = @transform_3, window_bounds = array<i64: 16, 288>}, {pipeline_mode = #tpu.pipeline_mode<synchronous>, transform_indices = @transform_4, window_bounds = array<i64: 16, 144>}, {pipeline_mode = #tpu.pipeline_mode<synchronous>, transform_indices = @transform_5, window_bounds = array<i64: 16, 3>}, {pipeline_mode = #tpu.pipeline_mode<synchronous>, transform_indices = @transform_6, window_bounds = array<i64: 16, 3>}, {pipeline_mode = #tpu.pipeline_mode<synchronous>, transform_indices = @transform_7, window_bounds = array<i64: 2, 16>}, {pipeline_mode = #tpu.pipeline_mode<synchronous>, transform_indices = @transform_8, window_bounds = array<i64: 2, 1>}, {transform_indices = @transform_9, window_bounds = array<i64: 1, 2, 288>}]} {
    %c0 = arith.constant 0 : index
    %c0_0 = arith.constant 0 : index
    %0 = vector.load %arg1[%c0, %c0_0] : memref<1x288xf32, #tpu.memory_space<vmem>>, vector<1x288xf32>
    %cst = arith.constant 0.000000e+00 : bf16
    %1 = vector.broadcast %cst : bf16 to vector<32x435xbf16>
    %c0_1 = arith.constant 0 : index
    %c0_2 = arith.constant 0 : index
    %2 = vector.load %arg11[%c0_1, %c0_2] : memref<32x435xbf16, #tpu.memory_space<vmem>>, vector<32x435xbf16>
    tpu.vector_store %arg11[%c0_1, %c0_2], %1 {strides = array<i32>} : memref<32x435xbf16, #tpu.memory_space<vmem>>, vector<32x435xbf16>,
    %c0_3 = arith.constant 0 : index
    %c0_4 = arith.constant 0 : index
    %c0_5 = arith.constant 0 : index
    %3 = vector.load %arg2[%c0_3, %c0_4, %c0_5] : memref<1x16x288xbf16, #tpu.memory_space<vmem>>, vector<1x16x288xbf16>
    %4 = vector.shape_cast %3 : vector<1x16x288xbf16> to vector<16x288xbf16>
    %c0_6 = arith.constant 0 : index
    %c128 = arith.constant 128 : index
    %5 = vector.load %arg11[%c0_6, %c128] : memref<32x435xbf16, #tpu.memory_space<vmem>>, vector<16x288xbf16>
    tpu.vector_store %arg11[%c0_6, %c128], %4 {strides = array<i32>} : memref<32x435xbf16, #tpu.memory_space<vmem>>, vector<16x288xbf16>,
    %c0_7 = arith.constant 0 : index
    %c0_8 = arith.constant 0 : index
    %c0_9 = arith.constant 0 : index
    %6 = vector.load %arg3[%c0_7, %c0_8, %c0_9] : memref<1x16x288xbf16, #tpu.memory_space<vmem>>, vector<1x16x288xbf16>
    %7 = vector.shape_cast %6 : vector<1x16x288xbf16> to vector<16x288xbf16>
    %c16 = arith.constant 16 : index
    %c128_10 = arith.constant 128 : index
    %8 = vector.load %arg11[%c16, %c128_10] : memref<32x435xbf16, #tpu.memory_space<vmem>>, vector<16x288xbf16>
    tpu.vector_store %arg11[%c16, %c128_10], %7 {strides = array<i32>} : memref<32x435xbf16, #tpu.memory_space<vmem>>, vector<16x288xbf16>,
    %c0_11 = arith.constant 0 : index
    %c0_12 = arith.constant 0 : index
    %9 = vector.load %arg4[%c0_11, %c0_12] : memref<16x288xbf16, #tpu.memory_space<vmem>>, vector<16x288xbf16>
    %c0_13 = arith.constant 0 : index
    %c109 = arith.constant 109 : index
    %10 = vector.load %arg11[%c0_13, %c109] : memref<32x435xbf16, #tpu.memory_space<vmem>>, vector<32x288xbf16>
    %c0_14 = arith.constant 0 : index
    %c0_15 = arith.constant 0 : index
    %11 = vector.load %arg12[%c0_14, %c0_15] : memref<288x288xbf16, #tpu.memory_space<vmem>>, vector<32x288xbf16>
    tpu.vector_store %arg12[%c0_14, %c0_15], %10 {strides = array<i32>} : memref<288x288xbf16, #tpu.memory_space<vmem>>, vector<32x288xbf16>,
    %c0_16 = arith.constant 0 : index
    %c110 = arith.constant 110 : index
    %12 = vector.load %arg11[%c0_16, %c110] : memref<32x435xbf16, #tpu.memory_space<vmem>>, vector<32x288xbf16>
    %c32 = arith.constant 32 : index
    %c0_17 = arith.constant 0 : index
    %13 = vector.load %arg12[%c32, %c0_17] : memref<288x288xbf16, #tpu.memory_space<vmem>>, vector<32x288xbf16>
    tpu.vector_store %arg12[%c32, %c0_17], %12 {strides = array<i32>} : memref<288x288xbf16, #tpu.memory_space<vmem>>, vector<32x288xbf16>,
    %c0_18 = arith.constant 0 : index
    %c111 = arith.constant 111 : index
    %14 = vector.load %arg11[%c0_18, %c111] : memref<32x435xbf16, #tpu.memory_space<vmem>>, vector<32x288xbf16>
    %c64 = arith.constant 64 : index
    %c0_19 = arith.constant 0 : index
    %15 = vector.load %arg12[%c64, %c0_19] : memref<288x288xbf16, #tpu.memory_space<vmem>>, vector<32x288xbf16>
    tpu.vector_store %arg12[%c64, %c0_19], %14 {strides = array<i32>} : memref<288x288xbf16, #tpu.memory_space<vmem>>, vector<32x288xbf16>,
    %c0_20 = arith.constant 0 : index
    %c127 = arith.constant 127 : index
    %16 = vector.load %arg11[%c0_20, %c127] : memref<32x435xbf16, #tpu.memory_space<vmem>>, vector<32x288xbf16>
    %c96 = arith.constant 96 : index
    %c0_21 = arith.constant 0 : index
    %17 = vector.load %arg12[%c96, %c0_21] : memref<288x288xbf16, #tpu.memory_space<vmem>>, vector<32x288xbf16>
    tpu.vector_store %arg12[%c96, %c0_21], %16 {strides = array<i32>} : memref<288x288xbf16, #tpu.memory_space<vmem>>, vector<32x288xbf16>,
    %c0_22 = arith.constant 0 : index
    %c128_23 = arith.constant 128 : index
    %18 = vector.load %arg11[%c0_22, %c128_23] : memref<32x435xbf16, #tpu.memory_space<vmem>>, vector<32x288xbf16>
    %c128_24 = arith.constant 128 : index
    %c0_25 = arith.constant 0 : index
    %19 = vector.load %arg12[%c128_24, %c0_25] : memref<288x288xbf16, #tpu.memory_space<vmem>>, vector<32x288xbf16>
    tpu.vector_store %arg12[%c128_24, %c0_25], %18 {strides = array<i32>} : memref<288x288xbf16, #tpu.memory_space<vmem>>, vector<32x288xbf16>,
    %c0_26 = arith.constant 0 : index
    %c129 = arith.constant 129 : index
    %20 = vector.load %arg11[%c0_26, %c129] : memref<32x435xbf16, #tpu.memory_space<vmem>>, vector<32x288xbf16>
    %c160 = arith.constant 160 : index
    %c0_27 = arith.constant 0 : index
    %21 = vector.load %arg12[%c160, %c0_27] : memref<288x288xbf16, #tpu.memory_space<vmem>>, vector<32x288xbf16>
    tpu.vector_store %arg12[%c160, %c0_27], %20 {strides = array<i32>} : memref<288x288xbf16, #tpu.memory_space<vmem>>, vector<32x288xbf16>,
    %c0_28 = arith.constant 0 : index
    %c145 = arith.constant 145 : index
    %22 = vector.load %arg11[%c0_28, %c145] : memref<32x435xbf16, #tpu.memory_space<vmem>>, vector<32x288xbf16>
    %c192 = arith.constant 192 : index
    %c0_29 = arith.constant 0 : index
    %23 = vector.load %arg12[%c192, %c0_29] : memref<288x288xbf16, #tpu.memory_space<vmem>>, vector<32x288xbf16>
    tpu.vector_store %arg12[%c192, %c0_29], %22 {strides = array<i32>} : memref<288x288xbf16, #tpu.memory_space<vmem>>, vector<32x288xbf16>,
    %c0_30 = arith.constant 0 : index
    %c146 = arith.constant 146 : index
    %24 = vector.load %arg11[%c0_30, %c146] : memref<32x435xbf16, #tpu.memory_space<vmem>>, vector<32x288xbf16>
    %c224 = arith.constant 224 : index
    %c0_31 = arith.constant 0 : index
    %25 = vector.load %arg12[%c224, %c0_31] : memref<288x288xbf16, #tpu.memory_space<vmem>>, vector<32x288xbf16>
    tpu.vector_store %arg12[%c224, %c0_31], %24 {strides = array<i32>} : memref<288x288xbf16, #tpu.memory_space<vmem>>, vector<32x288xbf16>,
    %c0_32 = arith.constant 0 : index
    %c147 = arith.constant 147 : index
    %26 = vector.load %arg11[%c0_32, %c147] : memref<32x435xbf16, #tpu.memory_space<vmem>>, vector<32x288xbf16>
    %c256 = arith.constant 256 : index
    %c0_33 = arith.constant 0 : index
    %27 = vector.load %arg12[%c256, %c0_33] : memref<288x288xbf16, #tpu.memory_space<vmem>>, vector<32x288xbf16>
    tpu.vector_store %arg12[%c256, %c0_33], %26 {strides = array<i32>} : memref<288x288xbf16, #tpu.memory_space<vmem>>, vector<32x288xbf16>,
    %c0_34 = arith.constant 0 : index
    %c0_35 = arith.constant 0 : index
    %28 = vector.load %arg12[%c0_34, %c0_35] : memref<288x288xbf16, #tpu.memory_space<vmem>>, vector<288x288xbf16>
    %cst_36 = arith.constant dense<0.000000e+00> : vector<16x288xf32>
    %29 = tpu.matmul %9, %28, %cst_36 {dimension_numbers = #tpu.dot_dimension_numbers<[1], [0], [0], [1], [0, 0, 1, 1], [], []>} : vector<16x288xbf16>, vector<288x288xbf16>, vector<16x288xf32> -> vector<16x288xf32>
    %c0_37 = arith.constant 0 : index
    %c0_38 = arith.constant 0 : index
    %30 = vector.load %arg6[%c0_37, %c0_38] : memref<16x3xf32, #tpu.memory_space<vmem>>, vector<16x3xf32>
    %31 = vector.extract_strided_slice %30 {offsets = [0, 0], sizes = [16, 1], strides = [1, 1]} : vector<16x3xf32> to vector<16x1xf32>
    %32 = vector.broadcast %31 : vector<16x1xf32> to vector<16x288xf32>
    %33 = arith.addf %29, %32 : vector<16x288xf32>
    %cst_39 = arith.constant 0.000000e+00 : f32
    %34 = vector.broadcast %cst_39 : f32 to vector<16x288xf32>
    %35 = arith.cmpf oge, %33, %34 : vector<16x288xf32>
    %cst_40 = arith.constant 0.00999999977 : f32
    %36 = vector.broadcast %cst_40 : f32 to vector<16x288xf32>
    %37 = arith.mulf %36, %33 : vector<16x288xf32>
    %38 = arith.select %35, %33, %37 : vector<16x288xi1>, vector<16x288xf32>
    %39 = vector.extract_strided_slice %30 {offsets = [0, 1], sizes = [16, 1], strides = [1, 1]} : vector<16x3xf32> to vector<16x1xf32>
    %40 = vector.broadcast %39 : vector<16x1xf32> to vector<16x288xf32>
    %41 = arith.mulf %38, %40 : vector<16x288xf32>
    %42 = vector.extract_strided_slice %30 {offsets = [0, 2], sizes = [16, 1], strides = [1, 1]} : vector<16x3xf32> to vector<16x1xf32>
    %43 = vector.broadcast %42 : vector<16x1xf32> to vector<16x288xf32>
    %44 = arith.addf %41, %43 : vector<16x288xf32>
    %45 = vector.broadcast %0 : vector<1x288xf32> to vector<16x288xf32>
    %46 = arith.mulf %44, %45 : vector<16x288xf32>
    %47 = arith.truncf %46 : vector<16x288xf32> to vector<16x288xbf16>
    %c0_41 = arith.constant 0 : index
    %c128_42 = arith.constant 128 : index
    %48 = vector.load %arg11[%c0_41, %c128_42] : memref<32x435xbf16, #tpu.memory_space<vmem>>, vector<16x288xbf16>
    tpu.vector_store %arg11[%c0_41, %c128_42], %47 {strides = array<i32>} : memref<32x435xbf16, #tpu.memory_space<vmem>>, vector<16x288xbf16>,
    %c0_43 = arith.constant 0 : index
    %c0_44 = arith.constant 0 : index
    %49 = vector.load %arg5[%c0_43, %c0_44] : memref<16x144xbf16, #tpu.memory_space<vmem>>, vector<16x144xbf16>
    %c0_45 = arith.constant 0 : index
    %c109_46 = arith.constant 109 : index
    %50 = vector.load %arg11[%c0_45, %c109_46] : memref<32x435xbf16, #tpu.memory_space<vmem>>, vector<16x288xbf16>
    %c0_47 = arith.constant 0 : index
    %c0_48 = arith.constant 0 : index
    %51 = vector.load %arg12[%c0_47, %c0_48] : memref<288x288xbf16, #tpu.memory_space<vmem>>, vector<16x288xbf16>
    tpu.vector_store %arg12[%c0_47, %c0_48], %50 {strides = array<i32>} : memref<288x288xbf16, #tpu.memory_space<vmem>>, vector<16x288xbf16>,
    %c0_49 = arith.constant 0 : index
    %c110_50 = arith.constant 110 : index
    %52 = vector.load %arg11[%c0_49, %c110_50] : memref<32x435xbf16, #tpu.memory_space<vmem>>, vector<16x288xbf16>
    %c16_51 = arith.constant 16 : index
    %c0_52 = arith.constant 0 : index
    %53 = vector.load %arg12[%c16_51, %c0_52] : memref<288x288xbf16, #tpu.memory_space<vmem>>, vector<16x288xbf16>
    tpu.vector_store %arg12[%c16_51, %c0_52], %52 {strides = array<i32>} : memref<288x288xbf16, #tpu.memory_space<vmem>>, vector<16x288xbf16>,
    %c0_53 = arith.constant 0 : index
    %c111_54 = arith.constant 111 : index
    %54 = vector.load %arg11[%c0_53, %c111_54] : memref<32x435xbf16, #tpu.memory_space<vmem>>, vector<16x288xbf16>
    %c32_55 = arith.constant 32 : index
    %c0_56 = arith.constant 0 : index
    %55 = vector.load %arg12[%c32_55, %c0_56] : memref<288x288xbf16, #tpu.memory_space<vmem>>, vector<16x288xbf16>
    tpu.vector_store %arg12[%c32_55, %c0_56], %54 {strides = array<i32>} : memref<288x288xbf16, #tpu.memory_space<vmem>>, vector<16x288xbf16>,
    %c0_57 = arith.constant 0 : index
    %c127_58 = arith.constant 127 : index
    %56 = vector.load %arg11[%c0_57, %c127_58] : memref<32x435xbf16, #tpu.memory_space<vmem>>, vector<16x288xbf16>
    %c48 = arith.constant 48 : index
    %c0_59 = arith.constant 0 : index
    %57 = vector.load %arg12[%c48, %c0_59] : memref<288x288xbf16, #tpu.memory_space<vmem>>, vector<16x288xbf16>
    tpu.vector_store %arg12[%c48, %c0_59], %56 {strides = array<i32>} : memref<288x288xbf16, #tpu.memory_space<vmem>>, vector<16x288xbf16>,
    %c0_60 = arith.constant 0 : index
    %c128_61 = arith.constant 128 : index
    %58 = vector.load %arg11[%c0_60, %c128_61] : memref<32x435xbf16, #tpu.memory_space<vmem>>, vector<16x288xbf16>
    %c64_62 = arith.constant 64 : index
    %c0_63 = arith.constant 0 : index
    %59 = vector.load %arg12[%c64_62, %c0_63] : memref<288x288xbf16, #tpu.memory_space<vmem>>, vector<16x288xbf16>
    tpu.vector_store %arg12[%c64_62, %c0_63], %58 {strides = array<i32>} : memref<288x288xbf16, #tpu.memory_space<vmem>>, vector<16x288xbf16>,
    %c0_64 = arith.constant 0 : index
    %c129_65 = arith.constant 129 : index
    %60 = vector.load %arg11[%c0_64, %c129_65] : memref<32x435xbf16, #tpu.memory_space<vmem>>, vector<16x288xbf16>
    %c80 = arith.constant 80 : index
    %c0_66 = arith.constant 0 : index
    %61 = vector.load %arg12[%c80, %c0_66] : memref<288x288xbf16, #tpu.memory_space<vmem>>, vector<16x288xbf16>
    tpu.vector_store %arg12[%c80, %c0_66], %60 {strides = array<i32>} : memref<288x288xbf16, #tpu.memory_space<vmem>>, vector<16x288xbf16>,
    %c0_67 = arith.constant 0 : index
    %c145_68 = arith.constant 145 : index
    %62 = vector.load %arg11[%c0_67, %c145_68] : memref<32x435xbf16, #tpu.memory_space<vmem>>, vector<16x288xbf16>
    %c96_69 = arith.constant 96 : index
    %c0_70 = arith.constant 0 : index
    %63 = vector.load %arg12[%c96_69, %c0_70] : memref<288x288xbf16, #tpu.memory_space<vmem>>, vector<16x288xbf16>
    tpu.vector_store %arg12[%c96_69, %c0_70], %62 {strides = array<i32>} : memref<288x288xbf16, #tpu.memory_space<vmem>>, vector<16x288xbf16>,
    %c0_71 = arith.constant 0 : index
    %c146_72 = arith.constant 146 : index
    %64 = vector.load %arg11[%c0_71, %c146_72] : memref<32x435xbf16, #tpu.memory_space<vmem>>, vector<16x288xbf16>
    %c112 = arith.constant 112 : index
    %c0_73 = arith.constant 0 : index
    %65 = vector.load %arg12[%c112, %c0_73] : memref<288x288xbf16, #tpu.memory_space<vmem>>, vector<16x288xbf16>
    tpu.vector_store %arg12[%c112, %c0_73], %64 {strides = array<i32>} : memref<288x288xbf16, #tpu.memory_space<vmem>>, vector<16x288xbf16>,
    %c0_74 = arith.constant 0 : index
    %c147_75 = arith.constant 147 : index
    %66 = vector.load %arg11[%c0_74, %c147_75] : memref<32x435xbf16, #tpu.memory_space<vmem>>, vector<16x288xbf16>
    %c128_76 = arith.constant 128 : index
    %c0_77 = arith.constant 0 : index
    %67 = vector.load %arg12[%c128_76, %c0_77] : memref<288x288xbf16, #tpu.memory_space<vmem>>, vector<16x288xbf16>
    tpu.vector_store %arg12[%c128_76, %c0_77], %66 {strides = array<i32>} : memref<288x288xbf16, #tpu.memory_space<vmem>>, vector<16x288xbf16>,
    %c0_78 = arith.constant 0 : index
    %c0_79 = arith.constant 0 : index
    %68 = vector.load %arg12[%c0_78, %c0_79] : memref<288x288xbf16, #tpu.memory_space<vmem>>, vector<144x288xbf16>
    %cst_80 = arith.constant dense<0.000000e+00> : vector<16x288xf32>
    %69 = tpu.matmul %49, %68, %cst_80 {dimension_numbers = #tpu.dot_dimension_numbers<[1], [0], [0], [1], [0, 0, 1, 1], [], []>} : vector<16x144xbf16>, vector<144x288xbf16>, vector<16x288xf32> -> vector<16x288xf32>
    %c0_81 = arith.constant 0 : index
    %c0_82 = arith.constant 0 : index
    %70 = vector.load %arg7[%c0_81, %c0_82] : memref<16x3xf32, #tpu.memory_space<vmem>>, vector<16x3xf32>
    %71 = vector.extract_strided_slice %70 {offsets = [0, 0], sizes = [16, 1], strides = [1, 1]} : vector<16x3xf32> to vector<16x1xf32>
    %72 = vector.broadcast %71 : vector<16x1xf32> to vector<16x288xf32>
    %73 = arith.addf %69, %72 : vector<16x288xf32>
    %cst_83 = arith.constant 0.000000e+00 : f32
    %74 = vector.broadcast %cst_83 : f32 to vector<16x288xf32>
    %75 = arith.cmpf oge, %73, %74 : vector<16x288xf32>
    %cst_84 = arith.constant 0.00999999977 : f32
    %76 = vector.broadcast %cst_84 : f32 to vector<16x288xf32>
    %77 = arith.mulf %76, %73 : vector<16x288xf32>
    %78 = arith.select %75, %73, %77 : vector<16x288xi1>, vector<16x288xf32>
    %79 = vector.extract_strided_slice %70 {offsets = [0, 1], sizes = [16, 1], strides = [1, 1]} : vector<16x3xf32> to vector<16x1xf32>
    %80 = vector.broadcast %79 : vector<16x1xf32> to vector<16x288xf32>
    %81 = arith.mulf %78, %80 : vector<16x288xf32>
    %82 = vector.extract_strided_slice %70 {offsets = [0, 2], sizes = [16, 1], strides = [1, 1]} : vector<16x3xf32> to vector<16x1xf32>
    %83 = vector.broadcast %82 : vector<16x1xf32> to vector<16x288xf32>
    %84 = arith.addf %81, %83 : vector<16x288xf32>
    %c0_85 = arith.constant 0 : index
    %c0_86 = arith.constant 0 : index
    %85 = vector.load %arg8[%c0_85, %c0_86] : memref<2x16xbf16, #tpu.memory_space<vmem>>, vector<2x16xbf16>
    %86 = arith.truncf %84 : vector<16x288xf32> to vector<16x288xbf16>
    %cst_87 = arith.constant dense<0.000000e+00> : vector<2x288xf32>
    %87 = tpu.matmul %85, %86, %cst_87 {dimension_numbers = #tpu.dot_dimension_numbers<[1], [0], [0], [1], [0, 0, 1, 1], [], []>} : vector<2x16xbf16>, vector<16x288xbf16>, vector<2x288xf32> -> vector<2x288xf32>
    %c0_88 = arith.constant 0 : index
    %c0_89 = arith.constant 0 : index
    %88 = vector.load %arg9[%c0_88, %c0_89] : memref<2x1xf32, #tpu.memory_space<vmem>>, vector<2x1xf32>
    %89 = vector.broadcast %88 : vector<2x1xf32> to vector<2x288xf32>
    %90 = arith.addf %87, %89 : vector<2x288xf32>
    %cst_90 = arith.constant 0.000000e+00 : f32
    %91 = vector.broadcast %cst_90 : f32 to vector<2x288xf32>
    %92 = arith.subf %91, %90 : vector<2x288xf32>
    %93 = math.exp %92 : vector<2x288xf32>
    %cst_91 = arith.constant 1.000000e+00 : f32
    %94 = vector.broadcast %cst_91 : f32 to vector<2x288xf32>
    %95 = arith.addf %94, %93 : vector<2x288xf32>
    %cst_92 = arith.constant 1.000000e+00 : f32
    %96 = vector.broadcast %cst_92 : f32 to vector<2x288xf32>
    %97 = arith.divf %96, %95 : vector<2x288xf32>
    %c0_93 = arith.constant 0 : index
    %c0_94 = arith.constant 0 : index
    %c0_95 = arith.constant 0 : index
    %98 = vector.load %arg10[%c0_93, %c0_94, %c0_95] : memref<1x2x288xf32, #tpu.memory_space<vmem>>, vector<1x2x288xf32>
    %99 = vector.shape_cast %98 : vector<1x2x288xf32> to vector<2x288xf32>
    %100 = vector.shape_cast %97 : vector<2x288xf32> to vector<1x2x288xf32>
    tpu.vector_store %arg10[%c0_93, %c0_94, %c0_95], %100 {strides = array<i32>} : memref<1x2x288xf32, #tpu.memory_space<vmem>>, vector<1x2x288xf32>,
    return
  }
  func.func @transform_0(%arg0: i32) -> (i32, i32) {
    %c0_i32 = arith.constant 0 : i32
    %c0_i32_0 = arith.constant 0 : i32
    %c0_i32_1 = arith.constant 0 : i32
    return %c0_i32, %c0_i32_0 : i32, i32
  }
  func.func @transform_1(%arg0: i32) -> (i32, i32, i32) {
    %c0_i32 = arith.constant 0 : i32
    %c0_i32_0 = arith.constant 0 : i32
    %c0_i32_1 = arith.constant 0 : i32
    return %arg0, %c0_i32, %c0_i32_0 : i32, i32, i32
  }
  func.func @transform_2(%arg0: i32) -> (i32, i32, i32) {
    %c0_i32 = arith.constant 0 : i32
    %c0_i32_0 = arith.constant 0 : i32
    %c0_i32_1 = arith.constant 0 : i32
    return %arg0, %c0_i32, %c0_i32_0 : i32, i32, i32
  }
  func.func @transform_3(%arg0: i32) -> (i32, i32) {
    %c0_i32 = arith.constant 0 : i32
    %c0_i32_0 = arith.constant 0 : i32
    %c0_i32_1 = arith.constant 0 : i32
    return %c0_i32, %c0_i32_0 : i32, i32
  }
  func.func @transform_4(%arg0: i32) -> (i32, i32) {
    %c0_i32 = arith.constant 0 : i32
    %c0_i32_0 = arith.constant 0 : i32
    %c0_i32_1 = arith.constant 0 : i32
    return %c0_i32, %c0_i32_0 : i32, i32
  }
  func.func @transform_5(%arg0: i32) -> (i32, i32) {
    %c0_i32 = arith.constant 0 : i32
    %c0_i32_0 = arith.constant 0 : i32
    %c0_i32_1 = arith.constant 0 : i32
    return %c0_i32, %c0_i32_0 : i32, i32
  }
  func.func @transform_6(%arg0: i32) -> (i32, i32) {
    %c0_i32 = arith.constant 0 : i32
    %c0_i32_0 = arith.constant 0 : i32
    %c0_i32_1 = arith.constant 0 : i32
    return %c0_i32, %c0_i32_0 : i32, i32
  }
  func.func @transform_7(%arg0: i32) -> (i32, i32) {
    %c0_i32 = arith.constant 0 : i32
    %c0_i32_0 = arith.constant 0 : i32
    %c0_i32_1 = arith.constant 0 : i32
    return %c0_i32, %c0_i32_0 : i32, i32
  }
  func.func @transform_8(%arg0: i32) -> (i32, i32) {
    %c0_i32 = arith.constant 0 : i32
    %c0_i32_0 = arith.constant 0 : i32
    %c0_i32_1 = arith.constant 0 : i32
    return %c0_i32, %c0_i32_0 : i32, i32
  }
  func.func @transform_9(%arg0: i32) -> (i32, i32, i32) {
    %c0_i32 = arith.constant 0 : i32
    %c0_i32_0 = arith.constant 0 : i32
    %c0_i32_1 = arith.constant 0 : i32
    return %arg0, %c0_i32, %c0_i32_0 : i32, i32, i32
  }
}

</mosaic_0001>

<bundles_post_ra>
// kernel: wnet_forward.10
= control target key start
LH: loop header
LB: loop body
LE: loop exit
PB: predicated region body
PF: predicated region fallthrough
CT: control target
= control target key end

     0   :  { %s1976_s21 = smov 0   ;;  %s2352_s0 = inlined_call_operand.vmem [shape: f32[1,288], index: 0, kind: input, shape index: {}]   ;;  %s2353_s1 = inlined_call_operand.vmem [shape: bf16[2,16,288], index: 1, kind: input, shape index: {}]   ;;  %s2354_s2 = inlined_call_operand.vmem [shape: bf16[16,144], index: 2, kind: input, shape index: {}]   ;;  %s2355_s3 = inlined_call_operand.vmem [shape: bf16[16,144], index: 3, kind: input, shape index: {}]   ;;  %s2356_s4 = inlined_call_operand.vmem [shape: f32[16,3], index: 4, kind: input, shape index: {}]   ;;  %s2357_s5 = inlined_call_operand.vmem [shape: f32[16,3], index: 5, kind: input, shape index: {}]   ;;  %s2358_s6 = inlined_call_operand.vmem [shape: bf16[2,16,288], index: 6, kind: output, shape index: {}]  }
   0x1 LB: > { %s1586_s22 = sadd.s32 4294967295, %s1928_s21   ;;  %p1590_p0 = scmp.ge.s32.totalorder %s1928_s21, 1  ;;  %s1928_s21 = sphi %s1976_s21, %s16_s21  }
   0x2   : > { %p212_p1 = scmp.lt.s32.totalorder %s1928_s21, 3 }
   0x4   : > { %p213_p2 = pnand %p1590_p0, %p212_p1 }
   0x5   : > { %p242_p3 = scmp.lt.s32.totalorder (!%p213_p2), %s1586_s22, 1  ;;  %s1931_s27 = smov (!%p213_p2), 110  }
   0x6   : > { %216 = sbr.rel (%p213_p2) target bundleno = 757 (0x2f5), region = 44  ;;  %s1932_s28 = smov (!%p213_p2), 111  }
   0x7   : > { %s1933_s29 = smov (!%p213_p2), 127   ;;  %s1934_s30 = smov (!%p213_p2), 109  }
   0x8   : > { %s1935_s7 = smov (!%p213_p2), 1   ;;  %s1936_s8 = smov (!%p213_p2), 17  }
   0x9   : > { %s1937_s9 = smov (!%p213_p2), 18   ;;  %s1938_s10 = smov (!%p213_p2), 19  }
   0xb   : > { %vm255_vm0 = vcmask 1043456   ;;  %vm256_vm1 = vcmask 416772   ;;  %v1930_v0 = vmov 0   ;;  %s2360_s22 = smov (!%p242_p3, %s1586_s22), 1  ;;  %vm266_vm3 = vcmask 257024  }
   0xc   : > { %vm257_vm2 = vmor %vm256_vm1, %vm255_vm0  ;;  %259 = vst [vmem:[#allocation2 + $0x10] sm:$0xff] %v1930_v0  ;;  %1912 = vset.pattern.permute.xlu0 %v1930_v0  ;;  %1911 = vset.pattern.permute.xlu2 %v1930_v0  ;;  %s1891_s23 = smul.u32 24, %s2360_s22  ;;  %vm475_vm4 = vcmask 908288   ;;  %vm508_vm5 = vcmask 900096   ;;  %vm399_vm6 = vcmask 7168   ;;  %vm442_vm7 = vcmask 1039360  }
   0xd   : > { %260 = vst.msk [vmem:[#allocation2 + $0x18] sm:$0xff] %vm257_vm2, %v1930_v0  ;;  %vm364_vm8 = vcmask 138240   ;;  %vm541_vm9 = vcmask 891904   ;;  %vm294_vm10 = vcmask 154624   ;;  %vm754_vm11 = vcmask 130048  }
   0xe   : > { %254 = vst [vmem:[#allocation2] sm:$0xff] %v1930_v0  ;;  %s246_s26 = scalar_lea.vmem %s2353_s1, %s1891_s23  ;;  %vm329_vm12 = vcmask 146432   ;;  %s251_s18 = scalar_lea.vmem %s2358_s6, %s1891_s23 }
   0xf   : > { %258 = vst.msk [vmem:[#allocation2 + $0x8] sm:$0xff] %vm257_vm2, %v1930_v0  ;;  %v263_v1 = vld [vmem:[%s246_s26 + $0xc] sm:$0xff]  ;;  %v261_v2 = vld [vmem:[%s246_s26] sm:$0xff]  ;;  %v264_v3 = vld [vmem:[%s246_s26 + $0x14] sm:$0xf] }
  0x10   : > { %268 = vst [vmem:[#allocation2 + $0x14] sm:$0xff] %v263_v1  ;;  %499 = vrot.lane.b32.xlu1 %v263_v1, %s1931_s27  ;;  %495 = vrot.lane.b32.xlu0 %v261_v2, %s1931_s27  ;;  %v262_v4 = vld [vmem:[%s246_s26 + $0x8] sm:$0xf] }
  0x11   : > { %265 = vst [vmem:[#allocation2 + $0x4] sm:$0xff] %v261_v2  ;;  %462 = vrot.lane.b32.xlu2 %v261_v2, %s1932_s28 }
  0x12   : > { %269 = vst.msk [vmem:[#allocation2 + $0x1c] sm:$0xf] %vm266_vm3, %v264_v3 }
  0x13   : > { %267 = vst.msk [vmem:[#allocation2 + $0xc] sm:$0xf] %vm266_vm3, %v262_v4 }
  0x14   : > { %417 = vst [vmem:[#allocation3 + $0x60] sm:$0xff] %v261_v2 }
  0x15   : > { %419 = vst [vmem:[#allocation3 + $0x6c] sm:$0xff] %v263_v1 }
  0x17   : > { %v380_v16 = vld [vmem:[#allocation2 + $0x10] sm:$0xff] }
  0x18   : > { %v378_v12 = vld [vmem:[#allocation2] sm:$0xff] }
  0x19   : > { %v490_v5 = vld [vmem:[#allocation2 + $0x1c] sm:$0xf] }
  0x1a   : > { %501 = vrot.lane.b32.xlu1 %v490_v5, %s1931_s27  ;;  %v488_v6 = vld [vmem:[#allocation2 + $0xc] sm:$0xf]  ;;  %v457_v8 = vld [vmem:[#allocation2 + $0x1c] sm:$0xf] }
  0x1b   : > { %v455_v7 = vld [vmem:[#allocation2 + $0xc] sm:$0xf]  ;;  %497 = vrot.lane.b32.xlu0 %v488_v6, %s1931_s27  ;;  %v424_v10 = vld [vmem:[#allocation2 + $0x1c] sm:$0xf] }
  0x1c   : > { %464 = vrot.lane.b32.xlu2 %v455_v7, %s1932_s28  ;;  %v422_v9 = vld [vmem:[#allocation2 + $0xc] sm:$0xf]  ;;  %v523_v13 = vld [vmem:[#allocation2 + $0x1c] sm:$0xf] }
  0x1d   : > { %v521_v11 = vld [vmem:[#allocation2 + $0xc] sm:$0xf]  ;;  %v381_v15 = vld [vmem:[#allocation2 + $0x18] sm:$0xff] }
  0x1e   : > { %v344_v14 = vld [vmem:[#allocation2 + $0x8] sm:$0xff]  ;;  %v416_v3 = vld [vmem:[#allocation2 + $0x1c] sm:$0xf] }
  0x1f   : > { %420 = vst.msk [vmem:[#allocation3 + $0x74] sm:$0xf] %vm266_vm3, %v416_v3 }
  0x22   : > { %468 = vrot.lane.b32.xlu1 %v457_v8, %s1932_s28 }
  0x23   : > { %466 = vrot.lane.b32.xlu0 %v263_v1, %s1932_s28 }
  0x24   : > { %429 = vrot.lane.b32.xlu2 %v261_v2, %s1933_s29 }
  0x2a   : > { %433 = vrot.lane.b32.xlu1 %v263_v1, %s1933_s29 }
  0x2b   : > { %431 = vrot.lane.b32.xlu0 %v422_v9, %s1933_s29 }
  0x2c   : > { %435 = vrot.lane.b32.xlu2 %v424_v10, %s1933_s29 }
  0x32   : > { %530 = vrot.lane.b32.xlu1 %v521_v11, %s1934_s30 }
  0x33   : > { %528 = vrot.lane.b32.xlu0 %v261_v2, %s1934_s30  ;;  %v414_v2 = vld [vmem:[#allocation2 + $0xc] sm:$0xf] }
  0x34   : > { %532 = vrot.lane.b32.xlu2 %v263_v1, %s1934_s30  ;;  %418 = vst.msk [vmem:[#allocation3 + $0x68] sm:$0xf] %vm266_vm3, %v414_v2 }
  0x3a   : > { %386 = vrot.lane.b32.xlu1 %v378_v12, %s1935_s7 }
  0x3b   : > { %534 = vrot.lane.b32.xlu0 %v523_v13, %s1934_s30 }
  0x3c   : > { %388 = vrot.lane.b32.xlu2 %v344_v14, %s1935_s7 }
  0x42   : > { %392 = vrot.lane.b32.xlu1 %v381_v15, %s1935_s7 }
  0x43   : > { %390 = vrot.lane.b32.xlu0 %v380_v16, %s1935_s7 }
  0x44   : > { %351 = vrot.lane.b32.xlu2 %v378_v12, %s1936_s8 }
  0x4a   : > { %355 = vrot.lane.b32.xlu1 %v380_v16, %s1936_s8 }
  0x4b   : > { %353 = vrot.lane.b32.xlu0 %v344_v14, %s1936_s8 }
  0x4c   : > { %357 = vrot.lane.b32.xlu2 %v381_v15, %s1936_s8 }
  0x52   : > { %318 = vrot.lane.b32.xlu1 %v344_v14, %s1937_s9 }
  0x53   : > { %316 = vrot.lane.b32.xlu0 %v378_v12, %s1937_s9 }
  0x54   : > { %320 = vrot.lane.b32.xlu2 %v380_v16, %s1937_s9 }
  0x5a   : > { %280 = vrot.lane.b32.xlu1 %v378_v12, %s1938_s10 }
  0x5b   : > { %322 = vrot.lane.b32.xlu0 %v381_v15, %s1937_s9 }
  0x5c   : > { %282 = vrot.lane.b32.xlu2 %v344_v14, %s1938_s10 }
  0x62   : > { %286 = vrot.lane.b32.xlu1 %v381_v15, %s1938_s10  ;;  %v1651_v15 = vld [vmem:[#allocation3 + $0x60] sm:$0xf] }
  0x63   : > { %284 = vrot.lane.b32.xlu0 %v380_v16, %s1938_s10  ;;  %v1848_v16 = vld [vmem:[#allocation3 + $0x68] sm:$0xf0] }
  0x6b   : > { %v463_v17 = vpop.permute.xlu2 %462 }
  0x6c   : > { %v470_v18 = vrot.slane %v463_v17, 4 }
  0x76   : > { %v465_v19 = vpop.permute.xlu2 %464 }
  0x77   : > { %v471_v20 = vrot.slane %v465_v19, 4  ;;  %484 = vst.msk [vmem:[#allocation3 + $0x98] sm:$0xf] %vm266_vm3, %v465_v19 }
  0x79   : > { %v474_v21 = vsel %vm255_vm0, %v470_v18, %v471_v20 }
  0x7a   : > { %v476_v22 = vsel %vm475_vm4, %v463_v17, %v474_v21  ;;  %v1847_v17 = vld [vmem:[#allocation3 + $0x64] sm:$0xf] }
  0x7b   : > { %483 = vst [vmem:[#allocation3 + $0x90] sm:$0xff] %v476_v22  ;;  %v1653_v22 = vld [vmem:[#allocation3 + $0x6c] sm:$0xf0] }
  0x7e   : > { %v430_v23 = vpop.permute.xlu2 %429 }
  0x7f   : > { %v437_v54 = vrot.slane %v430_v23, 4 }
  0x82   : > { %v500_v24 = vpop.permute.xlu1 %499  ;;  %v496_v25 = vpop.permute.xlu0 %495  ;;  %v1675_v61 = vld [vmem:[#allocation3 + $0x90] sm:$0xf]  ;;  %v1853_v1 = vld [vmem:[#allocation3 + $0x94] sm:$0xf] }
  0x83   : > { %v505_v28 = vrot.slane %v500_v24, 4  ;;  %v503_v32 = vrot.slane %v496_v25, 4 }
  0x86   : > { %v436_v26 = vpop.permute.xlu2 %435 }
  0x87   : > { %453 = vst.msk [vmem:[#allocation3 + $0x8c] sm:$0xf] %vm266_vm3, %v436_v26  ;;  %v440_v53 = vrot.slane %v436_v26, 4 }
  0x8c   : > { %v502_v27 = vpop.permute.xlu1 %501 }
  0x8d   : > { %v506_v29 = vrot.slane %v502_v27, 4  ;;  %519 = vst.msk [vmem:[#allocation3 + $0xbc] sm:$0xf] %vm266_vm3, %v502_v27  ;;  %v498_v30 = vpop.permute.xlu0 %497 }
  0x8e   : > { %v2038_v31 = vpop.permute.xlu2 %532  ;;  %v504_v33 = vrot.slane %v498_v30, 4  ;;  %517 = vst.msk [vmem:[#allocation3 + $0xb0] sm:$0xf] %vm266_vm3, %v498_v30  ;;  %v1652_v30 = vor.u32 %v1848_v16, %v1651_v15 }
  0x8f   : > { %v510_v34 = vsel %vm255_vm0, %v505_v28, %v506_v29  ;;  %v538_v28 = vrot.slane %v2038_v31, 4 }
  0x90   : > { %v511_v35 = vsel %vm508_vm5, %v500_v24, %v510_v34  ;;  %v507_v36 = vsel %vm255_vm0, %v503_v32, %v504_v33  ;;  %v1656_v32 = vor.u32 %v1847_v17, %v1653_v22 }
  0x91   : > { %518 = vst [vmem:[#allocation3 + $0xb4] sm:$0xff] %v511_v35  ;;  %v509_v37 = vsel %vm508_vm5, %v496_v25, %v507_v36 }
  0x92   : > { %516 = vst [vmem:[#allocation3 + $0xa8] sm:$0xff] %v509_v37 }
  0x94   : > { %v469_v38 = vpop.permute.xlu1 %468 }
  0x95   : > { %v473_v39 = vrot.slane %v469_v38, 4  ;;  %486 = vst.msk [vmem:[#allocation3 + $0xa4] sm:$0xf] %vm266_vm3, %v469_v38  ;;  %v467_v40 = vpop.permute.xlu0 %466 }
  0x96   : > { %v2046_v41 = vpop.permute.xlu2 %388  ;;  %v472_v42 = vrot.slane %v467_v40, 4 }
  0x97   : > { %v395_v43 = vrot.slane %v2046_v41, 4 }
  0x98   : > { %v477_v44 = vsel %vm255_vm0, %v472_v42, %v473_v39  ;;  %v1857_v45 = vld [vmem:[#allocation3 + $0xb0] sm:$0xf0]  ;;  %v1689_v46 = vld [vmem:[#allocation3 + $0xb4] sm:$0xf0] }
  0x99   : > { %v401_v47 = vsel %vm399_vm6, %v2046_v41, %v395_v43  ;;  %v478_v48 = vsel %vm475_vm4, %v467_v40, %v477_v44  ;;  %v1687_v49 = vld [vmem:[#allocation3 + $0xa8] sm:$0xf]  ;;  %v1856_v50 = vld [vmem:[#allocation3 + $0xac] sm:$0xf]  ;;  %v1695_v41 = vld [vmem:[#allocation3 + $0xb0] sm:$0xf] }
  0x9a   : > { %410 = vst.msk [vmem:[#allocation3 + $0x50] sm:$0xf] %vm266_vm3, %v401_v47  ;;  %v1688_v51 = vor.u32 %v1857_v45, %v1687_v49  ;;  %v1692_v52 = vor.u32 %v1856_v50, %v1689_v46 }
  0x9b   : > { %485 = vst [vmem:[#allocation3 + $0x9c] sm:$0xff] %v478_v48  ;;  %v1858_v48 = vld [vmem:[#allocation3 + $0xb8] sm:$0xf0] }
  0x9c   : > { %758 = vmatpush.bf16.msra.mxu0 %v1688_v51  ;;  %786 = vmatpush.bf16.msra.mxu2 %v1692_v52  ;;  %v434_v55 = vpop.permute.xlu1 %433 }
  0x9d   : > { %v439_v56 = vrot.slane %v434_v55, 4  ;;  %v432_v57 = vpop.permute.xlu0 %431 }
  0x9e   : > { %v2056_v58 = vpop.permute.xlu2 %351  ;;  %v438_v59 = vrot.slane %v432_v57, 4  ;;  %451 = vst.msk [vmem:[#allocation3 + $0x80] sm:$0xf] %vm266_vm3, %v432_v57 }
  0x9f   : > { %v444_v60 = vsel %vm255_vm0, %v439_v56, %v440_v53  ;;  %v359_v3 = vrot.slane %v2056_v58, 4 }
  0xa0   : > { %v441_v62 = vsel %vm255_vm0, %v437_v54, %v438_v59  ;;  %v445_v63 = vsel %vm442_vm7, %v434_v55, %v444_v60 }
  0xa1   : > { %v443_v4 = vsel %vm442_vm7, %v430_v23, %v441_v62  ;;  %452 = vst [vmem:[#allocation3 + $0x84] sm:$0xff] %v445_v63  ;;  %v1696_v63 = vor.u32 %v1858_v48, %v1695_v41  ;;  %v1647_v48 = vld [vmem:[#allocation3 + $0x50] sm:$0xf] }
  0xa2   : > { %v1854_v5 = vld [vmem:[#allocation3 + $0x98] sm:$0xf0]  ;;  %v1677_v6 = vld [vmem:[#allocation3 + $0x9c] sm:$0xf0]  ;;  %450 = vst [vmem:[#allocation3 + $0x78] sm:$0xff] %v443_v4 }
  0xa3   : > { %v1676_v7 = vor.u32 %v1854_v5, %v1675_v61  ;;  %v1680_v8 = vor.u32 %v1853_v1, %v1677_v6  ;;  %v1683_v5 = vld [vmem:[#allocation3 + $0x98] sm:$0xf]  ;;  %v1855_v6 = vld [vmem:[#allocation3 + $0xa0] sm:$0xf0] }
  0xa4   : > { %v531_v9 = vpop.permute.xlu1 %530 }
  0xa5   : > { %759 = vmatpush.bf16.msra.mxu0 %v1676_v7  ;;  %787 = vmatpush.bf16.msra.mxu2 %v1680_v8  ;;  %v537_v10 = vrot.slane %v531_v9, 4  ;;  %550 = vst.msk [vmem:[#allocation3 + $0xc8] sm:$0xf] %vm266_vm3, %v531_v9  ;;  %v529_v11 = vpop.permute.xlu0 %528 }
  0xa6   : > { %v2066_v12 = vpop.permute.xlu2 %357  ;;  %v536_v13 = vrot.slane %v529_v11, 4 }
  0xa7   : > { %v362_v14 = vrot.slane %v2066_v12, 4 }
  0xa8   : > { %v540_v18 = vsel %vm255_vm0, %v536_v13, %v537_v10  ;;  %v1851_v19 = vld [vmem:[#allocation3 + $0x80] sm:$0xf0]  ;;  %v1665_v20 = vld [vmem:[#allocation3 + $0x84] sm:$0xf0]  ;;  %v1852_v13 = vld [vmem:[#allocation3 + $0x88] sm:$0xf0] }
  0xa9   : > { %v369_v21 = vsel %vm364_vm8, %v2066_v12, %v362_v14  ;;  %v542_v23 = vsel %vm541_vm9, %v529_v11, %v540_v18  ;;  %v1663_v24 = vld [vmem:[#allocation3 + $0x78] sm:$0xf]  ;;  %v1850_v25 = vld [vmem:[#allocation3 + $0x7c] sm:$0xf]  ;;  %v1684_v11 = vor.u32 %v1855_v6, %v1683_v5 }
  0xaa   : > { %377 = vst.msk [vmem:[#allocation3 + $0x44] sm:$0xf] %vm266_vm3, %v369_v21  ;;  %v1664_v26 = vor.u32 %v1851_v19, %v1663_v24  ;;  %v1668_v27 = vor.u32 %v1850_v25, %v1665_v20  ;;  %v1671_v20 = vld [vmem:[#allocation3 + $0x80] sm:$0xf]  ;;  %v1659_v24 = vld [vmem:[#allocation3 + $0x68] sm:$0xf] }
  0xab   : > { %549 = vst [vmem:[#allocation3 + $0xc0] sm:$0xff] %v542_v23  ;;  %v1849_v25 = vld [vmem:[#allocation3 + $0x70] sm:$0xf0] }
  0xac   : > { %760 = vmatpush.bf16.msra.mxu0 %v1664_v26  ;;  %788 = vmatpush.bf16.msra.mxu2 %v1668_v27  ;;  %v387_v29 = vpop.permute.xlu1 %386  ;;  %v1707_v62 = vld [vmem:[#allocation3 + $0xc8] sm:$0xf]  ;;  %v1672_v26 = vor.u32 %v1852_v13, %v1671_v20 }
  0xad   : > { %v535_v33 = vpop.permute.xlu0 %534  ;;  %v394_v34 = vrot.slane %v387_v29, 4 }
  0xae   : > { %v2077_v35 = vpop.permute.xlu2 %320  ;;  %v539_v36 = vrot.slane %v535_v33, 4  ;;  %552 = vst.msk [vmem:[#allocation3 + $0xd4] sm:$0xf] %vm266_vm3, %v535_v33  ;;  %v589_v33 = vld [vmem:[%s2356_s4] sm:$0xff] }
  0xaf   : > { %v398_v37 = vsel %vm255_vm0, %v394_v34, %v395_v43  ;;  %v1833_v43 = vld [vmem:[%s2354_s2 + $0x4] sm:$0xf]  ;;  %v2128_v34 = vld [vmem:[%s2356_s4 + $0x8] sm:$0xff]  ;;  %593 = vperm.xlu2 %1911, %v589_v33  }
  0xb0   : > { %v543_v38 = vsel %vm255_vm0, %v538_v28, %v539_v36  ;;  %v400_v39 = vsel %vm399_vm6, %v387_v29, %v398_v37  ;;  %761 = vmatpush.bf16.msra.mxu0 %v1652_v30  ;;  %789 = vmatpush.bf16.msra.mxu2 %v1656_v32  ;;  %v1939_v37 = vmov 1  }
  0xb1   : > { %v544_v40 = vsel %vm541_vm9, %v2038_v31, %v543_v38  ;;  %409 = vst [vmem:[#allocation3 + $0x48] sm:$0xff] %v400_v39  ;;  %v1597_v31 = vld [vmem:[%s2354_s2 + $0x8] sm:$0xf0]  ;;  %1913 = vset.pattern.permute.xlu1 %v1939_v37  ;;  %598 = vperm.xlu0 %1912, %v2128_v34  }
  0xb2   : > { %551 = vst [vmem:[#allocation3 + $0xcc] sm:$0xff] %v544_v40  ;;  %v1699_v51 = vld [vmem:[#allocation3 + $0xc0] sm:$0xf]  ;;  %v1859_v53 = vld [vmem:[#allocation3 + $0xc4] sm:$0xf]  ;;  %v2105_v2 = vor.u32 %v1833_v43, %v1597_v31  ;;  %861 = vperm.xlu1 %1913, %v589_v33   ;;  %v326_v43 = vrot.slane %v2077_v35, 4 }
  0xb4   : > { %v393_v42 = vpop.permute.xlu1 %392 }
  0xb5   : > { %v391_v44 = vpop.permute.xlu0 %390  ;;  %v397_v45 = vrot.slane %v393_v42, 4  ;;  %v1861_v54 = vld [vmem:[#allocation3 + $0xd0] sm:$0xf0] }
  0xb6   : > { %v2087_v46 = vpop.permute.xlu2 %282  ;;  %v396_v47 = vrot.slane %v391_v44, 4  ;;  %v1708_v1 = vor.u32 %v1861_v54, %v1707_v62  ;;  %v1843_v54 = vld [vmem:[#allocation3 + $0x40] sm:$0xf0] }
  0xb7   : > { %v289_v49 = vrot.slane %v2087_v46, 4  ;;  %v404_v50 = vsel %vm399_vm6, %v393_v42, %v397_v45  ;;  %1914 = vset.pattern.permute.xlu2 %v1939_v37 }
  0xb8   : > { %v402_v52 = vsel %vm255_vm0, %v396_v47, %v397_v45  ;;  %412 = vst.msk [vmem:[#allocation3 + $0x5c] sm:$0xf] %vm266_vm3, %v404_v50  ;;  %v1639_v18 = vld [vmem:[#allocation3 + $0x48] sm:$0xf]  ;;  %v1844_v19 = vld [vmem:[#allocation3 + $0x4c] sm:$0xf]  ;;  %865 = vperm.xlu2 %1914, %v2128_v34  }
  0xb9   : > { %v296_v55 = vsel %vm294_vm10, %v2087_v46, %v289_v49  ;;  %v403_v56 = vsel %vm399_vm6, %v391_v44, %v402_v52  ;;  %v1860_v57 = vld [vmem:[#allocation3 + $0xc8] sm:$0xf0]  ;;  %v1701_v59 = vld [vmem:[#allocation3 + $0xcc] sm:$0xf0] }
  0xba   : > { %305 = vst.msk [vmem:[#allocation3 + $0x8] sm:$0xf] %vm266_vm3, %v296_v55  ;;  %v1700_v60 = vor.u32 %v1860_v57, %v1699_v51  ;;  %v1704_v61 = vor.u32 %v1859_v53, %v1701_v59 }
  0xbb   : > { %411 = vst [vmem:[#allocation3 + $0x54] sm:$0xff] %v403_v56 }
  0xbc   : > { %779 = vmatpush.bf16.msra.mxu1 %v1700_v60  ;;  %807 = vmatpush.bf16.msra.mxu3 %v1704_v61  ;;  %v356_v4 = vpop.permute.xlu1 %355 }
  0xbd   : > { %v361_v7 = vrot.slane %v356_v4, 4  ;;  %v354_v8 = vpop.permute.xlu0 %353 }
  0xbe   : > { %v360_v9 = vrot.slane %v354_v8, 4 }
  0xbf   : > { %v367_v10 = vsel %vm255_vm0, %v361_v7, %v362_v14  ;;  %1710 = vmatmul.msk.bf16.vlgmr.msra.gmra.mxu3 %vm754_vm11, %v2105_v2  ;;  %1709 = vmatmul.msk.bf16.vlgmr.msra.gmra.mxu1 %vm754_vm11, %v2105_v2  ;;  %v1846_v42 = vld [vmem:[#allocation3 + $0x58] sm:$0xf0] }
  0xc0   : > { %814 = vmatpush.bf16.msrb.mxu1 %v1696_v63  ;;  %835 = vmatpush.bf16.msrb.mxu3 %v1708_v1  ;;  %v363_v15 = vsel %vm255_vm0, %v359_v3, %v360_v9  ;;  %v366_v16 = vsel %vm364_vm8, %v354_v8, %v360_v9  ;;  %v368_v17 = vsel %vm364_vm8, %v356_v4, %v367_v10  ;;  %v1940_v63 = vmov 2  }
  0xc1   : > { %v365_v12 = vsel %vm364_vm8, %v2056_v58, %v363_v15  ;;  %375 = vst.msk [vmem:[#allocation3 + $0x38] sm:$0xf] %vm266_vm3, %v366_v16  ;;  %v1660_v58 = vor.u32 %v1849_v25, %v1659_v24  ;;  %v1648_v50 = vor.u32 %v1846_v42, %v1647_v48  ;;  %1915 = vset.pattern.permute.xlu1 %v1940_v63  ;;  %v1595_v16 = vld [vmem:[%s2354_s2] sm:$0xf] }
  0xc2   : > { %v1845_v14 = vld [vmem:[#allocation3 + $0x50] sm:$0xf0]  ;;  %v1641_v21 = vld [vmem:[#allocation3 + $0x54] sm:$0xf0]  ;;  %374 = vst [vmem:[#allocation3 + $0x30] sm:$0xff] %v365_v12  ;;  %875 = vperm.xlu1 %1915, %v589_v33   ;;  %1916 = vset.pattern.permute.xlu2 %v1940_v63 }
  0xc3   : > { %v1640_v22 = vor.u32 %v1845_v14, %v1639_v18  ;;  %v1644_v23 = vor.u32 %v1844_v19, %v1641_v21  ;;  %376 = vst [vmem:[#allocation3 + $0x3c] sm:$0xff] %v368_v17  ;;  %v1834_v17 = vld [vmem:[%s2354_s2 + $0x4] sm:$0xf0]  ;;  %879 = vperm.xlu2 %1916, %v2128_v34  }
  0xc4   : > { %815 = vmatpush.bf16.msrb.mxu1 %v1684_v11  ;;  %v319_v27 = vpop.permute.xlu1 %318  ;;  %v1611_v18 = vld [vmem:[#allocation3 + $0x8] sm:$0xf] }
  0xc5   : > { %762 = vmatpush.bf16.msra.mxu0 %v1640_v22  ;;  %790 = vmatpush.bf16.msra.mxu2 %v1644_v23  ;;  %v325_v28 = vrot.slane %v319_v27, 4  ;;  %v317_v29 = vpop.permute.xlu0 %316  ;;  %v1596_v23 = vor.u32 %v1834_v17, %v1595_v16 }
  0xc6   : > { %v324_v30 = vrot.slane %v317_v29, 4 }
  0xc7   : > { %v331_v32 = vsel %vm329_vm12, %v319_v27, %v325_v28 }
  0xc8   : > { %816 = vmatpush.bf16.msrb.mxu1 %v1672_v26  ;;  %340 = vst.msk [vmem:[#allocation3 + $0x20] sm:$0xf] %vm266_vm3, %v331_v32  ;;  %v328_v36 = vsel %vm255_vm0, %v324_v30, %v325_v28  ;;  %v1635_v53 = vld [vmem:[#allocation3 + $0x38] sm:$0xf] }
  0xc9   : > { %v330_v38 = vsel %vm329_vm12, %v317_v29, %v328_v36  ;;  %v1627_v39 = vld [vmem:[#allocation3 + $0x30] sm:$0xf]  ;;  %v1841_v40 = vld [vmem:[#allocation3 + $0x34] sm:$0xf]  ;;  %v1636_v61 = vor.u32 %v1843_v54, %v1635_v53 }
  0xca   : > { %339 = vst [vmem:[#allocation3 + $0x18] sm:$0xff] %v330_v38  ;;  %v1842_v44 = vld [vmem:[#allocation3 + $0x38] sm:$0xf0]  ;;  %v1629_v45 = vld [vmem:[#allocation3 + $0x3c] sm:$0xf0]  ;;  %1918 = vset.pattern.permute.xlu1 %v1939_v37 }
  0xcb   : > { %v1628_v47 = vor.u32 %v1842_v44, %v1627_v39  ;;  %v1632_v41 = vor.u32 %v1841_v40, %v1629_v45  ;;  %1917 = vset.pattern.permute.xlu2 %v1930_v0  ;;  %v253_v0 = vld [vmem:[%s2352_s0] sm:$0x7] }
  0xcc   : > { %817 = vmatpush.bf16.msrb.mxu1 %v1660_v58  ;;  %v281_v51 = vpop.permute.xlu1 %280 }
  0xcd   : > { %763 = vmatpush.bf16.msra.mxu0 %v1628_v47  ;;  %791 = vmatpush.bf16.msra.mxu2 %v1632_v41  ;;  %v323_v31 = vpop.permute.xlu0 %322  ;;  %v288_v52 = vrot.slane %v281_v51, 4 }
  0xce   : > { %v327_v55 = vrot.slane %v323_v31, 4 }
  0xcf   : > { %v293_v56 = vsel %vm255_vm0, %v288_v52, %v289_v49  ;;  %1711 = vmatmul.msk.bf16.vlgmr.msrb.gmra.mxu3 %vm754_vm11, %v2105_v2 }
  0xd0   : > { %818 = vmatpush.bf16.msrb.mxu1 %v1648_v50  ;;  %v332_v57 = vsel %vm255_vm0, %v326_v43, %v327_v55  ;;  %v334_v59 = vsel %vm329_vm12, %v323_v31, %v327_v55  ;;  %v295_v60 = vsel %vm294_vm10, %v281_v51, %v293_v56  ;;  %v2167_v31 = vperm.slane %v253_v0, 2 }
  0xd1   : > { %v333_v62 = vsel %vm329_vm12, %v2077_v35, %v332_v57  ;;  %342 = vst.msk [vmem:[#allocation3 + $0x2c] sm:$0xf] %vm266_vm3, %v334_v59  ;;  %v1623_v35 = vld [vmem:[#allocation3 + $0x20] sm:$0xf]  ;;  %v1615_v6 = vld [vmem:[#allocation3 + $0x18] sm:$0xf] }
  0xd2   : > { %341 = vst [vmem:[#allocation3 + $0x24] sm:$0xff] %v333_v62  ;;  %v1838_v10 = vld [vmem:[#allocation3 + $0x1c] sm:$0xf] }
  0xd3   : > { %304 = vst [vmem:[#allocation3] sm:$0xff] %v295_v60 }
  0xd4   : > { %819 = vmatpush.bf16.msrb.mxu1 %v1636_v61  ;;  %v287_v46 = vpop.permute.xlu1 %286 }
  0xd5   : > { %v285_v49 = vpop.permute.xlu0 %284  ;;  %v291_v1 = vrot.slane %v287_v46, 4 }
  0xd6   : > { %v290_v2 = vrot.slane %v285_v49, 4 }
  0xd7   : > { %v299_v3 = vsel %vm294_vm10, %v287_v46, %v291_v1 }
  0xd8   : > { %v297_v4 = vsel %vm255_vm0, %v290_v2, %v291_v1  ;;  %307 = vst.msk [vmem:[#allocation3 + $0x14] sm:$0xf] %vm266_vm3, %v299_v3  ;;  %v1840_v5 = vld [vmem:[#allocation3 + $0x28] sm:$0xf0]  ;;  %v2170_v3 = vperm.slane %v253_v0, 0 }
  0xd9   : > { %v298_v7 = vsel %vm294_vm10, %v285_v49, %v297_v4  ;;  %v1624_v8 = vor.u32 %v1840_v5, %v1623_v35  ;;  %v1839_v9 = vld [vmem:[#allocation3 + $0x20] sm:$0xf0]  ;;  %v1617_v11 = vld [vmem:[#allocation3 + $0x24] sm:$0xf0]  ;;  %v2172_v5 = vperm.slane %v253_v0, 1 }
  0xda   : > { %306 = vst [vmem:[#allocation3 + $0xc] sm:$0xff] %v298_v7  ;;  %v1616_v13 = vor.u32 %v1839_v9, %v1615_v6  ;;  %v1620_v15 = vor.u32 %v1838_v10, %v1617_v11  ;;  %v1603_v12 = vld [vmem:[#allocation3] sm:$0xf]  ;;  %v1835_v21 = vld [vmem:[#allocation3 + $0x4] sm:$0xf] }
  0xdb   : > { %820 = vmatpush.bf16.msrb.mxu1 %v1624_v8 }
  0xdc   : > { %764 = vmatpush.bf16.msra.mxu0 %v1616_v13  ;;  %792 = vmatpush.bf16.msra.mxu2 %v1620_v15 }
  0xdf   : > { %v1837_v19 = vld [vmem:[#allocation3 + $0x10] sm:$0xf0] }
  0xe0   : > { %v1612_v20 = vor.u32 %v1837_v19, %v1611_v18 }
  0xe1   : > { %v1836_v14 = vld [vmem:[#allocation3 + $0x8] sm:$0xf0]  ;;  %v1605_v22 = vld [vmem:[#allocation3 + $0xc] sm:$0xf0] }
  0xe2   : > { %821 = vmatpush.bf16.msrb.mxu1 %v1612_v20  ;;  %v1604_v24 = vor.u32 %v1836_v14, %v1603_v12  ;;  %v1608_v25 = vor.u32 %v1835_v21, %v1605_v22 }
  0xe4   : > { %765 = vmatpush.bf16.msra.mxu0 %v1604_v24  ;;  %793 = vmatpush.bf16.msra.mxu2 %v1608_v25 }
  0xe5   : > { %822 = vmatmul.bf16.vlgmr.msrb.gmra.mxu1 %v1596_v23 }
  0xe7   : > { %766 = vmatmul.bf16.vlgmr.msra.gmra.mxu0 %v1596_v23  ;;  %794 = vmatmul.bf16.vlgmr.msra.gmra.mxu2 %v1596_v23 }
 0x109   : > { %v594_v58 = vpop.permute.xlu2 %593 }
 0x112   : > { %v866_v44 = vpop.permute.xlu2 %865 }
 0x11d   : > { %v880_v7 = vpop.permute.xlu2 %879 }
 0x123   : > { %v599_v45 = vpop.permute.xlu0 %598 }
 0x124   : > { %v862_v30 = vpop.permute.xlu1 %861 }
 0x134   : > { %v876_v48 = vpop.permute.xlu1 %875 }
 0x13c   : > { %v781_v27 = vpop.f32.mrf.mxu1 }
 0x142   : > { %v809_v26 = vpop.f32.mrf.mxu3 }
 0x144   : > { %v783_v29 = vpop.f32.mrf.mxu1 }
 0x14a   : > { %v811_v28 = vpop.f32.mrf.mxu3 }
 0x152   : > { %v837_v32 = vpop.f32.mrf.mxu3 }
 0x15a   : > { %v839_v55 = vpop.f32.mrf.mxu3 }
 0x162   : > { %v823_v33 = vpop.f32.mrf.mxu1 }
 0x163   : > { %v824_v34 = vadd.f32 %v823_v33, %v594_v58 }
 0x164   : > { %v767_v36 = vpop.f32.mrf.mxu0 }
 0x165   : > { %v838_v38 = vadd.f32 %v837_v32, %v824_v34  ;;  %v768_v39 = vadd.f32 %v767_v36, %v594_v58 }
 0x167   : > { %v850_v40 = vmul.f32 0.01, %v838_v38  ;;  %vm844_vm13 = vcmp.ge.f32.partialorder %v838_v38, 0.0  ;;  %v782_v42 = vadd.f32 %v781_v27, %v768_v39 }
 0x169   : > { %v856_v47 = vsel %vm844_vm13, %v838_v38, %v850_v40  ;;  %vm842_vm14 = vcmp.ge.f32.partialorder %v782_v42, 0.0  ;;  %v848_v41 = vmul.f32 0.01, %v782_v42 }
 0x16a   : > { %v870_v43 = vmul.f32 %v862_v30, %v856_v47  ;;  %v795_v50 = vpop.f32.mrf.mxu2  ;;  %v825_v51 = vpop.f32.mrf.mxu1 }
 0x16b   : > { %v796_v52 = vadd.f32 %v795_v50, %v594_v58  ;;  %v826_v53 = vadd.f32 %v825_v51, %v599_v45  ;;  %v854_v54 = vsel %vm842_vm14, %v782_v42, %v848_v41 }
 0x16c   : > { %v769_v56 = vpop.f32.mrf.mxu0  ;;  %v884_v57 = vadd.f32 %v876_v48, %v870_v43  ;;  %v868_v62 = vmul.f32 %v862_v30, %v854_v54  ;;  %v2218_v43 = vld [vmem:[%s2357_s5 + $0x8] sm:$0xff] }
 0x16d   : > { %v810_v59 = vadd.f32 %v809_v26, %v796_v52  ;;  %v840_v60 = vadd.f32 %v839_v55, %v826_v53  ;;  %v770_v61 = vadd.f32 %v769_v56, %v599_v45 }
 0x16e   : > { %v897_v46 = vmul.f32 %v2167_v31, %v884_v57  ;;  %v882_v6 = vadd.f32 %v876_v48, %v868_v62 }
 0x16f   : > { %vm843_vm15 = vcmp.ge.f32.partialorder %v810_v59, 0.0  ;;  %v849_v49 = vmul.f32 0.01, %v810_v59  ;;  %vm847_vm1 = vcmp.ge.f32.partialorder %v840_v60, 0.0  ;;  %v853_v1 = vmul.f32 0.01, %v840_v60 }
 0x170   : > { %v784_v2 = vadd.f32 %v783_v29, %v770_v61  ;;  %v902_v35 = vpack.c.bf16 %v897_v46, %v897_v46  ;;  %v895_v20 = vmul.f32 %v2170_v3, %v882_v6 }
 0x171   : > { %v855_v4 = vsel %vm843_vm15, %v810_v59, %v849_v49  ;;  %v859_v8 = vsel %vm847_vm1, %v840_v60, %v853_v1 }
 0x172   : > { %vm845_vm2 = vcmp.ge.f32.partialorder %v784_v2, 0.0  ;;  %v851_v9 = vmul.f32 0.01, %v784_v2  ;;  %v869_v10 = vmul.f32 %v862_v30, %v855_v4  ;;  %906 = vst.msk [vmem:[#allocation2 + $0xc] sm:$0xf] %vm266_vm3, %v902_v35  ;;  %v797_v11 = vpop.f32.mrf.mxu2  ;;  %v873_v13 = vmul.f32 %v866_v44, %v859_v8 }
 0x173   : > { %v798_v15 = vadd.f32 %v797_v11, %v599_v45 }
 0x174   : > { %v883_v16 = vadd.f32 %v876_v48, %v869_v10  ;;  %v857_v17 = vsel %vm845_vm2, %v784_v2, %v851_v9  ;;  %v887_v18 = vadd.f32 %v880_v7, %v873_v13 }
 0x175   : > { %v812_v19 = vadd.f32 %v811_v28, %v798_v15  ;;  %v871_v14 = vmul.f32 %v866_v44, %v857_v17 }
 0x176   : > { %v896_v12 = vmul.f32 %v2172_v5, %v883_v16  ;;  %v900_v21 = vmul.f32 %v2167_v31, %v887_v18 }
 0x177   : > { %vm846_vm13 = vcmp.ge.f32.partialorder %v812_v19, 0.0  ;;  %v852_v22 = vmul.f32 0.01, %v812_v19  ;;  %v885_v30 = vadd.f32 %v880_v7, %v871_v14 }
 0x178   : > { %v901_v23 = vpack.c.bf16 %v896_v12, %v895_v20  ;;  %v904_v24 = vpack.c.bf16 %v900_v21, %v900_v21 }
 0x179   : > { %v858_v25 = vsel %vm846_vm13, %v812_v19, %v852_v22  ;;  %v1120_v26 = vld [vmem:[#allocation2 + $0xc] sm:$0xf]  ;;  %v898_v33 = vmul.f32 %v2170_v3, %v885_v30 }
 0x17a   : > { %v1088_v27 = vld [vmem:[#allocation2 + $0xc] sm:$0xf]  ;;  %905 = vst [vmem:[#allocation2 + $0x4] sm:$0xff] %v901_v23  ;;  %v872_v58 = vmul.f32 %v866_v44, %v858_v25  ;;  %1129 = vrot.lane.b32.xlu1 %v1120_v26, %s1931_s27 }
 0x17b   : > { %v1056_v29 = vld [vmem:[#allocation2 + $0xc] sm:$0xf]  ;;  %1097 = vrot.lane.b32.xlu2 %v1088_v27, %s1932_s28  ;;  %908 = vst.msk [vmem:[#allocation2 + $0x1c] sm:$0xf] %vm266_vm3, %v904_v24 }
 0x17c   : > { %v1048_v28 = vld [vmem:[#allocation2 + $0xc] sm:$0xf]  ;;  %1065 = vrot.lane.b32.xlu0 %v1056_v29, %s1933_s29  ;;  %v886_v32 = vadd.f32 %v880_v7, %v872_v58  ;;  %1051 = vst [vmem:[#allocation3 + $0x60] sm:$0xff] %v901_v23 }
 0x17d   : > { %1052 = vst.msk [vmem:[#allocation3 + $0x68] sm:$0xf] %vm266_vm3, %v1048_v28  ;;  %v1152_v41 = vld [vmem:[#allocation2 + $0xc] sm:$0xf] }
 0x17e   : > { %v899_v34 = vmul.f32 %v2172_v5, %v886_v32 }
 0x180   : > { %v903_v36 = vpack.c.bf16 %v899_v34, %v898_v33 }
 0x181   : > { %v1014_v44 = vld [vmem:[#allocation2 + $0x8] sm:$0xff]  ;;  %v1013_v0 = vld [vmem:[#allocation2] sm:$0xff] }
 0x182   : > { %907 = vst [vmem:[#allocation2 + $0x14] sm:$0xff] %v903_v36  ;;  %v1090_v38 = vld [vmem:[#allocation2 + $0x1c] sm:$0xf] }
 0x183   : > { %v1058_v39 = vld [vmem:[#allocation2 + $0x1c] sm:$0xf]  ;;  %1101 = vrot.lane.b32.xlu1 %v1090_v38, %s1932_s28  ;;  %1053 = vst [vmem:[#allocation3 + $0x6c] sm:$0xff] %v903_v36 }
 0x184   : > { %1069 = vrot.lane.b32.xlu2 %v1058_v39, %s1933_s29  ;;  %v1122_v40 = vld [vmem:[#allocation2 + $0x1c] sm:$0xf] }
 0x185   : > { %v1050_v42 = vld [vmem:[#allocation2 + $0x1c] sm:$0xf]  ;;  %1133 = vrot.lane.b32.xlu0 %v1122_v40, %s1931_s27 }
 0x186   : > { %1054 = vst.msk [vmem:[#allocation3 + $0x74] sm:$0xf] %vm266_vm3, %v1050_v42  ;;  %v1154_v48 = vld [vmem:[#allocation2 + $0x1c] sm:$0xf] }
 0x189   : > { %v1015_v45 = vld [vmem:[#allocation2 + $0x10] sm:$0xff]  ;;  %v948_v47 = vld [vmem:[#allocation2 + $0x18] sm:$0xff] }
 0x18b   : > { %1095 = vrot.lane.b32.xlu1 %v901_v23, %s1932_s28 }
 0x18c   : > { %1063 = vrot.lane.b32.xlu2 %v901_v23, %s1933_s29 }
 0x18d   : > { %1127 = vrot.lane.b32.xlu0 %v901_v23, %s1931_s27 }
 0x193   : > { %1023 = vrot.lane.b32.xlu1 %v1014_v44, %s1935_s7 }
 0x194   : > { %989 = vrot.lane.b32.xlu2 %v1014_v44, %s1936_s8 }
 0x195   : > { %1021 = vrot.lane.b32.xlu0 %v1013_v0, %s1935_s7 }
 0x19b   : > { %987 = vrot.lane.b32.xlu1 %v1013_v0, %s1936_s8 }
 0x19c   : > { %1131 = vrot.lane.b32.xlu2 %v903_v36, %s1931_s27 }
 0x19d   : > { %955 = vrot.lane.b32.xlu0 %v1014_v44, %s1937_s9 }
 0x1a3   : > { %921 = vrot.lane.b32.xlu1 %v1014_v44, %s1938_s10 }
 0x1a4   : > { %953 = vrot.lane.b32.xlu2 %v1013_v0, %s1937_s9 }
 0x1a5   : > { %919 = vrot.lane.b32.xlu0 %v1013_v0, %s1938_s10 }
 0x1ab   : > { %1067 = vrot.lane.b32.xlu1 %v903_v36, %s1933_s29 }
 0x1ac   : > { %1025 = vrot.lane.b32.xlu2 %v1015_v45, %s1935_s7 }
 0x1ad   : > { %1099 = vrot.lane.b32.xlu0 %v903_v36, %s1932_s28 }
 0x1b3   : > { %993 = vrot.lane.b32.xlu1 %v948_v47, %s1936_s8 }
 0x1b4   : > { %959 = vrot.lane.b32.xlu2 %v948_v47, %s1937_s9 }
 0x1b5   : > { %1027 = vrot.lane.b32.xlu0 %v948_v47, %s1935_s7 }
 0x1bb   : > { %957 = vrot.lane.b32.xlu1 %v1015_v45, %s1937_s9 }
 0x1bc   : > { %923 = vrot.lane.b32.xlu2 %v1015_v45, %s1938_s10 }
 0x1bd   : > { %991 = vrot.lane.b32.xlu0 %v1015_v45, %s1936_s8  ;;  %v1778_v45 = vld [vmem:[#allocation3 + $0x68] sm:$0xf] }
 0x1c3   : > { %1159 = vrot.lane.b32.xlu1 %v901_v23, %s1934_s30 }
 0x1c4   : > { %1161 = vrot.lane.b32.xlu2 %v1152_v41, %s1934_s30 }
 0x1c5   : > { %925 = vrot.lane.b32.xlu0 %v948_v47, %s1938_s10 }
 0x1cb   : > { %1165 = vrot.lane.b32.xlu1 %v1154_v48, %s1934_s30 }
 0x1cd   : > { %1163 = vrot.lane.b32.xlu0 %v903_v36, %s1934_s30  ;;  %v1878_v36 = vld [vmem:[#allocation3 + $0x70] sm:$0xf0] }
 0x1ce   : > { %v1779_v47 = vor.u32 %v1878_v36, %v1778_v45 }
 0x1d5   : > { %1228 = vperm.xlu0 %1912, %v2218_v43   ;;  %v1098_v50 = vpop.permute.xlu2 %1097 }
 0x1d6   : > { %1116 = vst.msk [vmem:[#allocation3 + $0x98] sm:$0xf] %vm266_vm3, %v1098_v50  ;;  %v1104_v9 = vrot.slane %v1098_v50, 4 }
 0x1dd   : > { %1920 = vset.pattern.permute.xlu0 %v1940_v63  ;;  %v1802_v22 = vld [vmem:[#allocation3 + $0x98] sm:$0xf] }
 0x1de   : > { %v2223_v51 = vpop.permute.xlu2 %1069 }
 0x1df   : > { %1086 = vst.msk [vmem:[#allocation3 + $0x8c] sm:$0xf] %vm266_vm3, %v2223_v51 }
 0x1e6   : > { %v1064_v52 = vpop.permute.xlu2 %1063  ;;  %v1881_v58 = vld [vmem:[#allocation3 + $0x88] sm:$0xf0] }
 0x1e7   : > { %v1071_v56 = vrot.slane %v1064_v52, 4 }
 0x1ec   : > { %v1130_v53 = vpop.permute.xlu1 %1129 }
 0x1ed   : > { %1148 = vst.msk [vmem:[#allocation3 + $0xb0] sm:$0xf] %vm266_vm3, %v1130_v53  ;;  %v1136_v16 = vrot.slane %v1130_v53, 4 }
 0x1ee   : > { %v1066_v54 = vpop.permute.xlu0 %1065  ;;  %v2228_v55 = vpop.permute.xlu2 %989 }
 0x1ef   : > { %v1072_v57 = vrot.slane %v1066_v54, 4  ;;  %1084 = vst.msk [vmem:[#allocation3 + $0x80] sm:$0xf] %vm266_vm3, %v1066_v54  ;;  %v996_v59 = vrot.slane %v2228_v55, 4 }
 0x1f1   : > { %v1075_v60 = vsel %vm255_vm0, %v1071_v56, %v1072_v57  ;;  %v1001_v61 = vsel %vm364_vm8, %v2228_v55, %v996_v59 }
 0x1f2   : > { %v1076_v62 = vsel %vm442_vm7, %v1064_v52, %v1075_v60  ;;  %1010 = vst.msk [vmem:[#allocation3 + $0x38] sm:$0xf] %vm266_vm3, %v1001_v61 }
 0x1f3   : > { %1083 = vst [vmem:[#allocation3 + $0x78] sm:$0xff] %v1076_v62 }
 0x1f4   : > { %v1814_v13 = vld [vmem:[#allocation3 + $0xb0] sm:$0xf] }
 0x1f5   : > { %v2239_v46 = vpop.permute.xlu1 %1101 }
 0x1f6   : > { %v1132_v49 = vpop.permute.xlu2 %1131  ;;  %1118 = vst.msk [vmem:[#allocation3 + $0xa4] sm:$0xf] %vm266_vm3, %v2239_v46  ;;  %v1790_v24 = vld [vmem:[#allocation3 + $0x80] sm:$0xf] }
 0x1f7   : > { %v1134_v1 = vpop.permute.xlu0 %1133  ;;  %v1137_v2 = vrot.slane %v1132_v49, 4  ;;  %v1791_v28 = vor.u32 %v1881_v58, %v1790_v24 }
 0x1f8   : > { %v1138_v35 = vrot.slane %v1134_v1, 4  ;;  %1150 = vst.msk [vmem:[#allocation3 + $0xbc] sm:$0xf] %vm266_vm3, %v1134_v1 }
 0x1fa   : > { %v1141_v4 = vsel %vm255_vm0, %v1137_v2, %v1138_v35 }
 0x1fb   : > { %v1142_v6 = vsel %vm508_vm5, %v1132_v49, %v1141_v4 }
 0x1fc   : > { %1149 = vst [vmem:[#allocation3 + $0xb4] sm:$0xff] %v1142_v6 }
 0x1fd   : > { %v1096_v7 = vpop.permute.xlu1 %1095  ;;  %v1884_v20 = vld [vmem:[#allocation3 + $0xa0] sm:$0xf0] }
 0x1fe   : > { %v954_v8 = vpop.permute.xlu2 %953  ;;  %v1103_v11 = vrot.slane %v1096_v7, 4  ;;  %v1803_v23 = vor.u32 %v1884_v20, %v1802_v22 }
 0x1ff   : > { %v1128_v10 = vpop.permute.xlu0 %1127  ;;  %v1887_v15 = vld [vmem:[#allocation3 + $0xb8] sm:$0xf0]  ;;  %v961_v54 = vrot.slane %v954_v8, 4 }
 0x200   : > { %v1135_v17 = vrot.slane %v1128_v10, 4  ;;  %v1815_v18 = vor.u32 %v1887_v15, %v1814_v13  ;;  %v1107_v19 = vsel %vm255_vm0, %v1103_v11, %v1104_v9  ;;  %v1074_v11 = vrot.slane %v2223_v51, 4 }
 0x201   : > { %v1108_v14 = vsel %vm475_vm4, %v1096_v7, %v1107_v19 }
 0x202   : > { %v1139_v12 = vsel %vm255_vm0, %v1135_v17, %v1136_v16  ;;  %1443 = vmatpush.bf16.msrb.mxu0 %v1815_v18  ;;  %1115 = vst [vmem:[#allocation3 + $0x90] sm:$0xff] %v1108_v14  ;;  %v1106_v16 = vrot.slane %v2239_v46, 4 }
 0x203   : > { %v1140_v21 = vsel %vm508_vm5, %v1128_v10, %v1139_v12  ;;  %v1886_v34 = vld [vmem:[#allocation3 + $0xb0] sm:$0xf0]  ;;  %v1808_v42 = vld [vmem:[#allocation3 + $0xb4] sm:$0xf0] }
 0x204   : > { %1147 = vst [vmem:[#allocation3 + $0xa8] sm:$0xff] %v1140_v21 }
 0x205   : > { %v1024_v25 = vpop.permute.xlu1 %1023 }
 0x206   : > { %1444 = vmatpush.bf16.msrb.mxu0 %v1803_v23  ;;  %v2250_v26 = vpop.permute.xlu2 %1025  ;;  %v1030_v27 = vrot.slane %v1024_v25, 4 }
 0x207   : > { %v1022_v29 = vpop.permute.xlu0 %1021  ;;  %v1031_v22 = vrot.slane %v2250_v26, 4 }
 0x208   : > { %v1029_v30 = vrot.slane %v1022_v29, 4  ;;  %v1035_v32 = vsel %vm399_vm6, %v1024_v25, %v1030_v27 }
 0x209   : > { %1044 = vst.msk [vmem:[#allocation3 + $0x50] sm:$0xf] %vm266_vm3, %v1035_v32 }
 0x20a   : > { %v1033_v33 = vsel %vm255_vm0, %v1029_v30, %v1030_v27  ;;  %1445 = vmatpush.bf16.msrb.mxu0 %v1791_v28  ;;  %v1794_v27 = vld [vmem:[#allocation3 + $0x90] sm:$0xf] }
 0x20b   : > { %v1034_v38 = vsel %vm399_vm6, %v1022_v29, %v1033_v33  ;;  %v1806_v39 = vld [vmem:[#allocation3 + $0xa8] sm:$0xf]  ;;  %v1885_v40 = vld [vmem:[#allocation3 + $0xac] sm:$0xf]  ;;  %v1882_v29 = vld [vmem:[#allocation3 + $0x94] sm:$0xf] }
 0x20c   : > { %1043 = vst [vmem:[#allocation3 + $0x48] sm:$0xff] %v1034_v38  ;;  %v1807_v44 = vor.u32 %v1886_v34, %v1806_v39  ;;  %v1811_v0 = vor.u32 %v1885_v40, %v1808_v42  ;;  %v1782_v42 = vld [vmem:[#allocation3 + $0x78] sm:$0xf] }
 0x20d   : > { %v988_v41 = vpop.permute.xlu1 %987 }
 0x20e   : > { %1387 = vmatpush.bf16.msra.mxu3 %v1807_v44  ;;  %1415 = vmatpush.bf16.msrb.mxu2 %v1811_v0  ;;  %v2256_v48 = vpop.permute.xlu2 %959  ;;  %v995_v50 = vrot.slane %v988_v41, 4  ;;  %v1879_v44 = vld [vmem:[#allocation3 + $0x7c] sm:$0xf] }
 0x20f   : > { %1446 = vmatpush.bf16.msrb.mxu0 %v1779_v47  ;;  %v956_v52 = vpop.permute.xlu0 %955  ;;  %v964_v53 = vrot.slane %v2256_v48, 4 }
 0x210   : > { %v962_v56 = vrot.slane %v956_v52, 4  ;;  %v999_v57 = vsel %vm255_vm0, %v995_v50, %v996_v59  ;;  %v1772_v50 = vld [vmem:[#allocation3 + $0x6c] sm:$0xf0] }
 0x211   : > { %v970_v60 = vsel %vm329_vm12, %v2256_v48, %v964_v53  ;;  %v1000_v61 = vsel %vm364_vm8, %v988_v41, %v999_v57  ;;  %v1877_v41 = vld [vmem:[#allocation3 + $0x68] sm:$0xf0] }
 0x212   : > { %v965_v62 = vsel %vm255_vm0, %v961_v54, %v962_v56  ;;  %v967_v49 = vsel %vm329_vm12, %v956_v52, %v962_v56  ;;  %978 = vst.msk [vmem:[#allocation3 + $0x2c] sm:$0xf] %vm266_vm3, %v970_v60  ;;  %v1766_v56 = vld [vmem:[#allocation3 + $0x50] sm:$0xf] }
 0x213   : > { %1009 = vst [vmem:[#allocation3 + $0x30] sm:$0xff] %v1000_v61  ;;  %v966_v1 = vsel %vm329_vm12, %v954_v8, %v965_v62  ;;  %v1770_v62 = vld [vmem:[#allocation3 + $0x60] sm:$0xf] }
 0x214   : > { %975 = vst [vmem:[#allocation3 + $0x18] sm:$0xff] %v966_v1  ;;  %v1771_v48 = vor.u32 %v1877_v41, %v1770_v62  ;;  %v1862_v62 = vld [vmem:[%s2355_s3 + $0x4] sm:$0xf] }
 0x215   : > { %976 = vst.msk [vmem:[#allocation3 + $0x20] sm:$0xf] %vm266_vm3, %v967_v49  ;;  %v922_v59 = vpop.permute.xlu1 %921  ;;  %v1876_v49 = vld [vmem:[#allocation3 + $0x64] sm:$0xf] }
 0x216   : > { %v2272_v55 = vpop.permute.xlu2 %923  ;;  %v928_v2 = vrot.slane %v922_v59, 4  ;;  %v1775_v1 = vor.u32 %v1876_v49, %v1772_v50 }
 0x217   : > { %v920_v35 = vpop.permute.xlu0 %919 }
 0x218   : > { %v927_v4 = vrot.slane %v920_v35, 4  ;;  %v933_v6 = vsel %vm294_vm10, %v922_v59, %v928_v2 }
 0x219   : > { %942 = vst.msk [vmem:[#allocation3 + $0x8] sm:$0xf] %vm266_vm3, %v933_v6 }
 0x21a   : > { %v931_v7 = vsel %vm255_vm0, %v927_v4, %v928_v2  ;;  %v1754_v4 = vld [vmem:[#allocation3 + $0x38] sm:$0xf] }
 0x21b   : > { %v932_v9 = vsel %vm294_vm10, %v920_v35, %v931_v7 }
 0x21c   : > { %941 = vst [vmem:[#allocation3] sm:$0xff] %v932_v9 }
 0x21d   : > { %v1068_v8 = vpop.permute.xlu1 %1067 }
 0x21e   : > { %v2278_v10 = vpop.permute.xlu2 %1161  ;;  %v1073_v13 = vrot.slane %v1068_v8, 4 }
 0x21f   : > { %1180 = vst.msk [vmem:[#allocation3 + $0xc8] sm:$0xf] %vm266_vm3, %v2278_v10  ;;  %v1100_v15 = vpop.permute.xlu0 %1099  ;;  %v1168_v6 = vrot.slane %v2278_v10, 4 }
 0x220   : > { %v1105_v17 = vrot.slane %v1100_v15, 4  ;;  %v1077_v18 = vsel %vm255_vm0, %v1073_v13, %v1074_v11  ;;  %v1758_v11 = vld [vmem:[#allocation3 + $0x48] sm:$0xf]  ;;  %v1873_v13 = vld [vmem:[#allocation3 + $0x4c] sm:$0xf] }
 0x221   : > { %v1078_v19 = vsel %vm442_vm7, %v1068_v8, %v1077_v18 }
 0x222   : > { %v1109_v20 = vsel %vm255_vm0, %v1105_v17, %v1106_v16  ;;  %1085 = vst [vmem:[#allocation3 + $0x84] sm:$0xff] %v1078_v19  ;;  %v1742_v19 = vld [vmem:[#allocation3 + $0x20] sm:$0xf] }
 0x223   : > { %v1110_v12 = vsel %vm475_vm4, %v1100_v15, %v1109_v20  ;;  %v929_v15 = vrot.slane %v2272_v55, 4  ;;  %v1869_v20 = vld [vmem:[#allocation3 + $0x28] sm:$0xf0]  ;;  %v1864_v41 = vld [vmem:[#allocation3 + $0x4] sm:$0xf] }
 0x224   : > { %1117 = vst [vmem:[#allocation3 + $0x9c] sm:$0xff] %v1110_v12 }
 0x225   : > { %v994_v14 = vpop.permute.xlu1 %993 }
 0x226   : > { %v998_v51 = vrot.slane %v994_v14, 4 }
 0x227   : > { %v1028_v21 = vpop.permute.xlu0 %1027 }
 0x228   : > { %v1032_v23 = vrot.slane %v1028_v21, 4  ;;  %v1004_v24 = vsel %vm364_vm8, %v994_v14, %v998_v51 }
 0x229   : > { %1012 = vst.msk [vmem:[#allocation3 + $0x44] sm:$0xf] %vm266_vm3, %v1004_v24  ;;  %v1880_v34 = vld [vmem:[#allocation3 + $0x80] sm:$0xf0]  ;;  %v1784_v36 = vld [vmem:[#allocation3 + $0x84] sm:$0xf0]  ;;  %v1743_v24 = vor.u32 %v1869_v20, %v1742_v19 }
 0x22a   : > { %v1036_v46 = vsel %vm255_vm0, %v1031_v22, %v1032_v23  ;;  %v1038_v25 = vsel %vm399_vm6, %v1028_v21, %v1032_v23  ;;  %v1783_v45 = vor.u32 %v1880_v34, %v1782_v42  ;;  %v1787_v47 = vor.u32 %v1879_v44, %v1784_v36  ;;  %v1746_v21 = vld [vmem:[#allocation3 + $0x30] sm:$0xf]  ;;  %v1870_v22 = vld [vmem:[#allocation3 + $0x34] sm:$0xf]  ;;  %v1722_v44 = vld [vmem:[#allocation3] sm:$0xf] }
 0x22b   : > { %v1037_v58 = vsel %vm399_vm6, %v2250_v26, %v1036_v46  ;;  %1046 = vst.msk [vmem:[#allocation3 + $0x5c] sm:$0xf] %vm266_vm3, %v1038_v25  ;;  %v1883_v30 = vld [vmem:[#allocation3 + $0x98] sm:$0xf0]  ;;  %v1796_v28 = vld [vmem:[#allocation3 + $0x9c] sm:$0xf0] }
 0x22c   : > { %1045 = vst [vmem:[#allocation3 + $0x54] sm:$0xff] %v1037_v58  ;;  %v1795_v32 = vor.u32 %v1883_v30, %v1794_v27  ;;  %v1799_v33 = vor.u32 %v1882_v29, %v1796_v28 }
 0x22d   : > { %v958_v38 = vpop.permute.xlu1 %957 }
 0x22e   : > { %1388 = vmatpush.bf16.msra.mxu3 %v1795_v32  ;;  %1416 = vmatpush.bf16.msrb.mxu2 %v1799_v33  ;;  %v963_v39 = vrot.slane %v958_v38, 4  ;;  %v1734_v32 = vld [vmem:[#allocation3 + $0x18] sm:$0xf] }
 0x22f   : > { %v992_v40 = vpop.permute.xlu0 %991 }
 0x230   : > { %v997_v0 = vrot.slane %v992_v40, 4  ;;  %v968_v26 = vsel %vm255_vm0, %v963_v39, %v964_v53  ;;  %v1872_v53 = vld [vmem:[#allocation3 + $0x40] sm:$0xf0] }
 0x231   : > { %v969_v52 = vsel %vm329_vm12, %v958_v38, %v968_v26  ;;  %v1755_v8 = vor.u32 %v1872_v53, %v1754_v4 }
 0x232   : > { %v1002_v54 = vsel %vm255_vm0, %v997_v0, %v998_v51  ;;  %1389 = vmatpush.bf16.msra.mxu3 %v1783_v45  ;;  %1417 = vmatpush.bf16.msrb.mxu2 %v1787_v47  ;;  %v1875_v57 = vld [vmem:[#allocation3 + $0x58] sm:$0xf0]  ;;  %977 = vst [vmem:[#allocation3 + $0x24] sm:$0xff] %v969_v52  ;;  %v1714_v0 = vld [vmem:[%s2355_s3] sm:$0xf] }
 0x233   : > { %v1003_v60 = vsel %vm364_vm8, %v992_v40, %v1002_v54  ;;  %v1767_v61 = vor.u32 %v1875_v57, %v1766_v56  ;;  %v1874_v59 = vld [vmem:[#allocation3 + $0x50] sm:$0xf0]  ;;  %v1760_v2 = vld [vmem:[#allocation3 + $0x54] sm:$0xf0]  ;;  %v1219_v40 = vld [vmem:[%s2357_s5] sm:$0xff] }
 0x234   : > { %1011 = vst [vmem:[#allocation3 + $0x3c] sm:$0xff] %v1003_v60  ;;  %v1759_v17 = vor.u32 %v1874_v59, %v1758_v11  ;;  %v1763_v18 = vor.u32 %v1873_v13, %v1760_v2  ;;  %v1863_v45 = vld [vmem:[%s2355_s3 + $0x4] sm:$0xf0]  ;;  %1490 = vperm.xlu1 %1918, %v1219_v40   ;;  %1504 = vperm.xlu0 %1920, %v1219_v40  }
 0x235   : > { %1447 = vmatpush.bf16.msrb.mxu0 %v1767_v61  ;;  %v1160_v35 = vpop.permute.xlu1 %1159  ;;  %v1730_v52 = vld [vmem:[#allocation3 + $0x8] sm:$0xf]  ;;  %1223 = vperm.xlu2 %1917, %v1219_v40   ;;  %v1715_v61 = vor.u32 %v1863_v45, %v1714_v0 }
 0x236   : > { %1390 = vmatpush.bf16.msra.mxu3 %v1771_v48  ;;  %1418 = vmatpush.bf16.msrb.mxu2 %v1775_v1  ;;  %v1167_v7 = vrot.slane %v1160_v35, 4  ;;  %v1716_v1 = vld [vmem:[%s2355_s3 + $0x8] sm:$0xf0] }
 0x237   : > { %v926_v9 = vpop.permute.xlu0 %925 }
 0x238   : > { %v930_v16 = vrot.slane %v926_v9, 4  ;;  %v1171_v12 = vsel %vm255_vm0, %v1167_v7, %v1168_v6  ;;  %v1826_v6 = vld [vmem:[#allocation3 + $0xc8] sm:$0xf] }
 0x239   : > { %1448 = vmatpush.bf16.msrb.mxu0 %v1755_v8  ;;  %v1172_v14 = vsel %vm541_vm9, %v1160_v35, %v1171_v12  ;;  %v1868_v58 = vld [vmem:[#allocation3 + $0x20] sm:$0xf0]  ;;  %v1736_v30 = vld [vmem:[#allocation3 + $0x24] sm:$0xf0] }
 0x23a   : > { %v934_v51 = vsel %vm255_vm0, %v929_v15, %v930_v16  ;;  %v936_v10 = vsel %vm294_vm10, %v926_v9, %v930_v16  ;;  %1391 = vmatpush.bf16.msra.mxu3 %v1759_v17  ;;  %1419 = vmatpush.bf16.msrb.mxu2 %v1763_v18  ;;  %1179 = vst [vmem:[#allocation3 + $0xc0] sm:$0xff] %v1172_v14 }
 0x23b   : > { %v935_v23 = vsel %vm294_vm10, %v2272_v55, %v934_v51  ;;  %v1871_v46 = vld [vmem:[#allocation3 + $0x38] sm:$0xf0]  ;;  %v1748_v25 = vld [vmem:[#allocation3 + $0x3c] sm:$0xf0]  ;;  %944 = vst.msk [vmem:[#allocation3 + $0x14] sm:$0xf] %vm266_vm3, %v936_v10  ;;  %v1735_v38 = vor.u32 %v1868_v58, %v1734_v32  ;;  %v1719_v9 = vor.u32 %v1862_v62, %v1716_v1 }
 0x23c   : > { %943 = vst [vmem:[#allocation3 + $0xc] sm:$0xff] %v935_v23  ;;  %v1747_v27 = vor.u32 %v1871_v46, %v1746_v21  ;;  %v1751_v29 = vor.u32 %v1870_v22, %v1748_v25  ;;  %v1867_v55 = vld [vmem:[#allocation3 + $0x1c] sm:$0xf]  ;;  %1921 = vset.pattern.permute.xlu1 %v1940_v63 }
 0x23d   : > { %1449 = vmatpush.bf16.msrb.mxu0 %v1743_v24  ;;  %v1166_v28 = vpop.permute.xlu1 %1165  ;;  %v1739_v39 = vor.u32 %v1867_v55, %v1736_v30  ;;  %1508 = vperm.xlu1 %1921, %v2218_v43  }
 0x23e   : > { %1392 = vmatpush.bf16.msra.mxu3 %v1747_v27  ;;  %1420 = vmatpush.bf16.msrb.mxu2 %v1751_v29  ;;  %v1170_v33 = vrot.slane %v1166_v28, 4  ;;  %1182 = vst.msk [vmem:[#allocation3 + $0xd4] sm:$0xf] %vm266_vm3, %v1166_v28 }
 0x23f   : > { %v1164_v34 = vpop.permute.xlu0 %1163  ;;  %1919 = vset.pattern.permute.xlu2 %v1939_v37 }
 0x240   : > { %v1169_v36 = vrot.slane %v1164_v34, 4  ;;  %1494 = vperm.xlu2 %1919, %v2218_v43  }
 0x241   : > { %v1818_v49 = vld [vmem:[#allocation3 + $0xc0] sm:$0xf]  ;;  %v1888_v59 = vld [vmem:[#allocation3 + $0xc4] sm:$0xf] }
 0x242   : > { %v1173_v42 = vsel %vm255_vm0, %v1169_v36, %v1170_v33  ;;  %1393 = vmatpush.bf16.msra.mxu3 %v1735_v38  ;;  %1421 = vmatpush.bf16.msrb.mxu2 %v1739_v39  ;;  %v1866_v54 = vld [vmem:[#allocation3 + $0x10] sm:$0xf0] }
 0x243   : > { %v1174_v47 = vsel %vm541_vm9, %v1164_v34, %v1173_v42  ;;  %v1865_v26 = vld [vmem:[#allocation3 + $0x8] sm:$0xf0]  ;;  %v1724_v50 = vld [vmem:[#allocation3 + $0xc] sm:$0xf0]  ;;  %v1731_v60 = vor.u32 %v1866_v54, %v1730_v52 }
 0x244   : > { %1181 = vst [vmem:[#allocation3 + $0xcc] sm:$0xff] %v1174_v47  ;;  %v1723_v56 = vor.u32 %v1865_v26, %v1722_v44  ;;  %v1727_v57 = vor.u32 %v1864_v41, %v1724_v50 }
 0x245   : > { %1450 = vmatpush.bf16.msrb.mxu0 %v1731_v60  ;;  %v1890_v48 = vld [vmem:[#allocation3 + $0xd0] sm:$0xf0] }
 0x246   : > { %1394 = vmatpush.bf16.msra.mxu3 %v1723_v56  ;;  %1422 = vmatpush.bf16.msrb.mxu2 %v1727_v57  ;;  %v1827_v7 = vor.u32 %v1890_v48, %v1826_v6 }
 0x247   : > { %v1229_v18 = vpop.permute.xlu0 %1228 }
 0x248   : > { %1451 = vmatmul.bf16.vlgmr.msrb.gmra.mxu0 %v1715_v61 }
 0x249   : > { %1395 = vmatmul.bf16.vlgmr.msra.gmra.mxu3 %v1715_v61  ;;  %1423 = vmatmul.bf16.vlgmr.msrb.gmra.mxu2 %v1715_v61 }
 0x24b   : > { %v1889_v53 = vld [vmem:[#allocation3 + $0xc8] sm:$0xf0]  ;;  %v1820_v2 = vld [vmem:[#allocation3 + $0xcc] sm:$0xf0] }
 0x24c   : > { %v1819_v35 = vor.u32 %v1889_v53, %v1818_v49  ;;  %v1823_v4 = vor.u32 %v1888_v59, %v1820_v2 }
 0x24e   : > { %1408 = vmatpush.bf16.msrb.mxu3 %v1819_v35  ;;  %1436 = vmatpush.bf16.msra.mxu1 %v1823_v4 }
 0x251   : > { %1829 = vmatmul.msk.bf16.vlgmr.msra.gmra.mxu1 %vm754_vm11, %v1719_v9 }
 0x252   : > { %1464 = vmatpush.bf16.msrb.mxu1 %v1827_v7 }
 0x259   : > { %1828 = vmatmul.msk.bf16.vlgmr.msrb.gmra.mxu3 %vm754_vm11, %v1719_v9 }
 0x261   : > { %1830 = vmatmul.msk.bf16.vlgmr.msrb.gmra.mxu1 %vm754_vm11, %v1719_v9 }
 0x28f   : > { %v1224_v63 = vpop.permute.xlu2 %1223 }
 0x29a   : > { %v1495_v38 = vpop.permute.xlu2 %1494 }
 0x2a6   : > { %v1491_v14 = vpop.permute.xlu1 %1490  ;;  %v1505_v30 = vpop.permute.xlu0 %1504 }
 0x2af   : > { %v1509_v56 = vpop.permute.xlu1 %1508 }
 0x2c5   : > { %v1452_v12 = vpop.f32.mrf.mxu0 }
 0x2c6   : > { %v1453_v22 = vadd.f32 %v1452_v12, %v1224_v63 }
 0x2cc   : > { %v1396_v8 = vpop.f32.mrf.mxu3  ;;  %v1424_v11 = vpop.f32.mrf.mxu2 }
 0x2cd   : > { %v1425_v15 = vadd.f32 %v1424_v11, %v1224_v63  ;;  %v1397_v21 = vadd.f32 %v1396_v8, %v1224_v63  ;;  %v1454_v33 = vpop.f32.mrf.mxu0 }
 0x2ce   : > { %v1438_v13 = vpop.f32.mrf.mxu1  ;;  %v1455_v45 = vadd.f32 %v1454_v33, %v1229_v18 }
 0x2cf   : > { %v1439_v16 = vadd.f32 %v1438_v13, %v1425_v15 }
 0x2d1   : > { %v1478_v20 = vmul.f32 0.01, %v1439_v16  ;;  %vm1472_vm0 = vcmp.ge.f32.partialorder %v1439_v16, 0.0 }
 0x2d3   : > { %v1484_v51 = vsel %vm1472_vm0, %v1439_v16, %v1478_v20 }
 0x2d4   : > { %v1398_v37 = vpop.f32.mrf.mxu3  ;;  %v1426_v17 = vpop.f32.mrf.mxu2  ;;  %v1498_v46 = vmul.f32 %v1491_v14, %v1484_v51 }
 0x2d5   : > { %v1427_v43 = vadd.f32 %v1426_v17, %v1229_v18  ;;  %v1399_v36 = vadd.f32 %v1398_v37, %v1229_v18 }
 0x2d6   : > { %v1440_v19 = vpop.f32.mrf.mxu1  ;;  %v1512_v55 = vadd.f32 %v1505_v30, %v1498_v46 }
 0x2d7   : > { %v1441_v10 = vadd.f32 %v1440_v19, %v1427_v43 }
 0x2d8   : > { %v1518_v52 = vmul.f32 %v1512_v55, %v2172_v5 }
 0x2d9   : > { %v1481_v27 = vmul.f32 0.01, %v1441_v10  ;;  %vm1475_vm5 = vcmp.ge.f32.partialorder %v1441_v10, 0.0 }
 0x2db   : > { %v1487_v39 = vsel %vm1475_vm5, %v1441_v10, %v1481_v27 }
 0x2dc   : > { %v1410_v23 = vpop.f32.mrf.mxu3  ;;  %v1501_v26 = vmul.f32 %v1495_v38, %v1487_v39 }
 0x2dd   : > { %v1411_v24 = vadd.f32 %v1410_v23, %v1397_v21 }
 0x2de   : > { %v1466_v25 = vpop.f32.mrf.mxu1  ;;  %v1515_v1 = vadd.f32 %v1509_v56, %v1501_v26 }
 0x2df   : > { %vm1471_vm4 = vcmp.ge.f32.partialorder %v1411_v24, 0.0  ;;  %v1477_v29 = vmul.f32 0.01, %v1411_v24  ;;  %v1467_v58 = vadd.f32 %v1466_v25, %v1453_v22 }
 0x2e0   : > { %v1521_v6 = vmul.f32 %v1515_v1, %v2172_v5 }
 0x2e1   : > { %vm1473_vm6 = vcmp.ge.f32.partialorder %v1467_v58, 0.0  ;;  %v1479_v28 = vmul.f32 0.01, %v1467_v58  ;;  %v1483_v32 = vsel %vm1471_vm4, %v1411_v24, %v1477_v29 }
 0x2e2   : > { %v1497_v34 = vmul.f32 %v1491_v14, %v1483_v32 }
 0x2e3   : > { %v1485_v40 = vsel %vm1473_vm6, %v1467_v58, %v1479_v28 }
 0x2e4   : > { %v1499_v42 = vmul.f32 %v1491_v14, %v1485_v40  ;;  %v1511_v44 = vadd.f32 %v1505_v30, %v1497_v34  ;;  %v1412_v0 = vpop.f32.mrf.mxu3 }
 0x2e5   : > { %v1413_v47 = vadd.f32 %v1412_v0, %v1399_v36 }
 0x2e6   : > { %v1513_v41 = vadd.f32 %v1505_v30, %v1499_v42  ;;  %v1517_v50 = vmul.f32 %v1511_v44, %v2170_v3  ;;  %v1468_v54 = vpop.f32.mrf.mxu1 }
 0x2e7   : > { %vm1474_vm7 = vcmp.ge.f32.partialorder %v1413_v47, 0.0  ;;  %v1480_v57 = vmul.f32 0.01, %v1413_v47  ;;  %v1469_v60 = vadd.f32 %v1468_v54, %v1455_v45 }
 0x2e8   : > { %v1519_v61 = vmul.f32 %v1513_v41, %v2167_v31  ;;  %v1523_v62 = vpack.c.bf16 %v1518_v52, %v1517_v50 }
 0x2e9   : > { %v1486_v49 = vsel %vm1474_vm7, %v1413_v47, %v1480_v57  ;;  %vm1476_vm8 = vcmp.ge.f32.partialorder %v1469_v60, 0.0  ;;  %v1482_v48 = vmul.f32 0.01, %v1469_v60 }
 0x2ea   : > { %v1524_v53 = vpack.c.bf16 %v1519_v61, %v1519_v61  ;;  %1527 = vst [vmem:[%s251_s18] sm:$0xff] %v1523_v62  ;;  %v1500_v59 = vmul.f32 %v1495_v38, %v1486_v49 }
 0x2eb   : > { %v1488_v2 = vsel %vm1476_vm8, %v1469_v60, %v1482_v48 }
 0x2ec   : > { %1528 = vst.msk [vmem:[%s251_s18 + $0x8] sm:$0xf] %vm266_vm3, %v1524_v53  ;;  %v1514_v35 = vadd.f32 %v1509_v56, %v1500_v59  ;;  %v1502_v4 = vmul.f32 %v1495_v38, %v1488_v2 }
 0x2ee   : > { %v1520_v7 = vmul.f32 %v1514_v35, %v2170_v3  ;;  %v1516_v9 = vadd.f32 %v1509_v56, %v1502_v4 }
 0x2f0   : > { %v1525_v63 = vpack.c.bf16 %v1521_v6, %v1520_v7  ;;  %v1522_v8 = vmul.f32 %v1516_v9, %v2167_v31 }
 0x2f2   : > { %1529 = vst [vmem:[%s251_s18 + $0xc] sm:$0xff] %v1525_v63  ;;  %v1526_v11 = vpack.c.bf16 %v1522_v8, %v1522_v8 }
 0x2f4   : > { %1530 = vst.msk [vmem:[%s251_s18 + $0x14] sm:$0xf] %vm266_vm3, %v1526_v11 }
 0x2f5 PF: > { %s16_s21 = sadd.s32 1, %s1928_s21  }
 0x2f6   : > { %p13_p4 = scmp.ge.s32.totalorder %s16_s21, 4  }
 0x2f8   :  { %15 = sbr.rel (!%p13_p4) target bundleno = 1 (0x1), region = 74 }

// kernel: wnet_forward.11
= control target key start
LH: loop header
LB: loop body
LE: loop exit
PB: predicated region body
PF: predicated region fallthrough
CT: control target
= control target key end

     0   :  { %s1086_s21 = smov 0   ;;  %s1261_s0 = inlined_call_operand.vmem [shape: f32[1,80], index: 0, kind: input, shape index: {}]   ;;  %s1262_s1 = inlined_call_operand.vmem [shape: bf16[2,16,80], index: 1, kind: input, shape index: {}]   ;;  %s1263_s2 = inlined_call_operand.vmem [shape: bf16[16,144], index: 2, kind: input, shape index: {}]   ;;  %s1264_s3 = inlined_call_operand.vmem [shape: bf16[16,144], index: 3, kind: input, shape index: {}]   ;;  %s1265_s4 = inlined_call_operand.vmem [shape: f32[16,3], index: 4, kind: input, shape index: {}]   ;;  %s1266_s5 = inlined_call_operand.vmem [shape: f32[16,3], index: 5, kind: input, shape index: {}]   ;;  %s1267_s6 = inlined_call_operand.vmem [shape: bf16[2,16,80], index: 6, kind: output, shape index: {}]  }
   0x1 LB: > { %s875_s22 = sadd.s32 4294967295, %s1038_s21   ;;  %p879_p0 = scmp.ge.s32.totalorder %s1038_s21, 1  ;;  %s1038_s21 = sphi %s1086_s21, %s16_s21  }
   0x2   : > { %p212_p1 = scmp.lt.s32.totalorder %s1038_s21, 3 }
   0x4   : > { %p213_p2 = pnand %p879_p0, %p212_p1 }
   0x5   : > { %p242_p3 = scmp.lt.s32.totalorder (!%p213_p2), %s875_s22, 1  ;;  %s1041_s27 = smov (!%p213_p2), 118  }
   0x6   : > { %216 = sbr.rel (%p213_p2) target bundleno = 661 (0x295), region = 44  ;;  %s1042_s28 = smov (!%p213_p2), 119  }
   0x7   : > { %s1043_s29 = smov (!%p213_p2), 127   ;;  %s1044_s30 = smov (!%p213_p2), 1  }
   0x8   : > { %s1045_s7 = smov (!%p213_p2), 9   ;;  %s1046_s8 = smov (!%p213_p2), 10  }
   0x9   : > { %s1047_s9 = smov (!%p213_p2), 11   ;;  %s1048_s10 = smov (!%p213_p2), 117  }
   0xb   : > { %vm254_vm0 = vcmask 1043456   ;;  %vm255_vm1 = vcmask 744452   ;;  %v1040_v0 = vmov 0   ;;  %s1269_s22 = smov (!%p242_p3, %s875_s22), 1  ;;  %vm261_vm3 = vcmask 650240   ;;  %v404_v36 = vld [vmem:[%s1265_s4] sm:$0xff] }
   0xc   : > { %vm256_vm2 = vmor %vm255_vm1, %vm254_vm0  ;;  %1019 = vset.pattern.permute.xlu1 %v1040_v0  ;;  %1020 = vset.pattern.permute.xlu2 %v1040_v0  ;;  %s976_s23 = sshll.u32 %s1269_s22, 3  ;;  %vm310_vm4 = vcmask 72704   ;;  %vm293_vm5 = vcmask 80896   ;;  %vm327_vm6 = vcmask 7168   ;;  %v405_v37 = vld [vmem:[%s1265_s4 + $0x8] sm:$0xff]  ;;  %v1049_v38 = vmov 1  }
   0xd   : > { %257 = vst.msk [vmem:[#allocation2] sm:$0xff] %vm256_vm2, %v1040_v0  ;;  %s246_s26 = scalar_lea.vmem %s1262_s1, %s976_s23  ;;  %1021 = vset.pattern.permute.xlu0 %v1049_v38  ;;  %v1050_v47 = vmov 2   ;;  %vm276_vm7 = vcmask 89088   ;;  %v886_v58 = vld [vmem:[%s1263_s2] sm:$0xf]  ;;  %vm479_vm8 = vcmask 130048   ;;  %s251_s18 = scalar_lea.vmem %s1267_s6, %s976_s23 }
   0xe   : > { %258 = vst.msk [vmem:[#allocation2 + $0x8] sm:$0xff] %vm256_vm2, %v1040_v0  ;;  %v259_v1 = vld [vmem:[%s246_s26] sm:$0xf]  ;;  %v260_v2 = vld [vmem:[%s246_s26 + $0x4] sm:$0xf] }
   0xf   : > { %262 = vst.msk [vmem:[#allocation2 + $0x4] sm:$0xf] %vm261_vm3, %v259_v1  ;;  %v979_v59 = vld [vmem:[%s1263_s2 + $0x4] sm:$0xf0]  ;;  %v978_v62 = vld [vmem:[%s1263_s2 + $0x4] sm:$0xf] }
  0x10   : > { %263 = vst.msk [vmem:[#allocation2 + $0xc] sm:$0xf] %vm261_vm3, %v260_v2  ;;  %v887_v61 = vor.u32 %v979_v59, %v886_v58  ;;  %v888_v63 = vld [vmem:[%s1263_s2 + $0x8] sm:$0xf0] }
  0x11   : > { %v891_v2 = vor.u32 %v978_v62, %v888_v63 }
  0x16   : > { %v362_v3 = vld [vmem:[#allocation2 + $0x4] sm:$0xf] }
  0x17   : > { %v350_v4 = vld [vmem:[#allocation2 + $0x4] sm:$0xf]  ;;  %366 = vrot.lane.b32.xlu0 %v362_v3, %s1041_s27  ;;  %v363_v6 = vld [vmem:[#allocation2 + $0xc] sm:$0xf] }
  0x18   : > { %354 = vrot.lane.b32.xlu1 %v350_v4, %s1042_s28  ;;  %v338_v5 = vld [vmem:[#allocation2 + $0x4] sm:$0xf]  ;;  %v351_v7 = vld [vmem:[#allocation2 + $0xc] sm:$0xf] }
  0x19   : > { %342 = vrot.lane.b32.xlu2 %v338_v5, %s1043_s29  ;;  %v339_v8 = vld [vmem:[#allocation2 + $0xc] sm:$0xf]  ;;  %v317_v10 = vld [vmem:[#allocation2] sm:$0xff] }
  0x1a   : > { %v318_v9 = vld [vmem:[#allocation2 + $0x8] sm:$0xff]  ;;  %v374_v11 = vld [vmem:[#allocation2 + $0x4] sm:$0xf] }
  0x1b   : > { %v375_v12 = vld [vmem:[#allocation2 + $0xc] sm:$0xf]  ;;  %v334_v15 = vld [vmem:[#allocation2 + $0x4] sm:$0xf] }
  0x1c   : > { %v335_v16 = vld [vmem:[#allocation2 + $0xc] sm:$0xf]  ;;  %336 = vst.msk [vmem:[#allocation3 + $0x20] sm:$0xf] %vm261_vm3, %v334_v15  ;;  %v1179_v15 = vld [vmem:[%s1261_s0] ss:$0 sm:$0xff] }
  0x1d   : > { %337 = vst.msk [vmem:[#allocation3 + $0x24] sm:$0xf] %vm261_vm3, %v335_v16 }
  0x1f   : > { %368 = vrot.lane.b32.xlu0 %v363_v6, %s1041_s27 }
  0x20   : > { %356 = vrot.lane.b32.xlu1 %v351_v7, %s1042_s28 }
  0x21   : > { %344 = vrot.lane.b32.xlu2 %v339_v8, %s1043_s29 }
  0x24   : > { %v984_v44 = vld [vmem:[#allocation3 + $0x20] sm:$0xff] }
  0x27   : > { %321 = vrot.lane.b32.xlu0 %v317_v10, %s1044_s30 }
  0x28   : > { %323 = vrot.lane.b32.xlu1 %v318_v9, %s1044_s30 }
  0x29   : > { %304 = vrot.lane.b32.xlu2 %v317_v10, %s1045_s7 }
  0x2f   : > { %306 = vrot.lane.b32.xlu0 %v318_v9, %s1045_s7 }
  0x30   : > { %287 = vrot.lane.b32.xlu1 %v317_v10, %s1046_s8 }
  0x31   : > { %289 = vrot.lane.b32.xlu2 %v318_v9, %s1046_s8 }
  0x37   : > { %270 = vrot.lane.b32.xlu0 %v317_v10, %s1047_s9 }
  0x38   : > { %272 = vrot.lane.b32.xlu1 %v318_v9, %s1047_s9 }
  0x39   : > { %378 = vrot.lane.b32.xlu2 %v374_v11, %s1048_s10 }
  0x3f   : > { %380 = vrot.lane.b32.xlu0 %v375_v12, %s1048_s10 }
  0x40   : > { %408 = vperm.xlu1 %1019, %v404_v36  }
  0x41   : > { %413 = vperm.xlu2 %1020, %v405_v37  }
  0x47   : > { %518 = vperm.xlu0 %1021, %v404_v36  }
  0x48   : > { %1022 = vset.pattern.permute.xlu1 %v1049_v38 }
  0x49   : > { %522 = vperm.xlu1 %1022, %v405_v37   ;;  %1023 = vset.pattern.permute.xlu2 %v1050_v47 }
  0x4a   : > { %528 = vperm.xlu2 %1023, %v404_v36  }
  0x4f   : > { %1025 = vset.pattern.permute.xlu0 %v1040_v0 }
  0x51   : > { %1024 = vset.pattern.permute.xlu1 %v1050_v47 }
  0x52   : > { %532 = vperm.xlu1 %1024, %v405_v37   ;;  %1027 = vset.pattern.permute.xlu2 %v1049_v38 }
  0x5a   : > { %1026 = vset.pattern.permute.xlu1 %v1040_v0 }
  0x73   : > { %v343_v13 = vpop.permute.xlu2 %342 }
  0x74   : > { %348 = vst.msk [vmem:[#allocation3 + $0x28] sm:$0xf] %vm261_vm3, %v343_v13 }
  0x7b   : > { %v345_v14 = vpop.permute.xlu2 %344 }
  0x7c   : > { %349 = vst.msk [vmem:[#allocation3 + $0x2c] sm:$0xf] %vm261_vm3, %v345_v14 }
  0x83   : > { %v305_v17 = vpop.permute.xlu2 %304  ;;  %v985_v41 = vld [vmem:[#allocation3 + $0x28] sm:$0xff] }
  0x84   : > { %v308_v18 = vrot.slane %v305_v17, 4 }
  0x86   : > { %v311_v19 = vsel %vm310_vm4, %v305_v17, %v308_v18 }
  0x87   : > { %315 = vst.msk [vmem:[#allocation3 + $0x10] sm:$0xf] %vm261_vm3, %v311_v19 }
  0x89   : > { %v367_v20 = vpop.permute.xlu0 %366 }
  0x8a   : > { %v355_v21 = vpop.permute.xlu1 %354  ;;  %372 = vst.msk [vmem:[#allocation3 + $0x38] sm:$0xf] %vm261_vm3, %v367_v20 }
  0x8b   : > { %360 = vst.msk [vmem:[#allocation3 + $0x30] sm:$0xf] %vm261_vm3, %v355_v21  ;;  %v290_v22 = vpop.permute.xlu2 %289 }
  0x8c   : > { %v292_v23 = vrot.slane %v290_v22, 4 }
  0x8e   : > { %v295_v24 = vsel %vm293_vm5, %v290_v22, %v292_v23 }
  0x8f   : > { %299 = vst.msk [vmem:[#allocation3 + $0xc] sm:$0xf] %vm261_vm3, %v295_v24 }
  0x91   : > { %v369_v25 = vpop.permute.xlu0 %368 }
  0x92   : > { %v357_v26 = vpop.permute.xlu1 %356  ;;  %373 = vst.msk [vmem:[#allocation3 + $0x3c] sm:$0xf] %vm261_vm3, %v369_v25 }
  0x93   : > { %361 = vst.msk [vmem:[#allocation3 + $0x34] sm:$0xf] %vm261_vm3, %v357_v26  ;;  %v379_v27 = vpop.permute.xlu2 %378 }
  0x94   : > { %384 = vst.msk [vmem:[#allocation3 + $0x40] sm:$0xf] %vm261_vm3, %v379_v27 }
  0x99   : > { %v322_v29 = vpop.permute.xlu0 %321  ;;  %v987_v30 = vld [vmem:[#allocation3 + $0x38] sm:$0xff] }
  0x9a   : > { %v324_v28 = vpop.permute.xlu1 %323  ;;  %v325_v32 = vrot.slane %v322_v29, 4  ;;  %483 = vmatpush.bf16.msra.mxu0 %v987_v30  ;;  %v986_v35 = vld [vmem:[#allocation3 + $0x30] sm:$0xff] }
  0x9b   : > { %v326_v31 = vrot.slane %v324_v28, 4  ;;  %v414_v4 = vpop.permute.xlu2 %413 }
  0x9c   : > { %v328_v34 = vsel %vm327_vm6, %v322_v29, %v325_v32 }
  0x9d   : > { %v329_v33 = vsel %vm327_vm6, %v324_v28, %v326_v31  ;;  %332 = vst.msk [vmem:[#allocation3 + $0x18] sm:$0xf] %vm261_vm3, %v328_v34 }
  0x9e   : > { %333 = vst.msk [vmem:[#allocation3 + $0x1c] sm:$0xf] %vm261_vm3, %v329_v33  ;;  %484 = vmatpush.bf16.msra.mxu0 %v986_v35 }
  0xa1   : > { %v307_v39 = vpop.permute.xlu0 %306 }
  0xa2   : > { %v288_v40 = vpop.permute.xlu1 %287  ;;  %v309_v42 = vrot.slane %v307_v39, 4  ;;  %485 = vmatpush.bf16.msra.mxu0 %v985_v41 }
  0xa3   : > { %v291_v43 = vrot.slane %v288_v40, 4 }
  0xa4   : > { %v312_v45 = vsel %vm310_vm4, %v307_v39, %v309_v42  ;;  %v529_v14 = vpop.permute.xlu2 %528 }
  0xa5   : > { %v294_v46 = vsel %vm293_vm5, %v288_v40, %v291_v43  ;;  %316 = vst.msk [vmem:[#allocation3 + $0x14] sm:$0xf] %vm261_vm3, %v312_v45  ;;  %v983_v50 = vld [vmem:[#allocation3 + $0x18] sm:$0xff] }
  0xa6   : > { %298 = vst.msk [vmem:[#allocation3 + $0x8] sm:$0xf] %vm261_vm3, %v294_v46  ;;  %486 = vmatpush.bf16.msra.mxu0 %v984_v44 }
  0xa9   : > { %v271_v49 = vpop.permute.xlu0 %270 }
  0xaa   : > { %v273_v48 = vpop.permute.xlu1 %272  ;;  %v274_v52 = vrot.slane %v271_v49, 4  ;;  %487 = vmatpush.bf16.msra.mxu0 %v983_v50 }
  0xab   : > { %v275_v51 = vrot.slane %v273_v48, 4 }
  0xac   : > { %v277_v54 = vsel %vm276_vm7, %v271_v49, %v274_v52  ;;  %v982_v55 = vld [vmem:[#allocation3 + $0x10] sm:$0xff] }
  0xad   : > { %v278_v53 = vsel %vm276_vm7, %v273_v48, %v275_v51  ;;  %281 = vst.msk [vmem:[#allocation3] sm:$0xf] %vm261_vm3, %v277_v54  ;;  %v981_v57 = vld [vmem:[#allocation3 + $0x8] sm:$0xff] }
  0xae   : > { %282 = vst.msk [vmem:[#allocation3 + $0x4] sm:$0xf] %vm261_vm3, %v278_v53  ;;  %488 = vmatpush.bf16.msra.mxu0 %v982_v55 }
  0xb1   : > { %v381_v56 = vpop.permute.xlu0 %380 }
  0xb2   : > { %385 = vst.msk [vmem:[#allocation3 + $0x44] sm:$0xf] %vm261_vm3, %v381_v56  ;;  %489 = vmatpush.bf16.msra.mxu0 %v981_v57  ;;  %v409_v3 = vpop.permute.xlu1 %408 }
  0xb5   : > { %v980_v60 = vld [vmem:[#allocation3] sm:$0xff] }
  0xb6   : > { %490 = vmatpush.bf16.msra.mxu0 %v980_v60 }
  0xb9   : > { %v988_v1 = vld [vmem:[#allocation3 + $0x40] sm:$0xff]  ;;  %491 = vmatmul.bf16.vlgmr.msra.gmra.mxu0 %v887_v61  ;;  %v519_v10 = vpop.permute.xlu0 %518 }
  0xba   : > { %504 = vmatpush.bf16.msra.mxu1 %v988_v1 }
  0xbb   : > { %v523_v11 = vpop.permute.xlu1 %522 }
  0xbd   : > { %928 = vmatmul.msk.bf16.vlgmr.msra.gmra.mxu1 %vm479_vm8, %v891_v2  ;;  %v682_v2 = vld [vmem:[%s1266_s5] sm:$0xff] }
  0xc4   : > { %v533_v23 = vpop.permute.xlu1 %532 }
 0x136   : > { %v492_v5 = vpop.f32.mrf.mxu0 }
 0x137   : > { %v493_v6 = vadd.f32 %v492_v5, %v409_v3  ;;  %v683_v3 = vld [vmem:[%s1266_s5 + $0x8] sm:$0xff] }
 0x13a   : > { %v506_v7 = vpop.f32.mrf.mxu1 }
 0x13b   : > { %v507_v8 = vadd.f32 %v506_v7, %v493_v6 }
 0x13d   : > { %v513_v9 = vmul.f32 0.01, %v507_v8  ;;  %vm511_vm9 = vcmp.ge.f32.partialorder %v507_v8, 0.0 }
 0x13e   : > { %v494_v12 = vpop.f32.mrf.mxu0 }
 0x13f   : > { %v515_v13 = vsel %vm511_vm9, %v507_v8, %v513_v9  ;;  %v495_v16 = vadd.f32 %v494_v12, %v414_v4 }
 0x140   : > { %v525_v0 = vmul.f32 %v519_v10, %v515_v13 }
 0x142   : > { %v535_v17 = vadd.f32 %v529_v14, %v525_v0  ;;  %v508_v18 = vpop.f32.mrf.mxu1 }
 0x143   : > { %v509_v19 = vadd.f32 %v508_v18, %v495_v16 }
 0x144   : > { %v540_v20 = vmul.f32 %v1179_v15, %v535_v17  ;;  %v933_v17 = vld [vmem:[%s1264_s3 + $0x8] sm:$0xf0] }
 0x145   : > { %vm512_vm10 = vcmp.ge.f32.partialorder %v509_v19, 0.0  ;;  %v514_v21 = vmul.f32 0.01, %v509_v19 }
 0x146   : > { %v542_v22 = vpack.c.bf16 %v540_v20, %v540_v20 }
 0x147   : > { %v516_v24 = vsel %vm512_vm10, %v509_v19, %v514_v21 }
 0x148   : > { %544 = vst.msk [vmem:[#allocation2 + $0x4] sm:$0xf] %vm261_vm3, %v542_v22  ;;  %v526_v25 = vmul.f32 %v523_v11, %v516_v24  ;;  %v990_v24 = vld [vmem:[%s1264_s3 + $0x4] sm:$0xf0] }
 0x14a   : > { %v536_v26 = vadd.f32 %v533_v23, %v526_v25  ;;  %v931_v23 = vld [vmem:[%s1264_s3] sm:$0xf] }
 0x14c   : > { %v541_v27 = vmul.f32 %v1179_v15, %v536_v26  ;;  %v932_v26 = vor.u32 %v990_v24, %v931_v23 }
 0x14e   : > { %v543_v28 = vpack.c.bf16 %v541_v27, %v541_v27 }
 0x14f   : > { %v640_v29 = vld [vmem:[#allocation2 + $0x4] sm:$0xf] }
 0x150   : > { %v628_v30 = vld [vmem:[#allocation2 + $0x4] sm:$0xf]  ;;  %545 = vst.msk [vmem:[#allocation2 + $0xc] sm:$0xf] %vm261_vm3, %v543_v28  ;;  %644 = vrot.lane.b32.xlu2 %v640_v29, %s1041_s27 }
 0x151   : > { %632 = vrot.lane.b32.xlu1 %v628_v30, %s1042_s28  ;;  %v612_v31 = vld [vmem:[#allocation2 + $0x4] sm:$0xf] }
 0x152   : > { %614 = vst.msk [vmem:[#allocation3 + $0x20] sm:$0xf] %vm261_vm3, %v612_v31  ;;  %v616_v36 = vld [vmem:[#allocation2 + $0x4] sm:$0xf] }
 0x153   : > { %v596_v37 = vld [vmem:[#allocation2] sm:$0xff] }
 0x154   : > { %v652_v40 = vld [vmem:[#allocation2 + $0x4] sm:$0xf] }
 0x157   : > { %v641_v32 = vld [vmem:[#allocation2 + $0xc] sm:$0xf] }
 0x158   : > { %v629_v33 = vld [vmem:[#allocation2 + $0xc] sm:$0xf]  ;;  %646 = vrot.lane.b32.xlu0 %v641_v32, %s1041_s27 }
 0x159   : > { %v617_v34 = vld [vmem:[#allocation2 + $0xc] sm:$0xf]  ;;  %634 = vrot.lane.b32.xlu2 %v629_v33, %s1042_s28 }
 0x15a   : > { %v613_v35 = vld [vmem:[#allocation2 + $0xc] sm:$0xf]  ;;  %622 = vrot.lane.b32.xlu1 %v617_v34, %s1043_s29 }
 0x15b   : > { %615 = vst.msk [vmem:[#allocation3 + $0x24] sm:$0xf] %vm261_vm3, %v613_v35  ;;  %v597_v39 = vld [vmem:[#allocation2 + $0x8] sm:$0xff] }
 0x15c   : > { %v653_v41 = vld [vmem:[#allocation2 + $0xc] sm:$0xf] }
 0x160   : > { %620 = vrot.lane.b32.xlu0 %v616_v36, %s1043_s29 }
 0x161   : > { %600 = vrot.lane.b32.xlu2 %v596_v37, %s1044_s30 }
 0x162   : > { %584 = vrot.lane.b32.xlu1 %v596_v37, %s1045_s7  ;;  %v995_v10 = vld [vmem:[#allocation3 + $0x20] sm:$0xff] }
 0x168   : > { %602 = vrot.lane.b32.xlu0 %v597_v39, %s1044_s30 }
 0x169   : > { %586 = vrot.lane.b32.xlu2 %v597_v39, %s1045_s7 }
 0x16a   : > { %570 = vrot.lane.b32.xlu1 %v597_v39, %s1046_s8 }
 0x170   : > { %568 = vrot.lane.b32.xlu0 %v596_v37, %s1046_s8 }
 0x171   : > { %552 = vrot.lane.b32.xlu2 %v596_v37, %s1047_s9 }
 0x172   : > { %656 = vrot.lane.b32.xlu1 %v652_v40, %s1048_s10 }
 0x178   : > { %554 = vrot.lane.b32.xlu0 %v597_v39, %s1047_s9 }
 0x179   : > { %658 = vrot.lane.b32.xlu2 %v653_v41, %s1048_s10 }
 0x17a   : > { %691 = vperm.xlu1 %1026, %v683_v3  }
 0x180   : > { %686 = vperm.xlu0 %1025, %v682_v2  }
 0x181   : > { %795 = vperm.xlu2 %1027, %v682_v2  }
 0x182   : > { %1028 = vset.pattern.permute.xlu1 %v1049_v38  ;;  %v989_v38 = vld [vmem:[%s1264_s3 + $0x4] sm:$0xf] }
 0x183   : > { %799 = vperm.xlu1 %1028, %v683_v3   ;;  %v936_v21 = vor.u32 %v989_v38, %v933_v17 }
 0x188   : > { %1030 = vset.pattern.permute.xlu0 %v1050_v47 }
 0x189   : > { %809 = vperm.xlu0 %1030, %v683_v3   ;;  %1029 = vset.pattern.permute.xlu2 %v1050_v47 }
 0x18a   : > { %805 = vperm.xlu2 %1029, %v682_v2  }
 0x1aa   : > { %v645_v42 = vpop.permute.xlu2 %644 }
 0x1ab   : > { %650 = vst.msk [vmem:[#allocation3 + $0x38] sm:$0xf] %vm261_vm3, %v645_v42 }
 0x1b3   : > { %v635_v43 = vpop.permute.xlu2 %634 }
 0x1b4   : > { %639 = vst.msk [vmem:[#allocation3 + $0x34] sm:$0xf] %vm261_vm3, %v635_v43 }
 0x1bb   : > { %v601_v44 = vpop.permute.xlu2 %600 }
 0x1bc   : > { %v604_v45 = vrot.slane %v601_v44, 4 }
 0x1be   : > { %v606_v46 = vsel %vm327_vm6, %v601_v44, %v604_v45 }
 0x1bf   : > { %610 = vst.msk [vmem:[#allocation3 + $0x18] sm:$0xf] %vm261_vm3, %v606_v46 }
 0x1c3   : > { %v633_v48 = vpop.permute.xlu1 %632  ;;  %v587_v49 = vpop.permute.xlu2 %586 }
 0x1c4   : > { %638 = vst.msk [vmem:[#allocation3 + $0x30] sm:$0xf] %vm261_vm3, %v633_v48  ;;  %v589_v50 = vrot.slane %v587_v49, 4 }
 0x1c6   : > { %v591_v51 = vsel %vm310_vm4, %v587_v49, %v589_v50 }
 0x1c7   : > { %595 = vst.msk [vmem:[#allocation3 + $0x14] sm:$0xf] %vm261_vm3, %v591_v51 }
 0x1ca   : > { %v647_v53 = vpop.permute.xlu0 %646 }
 0x1cb   : > { %v553_v52 = vpop.permute.xlu2 %552  ;;  %651 = vst.msk [vmem:[#allocation3 + $0x3c] sm:$0xf] %vm261_vm3, %v647_v53  ;;  %v997_v63 = vld [vmem:[#allocation3 + $0x30] sm:$0xff] }
 0x1cc   : > { %v623_v54 = vpop.permute.xlu1 %622  ;;  %v556_v55 = vrot.slane %v553_v52, 4 }
 0x1cd   : > { %627 = vst.msk [vmem:[#allocation3 + $0x2c] sm:$0xf] %vm261_vm3, %v623_v54 }
 0x1ce   : > { %v558_v56 = vsel %vm276_vm7, %v553_v52, %v556_v55 }
 0x1cf   : > { %562 = vst.msk [vmem:[#allocation3] sm:$0xf] %vm261_vm3, %v558_v56 }
 0x1d2   : > { %v621_v58 = vpop.permute.xlu0 %620  ;;  %v998_v59 = vld [vmem:[#allocation3 + $0x38] sm:$0xff] }
 0x1d3   : > { %v659_v57 = vpop.permute.xlu2 %658  ;;  %626 = vst.msk [vmem:[#allocation3 + $0x28] sm:$0xf] %vm261_vm3, %v621_v58  ;;  %760 = vmatpush.bf16.msra.mxu2 %v998_v59 }
 0x1d4   : > { %v585_v60 = vpop.permute.xlu1 %584  ;;  %663 = vst.msk [vmem:[#allocation3 + $0x44] sm:$0xf] %vm261_vm3, %v659_v57 }
 0x1d5   : > { %v588_v61 = vrot.slane %v585_v60, 4 }
 0x1d7   : > { %v590_v62 = vsel %vm310_vm4, %v585_v60, %v588_v61  ;;  %761 = vmatpush.bf16.msra.mxu2 %v997_v63 }
 0x1d8   : > { %594 = vst.msk [vmem:[#allocation3 + $0x10] sm:$0xf] %vm261_vm3, %v590_v62 }
 0x1da   : > { %v603_v1 = vpop.permute.xlu0 %602  ;;  %v996_v6 = vld [vmem:[#allocation3 + $0x28] sm:$0xff] }
 0x1db   : > { %v605_v5 = vrot.slane %v603_v1, 4  ;;  %762 = vmatpush.bf16.msra.mxu2 %v996_v6  ;;  %v796_v27 = vpop.permute.xlu2 %795 }
 0x1dc   : > { %v571_v4 = vpop.permute.xlu1 %570 }
 0x1dd   : > { %v573_v7 = vrot.slane %v571_v4, 4  ;;  %v607_v8 = vsel %vm327_vm6, %v603_v1, %v605_v5 }
 0x1de   : > { %611 = vst.msk [vmem:[#allocation3 + $0x1c] sm:$0xf] %vm261_vm3, %v607_v8 }
 0x1df   : > { %v575_v9 = vsel %vm293_vm5, %v571_v4, %v573_v7  ;;  %763 = vmatpush.bf16.msra.mxu2 %v995_v10  ;;  %v993_v16 = vld [vmem:[#allocation3 + $0x10] sm:$0xff] }
 0x1e0   : > { %579 = vst.msk [vmem:[#allocation3 + $0xc] sm:$0xf] %vm261_vm3, %v575_v9 }
 0x1e2   : > { %v569_v11 = vpop.permute.xlu0 %568 }
 0x1e3   : > { %v572_v13 = vrot.slane %v569_v11, 4 }
 0x1e4   : > { %v657_v12 = vpop.permute.xlu1 %656  ;;  %v806_v36 = vpop.permute.xlu2 %805 }
 0x1e5   : > { %662 = vst.msk [vmem:[#allocation3 + $0x40] sm:$0xf] %vm261_vm3, %v657_v12  ;;  %v574_v14 = vsel %vm293_vm5, %v569_v11, %v572_v13  ;;  %v994_v0 = vld [vmem:[#allocation3 + $0x18] sm:$0xff] }
 0x1e6   : > { %578 = vst.msk [vmem:[#allocation3 + $0x8] sm:$0xf] %vm261_vm3, %v574_v14  ;;  %764 = vmatpush.bf16.msra.mxu2 %v994_v0 }
 0x1ea   : > { %v555_v18 = vpop.permute.xlu0 %554  ;;  %765 = vmatpush.bf16.msra.mxu2 %v993_v16 }
 0x1eb   : > { %v557_v19 = vrot.slane %v555_v18, 4 }
 0x1ec   : > { %v999_v20 = vld [vmem:[#allocation3 + $0x40] sm:$0xff]  ;;  %v692_v33 = vpop.permute.xlu1 %691 }
 0x1ed   : > { %v559_v47 = vsel %vm276_vm7, %v555_v18, %v557_v19  ;;  %781 = vmatpush.bf16.msra.mxu3 %v999_v20  ;;  %v992_v22 = vld [vmem:[#allocation3 + $0x8] sm:$0xff] }
 0x1ee   : > { %563 = vst.msk [vmem:[#allocation3 + $0x4] sm:$0xf] %vm261_vm3, %v559_v47  ;;  %766 = vmatpush.bf16.msra.mxu2 %v992_v22 }
 0x1f0   : > { %973 = vmatmul.msk.bf16.vlgmr.msra.gmra.mxu3 %vm479_vm8, %v936_v21 }
 0x1f2   : > { %v687_v28 = vpop.permute.xlu0 %686 }
 0x1f5   : > { %v991_v25 = vld [vmem:[#allocation3] sm:$0xff]  ;;  %v800_v45 = vpop.permute.xlu1 %799 }
 0x1f6   : > { %767 = vmatpush.bf16.msra.mxu2 %v991_v25 }
 0x1f9   : > { %768 = vmatmul.bf16.vlgmr.msra.gmra.mxu2 %v932_v26 }
 0x1fb   : > { %v810_v50 = vpop.permute.xlu0 %809 }
 0x273   : > { %v783_v29 = vpop.f32.mrf.mxu3 }
 0x27b   : > { %v785_v41 = vpop.f32.mrf.mxu3 }
 0x27c   : > { %v769_v30 = vpop.f32.mrf.mxu2 }
 0x27d   : > { %v770_v31 = vadd.f32 %v769_v30, %v687_v28 }
 0x27f   : > { %v784_v32 = vadd.f32 %v783_v29, %v770_v31 }
 0x281   : > { %vm788_vm11 = vcmp.ge.f32.partialorder %v784_v32, 0.0  ;;  %v790_v34 = vmul.f32 0.01, %v784_v32 }
 0x283   : > { %v792_v35 = vsel %vm788_vm11, %v784_v32, %v790_v34 }
 0x284   : > { %v802_v37 = vmul.f32 %v796_v27, %v792_v35  ;;  %v771_v39 = vpop.f32.mrf.mxu2 }
 0x285   : > { %v772_v40 = vadd.f32 %v771_v39, %v692_v33 }
 0x286   : > { %v812_v42 = vadd.f32 %v806_v36, %v802_v37 }
 0x287   : > { %v786_v43 = vadd.f32 %v785_v41, %v772_v40 }
 0x288   : > { %v814_v44 = vmul.f32 %v1179_v15, %v812_v42 }
 0x289   : > { %vm789_vm12 = vcmp.ge.f32.partialorder %v786_v43, 0.0  ;;  %v791_v46 = vmul.f32 0.01, %v786_v43 }
 0x28a   : > { %v816_v48 = vpack.c.bf16 %v814_v44, %v814_v44 }
 0x28b   : > { %v793_v49 = vsel %vm789_vm12, %v786_v43, %v791_v46 }
 0x28c   : > { %818 = vst.msk [vmem:[%s251_s18] sm:$0xf] %vm261_vm3, %v816_v48  ;;  %v803_v51 = vmul.f32 %v800_v45, %v793_v49 }
 0x28e   : > { %v813_v52 = vadd.f32 %v810_v50, %v803_v51 }
 0x290   : > { %v815_v53 = vmul.f32 %v1179_v15, %v813_v52 }
 0x292   : > { %v817_v54 = vpack.c.bf16 %v815_v53, %v815_v53 }
 0x294   : > { %819 = vst.msk [vmem:[%s251_s18 + $0x4] sm:$0xf] %vm261_vm3, %v817_v54 }
 0x295 PF: > { %s16_s21 = sadd.s32 1, %s1038_s21  }
 0x296   : > { %p13_p4 = scmp.ge.s32.totalorder %s16_s21, 4  }
 0x298   :  { %15 = sbr.rel (!%p13_p4) target bundleno = 1 (0x1), region = 74 }

// kernel: wnet_forward.12
= control target key start
LH: loop header
LB: loop body
LE: loop exit
PB: predicated region body
PF: predicated region fallthrough
CT: control target
= control target key end

     0   :  { %s1231_s27 = smov 0   ;;  %s1422_s0 = inlined_call_operand.vmem [shape: f32[1,24], index: 0, kind: input, shape index: {}]   ;;  %s1423_s1 = inlined_call_operand.vmem [shape: bf16[2,16,24], index: 1, kind: input, shape index: {}]   ;;  %s1424_s2 = inlined_call_operand.vmem [shape: bf16[16,144], index: 2, kind: input, shape index: {}]   ;;  %s1425_s3 = inlined_call_operand.vmem [shape: bf16[16,144], index: 3, kind: input, shape index: {}]   ;;  %s1426_s4 = inlined_call_operand.vmem [shape: f32[16,3], index: 4, kind: input, shape index: {}]   ;;  %s1427_s5 = inlined_call_operand.vmem [shape: f32[16,3], index: 5, kind: input, shape index: {}]   ;;  %s1428_s6 = inlined_call_operand.vmem [shape: bf16[32,16], index: 6, kind: input, shape index: {}]   ;;  %s1429_s7 = inlined_call_operand.vmem [shape: f32[32,1], index: 7, kind: input, shape index: {}]   ;;  %s1430_s8 = inlined_call_operand.vmem [shape: bf16[2,32,24], index: 8, kind: output, shape index: {}]  }
   0x1 LB: > { %s995_s28 = sadd.s32 4294967295, %s1173_s27   ;;  %p999_p0 = scmp.ge.s32.totalorder %s1173_s27, 1  ;;  %s1173_s27 = sphi %s1231_s27, %s18_s27  }
   0x2   : > { %p262_p1 = scmp.lt.s32.totalorder %s1173_s27, 3 }
   0x4   : > { %p263_p2 = pnand %p999_p0, %p262_p1 }
   0x5   : > { %p296_p3 = scmp.lt.s32.totalorder (!%p263_p2), %s995_s28, 1  ;;  %s1176_s11 = smov (!%p263_p2), 122  }
   0x6   : > { %266 = sbr.rel (%p263_p2) target bundleno = 821 (0x335), region = 52  ;;  %s1177_s12 = smov (!%p263_p2), 123  }
   0x7   : > { %s1178_s13 = smov (!%p263_p2), 127   ;;  %s1179_s14 = smov (!%p263_p2), 1  }
   0x8   : > { %s1180_s15 = smov (!%p263_p2), 5   ;;  %s1181_s16 = smov (!%p263_p2), 6  }
   0x9   : > { %s1182_s17 = smov (!%p263_p2), 121   ;;  %s1183_s18 = smov (!%p263_p2), 7  }
   0xb   : > { %vm308_vm0 = vcmask 1043456   ;;  %vm309_vm1 = vcmask 252932   ;;  %v1175_v0 = vmov 0   ;;  %s1432_s28 = smov (!%p296_p3, %s995_s28), 1  ;;  %vm315_vm3 = vcmask 191488   ;;  %v458_v41 = vld [vmem:[%s1426_s4] sm:$0xff] }
   0xc   : > { %vm310_vm2 = vmor %vm309_vm1, %vm308_vm0  ;;  %1151 = vset.pattern.permute.xlu1 %v1175_v0  ;;  %1152 = vset.pattern.permute.xlu2 %v1175_v0  ;;  %s1106_s29 = sshll.u32 %s1432_s28, 3  ;;  %vm364_vm4 = vcmask 39936   ;;  %vm347_vm5 = vcmask 48128   ;;  %vm330_vm6 = vcmask 56320   ;;  %vm381_vm7 = vcmask 7168   ;;  %v459_v46 = vld [vmem:[%s1426_s4 + $0x8] sm:$0xff] }
   0xd   : > { %311 = vst.msk [vmem:[#allocation2] sm:$0xff] %vm310_vm2, %v1175_v0  ;;  %s300_s10 = scalar_lea.vmem %s1423_s1, %s1106_s29  ;;  %v1184_v44 = vmov 1   ;;  %v1185_v53 = vmov 2   ;;  %v1108_v55 = vld [vmem:[%s1424_s2 + $0x4] sm:$0xf]  ;;  %vm533_vm8 = vcmask 130048  }
   0xe   : > { %312 = vst.msk [vmem:[#allocation2 + $0x8] sm:$0xff] %vm310_vm2, %v1175_v0  ;;  %v313_v1 = vld [vmem:[%s300_s10] sm:$0xf]  ;;  %v314_v2 = vld [vmem:[%s300_s10 + $0x4] sm:$0xf]  ;;  %1153 = vset.pattern.permute.xlu0 %v1184_v44 }
   0xf   : > { %316 = vst.msk [vmem:[#allocation2 + $0x4] sm:$0xf] %vm315_vm3, %v313_v1  ;;  %v1008_v56 = vld [vmem:[%s1424_s2 + $0x8] sm:$0xf0]  ;;  %v1006_v62 = vld [vmem:[%s1424_s2] sm:$0xf] }
  0x10   : > { %317 = vst.msk [vmem:[#allocation2 + $0xc] sm:$0xf] %vm315_vm3, %v314_v2  ;;  %v1011_v60 = vor.u32 %v1108_v55, %v1008_v56  ;;  %v1109_v63 = vld [vmem:[%s1424_s2 + $0x4] sm:$0xf0] }
  0x11   : > { %v1007_v2 = vor.u32 %v1109_v63, %v1006_v62 }
  0x16   : > { %v416_v3 = vld [vmem:[#allocation2 + $0x4] sm:$0xf] }
  0x17   : > { %v404_v4 = vld [vmem:[#allocation2 + $0x4] sm:$0xf]  ;;  %420 = vrot.lane.b32.xlu0 %v416_v3, %s1176_s11  ;;  %v417_v6 = vld [vmem:[#allocation2 + $0xc] sm:$0xf] }
  0x18   : > { %408 = vrot.lane.b32.xlu1 %v404_v4, %s1177_s12  ;;  %v392_v5 = vld [vmem:[#allocation2 + $0x4] sm:$0xf]  ;;  %v405_v7 = vld [vmem:[#allocation2 + $0xc] sm:$0xf] }
  0x19   : > { %396 = vrot.lane.b32.xlu2 %v392_v5, %s1178_s13  ;;  %v393_v8 = vld [vmem:[#allocation2 + $0xc] sm:$0xf]  ;;  %v371_v10 = vld [vmem:[#allocation2] sm:$0xff] }
  0x1a   : > { %v372_v9 = vld [vmem:[#allocation2 + $0x8] sm:$0xff]  ;;  %v428_v11 = vld [vmem:[#allocation2 + $0x4] sm:$0xf] }
  0x1b   : > { %v429_v12 = vld [vmem:[#allocation2 + $0xc] sm:$0xf]  ;;  %v388_v15 = vld [vmem:[#allocation2 + $0x4] sm:$0xf] }
  0x1c   : > { %v389_v16 = vld [vmem:[#allocation2 + $0xc] sm:$0xf]  ;;  %390 = vst.msk [vmem:[#allocation3 + $0x20] sm:$0xf] %vm315_vm3, %v388_v15 }
  0x1d   : > { %391 = vst.msk [vmem:[#allocation3 + $0x24] sm:$0xf] %vm315_vm3, %v389_v16  ;;  %v1166_v16 = vld [vmem:[%s1422_s0] ss:$0 sm:$0xff] }
  0x1f   : > { %422 = vrot.lane.b32.xlu0 %v417_v6, %s1176_s11 }
  0x20   : > { %410 = vrot.lane.b32.xlu1 %v405_v7, %s1177_s12 }
  0x21   : > { %398 = vrot.lane.b32.xlu2 %v393_v8, %s1178_s13 }
  0x24   : > { %v1114_v45 = vld [vmem:[#allocation3 + $0x20] sm:$0xff] }
  0x27   : > { %375 = vrot.lane.b32.xlu0 %v371_v10, %s1179_s14 }
  0x28   : > { %377 = vrot.lane.b32.xlu1 %v372_v9, %s1179_s14 }
  0x29   : > { %358 = vrot.lane.b32.xlu2 %v371_v10, %s1180_s15 }
  0x2f   : > { %360 = vrot.lane.b32.xlu0 %v372_v9, %s1180_s15 }
  0x30   : > { %341 = vrot.lane.b32.xlu1 %v371_v10, %s1181_s16 }
  0x31   : > { %343 = vrot.lane.b32.xlu2 %v372_v9, %s1181_s16 }
  0x37   : > { %432 = vrot.lane.b32.xlu0 %v428_v11, %s1182_s17 }
  0x38   : > { %434 = vrot.lane.b32.xlu1 %v429_v12, %s1182_s17 }
  0x39   : > { %324 = vrot.lane.b32.xlu2 %v371_v10, %s1183_s18 }
  0x3f   : > { %326 = vrot.lane.b32.xlu0 %v372_v9, %s1183_s18 }
  0x40   : > { %462 = vperm.xlu1 %1151, %v458_v41  }
  0x41   : > { %467 = vperm.xlu2 %1152, %v459_v46  }
  0x47   : > { %572 = vperm.xlu0 %1153, %v458_v41  }
  0x48   : > { %1154 = vset.pattern.permute.xlu1 %v1184_v44 }
  0x49   : > { %576 = vperm.xlu1 %1154, %v459_v46   ;;  %1155 = vset.pattern.permute.xlu2 %v1185_v53 }
  0x4a   : > { %582 = vperm.xlu2 %1155, %v458_v41  }
  0x4f   : > { %1157 = vset.pattern.permute.xlu0 %v1175_v0 }
  0x51   : > { %1156 = vset.pattern.permute.xlu1 %v1185_v53 }
  0x52   : > { %586 = vperm.xlu1 %1156, %v459_v46   ;;  %1159 = vset.pattern.permute.xlu2 %v1184_v44 }
  0x5a   : > { %1158 = vset.pattern.permute.xlu1 %v1175_v0 }
  0x73   : > { %v397_v13 = vpop.permute.xlu2 %396 }
  0x74   : > { %402 = vst.msk [vmem:[#allocation3 + $0x28] sm:$0xf] %vm315_vm3, %v397_v13 }
  0x7b   : > { %v399_v14 = vpop.permute.xlu2 %398 }
  0x7c   : > { %403 = vst.msk [vmem:[#allocation3 + $0x2c] sm:$0xf] %vm315_vm3, %v399_v14 }
  0x83   : > { %v359_v17 = vpop.permute.xlu2 %358  ;;  %v1115_v40 = vld [vmem:[#allocation3 + $0x28] sm:$0xff] }
  0x84   : > { %v362_v18 = vrot.slane %v359_v17, 4 }
  0x86   : > { %v365_v19 = vsel %vm364_vm4, %v359_v17, %v362_v18 }
  0x87   : > { %369 = vst.msk [vmem:[#allocation3 + $0x10] sm:$0xf] %vm315_vm3, %v365_v19 }
  0x89   : > { %v421_v20 = vpop.permute.xlu0 %420 }
  0x8a   : > { %v409_v21 = vpop.permute.xlu1 %408  ;;  %426 = vst.msk [vmem:[#allocation3 + $0x38] sm:$0xf] %vm315_vm3, %v421_v20 }
  0x8b   : > { %414 = vst.msk [vmem:[#allocation3 + $0x30] sm:$0xf] %vm315_vm3, %v409_v21  ;;  %v344_v22 = vpop.permute.xlu2 %343 }
  0x8c   : > { %v346_v23 = vrot.slane %v344_v22, 4 }
  0x8e   : > { %v349_v24 = vsel %vm347_vm5, %v344_v22, %v346_v23 }
  0x8f   : > { %353 = vst.msk [vmem:[#allocation3 + $0xc] sm:$0xf] %vm315_vm3, %v349_v24 }
  0x91   : > { %v423_v25 = vpop.permute.xlu0 %422 }
  0x92   : > { %v411_v26 = vpop.permute.xlu1 %410  ;;  %427 = vst.msk [vmem:[#allocation3 + $0x3c] sm:$0xf] %vm315_vm3, %v423_v25 }
  0x93   : > { %415 = vst.msk [vmem:[#allocation3 + $0x34] sm:$0xf] %vm315_vm3, %v411_v26  ;;  %v325_v27 = vpop.permute.xlu2 %324 }
  0x94   : > { %v328_v28 = vrot.slane %v325_v27, 4 }
  0x96   : > { %v331_v29 = vsel %vm330_vm6, %v325_v27, %v328_v28 }
  0x97   : > { %335 = vst.msk [vmem:[#allocation3] sm:$0xf] %vm315_vm3, %v331_v29 }
  0x99   : > { %v376_v31 = vpop.permute.xlu0 %375  ;;  %v1117_v32 = vld [vmem:[#allocation3 + $0x38] sm:$0xff] }
  0x9a   : > { %v378_v30 = vpop.permute.xlu1 %377  ;;  %v379_v34 = vrot.slane %v376_v31, 4  ;;  %537 = vmatpush.bf16.msra.mxu0 %v1117_v32  ;;  %v1116_v37 = vld [vmem:[#allocation3 + $0x30] sm:$0xff] }
  0x9b   : > { %v380_v33 = vrot.slane %v378_v30, 4  ;;  %v468_v4 = vpop.permute.xlu2 %467 }
  0x9c   : > { %v382_v36 = vsel %vm381_vm7, %v376_v31, %v379_v34 }
  0x9d   : > { %v383_v35 = vsel %vm381_vm7, %v378_v30, %v380_v33  ;;  %386 = vst.msk [vmem:[#allocation3 + $0x18] sm:$0xf] %vm315_vm3, %v382_v36 }
  0x9e   : > { %387 = vst.msk [vmem:[#allocation3 + $0x1c] sm:$0xf] %vm315_vm3, %v383_v35  ;;  %538 = vmatpush.bf16.msra.mxu0 %v1116_v37 }
  0xa1   : > { %v361_v38 = vpop.permute.xlu0 %360 }
  0xa2   : > { %v342_v39 = vpop.permute.xlu1 %341  ;;  %v363_v42 = vrot.slane %v361_v38, 4  ;;  %539 = vmatpush.bf16.msra.mxu0 %v1115_v40 }
  0xa3   : > { %v345_v43 = vrot.slane %v342_v39, 4 }
  0xa4   : > { %v366_v47 = vsel %vm364_vm4, %v361_v38, %v363_v42  ;;  %v583_v13 = vpop.permute.xlu2 %582 }
  0xa5   : > { %v348_v48 = vsel %vm347_vm5, %v342_v39, %v345_v43  ;;  %370 = vst.msk [vmem:[#allocation3 + $0x14] sm:$0xf] %vm315_vm3, %v366_v47  ;;  %v1113_v51 = vld [vmem:[#allocation3 + $0x18] sm:$0xff] }
  0xa6   : > { %352 = vst.msk [vmem:[#allocation3 + $0x8] sm:$0xf] %vm315_vm3, %v348_v48  ;;  %540 = vmatpush.bf16.msra.mxu0 %v1114_v45 }
  0xa9   : > { %v433_v49 = vpop.permute.xlu0 %432 }
  0xaa   : > { %v435_v50 = vpop.permute.xlu1 %434  ;;  %438 = vst.msk [vmem:[#allocation3 + $0x40] sm:$0xf] %vm315_vm3, %v433_v49  ;;  %541 = vmatpush.bf16.msra.mxu0 %v1113_v51 }
  0xab   : > { %439 = vst.msk [vmem:[#allocation3 + $0x44] sm:$0xf] %vm315_vm3, %v435_v50 }
  0xac   : > { %v1112_v52 = vld [vmem:[#allocation3 + $0x10] sm:$0xff] }
  0xad   : > { %v1111_v54 = vld [vmem:[#allocation3 + $0x8] sm:$0xff] }
  0xae   : > { %542 = vmatpush.bf16.msra.mxu0 %v1112_v52 }
  0xb1   : > { %v327_v57 = vpop.permute.xlu0 %326 }
  0xb2   : > { %v329_v58 = vrot.slane %v327_v57, 4  ;;  %v1118_v59 = vld [vmem:[#allocation3 + $0x40] sm:$0xff]  ;;  %543 = vmatpush.bf16.msra.mxu0 %v1111_v54  ;;  %v463_v3 = vpop.permute.xlu1 %462 }
  0xb3   : > { %558 = vmatpush.bf16.msra.mxu3 %v1118_v59 }
  0xb4   : > { %v332_v61 = vsel %vm330_vm6, %v327_v57, %v329_v58 }
  0xb5   : > { %336 = vst.msk [vmem:[#allocation3 + $0x4] sm:$0xf] %vm315_vm3, %v332_v61 }
  0xb6   : > { %1048 = vmatmul.msk.bf16.vlgmr.msra.gmra.mxu3 %vm533_vm8, %v1011_v60 }
  0xb9   : > { %v573_v9 = vpop.permute.xlu0 %572 }
  0xbb   : > { %v577_v11 = vpop.permute.xlu1 %576 }
  0xbc   : > { %v1110_v1 = vld [vmem:[#allocation3] sm:$0xff] }
  0xbd   : > { %544 = vmatpush.bf16.msra.mxu0 %v1110_v1 }
  0xc0   : > { %545 = vmatmul.bf16.vlgmr.msra.gmra.mxu0 %v1007_v2 }
  0xc4   : > { %v587_v24 = vpop.permute.xlu1 %586 }
 0x139   : > { %v560_v5 = vpop.f32.mrf.mxu3 }
 0x13d   : > { %v546_v6 = vpop.f32.mrf.mxu0 }
 0x13e   : > { %v547_v7 = vadd.f32 %v546_v6, %v463_v3 }
 0x140   : > { %v561_v8 = vadd.f32 %v560_v5, %v547_v7  ;;  %v737_v5 = vld [vmem:[%s1427_s5 + $0x8] sm:$0xff] }
 0x141   : > { %v562_v18 = vpop.f32.mrf.mxu3 }
 0x142   : > { %vm565_vm9 = vcmp.ge.f32.partialorder %v561_v8, 0.0  ;;  %v567_v10 = vmul.f32 0.01, %v561_v8 }
 0x144   : > { %v569_v12 = vsel %vm565_vm9, %v561_v8, %v567_v10 }
 0x145   : > { %v579_v14 = vmul.f32 %v573_v9, %v569_v12  ;;  %v548_v15 = vpop.f32.mrf.mxu0 }
 0x146   : > { %v549_v17 = vadd.f32 %v548_v15, %v468_v4  ;;  %v736_v4 = vld [vmem:[%s1427_s5] sm:$0xff] }
 0x147   : > { %v589_v19 = vadd.f32 %v583_v13, %v579_v14 }
 0x148   : > { %v563_v20 = vadd.f32 %v562_v18, %v549_v17  ;;  %v1053_v18 = vld [vmem:[%s1425_s3 + $0x8] sm:$0xf0] }
 0x149   : > { %v594_v21 = vmul.f32 %v1166_v16, %v589_v19 }
 0x14a   : > { %v568_v22 = vmul.f32 0.01, %v563_v20  ;;  %vm566_vm10 = vcmp.ge.f32.partialorder %v563_v20, 0.0 }
 0x14b   : > { %v596_v23 = vpack.c.bf16 %v594_v21, %v594_v21 }
 0x14c   : > { %v570_v25 = vsel %vm566_vm10, %v563_v20, %v568_v22 }
 0x14d   : > { %598 = vst.msk [vmem:[#allocation2 + $0x4] sm:$0xf] %vm315_vm3, %v596_v23  ;;  %v580_v26 = vmul.f32 %v577_v11, %v570_v25  ;;  %v1120_v25 = vld [vmem:[%s1425_s3 + $0x4] sm:$0xf0] }
 0x14f   : > { %v590_v27 = vadd.f32 %v587_v24, %v580_v26  ;;  %v1051_v24 = vld [vmem:[%s1425_s3] sm:$0xf] }
 0x151   : > { %v595_v28 = vmul.f32 %v1166_v16, %v590_v27  ;;  %v1052_v27 = vor.u32 %v1120_v25, %v1051_v24 }
 0x153   : > { %v597_v29 = vpack.c.bf16 %v595_v28, %v595_v28  ;;  %v873_v28 = vld [vmem:[%s1429_s7] sm:$0xff] }
 0x154   : > { %v694_v30 = vld [vmem:[#allocation2 + $0x4] sm:$0xf] }
 0x155   : > { %v682_v31 = vld [vmem:[#allocation2 + $0x4] sm:$0xf]  ;;  %599 = vst.msk [vmem:[#allocation2 + $0xc] sm:$0xf] %vm315_vm3, %v597_v29  ;;  %698 = vrot.lane.b32.xlu2 %v694_v30, %s1176_s11 }
 0x156   : > { %686 = vrot.lane.b32.xlu1 %v682_v31, %s1177_s12  ;;  %v666_v32 = vld [vmem:[#allocation2 + $0x4] sm:$0xf] }
 0x157   : > { %668 = vst.msk [vmem:[#allocation3 + $0x20] sm:$0xf] %vm315_vm3, %v666_v32  ;;  %v670_v37 = vld [vmem:[#allocation2 + $0x4] sm:$0xf] }
 0x158   : > { %v650_v38 = vld [vmem:[#allocation2] sm:$0xff] }
 0x159   : > { %v706_v40 = vld [vmem:[#allocation2 + $0x4] sm:$0xf] }
 0x15c   : > { %v695_v33 = vld [vmem:[#allocation2 + $0xc] sm:$0xf] }
 0x15d   : > { %v683_v34 = vld [vmem:[#allocation2 + $0xc] sm:$0xf]  ;;  %700 = vrot.lane.b32.xlu0 %v695_v33, %s1176_s11 }
 0x15e   : > { %v671_v35 = vld [vmem:[#allocation2 + $0xc] sm:$0xf]  ;;  %688 = vrot.lane.b32.xlu2 %v683_v34, %s1177_s12 }
 0x15f   : > { %v667_v36 = vld [vmem:[#allocation2 + $0xc] sm:$0xf]  ;;  %676 = vrot.lane.b32.xlu1 %v671_v35, %s1178_s13 }
 0x160   : > { %669 = vst.msk [vmem:[#allocation3 + $0x24] sm:$0xf] %vm315_vm3, %v667_v36  ;;  %v651_v39 = vld [vmem:[#allocation2 + $0x8] sm:$0xff] }
 0x161   : > { %v707_v41 = vld [vmem:[#allocation2 + $0xc] sm:$0xf] }
 0x165   : > { %674 = vrot.lane.b32.xlu0 %v670_v37, %s1178_s13 }
 0x166   : > { %654 = vrot.lane.b32.xlu2 %v650_v38, %s1179_s14 }
 0x167   : > { %638 = vrot.lane.b32.xlu1 %v650_v38, %s1180_s15  ;;  %v1125_v11 = vld [vmem:[#allocation3 + $0x20] sm:$0xff] }
 0x16d   : > { %656 = vrot.lane.b32.xlu0 %v651_v39, %s1179_s14 }
 0x16e   : > { %640 = vrot.lane.b32.xlu2 %v651_v39, %s1180_s15  ;;  %s1107_s15 = sshll.u32 %s1432_s28, 4 }
 0x16f   : > { %624 = vrot.lane.b32.xlu1 %v651_v39, %s1181_s16 }
 0x175   : > { %622 = vrot.lane.b32.xlu0 %v650_v38, %s1181_s16 }
 0x176   : > { %606 = vrot.lane.b32.xlu2 %v650_v38, %s1183_s18  ;;  %v875_v38 = vld [vmem:[%s1429_s7 + $0x10] sm:$0xff] }
 0x177   : > { %710 = vrot.lane.b32.xlu1 %v706_v40, %s1182_s17 }
 0x17d   : > { %608 = vrot.lane.b32.xlu0 %v651_v39, %s1183_s18  ;;  %v874_v39 = vld [vmem:[%s1429_s7 + $0x8] sm:$0xff]  ;;  %s305_s18 = scalar_lea.vmem %s1430_s8, %s1107_s15 }
 0x17e   : > { %712 = vrot.lane.b32.xlu2 %v707_v41, %s1182_s17 }
 0x17f   : > { %745 = vperm.xlu1 %1158, %v737_v5  }
 0x185   : > { %740 = vperm.xlu0 %1157, %v736_v4  }
 0x186   : > { %849 = vperm.xlu2 %1159, %v736_v4  }
 0x187   : > { %1160 = vset.pattern.permute.xlu1 %v1184_v44  ;;  %v1119_v44 = vld [vmem:[%s1425_s3 + $0x4] sm:$0xf] }
 0x188   : > { %853 = vperm.xlu1 %1160, %v737_v5   ;;  %v1056_v22 = vor.u32 %v1119_v44, %v1053_v18 }
 0x18d   : > { %1162 = vset.pattern.permute.xlu0 %v1185_v53 }
 0x18e   : > { %863 = vperm.xlu0 %1162, %v737_v5   ;;  %1161 = vset.pattern.permute.xlu2 %v1185_v53 }
 0x18f   : > { %859 = vperm.xlu2 %1161, %v736_v4  }
 0x190   : > { %1163 = vset.pattern.permute.xlu1 %v1175_v0 }
 0x191   : > { %879 = vperm.xlu1 %1163, %v873_v28  }
 0x196   : > { %1165 = vset.pattern.permute.xlu0 %v1175_v0 }
 0x197   : > { %1164 = vset.pattern.permute.xlu2 %v1175_v0 }
 0x198   : > { %884 = vperm.xlu2 %1164, %v874_v39  }
 0x199   : > { %889 = vperm.xlu1 %1163, %v875_v38  }
 0x1af   : > { %v699_v42 = vpop.permute.xlu2 %698 }
 0x1b0   : > { %704 = vst.msk [vmem:[#allocation3 + $0x38] sm:$0xf] %vm315_vm3, %v699_v42 }
 0x1b8   : > { %v689_v43 = vpop.permute.xlu2 %688 }
 0x1b9   : > { %693 = vst.msk [vmem:[#allocation3 + $0x34] sm:$0xf] %vm315_vm3, %v689_v43 }
 0x1c0   : > { %v655_v45 = vpop.permute.xlu2 %654 }
 0x1c1   : > { %v658_v46 = vrot.slane %v655_v45, 4 }
 0x1c3   : > { %v660_v47 = vsel %vm381_vm7, %v655_v45, %v658_v46 }
 0x1c4   : > { %664 = vst.msk [vmem:[#allocation3 + $0x18] sm:$0xf] %vm315_vm3, %v660_v47 }
 0x1c8   : > { %v687_v48 = vpop.permute.xlu1 %686  ;;  %v641_v49 = vpop.permute.xlu2 %640 }
 0x1c9   : > { %692 = vst.msk [vmem:[#allocation3 + $0x30] sm:$0xf] %vm315_vm3, %v687_v48  ;;  %v643_v50 = vrot.slane %v641_v49, 4 }
 0x1cb   : > { %v645_v51 = vsel %vm364_vm4, %v641_v49, %v643_v50  ;;  %v876_v50 = vld [vmem:[%s1429_s7 + $0x18] sm:$0xff] }
 0x1cc   : > { %649 = vst.msk [vmem:[#allocation3 + $0x14] sm:$0xf] %vm315_vm3, %v645_v51  ;;  %894 = vperm.xlu2 %1164, %v876_v50  }
 0x1cf   : > { %v701_v52 = vpop.permute.xlu0 %700 }
 0x1d0   : > { %v607_v54 = vpop.permute.xlu2 %606  ;;  %705 = vst.msk [vmem:[#allocation3 + $0x3c] sm:$0xf] %vm315_vm3, %v701_v52  ;;  %v1127_v1 = vld [vmem:[#allocation3 + $0x30] sm:$0xff] }
 0x1d1   : > { %v677_v55 = vpop.permute.xlu1 %676  ;;  %v610_v56 = vrot.slane %v607_v54, 4 }
 0x1d2   : > { %681 = vst.msk [vmem:[#allocation3 + $0x2c] sm:$0xf] %vm315_vm3, %v677_v55 }
 0x1d3   : > { %v612_v57 = vsel %vm330_vm6, %v607_v54, %v610_v56  ;;  %v1130_v56 = vld [vmem:[%s1428_s6] sm:$0xff] }
 0x1d4   : > { %616 = vst.msk [vmem:[#allocation3] sm:$0xf] %vm315_vm3, %v612_v57  ;;  %v1131_v57 = vld [vmem:[%s1428_s6 + $0x8] sm:$0xff] }
 0x1d7   : > { %v675_v58 = vpop.permute.xlu0 %674  ;;  %v1128_v60 = vld [vmem:[#allocation3 + $0x38] sm:$0xff] }
 0x1d8   : > { %v713_v59 = vpop.permute.xlu2 %712  ;;  %680 = vst.msk [vmem:[#allocation3 + $0x28] sm:$0xf] %vm315_vm3, %v675_v58  ;;  %814 = vmatpush.bf16.msra.mxu2 %v1128_v60 }
 0x1d9   : > { %v639_v61 = vpop.permute.xlu1 %638  ;;  %717 = vst.msk [vmem:[#allocation3 + $0x44] sm:$0xf] %vm315_vm3, %v713_v59 }
 0x1da   : > { %v642_v62 = vrot.slane %v639_v61, 4 }
 0x1dc   : > { %v644_v63 = vsel %vm364_vm4, %v639_v61, %v642_v62  ;;  %815 = vmatpush.bf16.msra.mxu2 %v1127_v1 }
 0x1dd   : > { %648 = vst.msk [vmem:[#allocation3 + $0x10] sm:$0xf] %vm315_vm3, %v644_v63 }
 0x1df   : > { %v657_v2 = vpop.permute.xlu0 %656  ;;  %v1126_v3 = vld [vmem:[#allocation3 + $0x28] sm:$0xff] }
 0x1e0   : > { %v659_v6 = vrot.slane %v657_v2, 4  ;;  %816 = vmatpush.bf16.msra.mxu2 %v1126_v3  ;;  %v850_v34 = vpop.permute.xlu2 %849 }
 0x1e1   : > { %v625_v7 = vpop.permute.xlu1 %624 }
 0x1e2   : > { %v627_v8 = vrot.slane %v625_v7, 4  ;;  %v661_v9 = vsel %vm381_vm7, %v657_v2, %v659_v6 }
 0x1e3   : > { %665 = vst.msk [vmem:[#allocation3 + $0x1c] sm:$0xf] %vm315_vm3, %v661_v9 }
 0x1e4   : > { %v629_v10 = vsel %vm347_vm5, %v625_v7, %v627_v8  ;;  %817 = vmatpush.bf16.msra.mxu2 %v1125_v11  ;;  %v1123_v17 = vld [vmem:[#allocation3 + $0x10] sm:$0xff] }
 0x1e5   : > { %633 = vst.msk [vmem:[#allocation3 + $0xc] sm:$0xf] %vm315_vm3, %v629_v10 }
 0x1e7   : > { %v623_v12 = vpop.permute.xlu0 %622 }
 0x1e8   : > { %v626_v14 = vrot.slane %v623_v12, 4 }
 0x1e9   : > { %v711_v13 = vpop.permute.xlu1 %710  ;;  %v860_v47 = vpop.permute.xlu2 %859 }
 0x1ea   : > { %716 = vst.msk [vmem:[#allocation3 + $0x40] sm:$0xf] %vm315_vm3, %v711_v13  ;;  %v628_v15 = vsel %vm347_vm5, %v623_v12, %v626_v14  ;;  %v1124_v16 = vld [vmem:[#allocation3 + $0x18] sm:$0xff] }
 0x1eb   : > { %632 = vst.msk [vmem:[#allocation3 + $0x8] sm:$0xf] %vm315_vm3, %v628_v15  ;;  %818 = vmatpush.bf16.msra.mxu2 %v1124_v16 }
 0x1ef   : > { %v609_v19 = vpop.permute.xlu0 %608  ;;  %819 = vmatpush.bf16.msra.mxu2 %v1123_v17 }
 0x1f0   : > { %v611_v20 = vrot.slane %v609_v19, 4 }
 0x1f1   : > { %v1129_v21 = vld [vmem:[#allocation3 + $0x40] sm:$0xff]  ;;  %v746_v33 = vpop.permute.xlu1 %745 }
 0x1f2   : > { %v613_v53 = vsel %vm330_vm6, %v609_v19, %v611_v20  ;;  %835 = vmatpush.bf16.msrb.mxu3 %v1129_v21  ;;  %v1122_v23 = vld [vmem:[#allocation3 + $0x8] sm:$0xff]  ;;  %v885_v62 = vpop.permute.xlu2 %884 }
 0x1f3   : > { %617 = vst.msk [vmem:[#allocation3 + $0x4] sm:$0xf] %vm315_vm3, %v613_v53  ;;  %820 = vmatpush.bf16.msra.mxu2 %v1122_v23 }
 0x1f5   : > { %1093 = vmatmul.msk.bf16.vlgmr.msrb.gmra.mxu3 %vm533_vm8, %v1056_v22 }
 0x1f7   : > { %v741_v0 = vpop.permute.xlu0 %740 }
 0x1fa   : > { %v1121_v26 = vld [vmem:[#allocation3] sm:$0xff]  ;;  %v854_v43 = vpop.permute.xlu1 %853 }
 0x1fb   : > { %821 = vmatpush.bf16.msra.mxu2 %v1121_v26 }
 0x1fe   : > { %822 = vmatmul.bf16.vlgmr.msra.gmra.mxu2 %v1052_v27 }
 0x200   : > { %v864_v49 = vpop.permute.xlu0 %863 }
 0x203   : > { %v880_v58 = vpop.permute.xlu1 %879 }
 0x20b   : > { %v890_v3 = vpop.permute.xlu1 %889 }
 0x226   : > { %v895_v7 = vpop.permute.xlu2 %894 }
 0x278   : > { %v837_v29 = vpop.f32.mrf.mxu3 }
 0x280   : > { %v839_v40 = vpop.f32.mrf.mxu3 }
 0x281   : > { %v823_v30 = vpop.f32.mrf.mxu2 }
 0x282   : > { %v824_v31 = vadd.f32 %v823_v30, %v741_v0 }
 0x284   : > { %v838_v32 = vadd.f32 %v837_v29, %v824_v31 }
 0x286   : > { %v844_v35 = vmul.f32 0.01, %v838_v32  ;;  %vm842_vm11 = vcmp.ge.f32.partialorder %v838_v32, 0.0 }
 0x288   : > { %v846_v41 = vsel %vm842_vm11, %v838_v32, %v844_v35 }
 0x289   : > { %v825_v36 = vpop.f32.mrf.mxu2  ;;  %v856_v46 = vmul.f32 %v850_v34, %v846_v41 }
 0x28a   : > { %v826_v37 = vadd.f32 %v825_v36, %v746_v33 }
 0x28b   : > { %v866_v52 = vadd.f32 %v860_v47, %v856_v46 }
 0x28c   : > { %v840_v42 = vadd.f32 %v839_v40, %v826_v37 }
 0x28e   : > { %vm843_vm12 = vcmp.ge.f32.partialorder %v840_v42, 0.0  ;;  %v845_v45 = vmul.f32 0.01, %v840_v42 }
 0x290   : > { %v847_v48 = vsel %vm843_vm12, %v840_v42, %v845_v45 }
 0x291   : > { %v857_v51 = vmul.f32 %v854_v43, %v847_v48 }
 0x293   : > { %v867_v54 = vadd.f32 %v864_v49, %v857_v51 }
 0x295   : > { %v872_v55 = vpack.c.bf16 %v867_v54, %v866_v52 }
 0x297   : > { %920 = vmatpush.bf16.msra.mxu1 %v872_v55 }
 0x29a   : > { %1102 = vmatmul.msk.bf16.vlgmr.msra.gmra.mxu1 %vm533_vm8, %v1130_v56 }
 0x2aa   : > { %1103 = vmatmul.msk.bf16.gmra.mxu1 %vm533_vm8, %v1131_v57 }
 0x317   : > { %v922_v59 = vpop.f32.mrf.mxu1 }
 0x318   : > { %v923_v60 = vadd.f32 %v922_v59, %v880_v58 }
 0x31a   : > { %v932_v61 = vpack.c.bf16 %v923_v60, %v923_v60 }
 0x31c   : > { %936 = vst.msk [vmem:[%s305_s18] sm:$0xf] %vm315_vm3, %v932_v61 }
 0x31f   : > { %v924_v63 = vpop.f32.mrf.mxu1 }
 0x320   : > { %v925_v1 = vadd.f32 %v924_v63, %v885_v62 }
 0x322   : > { %v933_v2 = vpack.c.bf16 %v925_v1, %v925_v1 }
 0x324   : > { %937 = vst.msk [vmem:[%s305_s18 + $0x4] sm:$0xf] %vm315_vm3, %v933_v2 }
 0x327   : > { %v927_v4 = vpop.f32.mrf.mxu1 }
 0x328   : > { %v928_v5 = vadd.f32 %v927_v4, %v890_v3 }
 0x32a   : > { %v934_v6 = vpack.c.bf16 %v928_v5, %v928_v5 }
 0x32c   : > { %938 = vst.msk [vmem:[%s305_s18 + $0x8] sm:$0xf] %vm315_vm3, %v934_v6 }
 0x32f   : > { %v929_v8 = vpop.f32.mrf.mxu1 }
 0x330   : > { %v930_v9 = vadd.f32 %v929_v8, %v895_v7 }
 0x332   : > { %v935_v10 = vpack.c.bf16 %v930_v9, %v930_v9 }
 0x334   : > { %939 = vst.msk [vmem:[%s305_s18 + $0xc] sm:$0xf] %vm315_vm3, %v935_v10 }
 0x335 PF: > { %s18_s27 = sadd.s32 1, %s1173_s27  }
 0x336   : > { %p15_p4 = scmp.ge.s32.totalorder %s18_s27, 4  }
 0x338   :  { %17 = sbr.rel (!%p15_p4) target bundleno = 1 (0x1), region = 82 }

// kernel: wnet_forward.13
= control target key start
LH: loop header
LB: loop body
LE: loop exit
PB: predicated region body
PF: predicated region fallthrough
CT: control target
= control target key end

     0   :  { %s1527_s30 = smov 0   ;;  %s1760_s0 = inlined_call_operand.vmem [shape: f32[1,80], index: 0, kind: input, shape index: {}]   ;;  %s1761_s1 = inlined_call_operand.vmem [shape: bf16[2,16,80], index: 1, kind: input, shape index: {}]   ;;  %s1762_s2 = inlined_call_operand.vmem [shape: bf16[2,16,80], index: 2, kind: input, shape index: {}]   ;;  %s1763_s3 = inlined_call_operand.vmem [shape: bf16[16,288], index: 3, kind: input, shape index: {}]   ;;  %s1764_s4 = inlined_call_operand.vmem [shape: bf16[16,144], index: 4, kind: input, shape index: {}]   ;;  %s1765_s5 = inlined_call_operand.vmem [shape: f32[16,3], index: 5, kind: input, shape index: {}]   ;;  %s1766_s6 = inlined_call_operand.vmem [shape: f32[16,3], index: 6, kind: input, shape index: {}]   ;;  %s1767_s7 = inlined_call_operand.vmem [shape: bf16[16,16], index: 7, kind: input, shape index: {}]   ;;  %s1768_s8 = inlined_call_operand.vmem [shape: f32[16,1], index: 8, kind: input, shape index: {}]   ;;  %s1769_s9 = inlined_call_operand.vmem [shape: bf16[2,16,80], index: 9, kind: output, shape index: {}]  }
   0x1 LB: > { %s1240_s10 = sadd.s32 4294967295, %s1464_s30   ;;  %p1244_p0 = scmp.ge.s32.totalorder %s1464_s30, 1  ;;  %s1464_s30 = sphi %s1527_s30, %s19_s30  }
   0x2   : > { %p297_p1 = scmp.lt.s32.totalorder %s1464_s30, 3 }
   0x4   : > { %p298_p2 = pnand %p1244_p0, %p297_p1 }
   0x5   : > { %p338_p3 = scmp.lt.s32.totalorder (!%p298_p2), %s1240_s10, 1  ;;  %s1467_s18 = smov (!%p298_p2), 1  }
   0x6   : > { %301 = sbr.rel (%p298_p2) target bundleno = 855 (0x357), region = 56  ;;  %s1468_s19 = smov (!%p298_p2), 118  }
   0x7   : > { %s1469_s20 = smov (!%p298_p2), 9   ;;  %s1470_s21 = smov (!%p298_p2), 119  }
   0x8   : > { %s1471_s22 = smov (!%p298_p2), 10   ;;  %s1472_s23 = smov (!%p298_p2), 127  }
   0x9   : > { %s1473_s24 = smov (!%p298_p2), 11   ;;  %s1474_s25 = smov (!%p298_p2), 117  }
   0xb   : > { %vm355_vm0 = vcmask 1043456   ;;  %vm356_vm1 = vcmask 744452   ;;  %v1466_v0 = vmov 0   ;;  %s1771_s10 = smov (!%p338_p3, %s1240_s10), 1  ;;  %vm364_vm3 = vcmask 650240  }
   0xc   : > { %vm357_vm2 = vmor %vm356_vm1, %vm355_vm0  ;;  %1444 = vset.pattern.permute.xlu0 %v1466_v0  ;;  %1443 = vset.pattern.permute.xlu2 %v1466_v0  ;;  %s1539_s11 = sshll.u32 %s1771_s10, 3  ;;  %vm494_vm4 = vcmask 7168   ;;  %vm461_vm5 = vcmask 72704   ;;  %vm428_vm6 = vcmask 80896   ;;  %vm395_vm7 = vcmask 89088  }
   0xd   : > { %360 = vst.msk [vmem:[#allocation2 + $0x10] sm:$0xff] %vm357_vm2, %v1466_v0  ;;  %s347_s14 = scalar_lea.vmem %s1762_s2, %s1539_s11  ;;  %s342_s17 = scalar_lea.vmem %s1761_s1, %s1539_s11  ;;  %vm782_vm8 = vcmask 261120   ;;  %vm1074_vm11 = vcmask 130048  }
   0xe   : > { %358 = vst.msk [vmem:[#allocation2] sm:$0xff] %vm357_vm2, %v1466_v0  ;;  %v367_v1 = vld [vmem:[%s347_s14] sm:$0xf]  ;;  %v368_v3 = vld [vmem:[%s347_s14 + $0x4] sm:$0xf] }
   0xf   : > { %359 = vst.msk [vmem:[#allocation2 + $0x8] sm:$0xff] %vm357_vm2, %v1466_v0  ;;  %v362_v2 = vld [vmem:[%s342_s17] sm:$0xf]  ;;  %v363_v4 = vld [vmem:[%s342_s17 + $0x4] sm:$0xf] }
  0x10   : > { %361 = vst.msk [vmem:[#allocation2 + $0x18] sm:$0xff] %vm357_vm2, %v1466_v0 }
  0x11   : > { %369 = vst.msk [vmem:[#allocation2 + $0x14] sm:$0xf] %vm364_vm3, %v367_v1 }
  0x12   : > { %365 = vst.msk [vmem:[#allocation2 + $0x4] sm:$0xf] %vm364_vm3, %v362_v2 }
  0x13   : > { %370 = vst.msk [vmem:[#allocation2 + $0x1c] sm:$0xf] %vm364_vm3, %v368_v3 }
  0x14   : > { %366 = vst.msk [vmem:[#allocation2 + $0xc] sm:$0xf] %vm364_vm3, %v363_v4 }
  0x18   : > { %v476_v5 = vld [vmem:[#allocation2 + $0x10] sm:$0xff] }
  0x19   : > { %v565_v6 = vld [vmem:[#allocation2 + $0x14] sm:$0xf]  ;;  %486 = vrot.lane.b32.xlu0 %v476_v5, %s1467_s18  ;;  %v474_v7 = vld [vmem:[#allocation2] sm:$0xff] }
  0x1a   : > { %575 = vrot.lane.b32.xlu2 %v565_v6, %s1468_s19  ;;  %482 = vrot.lane.b32.xlu1 %v474_v7, %s1467_s18  ;;  %v477_v8 = vld [vmem:[#allocation2 + $0x18] sm:$0xff]  ;;  %v563_v11 = vld [vmem:[#allocation2 + $0x4] sm:$0xf]  ;;  %v541_v13 = vld [vmem:[#allocation2 + $0x14] sm:$0xf] }
  0x1b   : > { %v566_v9 = vld [vmem:[#allocation2 + $0x1c] sm:$0xf]  ;;  %v475_v10 = vld [vmem:[#allocation2 + $0x8] sm:$0xff]  ;;  %v539_v16 = vld [vmem:[#allocation2 + $0x4] sm:$0xf] }
  0x1c   : > { %v564_v12 = vld [vmem:[#allocation2 + $0xc] sm:$0xf]  ;;  %v542_v14 = vld [vmem:[#allocation2 + $0x1c] sm:$0xf]  ;;  %v517_v17 = vld [vmem:[#allocation2 + $0x14] sm:$0xf] }
  0x1d   : > { %v540_v15 = vld [vmem:[#allocation2 + $0xc] sm:$0xf]  ;;  %v518_v18 = vld [vmem:[#allocation2 + $0x1c] sm:$0xf]  ;;  %v515_v19 = vld [vmem:[#allocation2 + $0x4] sm:$0xf] }
  0x1e   : > { %v589_v20 = vld [vmem:[#allocation2 + $0x14] sm:$0xf]  ;;  %v516_v21 = vld [vmem:[#allocation2 + $0xc] sm:$0xf]  ;;  %v590_v22 = vld [vmem:[#allocation2 + $0x1c] sm:$0xf] }
  0x1f   : > { %v587_v23 = vld [vmem:[#allocation2 + $0x4] sm:$0xf]  ;;  %v588_v24 = vld [vmem:[#allocation2 + $0xc] sm:$0xf] }
  0x21   : > { %488 = vrot.lane.b32.xlu0 %v477_v8, %s1467_s18 }
  0x22   : > { %577 = vrot.lane.b32.xlu2 %v566_v9, %s1468_s19  ;;  %484 = vrot.lane.b32.xlu1 %v475_v10, %s1467_s18 }
  0x29   : > { %453 = vrot.lane.b32.xlu0 %v476_v5, %s1469_s20 }
  0x2a   : > { %571 = vrot.lane.b32.xlu2 %v563_v11, %s1468_s19  ;;  %455 = vrot.lane.b32.xlu1 %v477_v8, %s1469_s20  ;;  %v509_v11 = vld [vmem:[#allocation2 + $0x14] sm:$0xf] }
  0x2b   : > { %513 = vst.msk [vmem:[#allocation3 + $0x48] sm:$0xf] %vm364_vm3, %v509_v11 }
  0x31   : > { %573 = vrot.lane.b32.xlu0 %v564_v12, %s1468_s19  ;;  %v510_v12 = vld [vmem:[#allocation2 + $0x1c] sm:$0xf] }
  0x32   : > { %451 = vrot.lane.b32.xlu2 %v475_v10, %s1469_s20  ;;  %449 = vrot.lane.b32.xlu1 %v474_v7, %s1469_s20  ;;  %514 = vst.msk [vmem:[#allocation3 + $0x4c] sm:$0xf] %vm364_vm3, %v510_v12 }
  0x39   : > { %551 = vrot.lane.b32.xlu0 %v541_v13, %s1470_s21 }
  0x3a   : > { %420 = vrot.lane.b32.xlu2 %v476_v5, %s1471_s22  ;;  %553 = vrot.lane.b32.xlu1 %v542_v14, %s1470_s21  ;;  %v507_v14 = vld [vmem:[#allocation2 + $0x4] sm:$0xf] }
  0x3b   : > { %511 = vst.msk [vmem:[#allocation3 + $0x40] sm:$0xf] %vm364_vm3, %v507_v14 }
  0x41   : > { %422 = vrot.lane.b32.xlu0 %v477_v8, %s1471_s22 }
  0x42   : > { %549 = vrot.lane.b32.xlu2 %v540_v15, %s1470_s21  ;;  %547 = vrot.lane.b32.xlu1 %v539_v16, %s1470_s21  ;;  %v508_v15 = vld [vmem:[#allocation2 + $0xc] sm:$0xf] }
  0x43   : > { %512 = vst.msk [vmem:[#allocation3 + $0x44] sm:$0xf] %vm364_vm3, %v508_v15  ;;  %v1457_v15 = vld [vmem:[%s1760_s0] ss:$0 sm:$0xff] }
  0x49   : > { %416 = vrot.lane.b32.xlu0 %v474_v7, %s1471_s22 }
  0x4a   : > { %527 = vrot.lane.b32.xlu2 %v517_v17, %s1472_s23  ;;  %418 = vrot.lane.b32.xlu1 %v475_v10, %s1471_s22 }
  0x51   : > { %529 = vrot.lane.b32.xlu0 %v518_v18, %s1472_s23 }
  0x52   : > { %389 = vrot.lane.b32.xlu2 %v477_v8, %s1473_s24  ;;  %387 = vrot.lane.b32.xlu1 %v476_v5, %s1473_s24 }
  0x59   : > { %523 = vrot.lane.b32.xlu0 %v515_v19, %s1472_s23 }
  0x5a   : > { %599 = vrot.lane.b32.xlu2 %v589_v20, %s1474_s25  ;;  %525 = vrot.lane.b32.xlu1 %v516_v21, %s1472_s23 }
  0x61   : > { %601 = vrot.lane.b32.xlu0 %v590_v22, %s1474_s25 }
  0x62   : > { %385 = vrot.lane.b32.xlu2 %v475_v10, %s1473_s24  ;;  %383 = vrot.lane.b32.xlu1 %v474_v7, %s1473_s24 }
  0x69   : > { %595 = vrot.lane.b32.xlu0 %v587_v23, %s1474_s25 }
  0x6a   : > { %597 = vrot.lane.b32.xlu1 %v588_v24, %s1474_s25 }
  0x74   : > { %v576_v25 = vpop.permute.xlu2 %575 }
  0x75   : > { %585 = vst.msk [vmem:[#allocation3 + $0x78] sm:$0xf] %vm364_vm3, %v576_v25 }
  0x7c   : > { %v578_v26 = vpop.permute.xlu2 %577 }
  0x7d   : > { %586 = vst.msk [vmem:[#allocation3 + $0x7c] sm:$0xf] %vm364_vm3, %v578_v26 }
  0x84   : > { %v572_v27 = vpop.permute.xlu2 %571  ;;  %v1409_v28 = vld [vmem:[#allocation3 + $0x78] sm:$0xff] }
  0x85   : > { %583 = vst.msk [vmem:[#allocation3 + $0x70] sm:$0xf] %vm364_vm3, %v572_v27  ;;  %800 = vmatpush.bf16.msra.mxu1 %v1409_v28 }
  0x8b   : > { %v487_v29 = vpop.permute.xlu0 %486 }
  0x8c   : > { %v452_v30 = vpop.permute.xlu2 %451  ;;  %v492_v31 = vrot.slane %v487_v29, 4  ;;  %v483_v32 = vpop.permute.xlu1 %482 }
  0x8d   : > { %v458_v33 = vrot.slane %v452_v30, 4  ;;  %v490_v34 = vrot.slane %v483_v32, 4 }
  0x8e   : > { %v497_v35 = vsel %vm494_vm4, %v487_v29, %v492_v31 }
  0x8f   : > { %v463_v36 = vsel %vm461_vm5, %v452_v30, %v458_v33  ;;  %505 = vst.msk [vmem:[#allocation3 + $0x38] sm:$0xf] %vm364_vm3, %v497_v35  ;;  %v495_v37 = vsel %vm494_vm4, %v483_v32, %v490_v34  ;;  %v648_v32 = vld [vmem:[%s1765_s5 + $0x8] sm:$0xff]  ;;  %v647_v33 = vld [vmem:[%s1765_s5] sm:$0xff]  ;;  %v1475_v34 = vmov 1  }
  0x90   : > { %503 = vst.msk [vmem:[#allocation3 + $0x30] sm:$0xf] %vm364_vm3, %v495_v37  ;;  %1445 = vset.pattern.permute.xlu1 %v1475_v34  ;;  %656 = vperm.xlu0 %1444, %v648_v32  }
  0x91   : > { %471 = vst.msk [vmem:[#allocation3 + $0x24] sm:$0xf] %vm364_vm3, %v463_v36  ;;  %835 = vperm.xlu1 %1445, %v647_v33   ;;  %651 = vperm.xlu2 %1443, %v647_v33  }
  0x93   : > { %v489_v38 = vpop.permute.xlu0 %488 }
  0x94   : > { %v421_v39 = vpop.permute.xlu2 %420  ;;  %v493_v40 = vrot.slane %v489_v38, 4  ;;  %v485_v41 = vpop.permute.xlu1 %484 }
  0x95   : > { %v426_v42 = vrot.slane %v421_v39, 4  ;;  %v491_v43 = vrot.slane %v485_v41, 4 }
  0x96   : > { %v498_v44 = vsel %vm494_vm4, %v489_v38, %v493_v40  ;;  %v1476_v40 = vmov 2  }
  0x97   : > { %v431_v45 = vsel %vm428_vm6, %v421_v39, %v426_v42  ;;  %506 = vst.msk [vmem:[#allocation3 + $0x3c] sm:$0xf] %vm364_vm3, %v498_v44  ;;  %v496_v46 = vsel %vm494_vm4, %v485_v41, %v491_v43  ;;  %v1403_v44 = vld [vmem:[#allocation3 + $0x48] sm:$0xff] }
  0x98   : > { %504 = vst.msk [vmem:[#allocation3 + $0x34] sm:$0xf] %vm364_vm3, %v496_v46  ;;  %1451 = vset.pattern.permute.xlu0 %v1475_v34  ;;  %v1402_v46 = vld [vmem:[#allocation3 + $0x40] sm:$0xff] }
  0x99   : > { %439 = vst.msk [vmem:[#allocation3 + $0x18] sm:$0xf] %vm364_vm3, %v431_v45  ;;  %1447 = vset.pattern.permute.xlu1 %v1476_v40  ;;  %1446 = vset.pattern.permute.xlu2 %v1475_v34 }
  0x9a   : > { %845 = vperm.xlu1 %1447, %v647_v33   ;;  %839 = vperm.xlu2 %1446, %v648_v32  }
  0x9b   : > { %v454_v47 = vpop.permute.xlu0 %453 }
  0x9c   : > { %v550_v48 = vpop.permute.xlu2 %549  ;;  %v459_v49 = vrot.slane %v454_v47, 4  ;;  %v456_v50 = vpop.permute.xlu1 %455 }
  0x9d   : > { %560 = vst.msk [vmem:[#allocation3 + $0x64] sm:$0xf] %vm364_vm3, %v550_v48  ;;  %v460_v51 = vrot.slane %v456_v50, 4  ;;  %v1255_v48 = vld [vmem:[%s1763_s3 + $0xc] sm:$0xf0] }
  0x9e   : > { %v464_v52 = vsel %vm461_vm5, %v454_v47, %v459_v49  ;;  %v1401_v53 = vld [vmem:[#allocation3 + $0x38] sm:$0xff]  ;;  %v1391_v47 = vld [vmem:[%s1763_s3 + $0x4] sm:$0xf] }
  0x9f   : > { %472 = vst.msk [vmem:[#allocation3 + $0x28] sm:$0xf] %vm364_vm3, %v464_v52  ;;  %v465_v54 = vsel %vm461_vm5, %v456_v50, %v460_v51  ;;  %786 = vmatpush.bf16.msra.mxu0 %v1401_v53  ;;  %v1400_v55 = vld [vmem:[#allocation3 + $0x30] sm:$0xff]  ;;  %v1253_v52 = vld [vmem:[%s1763_s3] sm:$0xf] }
  0xa0   : > { %473 = vst.msk [vmem:[#allocation3 + $0x2c] sm:$0xf] %vm364_vm3, %v465_v54  ;;  %v1392_v53 = vld [vmem:[%s1763_s3 + $0x8] sm:$0xf0]  ;;  %v1258_v54 = vor.u32 %v1391_v47, %v1255_v48 }
  0xa2   : > { %1448 = vset.pattern.permute.xlu2 %v1476_v40  ;;  %1449 = vset.pattern.permute.xlu1 %v1466_v0 }
  0xa3   : > { %v574_v56 = vpop.permute.xlu0 %573  ;;  %787 = vmatpush.bf16.msra.mxu0 %v1400_v55  ;;  %849 = vperm.xlu2 %1448, %v648_v32  }
  0xa4   : > { %v528_v57 = vpop.permute.xlu2 %527  ;;  %584 = vst.msk [vmem:[#allocation3 + $0x74] sm:$0xf] %vm364_vm3, %v574_v56  ;;  %v450_v58 = vpop.permute.xlu1 %449  ;;  %v1254_v56 = vor.u32 %v1392_v53, %v1253_v52 }
  0xa5   : > { %v457_v59 = vrot.slane %v450_v58, 4  ;;  %537 = vst.msk [vmem:[#allocation3 + $0x58] sm:$0xf] %vm364_vm3, %v528_v57  ;;  %v1261_v57 = vld [vmem:[%s1763_s3 + $0x8] sm:$0xf] }
  0xa7   : > { %v462_v60 = vsel %vm461_vm5, %v450_v58, %v457_v59  ;;  %v1399_v61 = vld [vmem:[#allocation3 + $0x28] sm:$0xff]  ;;  %v1393_v58 = vld [vmem:[%s1763_s3 + $0x10] sm:$0xf0] }
  0xa8   : > { %470 = vst.msk [vmem:[#allocation3 + $0x20] sm:$0xf] %vm364_vm3, %v462_v60  ;;  %788 = vmatpush.bf16.msra.mxu0 %v1399_v61  ;;  %v1262_v60 = vor.u32 %v1393_v58, %v1261_v57 }
  0xab   : > { %v552_v62 = vpop.permute.xlu0 %551  ;;  %v1408_v63 = vld [vmem:[#allocation3 + $0x70] sm:$0xff]  ;;  %1450 = vset.pattern.permute.xlu2 %v1466_v0 }
  0xac   : > { %v390_v1 = vpop.permute.xlu2 %389  ;;  %561 = vst.msk [vmem:[#allocation3 + $0x68] sm:$0xf] %vm364_vm3, %v552_v62  ;;  %v554_v2 = vpop.permute.xlu1 %553  ;;  %801 = vmatpush.bf16.msra.mxu1 %v1408_v63 }
  0xad   : > { %v394_v3 = vrot.slane %v390_v1, 4  ;;  %562 = vst.msk [vmem:[#allocation3 + $0x6c] sm:$0xf] %vm364_vm3, %v554_v2 }
  0xaf   : > { %v399_v4 = vsel %vm395_vm7, %v390_v1, %v394_v3  ;;  %v1398_v5 = vld [vmem:[#allocation3 + $0x20] sm:$0xff] }
  0xb0   : > { %407 = vst.msk [vmem:[#allocation3 + $0xc] sm:$0xf] %vm364_vm3, %v399_v4  ;;  %789 = vmatpush.bf16.msra.mxu0 %v1398_v5 }
  0xb3   : > { %v423_v6 = vpop.permute.xlu0 %422 }
  0xb4   : > { %v600_v7 = vpop.permute.xlu2 %599  ;;  %v427_v8 = vrot.slane %v423_v6, 4  ;;  %v548_v9 = vpop.permute.xlu1 %547  ;;  %v1407_v10 = vld [vmem:[#allocation3 + $0x68] sm:$0xff] }
  0xb5   : > { %609 = vst.msk [vmem:[#allocation3 + $0x88] sm:$0xf] %vm364_vm3, %v600_v7  ;;  %802 = vmatpush.bf16.msra.mxu1 %v1407_v10 }
  0xb6   : > { %559 = vst.msk [vmem:[#allocation3 + $0x60] sm:$0xf] %vm364_vm3, %v548_v9  ;;  %v432_v13 = vsel %vm428_vm6, %v423_v6, %v427_v8 }
  0xb7   : > { %440 = vst.msk [vmem:[#allocation3 + $0x1c] sm:$0xf] %vm364_vm3, %v432_v13 }
  0xbb   : > { %v417_v16 = vpop.permute.xlu0 %416 }
  0xbc   : > { %v386_v17 = vpop.permute.xlu2 %385  ;;  %v419_v18 = vpop.permute.xlu1 %418  ;;  %v424_v19 = vrot.slane %v417_v16, 4 }
  0xbd   : > { %v1406_v20 = vld [vmem:[#allocation3 + $0x60] sm:$0xff]  ;;  %v392_v21 = vrot.slane %v386_v17, 4  ;;  %v425_v22 = vrot.slane %v419_v18, 4 }
  0xbe   : > { %v429_v23 = vsel %vm428_vm6, %v417_v16, %v424_v19  ;;  %803 = vmatpush.bf16.msra.mxu1 %v1406_v20  ;;  %v1397_v24 = vld [vmem:[#allocation3 + $0x18] sm:$0xff] }
  0xbf   : > { %v397_v25 = vsel %vm395_vm7, %v386_v17, %v392_v21  ;;  %v430_v26 = vsel %vm428_vm6, %v419_v18, %v425_v22  ;;  %437 = vst.msk [vmem:[#allocation3 + $0x10] sm:$0xf] %vm364_vm3, %v429_v23  ;;  %790 = vmatpush.bf16.msra.mxu0 %v1397_v24 }
  0xc0   : > { %438 = vst.msk [vmem:[#allocation3 + $0x14] sm:$0xf] %vm364_vm3, %v430_v26 }
  0xc1   : > { %405 = vst.msk [vmem:[#allocation3 + $0x4] sm:$0xf] %vm364_vm3, %v397_v25 }
  0xc3   : > { %v530_v27 = vpop.permute.xlu0 %529 }
  0xc4   : > { %v388_v28 = vpop.permute.xlu1 %387  ;;  %538 = vst.msk [vmem:[#allocation3 + $0x5c] sm:$0xf] %vm364_vm3, %v530_v27 }
  0xc5   : > { %v393_v29 = vrot.slane %v388_v28, 4 }
  0xc7   : > { %v398_v30 = vsel %vm395_vm7, %v388_v28, %v393_v29  ;;  %v1396_v31 = vld [vmem:[#allocation3 + $0x10] sm:$0xff] }
  0xc8   : > { %406 = vst.msk [vmem:[#allocation3 + $0x8] sm:$0xf] %vm364_vm3, %v398_v30  ;;  %791 = vmatpush.bf16.msra.mxu0 %v1396_v31 }
  0xcb   : > { %v524_v35 = vpop.permute.xlu0 %523  ;;  %v1405_v36 = vld [vmem:[#allocation3 + $0x58] sm:$0xff] }
  0xcc   : > { %v526_v37 = vpop.permute.xlu1 %525  ;;  %535 = vst.msk [vmem:[#allocation3 + $0x50] sm:$0xf] %vm364_vm3, %v524_v35  ;;  %804 = vmatpush.bf16.msra.mxu1 %v1405_v36 }
  0xcd   : > { %536 = vst.msk [vmem:[#allocation3 + $0x54] sm:$0xf] %vm364_vm3, %v526_v37 }
  0xcf   : > { %v1395_v38 = vld [vmem:[#allocation3 + $0x8] sm:$0xff] }
  0xd0   : > { %792 = vmatpush.bf16.msra.mxu0 %v1395_v38 }
  0xd3   : > { %v602_v39 = vpop.permute.xlu0 %601 }
  0xd4   : > { %610 = vst.msk [vmem:[#allocation3 + $0x8c] sm:$0xf] %vm364_vm3, %v602_v39  ;;  %v384_v41 = vpop.permute.xlu1 %383  ;;  %v1404_v42 = vld [vmem:[#allocation3 + $0x50] sm:$0xff] }
  0xd5   : > { %v391_v43 = vrot.slane %v384_v41, 4  ;;  %805 = vmatpush.bf16.msra.mxu1 %v1404_v42 }
  0xd7   : > { %v396_v45 = vsel %vm395_vm7, %v384_v41, %v391_v43 }
  0xd8   : > { %404 = vst.msk [vmem:[#allocation3] sm:$0xf] %vm364_vm3, %v396_v45 }
  0xd9   : > { %806 = vmatpush.bf16.msra.mxu1 %v1403_v44 }
  0xdb   : > { %v596_v49 = vpop.permute.xlu0 %595  ;;  %v1411_v50 = vld [vmem:[#allocation3 + $0x88] sm:$0xff] }
  0xdc   : > { %607 = vst.msk [vmem:[#allocation3 + $0x80] sm:$0xf] %vm364_vm3, %v596_v49  ;;  %v598_v51 = vpop.permute.xlu1 %597  ;;  %820 = vmatpush.bf16.msra.mxu2 %v1411_v50 }
  0xdd   : > { %608 = vst.msk [vmem:[#allocation3 + $0x84] sm:$0xf] %vm364_vm3, %v598_v51  ;;  %807 = vmatpush.bf16.msra.mxu1 %v1402_v46 }
  0xdf   : > { %v1394_v55 = vld [vmem:[#allocation3] sm:$0xff] }
  0xe0   : > { %793 = vmatpush.bf16.msra.mxu0 %v1394_v55  ;;  %808 = vmatmul.bf16.vlgmr.msra.gmra.mxu1 %v1258_v54 }
  0xe3   : > { %794 = vmatmul.bf16.vlgmr.msra.gmra.mxu0 %v1254_v56 }
  0xe4   : > { %v1410_v59 = vld [vmem:[#allocation3 + $0x80] sm:$0xff] }
  0xe5   : > { %821 = vmatpush.bf16.msra.mxu2 %v1410_v59 }
  0xe8   : > { %1335 = vmatmul.msk.bf16.vlgmr.msra.gmra.mxu2 %vm782_vm8, %v1262_v60 }
  0xeb   : > { %v652_v62 = vpop.permute.xlu2 %651 }
  0xf4   : > { %v840_v10 = vpop.permute.xlu2 %839 }
  0xfd   : > { %v850_v23 = vpop.permute.xlu2 %849 }
 0x102   : > { %v657_v4 = vpop.permute.xlu0 %656 }
 0x103   : > { %v836_v2 = vpop.permute.xlu1 %835 }
 0x10c   : > { %v846_v13 = vpop.permute.xlu1 %845 }
 0x15d   : > { %v809_v1 = vpop.f32.mrf.mxu1 }
 0x160   : > { %v795_v61 = vpop.f32.mrf.mxu0 }
 0x161   : > { %v796_v63 = vadd.f32 %v795_v61, %v652_v62 }
 0x163   : > { %v810_v3 = vadd.f32 %v809_v1, %v796_v63  ;;  %v999_v1 = vld [vmem:[%s1766_s6] sm:$0xff] }
 0x165   : > { %v811_v11 = vpop.f32.mrf.mxu1 }
 0x168   : > { %v797_v5 = vpop.f32.mrf.mxu0 }
 0x169   : > { %v798_v8 = vadd.f32 %v797_v5, %v657_v4  ;;  %v1000_v4 = vld [vmem:[%s1766_s6 + $0x8] sm:$0xff] }
 0x16b   : > { %v823_v6 = vpop.f32.mrf.mxu2  ;;  %v812_v16 = vadd.f32 %v811_v11, %v798_v8 }
 0x16c   : > { %v824_v7 = vadd.f32 %v823_v6, %v810_v3 }
 0x16e   : > { %vm828_vm9 = vcmp.ge.f32.partialorder %v824_v7, 0.0  ;;  %v830_v9 = vmul.f32 0.01, %v824_v7 }
 0x170   : > { %v832_v12 = vsel %vm828_vm9, %v824_v7, %v830_v9 }
 0x171   : > { %v842_v14 = vmul.f32 %v836_v2, %v832_v12 }
 0x173   : > { %v852_v17 = vadd.f32 %v846_v13, %v842_v14  ;;  %v825_v18 = vpop.f32.mrf.mxu2 }
 0x174   : > { %v826_v19 = vadd.f32 %v825_v18, %v812_v16 }
 0x175   : > { %v857_v20 = vmul.f32 %v1457_v15, %v852_v17 }
 0x176   : > { %vm829_vm10 = vcmp.ge.f32.partialorder %v826_v19, 0.0  ;;  %v831_v21 = vmul.f32 0.01, %v826_v19 }
 0x177   : > { %v859_v22 = vpack.c.bf16 %v857_v20, %v857_v20  ;;  %v1412_v20 = vld [vmem:[%s1764_s4 + $0x4] sm:$0xf] }
 0x178   : > { %v833_v24 = vsel %vm829_vm10, %v826_v19, %v831_v21  ;;  %v1340_v21 = vld [vmem:[%s1764_s4 + $0x8] sm:$0xf0] }
 0x179   : > { %861 = vst.msk [vmem:[#allocation2 + $0x4] sm:$0xf] %vm364_vm3, %v859_v22  ;;  %v843_v25 = vmul.f32 %v840_v10, %v833_v24 }
 0x17b   : > { %v853_v26 = vadd.f32 %v850_v23, %v843_v25  ;;  %v1343_v23 = vor.u32 %v1412_v20, %v1340_v21 }
 0x17d   : > { %v858_v27 = vmul.f32 %v1457_v15, %v853_v26  ;;  %v1136_v26 = vld [vmem:[%s1768_s8 + $0x8] sm:$0xff] }
 0x17f   : > { %v860_v28 = vpack.c.bf16 %v858_v27, %v858_v27  ;;  %v1135_v27 = vld [vmem:[%s1768_s8] sm:$0xff] }
 0x180   : > { %v957_v29 = vld [vmem:[#allocation2 + $0x4] sm:$0xf] }
 0x181   : > { %v945_v30 = vld [vmem:[#allocation2 + $0x4] sm:$0xf]  ;;  %862 = vst.msk [vmem:[#allocation2 + $0xc] sm:$0xf] %vm364_vm3, %v860_v28  ;;  %961 = vrot.lane.b32.xlu0 %v957_v29, %s1468_s19 }
 0x182   : > { %949 = vrot.lane.b32.xlu2 %v945_v30, %s1470_s21  ;;  %v929_v31 = vld [vmem:[#allocation2 + $0x4] sm:$0xf] }
 0x183   : > { %931 = vst.msk [vmem:[#allocation3 + $0x20] sm:$0xf] %vm364_vm3, %v929_v31  ;;  %v933_v37 = vld [vmem:[#allocation2 + $0x4] sm:$0xf] }
 0x184   : > { %v913_v38 = vld [vmem:[#allocation2] sm:$0xff] }
 0x185   : > { %v969_v41 = vld [vmem:[#allocation2 + $0x4] sm:$0xf] }
 0x188   : > { %v958_v32 = vld [vmem:[#allocation2 + $0xc] sm:$0xf] }
 0x189   : > { %v946_v33 = vld [vmem:[#allocation2 + $0xc] sm:$0xf]  ;;  %963 = vrot.lane.b32.xlu1 %v958_v32, %s1468_s19  ;;  %s352_s19 = scalar_lea.vmem %s1769_s9, %s1539_s11 }
 0x18a   : > { %v934_v35 = vld [vmem:[#allocation2 + $0xc] sm:$0xf]  ;;  %951 = vrot.lane.b32.xlu0 %v946_v33, %s1470_s21 }
 0x18b   : > { %v930_v36 = vld [vmem:[#allocation2 + $0xc] sm:$0xf]  ;;  %939 = vrot.lane.b32.xlu2 %v934_v35, %s1472_s23 }
 0x18c   : > { %932 = vst.msk [vmem:[#allocation3 + $0x24] sm:$0xf] %vm364_vm3, %v930_v36  ;;  %v914_v39 = vld [vmem:[#allocation2 + $0x8] sm:$0xff] }
 0x18d   : > { %v970_v42 = vld [vmem:[#allocation2 + $0xc] sm:$0xf] }
 0x191   : > { %937 = vrot.lane.b32.xlu1 %v933_v37, %s1472_s23 }
 0x192   : > { %917 = vrot.lane.b32.xlu0 %v913_v38, %s1467_s18 }
 0x193   : > { %901 = vrot.lane.b32.xlu2 %v913_v38, %s1469_s20  ;;  %v1418_v7 = vld [vmem:[#allocation3 + $0x20] sm:$0xff] }
 0x199   : > { %919 = vrot.lane.b32.xlu1 %v914_v39, %s1467_s18 }
 0x19a   : > { %903 = vrot.lane.b32.xlu0 %v914_v39, %s1469_s20 }
 0x19b   : > { %887 = vrot.lane.b32.xlu2 %v914_v39, %s1471_s22 }
 0x1a1   : > { %885 = vrot.lane.b32.xlu1 %v913_v38, %s1471_s22 }
 0x1a2   : > { %869 = vrot.lane.b32.xlu0 %v913_v38, %s1473_s24 }
 0x1a3   : > { %973 = vrot.lane.b32.xlu2 %v969_v41, %s1474_s25 }
 0x1a9   : > { %871 = vrot.lane.b32.xlu1 %v914_v39, %s1473_s24 }
 0x1aa   : > { %975 = vrot.lane.b32.xlu0 %v970_v42, %s1474_s25 }
 0x1ab   : > { %1008 = vperm.xlu2 %1450, %v1000_v4  }
 0x1b1   : > { %1003 = vperm.xlu1 %1449, %v999_v1  }
 0x1b2   : > { %1113 = vperm.xlu0 %1451, %v999_v1  }
 0x1b3   : > { %1453 = vset.pattern.permute.xlu2 %v1476_v40 }
 0x1b4   : > { %1123 = vperm.xlu2 %1453, %v999_v1  }
 0x1b9   : > { %1452 = vset.pattern.permute.xlu1 %v1475_v34 }
 0x1ba   : > { %1456 = vset.pattern.permute.xlu0 %v1466_v0  ;;  %1117 = vperm.xlu1 %1452, %v1000_v4  }
 0x1bb   : > { %1144 = vperm.xlu0 %1456, %v1136_v26  }
 0x1bc   : > { %1455 = vset.pattern.permute.xlu2 %v1466_v0  ;;  %v1413_v0 = vld [vmem:[%s1764_s4 + $0x4] sm:$0xf0] }
 0x1bd   : > { %1139 = vperm.xlu2 %1455, %v1135_v27  }
 0x1c2   : > { %1454 = vset.pattern.permute.xlu1 %v1476_v40  ;;  %v1338_v40 = vld [vmem:[%s1764_s4] sm:$0xf] }
 0x1c3   : > { %1127 = vperm.xlu1 %1454, %v1000_v4   ;;  %v1339_v25 = vor.u32 %v1413_v0, %v1338_v40 }
 0x1dc   : > { %v950_v43 = vpop.permute.xlu2 %949 }
 0x1dd   : > { %955 = vst.msk [vmem:[#allocation3 + $0x30] sm:$0xf] %vm364_vm3, %v950_v43 }
 0x1e5   : > { %v940_v44 = vpop.permute.xlu2 %939 }
 0x1e6   : > { %944 = vst.msk [vmem:[#allocation3 + $0x2c] sm:$0xf] %vm364_vm3, %v940_v44 }
 0x1ed   : > { %v902_v45 = vpop.permute.xlu2 %901 }
 0x1ee   : > { %v905_v46 = vrot.slane %v902_v45, 4 }
 0x1f0   : > { %v907_v47 = vsel %vm461_vm5, %v902_v45, %v905_v46 }
 0x1f1   : > { %911 = vst.msk [vmem:[#allocation3 + $0x10] sm:$0xf] %vm364_vm3, %v907_v47 }
 0x1f3   : > { %v962_v48 = vpop.permute.xlu0 %961 }
 0x1f4   : > { %967 = vst.msk [vmem:[#allocation3 + $0x38] sm:$0xf] %vm364_vm3, %v962_v48 }
 0x1f5   : > { %v888_v49 = vpop.permute.xlu2 %887 }
 0x1f6   : > { %v890_v50 = vrot.slane %v888_v49, 4 }
 0x1f8   : > { %v892_v51 = vsel %vm428_vm6, %v888_v49, %v890_v50 }
 0x1f9   : > { %896 = vst.msk [vmem:[#allocation3 + $0xc] sm:$0xf] %vm364_vm3, %v892_v51 }
 0x1fb   : > { %v964_v53 = vpop.permute.xlu1 %963 }
 0x1fc   : > { %v952_v52 = vpop.permute.xlu0 %951  ;;  %968 = vst.msk [vmem:[#allocation3 + $0x3c] sm:$0xf] %vm364_vm3, %v964_v53  ;;  %v1423_v53 = vld [vmem:[%s1767_s7] sm:$0xff] }
 0x1fd   : > { %956 = vst.msk [vmem:[#allocation3 + $0x34] sm:$0xf] %vm364_vm3, %v952_v52  ;;  %v974_v54 = vpop.permute.xlu2 %973 }
 0x1fe   : > { %979 = vst.msk [vmem:[#allocation3 + $0x40] sm:$0xf] %vm364_vm3, %v974_v54 }
 0x203   : > { %v938_v56 = vpop.permute.xlu1 %937  ;;  %v1421_v58 = vld [vmem:[#allocation3 + $0x38] sm:$0xff] }
 0x204   : > { %v918_v55 = vpop.permute.xlu0 %917  ;;  %943 = vst.msk [vmem:[#allocation3 + $0x28] sm:$0xf] %vm364_vm3, %v938_v56  ;;  %1078 = vmatpush.bf16.msra.mxu3 %v1421_v58  ;;  %v1420_v60 = vld [vmem:[#allocation3 + $0x30] sm:$0xff] }
 0x205   : > { %v921_v57 = vrot.slane %v918_v55, 4  ;;  %v1009_v33 = vpop.permute.xlu2 %1008 }
 0x207   : > { %v923_v59 = vsel %vm494_vm4, %v918_v55, %v921_v57 }
 0x208   : > { %927 = vst.msk [vmem:[#allocation3 + $0x18] sm:$0xf] %vm364_vm3, %v923_v59  ;;  %1079 = vmatpush.bf16.msra.mxu3 %v1420_v60 }
 0x20b   : > { %v920_v62 = vpop.permute.xlu1 %919  ;;  %v1419_v63 = vld [vmem:[#allocation3 + $0x28] sm:$0xff] }
 0x20c   : > { %v904_v61 = vpop.permute.xlu0 %903  ;;  %v922_v3 = vrot.slane %v920_v62, 4  ;;  %1080 = vmatpush.bf16.msra.mxu3 %v1419_v63 }
 0x20d   : > { %v906_v2 = vrot.slane %v904_v61, 4 }
 0x20e   : > { %v924_v6 = vsel %vm494_vm4, %v920_v62, %v922_v3  ;;  %v1124_v47 = vpop.permute.xlu2 %1123 }
 0x20f   : > { %v908_v5 = vsel %vm461_vm5, %v904_v61, %v906_v2  ;;  %928 = vst.msk [vmem:[#allocation3 + $0x1c] sm:$0xf] %vm364_vm3, %v924_v6 }
 0x210   : > { %912 = vst.msk [vmem:[#allocation3 + $0x14] sm:$0xf] %vm364_vm3, %v908_v5  ;;  %1081 = vmatpush.bf16.msra.mxu3 %v1418_v7 }
 0x213   : > { %v886_v9 = vpop.permute.xlu1 %885 }
 0x214   : > { %v870_v8 = vpop.permute.xlu0 %869  ;;  %v889_v11 = vrot.slane %v886_v9, 4 }
 0x215   : > { %v873_v10 = vrot.slane %v870_v8, 4 }
 0x216   : > { %v891_v13 = vsel %vm428_vm6, %v886_v9, %v889_v11  ;;  %v1417_v14 = vld [vmem:[#allocation3 + $0x18] sm:$0xff] }
 0x217   : > { %v875_v12 = vsel %vm395_vm7, %v870_v8, %v873_v10  ;;  %895 = vst.msk [vmem:[#allocation3 + $0x8] sm:$0xf] %vm364_vm3, %v891_v13  ;;  %1082 = vmatpush.bf16.msra.mxu3 %v1417_v14  ;;  %v1416_v17 = vld [vmem:[#allocation3 + $0x10] sm:$0xff]  ;;  %v1140_v54 = vpop.permute.xlu2 %1139 }
 0x218   : > { %879 = vst.msk [vmem:[#allocation3] sm:$0xf] %vm364_vm3, %v875_v12 }
 0x21b   : > { %v872_v16 = vpop.permute.xlu1 %871  ;;  %1083 = vmatpush.bf16.msra.mxu3 %v1416_v17 }
 0x21c   : > { %v976_v15 = vpop.permute.xlu0 %975  ;;  %v874_v34 = vrot.slane %v872_v16, 4 }
 0x21d   : > { %980 = vst.msk [vmem:[#allocation3 + $0x44] sm:$0xf] %vm364_vm3, %v976_v15 }
 0x21e   : > { %v876_v18 = vsel %vm395_vm7, %v872_v16, %v874_v34  ;;  %v1415_v19 = vld [vmem:[#allocation3 + $0x8] sm:$0xff] }
 0x21f   : > { %880 = vst.msk [vmem:[#allocation3 + $0x4] sm:$0xf] %vm364_vm3, %v876_v18  ;;  %1084 = vmatpush.bf16.msra.mxu3 %v1415_v19 }
 0x223   : > { %v1004_v28 = vpop.permute.xlu1 %1003 }
 0x224   : > { %v1422_v22 = vld [vmem:[#allocation3 + $0x40] sm:$0xff]  ;;  %v1114_v41 = vpop.permute.xlu0 %1113 }
 0x225   : > { %1099 = vmatpush.bf16.msrb.mxu2 %v1422_v22 }
 0x226   : > { %v1414_v24 = vld [vmem:[#allocation3] sm:$0xff] }
 0x227   : > { %1085 = vmatpush.bf16.msra.mxu3 %v1414_v24 }
 0x228   : > { %1380 = vmatmul.msk.bf16.vlgmr.msrb.gmra.mxu2 %vm1074_vm11, %v1343_v23 }
 0x22a   : > { %1086 = vmatmul.bf16.vlgmr.msra.gmra.mxu3 %v1339_v25 }
 0x22c   : > { %v1118_v35 = vpop.permute.xlu1 %1117 }
 0x22d   : > { %v1145_v58 = vpop.permute.xlu0 %1144 }
 0x235   : > { %v1128_v48 = vpop.permute.xlu1 %1127 }
 0x2ab   : > { %v1101_v29 = vpop.f32.mrf.mxu2 }
 0x2ad   : > { %v1087_v30 = vpop.f32.mrf.mxu3 }
 0x2ae   : > { %v1088_v31 = vadd.f32 %v1087_v30, %v1004_v28 }
 0x2b0   : > { %v1102_v32 = vadd.f32 %v1101_v29, %v1088_v31 }
 0x2b2   : > { %v1108_v36 = vmul.f32 0.01, %v1102_v32  ;;  %vm1106_vm12 = vcmp.ge.f32.partialorder %v1102_v32, 0.0 }
 0x2b3   : > { %v1103_v39 = vpop.f32.mrf.mxu2 }
 0x2b4   : > { %v1110_v42 = vsel %vm1106_vm12, %v1102_v32, %v1108_v36 }
 0x2b5   : > { %v1089_v37 = vpop.f32.mrf.mxu3  ;;  %v1120_v45 = vmul.f32 %v1114_v41, %v1110_v42 }
 0x2b6   : > { %v1090_v38 = vadd.f32 %v1089_v37, %v1009_v33 }
 0x2b7   : > { %v1130_v50 = vadd.f32 %v1124_v47, %v1120_v45 }
 0x2b8   : > { %v1104_v43 = vadd.f32 %v1103_v39, %v1090_v38 }
 0x2ba   : > { %vm1107_vm13 = vcmp.ge.f32.partialorder %v1104_v43, 0.0  ;;  %v1109_v44 = vmul.f32 0.01, %v1104_v43 }
 0x2bc   : > { %v1111_v46 = vsel %vm1107_vm13, %v1104_v43, %v1109_v44 }
 0x2bd   : > { %v1121_v49 = vmul.f32 %v1118_v35, %v1111_v46 }
 0x2bf   : > { %v1131_v51 = vadd.f32 %v1128_v48, %v1121_v49 }
 0x2c1   : > { %v1134_v52 = vpack.c.bf16 %v1131_v51, %v1130_v50 }
 0x2c3   : > { %1162 = vmatpush.bf16.msra.mxu2 %v1134_v52 }
 0x2c6   : > { %1385 = vmatmul.msk.bf16.vlgmr.msra.gmra.mxu2 %vm1074_vm11, %v1423_v53 }
 0x349   : > { %v1164_v55 = vpop.f32.mrf.mxu2 }
 0x34a   : > { %v1165_v56 = vadd.f32 %v1164_v55, %v1140_v54 }
 0x34c   : > { %v1169_v57 = vpack.c.bf16 %v1165_v56, %v1165_v56 }
 0x34e   : > { %1171 = vst.msk [vmem:[%s352_s19] sm:$0xf] %vm364_vm3, %v1169_v57 }
 0x351   : > { %v1166_v59 = vpop.f32.mrf.mxu2 }
 0x352   : > { %v1167_v60 = vadd.f32 %v1166_v59, %v1145_v58 }
 0x354   : > { %v1170_v61 = vpack.c.bf16 %v1167_v60, %v1167_v60 }
 0x356   : > { %1172 = vst.msk [vmem:[%s352_s19 + $0x4] sm:$0xf] %vm364_vm3, %v1170_v61 }
 0x357 PF: > { %s19_s30 = sadd.s32 1, %s1464_s30  }
 0x358   : > { %p16_p4 = scmp.ge.s32.totalorder %s19_s30, 4  }
 0x35a   :  { %18 = sbr.rel (!%p16_p4) target bundleno = 1 (0x1), region = 89 }

// kernel: wnet_forward.14
= control target key start
LH: loop header
LB: loop body
LE: loop exit
PB: predicated region body
PF: predicated region fallthrough
CT: control target
= control target key end

     0   :  { %s2841_s24 = smov 0   ;;  %s3484_s0 = inlined_call_operand.vmem [shape: f32[1,288], index: 0, kind: input, shape index: {}]   ;;  %s3485_s1 = inlined_call_operand.vmem [shape: bf16[2,16,288], index: 1, kind: input, shape index: {}]   ;;  %s3486_s2 = inlined_call_operand.vmem [shape: bf16[2,16,288], index: 2, kind: input, shape index: {}]   ;;  %s3487_s3 = inlined_call_operand.vmem [shape: bf16[16,288], index: 3, kind: input, shape index: {}]   ;;  %s3488_s4 = inlined_call_operand.vmem [shape: bf16[16,144], index: 4, kind: input, shape index: {}]   ;;  %s3489_s5 = inlined_call_operand.vmem [shape: f32[16,3], index: 5, kind: input, shape index: {}]   ;;  %s3490_s6 = inlined_call_operand.vmem [shape: f32[16,3], index: 6, kind: input, shape index: {}]   ;;  %s3491_s7 = inlined_call_operand.vmem [shape: bf16[2,16,288], index: 7, kind: output, shape index: {}]  }
   0x1 LB: > { %s2287_s25 = sadd.s32 4294967295, %s2787_s24   ;;  %p2291_p0 = scmp.ge.s32.totalorder %s2787_s24, 1  ;;  %s2787_s24 = sphi %s2841_s24, %s17_s24  }
   0x2   : > { %p247_p1 = scmp.lt.s32.totalorder %s2787_s24, 3 }
   0x4   : > { %p248_p2 = pnand %p2291_p0, %p247_p1 }
   0x5   : > { %p284_p3 = scmp.lt.s32.totalorder (!%p248_p2), %s2287_s25, 1  ;;  %s2790_s10 = smov (!%p248_p2), 110  }
   0x6   : > { %251 = sbr.rel (%p248_p2) target bundleno = 933 (0x3a5), region = 48  ;;  %s2791_s11 = smov (!%p248_p2), 1  }
   0x7   : > { %s2792_s12 = smov (!%p248_p2), 17   ;;  %s2793_s13 = smov (!%p248_p2), 109  }
   0x8   : > { %s2794_s14 = smov (!%p248_p2), 111   ;;  %s2795_s15 = smov (!%p248_p2), 18  }
   0x9   : > { %s2796_s16 = smov (!%p248_p2), 127   ;;  %s2797_s17 = smov (!%p248_p2), 19  }
   0xb   : > { %vm302_vm0 = vcmask 1043456   ;;  %vm303_vm1 = vcmask 416772   ;;  %v2789_v1 = vmov 0   ;;  %s3495_s25 = smov (!%p284_p3, %s2287_s25), 1  ;;  %vm317_vm3 = vcmask 257024  }
   0xc   : > { %vm2850_vm2 = vmor %vm303_vm1, %vm302_vm0  ;;  %310 = vst [vmem:[#allocation2 + $0x30] sm:$0xff] %v2789_v1  ;;  %2754 = vset.pattern.permute.xlu1 %v2789_v1  ;;  %2755 = vset.pattern.permute.xlu2 %v2789_v1  ;;  %s2861_s26 = smul.u32 24, %s3495_s25  ;;  %vm797_vm4 = vcmask 900096   ;;  %vm582_vm5 = vcmask 7168   ;;  %vm513_vm6 = vcmask 138240   ;;  %vm862_vm7 = vcmask 891904  }
   0xd   : > { %311 = vst.msk [vmem:[#allocation2 + $0x38] sm:$0xff] %vm2850_vm2, %v2789_v1  ;;  %vm732_vm8 = vcmask 908288   ;;  %vm444_vm9 = vcmask 146432   ;;  %vm667_vm10 = vcmask 1039360   ;;  %vm375_vm11 = vcmask 154624  }
   0xe   : > { %301 = vst [vmem:[#allocation2] sm:$0xff] %v2789_v1  ;;  %s293_s29 = scalar_lea.vmem %s3486_s2, %s2861_s26  ;;  %s288_s9 = scalar_lea.vmem %s3485_s1, %s2861_s26  ;;  %vm1273_vm12 = vcmask 261120  }
   0xf   : > { %305 = vst.msk [vmem:[#allocation2 + $0x8] sm:$0xff] %vm2850_vm2, %v2789_v1  ;;  %v2874_v2 = vld [vmem:[%s293_s29 + $0xc] sm:$0xff]  ;;  %v2877_v3 = vld [vmem:[%s293_s29] sm:$0xff]  ;;  %v324_v4 = vld [vmem:[%s293_s29 + $0x14] sm:$0xf] }
  0x10   : > { %306 = vst [vmem:[#allocation2 + $0x10] sm:$0xff] %v2789_v1  ;;  %780 = vrot.lane.b32.xlu2 %v2877_v3, %s2790_s10  ;;  %v322_v5 = vld [vmem:[%s293_s29 + $0x8] sm:$0xf]  ;;  %v2890_v6 = vld [vmem:[%s288_s9 + $0xc] sm:$0xff]  ;;  %v2893_v7 = vld [vmem:[%s288_s9] sm:$0xff]  ;;  %s298_s29 = scalar_lea.vmem %s3491_s7, %s2861_s26 }
  0x11   : > { %307 = vst.msk [vmem:[#allocation2 + $0x18] sm:$0xff] %vm2850_vm2, %v2789_v1  ;;  %v313_v8 = vld [vmem:[%s288_s9 + $0x8] sm:$0xf]  ;;  %v315_v11 = vld [vmem:[%s288_s9 + $0x14] sm:$0xf] }
  0x12   : > { %308 = vst [vmem:[#allocation2 + $0x20] sm:$0xff] %v2789_v1 }
  0x13   : > { %327 = vst [vmem:[#allocation2 + $0x34] sm:$0xff] %v2874_v2 }
  0x14   : > { %309 = vst.msk [vmem:[#allocation2 + $0x28] sm:$0xff] %vm2850_vm2, %v2789_v1 }
  0x15   : > { %325 = vst [vmem:[#allocation2 + $0x24] sm:$0xff] %v2877_v3 }
  0x16   : > { %328 = vst.msk [vmem:[#allocation2 + $0x3c] sm:$0xf] %vm317_vm3, %v324_v4 }
  0x17   : > { %326 = vst.msk [vmem:[#allocation2 + $0x2c] sm:$0xf] %vm317_vm3, %v322_v5 }
  0x18   : > { %319 = vst [vmem:[#allocation2 + $0x14] sm:$0xff] %v2890_v6 }
  0x19   : > { %316 = vst [vmem:[#allocation2 + $0x4] sm:$0xff] %v2893_v7 }
  0x1a   : > { %v2898_v9 = vld [vmem:[#allocation2 + $0x30] sm:$0xff]  ;;  %318 = vst.msk [vmem:[#allocation2 + $0xc] sm:$0xf] %vm317_vm3, %v313_v8 }
  0x1b   : > { %569 = vrot.lane.b32.xlu1 %v2898_v9, %s2791_s11  ;;  %320 = vst.msk [vmem:[#allocation2 + $0x1c] sm:$0xf] %vm317_vm3, %v315_v11 }
  0x1c   : > { %v2903_v10 = vld [vmem:[#allocation2 + $0x20] sm:$0xff] }
  0x1d   : > { %565 = vrot.lane.b32.xlu0 %v2903_v10, %s2791_s11  ;;  %v2909_v13 = vld [vmem:[#allocation2 + $0x38] sm:$0xff] }
  0x1e   : > { %v761_v12 = vld [vmem:[#allocation2 + $0x2c] sm:$0xf]  ;;  %v763_v16 = vld [vmem:[#allocation2 + $0x3c] sm:$0xf] }
  0x1f   : > { %782 = vrot.lane.b32.xlu2 %v761_v12, %s2790_s10  ;;  %v2911_v14 = vld [vmem:[#allocation2 + $0x28] sm:$0xff]  ;;  %v2928_v18 = vld [vmem:[#allocation2 + $0x10] sm:$0xff]  ;;  %v828_v22 = vld [vmem:[#allocation2 + $0x3c] sm:$0xf] }
  0x20   : > { %v2915_v15 = vld [vmem:[#allocation2] sm:$0xff]  ;;  %v826_v23 = vld [vmem:[#allocation2 + $0x2c] sm:$0xf]  ;;  %v698_v25 = vld [vmem:[#allocation2 + $0x3c] sm:$0xf] }
  0x21   : > { %v2930_v19 = vld [vmem:[#allocation2 + $0x8] sm:$0xff]  ;;  %v633_v40 = vld [vmem:[#allocation2 + $0x3c] sm:$0xf] }
  0x22   : > { %v2922_v17 = vld [vmem:[#allocation2 + $0x18] sm:$0xff]  ;;  %v757_v20 = vld [vmem:[#allocation2 + $0xc] sm:$0xf] }
  0x23   : > { %571 = vrot.lane.b32.xlu1 %v2909_v13, %s2791_s11  ;;  %v759_v21 = vld [vmem:[#allocation2 + $0x1c] sm:$0xf]  ;;  %v696_v24 = vld [vmem:[#allocation2 + $0x2c] sm:$0xf] }
  0x24   : > { %v824_v26 = vld [vmem:[#allocation2 + $0x1c] sm:$0xf]  ;;  %v822_v28 = vld [vmem:[#allocation2 + $0xc] sm:$0xf] }
  0x25   : > { %567 = vrot.lane.b32.xlu0 %v2911_v14, %s2791_s11  ;;  %v692_v29 = vld [vmem:[#allocation2 + $0xc] sm:$0xf]  ;;  %v694_v36 = vld [vmem:[#allocation2 + $0x1c] sm:$0xf] }
  0x26   : > { %v631_v44 = vld [vmem:[#allocation2 + $0x2c] sm:$0xf] }
  0x27   : > { %557 = vrot.lane.b32.xlu2 %v2915_v15, %s2791_s11  ;;  %v627_v59 = vld [vmem:[#allocation2 + $0xc] sm:$0xf] }
  0x2b   : > { %786 = vrot.lane.b32.xlu1 %v763_v16, %s2790_s10 }
  0x2d   : > { %784 = vrot.lane.b32.xlu0 %v2874_v2, %s2790_s10 }
  0x2f   : > { %563 = vrot.lane.b32.xlu2 %v2922_v17, %s2791_s11 }
  0x33   : > { %561 = vrot.lane.b32.xlu1 %v2928_v18, %s2791_s11 }
  0x35   : > { %559 = vrot.lane.b32.xlu0 %v2930_v19, %s2791_s11 }
  0x37   : > { %776 = vrot.lane.b32.xlu2 %v2890_v6, %s2790_s10 }
  0x3b   : > { %774 = vrot.lane.b32.xlu1 %v757_v20, %s2790_s10 }
  0x3d   : > { %772 = vrot.lane.b32.xlu0 %v2893_v7, %s2790_s10 }
  0x3f   : > { %498 = vrot.lane.b32.xlu2 %v2911_v14, %s2792_s12 }
  0x43   : > { %496 = vrot.lane.b32.xlu1 %v2903_v10, %s2792_s12 }
  0x45   : > { %778 = vrot.lane.b32.xlu0 %v759_v21, %s2790_s10 }
  0x47   : > { %845 = vrot.lane.b32.xlu2 %v2877_v3, %s2793_s13 }
  0x4b   : > { %502 = vrot.lane.b32.xlu1 %v2909_v13, %s2792_s12 }
  0x4d   : > { %500 = vrot.lane.b32.xlu0 %v2898_v9, %s2792_s12 }
  0x4f   : > { %851 = vrot.lane.b32.xlu2 %v828_v22, %s2793_s13 }
  0x53   : > { %849 = vrot.lane.b32.xlu1 %v2874_v2, %s2793_s13 }
  0x55   : > { %847 = vrot.lane.b32.xlu0 %v826_v23, %s2793_s13  ;;  %v629_v23 = vld [vmem:[#allocation2 + $0x1c] sm:$0xf] }
  0x57   : > { %719 = vrot.lane.b32.xlu2 %v2874_v2, %s2794_s14 }
  0x5b   : > { %717 = vrot.lane.b32.xlu1 %v696_v24, %s2794_s14 }
  0x5d   : > { %715 = vrot.lane.b32.xlu0 %v2877_v3, %s2794_s14 }
  0x5f   : > { %490 = vrot.lane.b32.xlu2 %v2930_v19, %s2792_s12 }
  0x63   : > { %488 = vrot.lane.b32.xlu1 %v2915_v15, %s2792_s12 }
  0x65   : > { %721 = vrot.lane.b32.xlu0 %v698_v25, %s2794_s14 }
  0x67   : > { %837 = vrot.lane.b32.xlu2 %v2893_v7, %s2793_s13 }
  0x6a   : > { %v781_v27 = vpop.permute.xlu2 %780 }
  0x6b   : > { %494 = vrot.lane.b32.xlu1 %v2922_v17, %s2792_s12  ;;  %v792_v30 = vrot.slane %v781_v27, 4 }
  0x6d   : > { %492 = vrot.lane.b32.xlu0 %v2928_v18, %s2792_s12 }
  0x6f   : > { %843 = vrot.lane.b32.xlu2 %v824_v26, %s2793_s13 }
  0x73   : > { %841 = vrot.lane.b32.xlu1 %v2890_v6, %s2793_s13 }
  0x75   : > { %839 = vrot.lane.b32.xlu0 %v822_v28, %s2793_s13 }
  0x77   : > { %711 = vrot.lane.b32.xlu2 %v2890_v6, %s2794_s14 }
  0x79   : > { %v783_v31 = vpop.permute.xlu2 %782 }
  0x7a   : > { %v793_v32 = vrot.slane %v783_v31, 4  ;;  %818 = vst.msk [vmem:[#allocation3 + $0x170] sm:$0xf] %vm317_vm3, %v783_v31 }
  0x7b   : > { %709 = vrot.lane.b32.xlu1 %v692_v29, %s2794_s14 }
  0x7c   : > { %v801_v33 = vsel %vm302_vm0, %v792_v30, %v793_v32 }
  0x7d   : > { %707 = vrot.lane.b32.xlu0 %v2893_v7, %s2794_s14  ;;  %v802_v34 = vsel %vm797_vm4, %v781_v27, %v801_v33 }
  0x7e   : > { %817 = vst [vmem:[#allocation3 + $0x168] sm:$0xff] %v802_v34 }
  0x7f   : > { %429 = vrot.lane.b32.xlu2 %v2911_v14, %s2795_s15 }
  0x81   : > { %v2986_v35 = vpop.permute.xlu2 %557 }
  0x82   : > { %v573_v16 = vrot.slane %v2986_v35, 4 }
  0x83   : > { %427 = vrot.lane.b32.xlu1 %v2903_v10, %s2795_s15 }
  0x85   : > { %713 = vrot.lane.b32.xlu0 %v694_v36, %s2794_s14  ;;  %v2489_v28 = vld [vmem:[#allocation3 + $0x168] sm:$0xf]  ;;  %v2695_v29 = vld [vmem:[#allocation3 + $0x16c] sm:$0xf] }
  0x87   : > { %650 = vrot.lane.b32.xlu2 %v2877_v3, %s2796_s16 }
  0x89   : > { %v2993_v37 = vpop.permute.xlu2 %563 }
  0x8a   : > { %v576_v38 = vrot.slane %v2993_v37, 4 }
  0x8b   : > { %433 = vrot.lane.b32.xlu1 %v2909_v13, %s2795_s15 }
  0x8c   : > { %v587_v39 = vsel %vm582_vm5, %v2993_v37, %v576_v38 }
  0x8d   : > { %431 = vrot.lane.b32.xlu0 %v2898_v9, %s2795_s15  ;;  %v570_v41 = vpop.permute.xlu1 %569  ;;  %605 = vst.msk [vmem:[#allocation3 + $0xa4] sm:$0xf] %vm317_vm3, %v587_v39 }
  0x8e   : > { %v579_v45 = vrot.slane %v570_v41, 4 }
  0x8f   : > { %v566_v42 = vpop.permute.xlu0 %565  ;;  %656 = vrot.lane.b32.xlu2 %v633_v40, %s2796_s16 }
  0x90   : > { %v577_v49 = vrot.slane %v566_v42, 4 }
  0x91   : > { %v3006_v43 = vpop.permute.xlu2 %776 }
  0x93   : > { %654 = vrot.lane.b32.xlu1 %v2874_v2, %s2796_s16 }
  0x95   : > { %652 = vrot.lane.b32.xlu0 %v631_v44, %s2796_s16  ;;  %v572_v46 = vpop.permute.xlu1 %571 }
  0x96   : > { %v580_v47 = vrot.slane %v572_v46, 4 }
  0x97   : > { %v568_v48 = vpop.permute.xlu0 %567  ;;  %423 = vrot.lane.b32.xlu2 %v2928_v18, %s2795_s15 }
  0x98   : > { %v591_v50 = vsel %vm302_vm0, %v579_v45, %v580_v47  ;;  %v593_v51 = vsel %vm582_vm5, %v572_v46, %v580_v47  ;;  %v578_v52 = vrot.slane %v568_v48, 4 }
  0x99   : > { %v592_v53 = vsel %vm582_vm5, %v570_v41, %v591_v50  ;;  %609 = vst.msk [vmem:[#allocation3 + $0xbc] sm:$0xf] %vm317_vm3, %v593_v51  ;;  %v3017_v54 = vpop.permute.xlu2 %498 }
  0x9a   : > { %608 = vst [vmem:[#allocation3 + $0xb4] sm:$0xff] %v592_v53  ;;  %v588_v55 = vsel %vm302_vm0, %v577_v49, %v578_v52  ;;  %v590_v56 = vsel %vm582_vm5, %v568_v48, %v578_v52  ;;  %v509_v58 = vrot.slane %v3017_v54, 4 }
  0x9b   : > { %v589_v57 = vsel %vm582_vm5, %v566_v42, %v588_v55  ;;  %607 = vst.msk [vmem:[#allocation3 + $0xb0] sm:$0xf] %vm317_vm3, %v590_v56  ;;  %421 = vrot.lane.b32.xlu1 %v2930_v19, %s2795_s15 }
  0x9c   : > { %606 = vst [vmem:[#allocation3 + $0xa8] sm:$0xff] %v589_v57  ;;  %v521_v62 = vsel %vm513_vm6, %v3017_v54, %v509_v58 }
  0x9d   : > { %419 = vrot.lane.b32.xlu0 %v2915_v15, %s2795_s15  ;;  %v787_v60 = vpop.permute.xlu1 %786  ;;  %538 = vst.msk [vmem:[#allocation3 + $0x80] sm:$0xf] %vm317_vm3, %v521_v62 }
  0x9e   : > { %v795_v61 = vrot.slane %v787_v60, 4  ;;  %820 = vst.msk [vmem:[#allocation3 + $0x17c] sm:$0xf] %vm317_vm3, %v787_v60 }
  0x9f   : > { %v785_v63 = vpop.permute.xlu0 %784  ;;  %644 = vrot.lane.b32.xlu2 %v627_v59, %s2796_s16 }
  0xa0   : > { %v794_v0 = vrot.slane %v785_v63, 4 }
  0xa1   : > { %v2672_v2 = vld [vmem:[#allocation3 + $0xb0] sm:$0xf0]  ;;  %v3035_v3 = vpop.permute.xlu2 %845 }
  0xa2   : > { %v803_v4 = vsel %vm302_vm0, %v794_v0, %v795_v61 }
  0xa3   : > { %v804_v5 = vsel %vm797_vm4, %v785_v63, %v803_v4  ;;  %642 = vrot.lane.b32.xlu1 %v2893_v7, %s2796_s16  ;;  %v2393_v8 = vld [vmem:[#allocation3 + $0xa8] sm:$0xf] }
  0xa4   : > { %819 = vst [vmem:[#allocation3 + $0x174] sm:$0xff] %v804_v5  ;;  %v2394_v11 = vor.u32 %v2672_v2, %v2393_v8  ;;  %v857_v2 = vrot.slane %v3035_v3, 4 }
  0xa5   : > { %425 = vrot.lane.b32.xlu0 %v2922_v17, %s2795_s15  ;;  %v562_v12 = vpop.permute.xlu1 %561 }
  0xa6   : > { %1277 = vmatpush.bf16.msra.mxu0 %v2394_v11  ;;  %v575_v20 = vrot.slane %v562_v12, 4 }
  0xa7   : > { %v560_v21 = vpop.permute.xlu0 %559  ;;  %357 = vrot.lane.b32.xlu2 %v2903_v10, %s2797_s17 }
  0xa8   : > { %v574_v22 = vrot.slane %v560_v21, 4  ;;  %v585_v7 = vsel %vm302_vm0, %v575_v20, %v576_v38 }
  0xa9   : > { %v586_v24 = vsel %vm582_vm5, %v562_v12, %v585_v7  ;;  %v3050_v25 = vpop.permute.xlu2 %851 }
  0xaa   : > { %v581_v26 = vsel %vm302_vm0, %v573_v16, %v574_v22  ;;  %v584_v27 = vsel %vm582_vm5, %v560_v21, %v574_v22  ;;  %604 = vst [vmem:[#allocation3 + $0x9c] sm:$0xff] %v586_v24  ;;  %v860_v63 = vrot.slane %v3050_v25, 4 }
  0xab   : > { %v583_v10 = vsel %vm582_vm5, %v2986_v35, %v581_v26  ;;  %603 = vst.msk [vmem:[#allocation3 + $0x98] sm:$0xf] %vm317_vm3, %v584_v27  ;;  %648 = vrot.lane.b32.xlu1 %v629_v23, %s2796_s16  ;;  %v2696_v30 = vld [vmem:[#allocation3 + $0x170] sm:$0xf0]  ;;  %v2491_v31 = vld [vmem:[#allocation3 + $0x174] sm:$0xf0] }
  0xac   : > { %602 = vst [vmem:[#allocation3 + $0x90] sm:$0xff] %v583_v10  ;;  %v2490_v32 = vor.u32 %v2696_v30, %v2489_v28  ;;  %v2494_v33 = vor.u32 %v2695_v29, %v2491_v31 }
  0xad   : > { %646 = vrot.lane.b32.xlu0 %v2890_v6, %s2796_s16  ;;  %v775_v34 = vpop.permute.xlu1 %774  ;;  %885 = vst.msk [vmem:[#allocation3 + $0x1ac] sm:$0xf] %vm317_vm3, %v3050_v25 }
  0xae   : > { %1291 = vmatpush.bf16.msra.mxu1 %v2490_v32  ;;  %1333 = vmatpush.bf16.msra.mxu2 %v2494_v33  ;;  %v789_v36 = vrot.slane %v775_v34, 4  ;;  %814 = vst.msk [vmem:[#allocation3 + $0x158] sm:$0xf] %vm317_vm3, %v775_v34 }
  0xaf   : > { %v773_v35 = vpop.permute.xlu0 %772  ;;  %363 = vrot.lane.b32.xlu2 %v2909_v13, %s2797_s17  ;;  %v790_v13 = vrot.slane %v3006_v43, 4 }
  0xb0   : > { %v788_v37 = vrot.slane %v773_v35, 4 }
  0xb1   : > { %v2669_v38 = vld [vmem:[#allocation3 + $0x98] sm:$0xf0]  ;;  %v3065_v39 = vpop.permute.xlu2 %719 }
  0xb2   : > { %v796_v40 = vsel %vm302_vm0, %v788_v37, %v789_v36  ;;  %v729_v32 = vrot.slane %v3065_v39, 4 }
  0xb3   : > { %v798_v6 = vsel %vm797_vm4, %v773_v35, %v796_v40  ;;  %361 = vrot.lane.b32.xlu1 %v2898_v9, %s2797_s17  ;;  %v2381_v41 = vld [vmem:[#allocation3 + $0x90] sm:$0xf] }
  0xb4   : > { %813 = vst [vmem:[#allocation3 + $0x150] sm:$0xff] %v798_v6  ;;  %v2382_v42 = vor.u32 %v2669_v38, %v2381_v41 }
  0xb5   : > { %359 = vrot.lane.b32.xlu0 %v2911_v14, %s2797_s17  ;;  %v497_v44 = vpop.permute.xlu1 %496 }
  0xb6   : > { %1278 = vmatpush.bf16.msra.mxu0 %v2382_v42  ;;  %v508_v45 = vrot.slane %v497_v44, 4 }
  0xb7   : > { %v779_v46 = vpop.permute.xlu0 %778  ;;  %353 = vrot.lane.b32.xlu2 %v2928_v18, %s2797_s17 }
  0xb8   : > { %v791_v47 = vrot.slane %v779_v46, 4  ;;  %816 = vst.msk [vmem:[#allocation3 + $0x164] sm:$0xf] %vm317_vm3, %v779_v46  ;;  %v519_v9 = vsel %vm302_vm0, %v508_v45, %v509_v58 }
  0xb9   : > { %v520_v48 = vsel %vm513_vm6, %v497_v44, %v519_v9  ;;  %v3081_v49 = vpop.permute.xlu2 %490 }
  0xba   : > { %v799_v14 = vsel %vm302_vm0, %v790_v13, %v791_v47  ;;  %537 = vst [vmem:[#allocation3 + $0x78] sm:$0xff] %v520_v48  ;;  %v505_v18 = vrot.slane %v3081_v49, 4 }
  0xbb   : > { %v800_v50 = vsel %vm797_vm4, %v3006_v43, %v799_v14  ;;  %351 = vrot.lane.b32.xlu1 %v2930_v19, %s2797_s17  ;;  %v2692_v59 = vld [vmem:[#allocation3 + $0x154] sm:$0xf] }
  0xbc   : > { %815 = vst [vmem:[#allocation3 + $0x15c] sm:$0xff] %v800_v50  ;;  %v515_v53 = vsel %vm513_vm6, %v3081_v49, %v505_v18 }
  0xbd   : > { %349 = vrot.lane.b32.xlu0 %v2915_v15, %s2797_s17  ;;  %v503_v51 = vpop.permute.xlu1 %502  ;;  %534 = vst.msk [vmem:[#allocation3 + $0x68] sm:$0xf] %vm317_vm3, %v515_v53  ;;  %v2477_v15 = vld [vmem:[#allocation3 + $0x150] sm:$0xf] }
  0xbe   : > { %v511_v52 = vrot.slane %v503_v51, 4 }
  0xbf   : > { %v501_v54 = vpop.permute.xlu0 %500 }
  0xc0   : > { %v524_v43 = vsel %vm513_vm6, %v503_v51, %v511_v52  ;;  %v510_v55 = vrot.slane %v501_v54, 4 }
  0xc1   : > { %540 = vst.msk [vmem:[#allocation3 + $0x8c] sm:$0xf] %vm317_vm3, %v524_v43  ;;  %v3098_v19 = vpop.permute.xlu2 %837  ;;  %v2369_v21 = vld [vmem:[#allocation3 + $0x78] sm:$0xf] }
  0xc2   : > { %v522_v56 = vsel %vm302_vm0, %v510_v55, %v511_v52  ;;  %v853_v43 = vrot.slane %v3098_v19, 4 }
  0xc3   : > { %v523_v57 = vsel %vm513_vm6, %v501_v54, %v522_v56  ;;  %v2693_v58 = vld [vmem:[#allocation3 + $0x158] sm:$0xf0]  ;;  %v2479_v60 = vld [vmem:[#allocation3 + $0x15c] sm:$0xf0] }
  0xc4   : > { %539 = vst [vmem:[#allocation3 + $0x84] sm:$0xff] %v523_v57  ;;  %v2478_v61 = vor.u32 %v2693_v58, %v2477_v15  ;;  %v2482_v62 = vor.u32 %v2692_v59, %v2479_v60 }
  0xc5   : > { %355 = vrot.lane.b32.xlu0 %v2922_v17, %s2797_s17  ;;  %v850_v0 = vpop.permute.xlu1 %849 }
  0xc6   : > { %1292 = vmatpush.bf16.msra.mxu1 %v2478_v61  ;;  %1334 = vmatpush.bf16.msra.mxu2 %v2482_v62  ;;  %v859_v4 = vrot.slane %v850_v0, 4 }
  0xc7   : > { %v848_v5 = vpop.permute.xlu0 %847 }
  0xc8   : > { %v858_v8 = vrot.slane %v848_v5, 4  ;;  %883 = vst.msk [vmem:[#allocation3 + $0x1a0] sm:$0xf] %vm317_vm3, %v848_v5  ;;  %v868_v11 = vsel %vm302_vm0, %v859_v4, %v860_v63 }
  0xc9   : > { %v869_v12 = vsel %vm862_vm7, %v850_v0, %v868_v11  ;;  %v3109_v16 = vpop.permute.xlu2 %843 }
  0xca   : > { %v866_v20 = vsel %vm302_vm0, %v857_v2, %v858_v8  ;;  %884 = vst [vmem:[#allocation3 + $0x1a4] sm:$0xff] %v869_v12  ;;  %v856_v53 = vrot.slane %v3109_v16, 4 }
  0xcb   : > { %v867_v17 = vsel %vm862_vm7, %v3035_v3, %v866_v20  ;;  %v2666_v22 = vld [vmem:[#allocation3 + $0x80] sm:$0xf0]  ;;  %881 = vst.msk [vmem:[#allocation3 + $0x194] sm:$0xf] %vm317_vm3, %v3109_v16  ;;  %v2395_v20 = vld [vmem:[#allocation3 + $0xb4] sm:$0xf0] }
  0xcc   : > { %882 = vst [vmem:[#allocation3 + $0x198] sm:$0xff] %v867_v17  ;;  %v2370_v7 = vor.u32 %v2666_v22, %v2369_v21 }
  0xcd   : > { %v718_v23 = vpop.permute.xlu1 %717 }
  0xce   : > { %1279 = vmatpush.bf16.msra.mxu0 %v2370_v7  ;;  %v728_v24 = vrot.slane %v718_v23, 4  ;;  %753 = vst.msk [vmem:[#allocation3 + $0x140] sm:$0xf] %vm317_vm3, %v718_v23 }
  0xcf   : > { %v716_v25 = vpop.permute.xlu0 %715 }
  0xd0   : > { %v727_v26 = vrot.slane %v716_v25, 4 }
  0xd1   : > { %v2702_v27 = vld [vmem:[#allocation3 + $0x1a0] sm:$0xf0]  ;;  %v3117_v28 = vpop.permute.xlu2 %711 }
  0xd2   : > { %v736_v3 = vsel %vm302_vm0, %v727_v26, %v728_v24  ;;  %v725_v24 = vrot.slane %v3117_v28, 4  ;;  %v2668_v26 = vld [vmem:[#allocation3 + $0x94] sm:$0xf] }
  0xd3   : > { %v737_v29 = vsel %vm732_vm8, %v716_v25, %v736_v3  ;;  %v2513_v10 = vld [vmem:[#allocation3 + $0x198] sm:$0xf] }
  0xd4   : > { %752 = vst [vmem:[#allocation3 + $0x138] sm:$0xff] %v737_v29  ;;  %v2514_v30 = vor.u32 %v2702_v27, %v2513_v10  ;;  %v2383_v27 = vld [vmem:[#allocation3 + $0x9c] sm:$0xf0] }
  0xd5   : > { %v489_v31 = vpop.permute.xlu1 %488 }
  0xd6   : > { %1311 = vmatpush.bf16.msra.mxu3 %v2514_v30  ;;  %v504_v33 = vrot.slane %v489_v31, 4 }
  0xd7   : > { %v722_v34 = vpop.permute.xlu0 %721 }
  0xd8   : > { %v730_v36 = vrot.slane %v722_v34, 4  ;;  %755 = vst.msk [vmem:[#allocation3 + $0x14c] sm:$0xf] %vm317_vm3, %v722_v34  ;;  %v512_v35 = vsel %vm302_vm0, %v504_v33, %v505_v18  ;;  %v2371_v34 = vld [vmem:[#allocation3 + $0x84] sm:$0xf0] }
  0xd9   : > { %v514_v37 = vsel %vm513_vm6, %v489_v31, %v512_v35  ;;  %v3127_v38 = vpop.permute.xlu2 %429  ;;  %v2386_v31 = vor.u32 %v2668_v26, %v2383_v27  ;;  %v2665_v35 = vld [vmem:[#allocation3 + $0x7c] sm:$0xf] }
  0xda   : > { %v738_v40 = vsel %vm302_vm0, %v729_v32, %v730_v36  ;;  %533 = vst [vmem:[#allocation3 + $0x60] sm:$0xff] %v514_v37  ;;  %v440_v41 = vrot.slane %v3127_v38, 4  ;;  %v2374_v37 = vor.u32 %v2665_v35, %v2371_v34  ;;  %v2649_v35 = vld [vmem:[%s3487_s3 + $0x10] sm:$0xf0] }
  0xdb   : > { %v739_v6 = vsel %vm732_vm8, %v3065_v39, %v738_v40  ;;  %v2465_v48 = vld [vmem:[#allocation3 + $0x138] sm:$0xf]  ;;  %v2689_v50 = vld [vmem:[#allocation3 + $0x13c] sm:$0xf] }
  0xdc   : > { %754 = vst [vmem:[#allocation3 + $0x144] sm:$0xff] %v739_v6  ;;  %v452_v13 = vsel %vm444_vm9, %v3127_v38, %v440_v41 }
  0xdd   : > { %v495_v42 = vpop.permute.xlu1 %494  ;;  %469 = vst.msk [vmem:[#allocation3 + $0x50] sm:$0xf] %vm317_vm3, %v452_v13 }
  0xde   : > { %v507_v44 = vrot.slane %v495_v42, 4 }
  0xdf   : > { %v493_v45 = vpop.permute.xlu0 %492 }
  0xe0   : > { %v506_v46 = vrot.slane %v493_v45, 4  ;;  %v518_v47 = vsel %vm513_vm6, %v495_v42, %v507_v44 }
  0xe1   : > { %536 = vst.msk [vmem:[#allocation3 + $0x74] sm:$0xf] %vm317_vm3, %v518_v47  ;;  %v3140_v39 = vpop.permute.xlu2 %650  ;;  %v2357_v62 = vld [vmem:[#allocation3 + $0x60] sm:$0xf]  ;;  %v2662_v13 = vld [vmem:[#allocation3 + $0x64] sm:$0xf] }
  0xe2   : > { %v516_v9 = vsel %vm302_vm0, %v506_v46, %v507_v44 }
  0xe3   : > { %v517_v49 = vsel %vm513_vm6, %v493_v45, %v516_v9  ;;  %v2690_v14 = vld [vmem:[#allocation3 + $0x140] sm:$0xf0]  ;;  %v2467_v18 = vld [vmem:[#allocation3 + $0x144] sm:$0xf0] }
  0xe4   : > { %535 = vst [vmem:[#allocation3 + $0x6c] sm:$0xff] %v517_v49  ;;  %v2466_v51 = vor.u32 %v2690_v14, %v2465_v48  ;;  %v2470_v52 = vor.u32 %v2689_v50, %v2467_v18 }
  0xe5   : > { %v842_v54 = vpop.permute.xlu1 %841 }
  0xe6   : > { %1293 = vmatpush.bf16.msra.mxu1 %v2466_v51  ;;  %1335 = vmatpush.bf16.msra.mxu2 %v2470_v52  ;;  %v855_v55 = vrot.slane %v842_v54, 4 }
  0xe7   : > { %v840_v56 = vpop.permute.xlu0 %839 }
  0xe8   : > { %v854_v15 = vrot.slane %v840_v56, 4  ;;  %879 = vst.msk [vmem:[#allocation3 + $0x188] sm:$0xf] %vm317_vm3, %v840_v56  ;;  %v864_v57 = vsel %vm302_vm0, %v855_v55, %v856_v53  ;;  %v662_v53 = vrot.slane %v3140_v39, 4  ;;  %v614_v55 = vld [vmem:[#allocation2 + $0x24] sm:$0xff] }
  0xe9   : > { %v865_v58 = vsel %vm862_vm7, %v842_v54, %v864_v57  ;;  %v3149_v59 = vpop.permute.xlu2 %656  ;;  %v616_v57 = vld [vmem:[#allocation2 + $0x34] sm:$0xff]  ;;  %622 = vst [vmem:[#allocation3 + $0xd8] sm:$0xff] %v614_v55 }
  0xea   : > { %v861_v60 = vsel %vm302_vm0, %v853_v43, %v854_v15  ;;  %880 = vst [vmem:[#allocation3 + $0x18c] sm:$0xff] %v865_v58  ;;  %v665_v51 = vrot.slane %v3149_v59, 4 }
  0xeb   : > { %v863_v61 = vsel %vm862_vm7, %v3098_v19, %v861_v60  ;;  %v2663_v63 = vld [vmem:[#allocation3 + $0x68] sm:$0xf0]  ;;  %690 = vst.msk [vmem:[#allocation3 + $0x11c] sm:$0xf] %vm317_vm3, %v3149_v59  ;;  %v2359_v6 = vld [vmem:[#allocation3 + $0x6c] sm:$0xf0] }
  0xec   : > { %878 = vst [vmem:[#allocation3 + $0x180] sm:$0xff] %v863_v61  ;;  %v2358_v0 = vor.u32 %v2663_v63, %v2357_v62  ;;  %v2671_v19 = vld [vmem:[#allocation3 + $0xac] sm:$0xf]  ;;  %v2362_v45 = vor.u32 %v2662_v13, %v2359_v6 }
  0xed   : > { %v710_v2 = vpop.permute.xlu1 %709  ;;  %v2398_v7 = vor.u32 %v2671_v19, %v2395_v20  ;;  %624 = vst [vmem:[#allocation3 + $0xe4] sm:$0xff] %v616_v57  ;;  %v612_v19 = vld [vmem:[#allocation2 + $0x14] sm:$0xff] }
  0xee   : > { %1280 = vmatpush.bf16.msra.mxu0 %v2358_v0  ;;  %v724_v4 = vrot.slane %v710_v2, 4  ;;  %749 = vst.msk [vmem:[#allocation3 + $0x128] sm:$0xf] %vm317_vm3, %v710_v2 }
  0xef   : > { %v708_v5 = vpop.permute.xlu0 %707  ;;  %620 = vst [vmem:[#allocation3 + $0xcc] sm:$0xff] %v612_v19 }
  0xf0   : > { %v723_v8 = vrot.slane %v708_v5, 4 }
  0xf1   : > { %v2699_v11 = vld [vmem:[#allocation3 + $0x188] sm:$0xf0]  ;;  %v3157_v12 = vpop.permute.xlu2 %423 }
  0xf2   : > { %v731_v16 = vsel %vm302_vm0, %v723_v8, %v724_v4 }
  0xf3   : > { %v733_v17 = vsel %vm732_vm8, %v708_v5, %v731_v16  ;;  %v2501_v21 = vld [vmem:[#allocation3 + $0x180] sm:$0xf]  ;;  %v610_v5 = vld [vmem:[#allocation2 + $0x4] sm:$0xff] }
  0xf4   : > { %748 = vst [vmem:[#allocation3 + $0x120] sm:$0xff] %v733_v17  ;;  %v2502_v22 = vor.u32 %v2699_v11, %v2501_v21  ;;  %v2678_v57 = vld [vmem:[#allocation3 + $0xe0] sm:$0xf0] }
  0xf5   : > { %v428_v23 = vpop.permute.xlu1 %427  ;;  %618 = vst [vmem:[#allocation3 + $0xc0] sm:$0xff] %v610_v5 }
  0xf6   : > { %1312 = vmatpush.bf16.msra.mxu3 %v2502_v22  ;;  %v439_v25 = vrot.slane %v428_v23, 4 }
  0xf7   : > { %v714_v3 = vpop.permute.xlu0 %713 }
  0xf8   : > { %v726_v29 = vrot.slane %v714_v3, 4  ;;  %751 = vst.msk [vmem:[#allocation3 + $0x134] sm:$0xf] %vm317_vm3, %v714_v3  ;;  %v450_v10 = vsel %vm302_vm0, %v439_v25, %v440_v41 }
  0xf9   : > { %v451_v30 = vsel %vm444_vm9, %v428_v23, %v450_v10  ;;  %v3167_v32 = vpop.permute.xlu2 %644 }
  0xfa   : > { %1319 = vmatpush.bf16.msrb.mxu3 %v2398_v7  ;;  %v734_v33 = vsel %vm302_vm0, %v725_v24, %v726_v29  ;;  %468 = vst [vmem:[#allocation3 + $0x48] sm:$0xff] %v451_v30  ;;  %v659_v10 = vrot.slane %v3167_v32, 4 }
  0xfb   : > { %v735_v36 = vsel %vm732_vm8, %v3117_v28, %v734_v33  ;;  %684 = vst.msk [vmem:[#allocation3 + $0xf8] sm:$0xf] %vm317_vm3, %v3167_v32  ;;  %v2453_v47 = vld [vmem:[#allocation3 + $0x120] sm:$0xf]  ;;  %v2686_v49 = vld [vmem:[#allocation3 + $0x124] sm:$0xf] }
  0xfc   : > { %750 = vst [vmem:[#allocation3 + $0x12c] sm:$0xff] %v735_v36  ;;  %v2305_v36 = vld [vmem:[%s3487_s3 + $0x8] sm:$0xf] }
  0xfd   : > { %v434_v38 = vpop.permute.xlu1 %433  ;;  %v3209_v32 = vor.u32 %v2649_v35, %v2305_v36 }
  0xfe   : > { %1320 = vmatpush.bf16.msrb.mxu3 %v2386_v31  ;;  %v442_v40 = vrot.slane %v434_v38, 4  ;;  %v437_v31 = vrot.slane %v3157_v12, 4 }
  0xff   : > { %v432_v41 = vpop.permute.xlu0 %431  ;;  %2523 = vmatmul.msk.bf16.vlgmr.msra.gmra.mxu3 %vm1273_vm12, %v3209_v32 }
 0x100   : > { %v441_v42 = vrot.slane %v432_v41, 4  ;;  %v455_v44 = vsel %vm444_vm9, %v434_v38, %v442_v40 }
 0x101   : > { %471 = vst.msk [vmem:[#allocation3 + $0x5c] sm:$0xf] %vm317_vm3, %v455_v44  ;;  %v3176_v28 = vpop.permute.xlu2 %357  ;;  %v2345_v61 = vld [vmem:[#allocation3 + $0x48] sm:$0xf]  ;;  %v2659_v62 = vld [vmem:[#allocation3 + $0x4c] sm:$0xf] }
 0x102   : > { %1321 = vmatpush.bf16.msrb.mxu3 %v2374_v37  ;;  %v453_v46 = vsel %vm302_vm0, %v441_v42, %v442_v40 }
 0x103   : > { %v454_v9 = vsel %vm444_vm9, %v432_v41, %v453_v46  ;;  %v2687_v48 = vld [vmem:[#allocation3 + $0x128] sm:$0xf0]  ;;  %v2455_v14 = vld [vmem:[#allocation3 + $0x12c] sm:$0xf0] }
 0x104   : > { %470 = vst [vmem:[#allocation3 + $0x54] sm:$0xff] %v454_v9  ;;  %v2454_v50 = vor.u32 %v2687_v48, %v2453_v47  ;;  %v2458_v18 = vor.u32 %v2686_v49, %v2455_v14 }
 0x105   : > { %v655_v52 = vpop.permute.xlu1 %654 }
 0x106   : > { %1322 = vmatpush.bf16.msrb.mxu3 %v2362_v45  ;;  %1294 = vmatpush.bf16.msra.mxu1 %v2454_v50  ;;  %v664_v54 = vrot.slane %v655_v52, 4 }
 0x107   : > { %1336 = vmatpush.bf16.msra.mxu2 %v2458_v18  ;;  %v653_v43 = vpop.permute.xlu0 %652 }
 0x108   : > { %v663_v56 = vrot.slane %v653_v43, 4  ;;  %688 = vst.msk [vmem:[#allocation3 + $0x110] sm:$0xf] %vm317_vm3, %v653_v43  ;;  %v673_v15 = vsel %vm302_vm0, %v664_v54, %v665_v51 }
 0x109   : > { %v674_v58 = vsel %vm667_vm10, %v655_v52, %v673_v15  ;;  %v3185_v60 = vpop.permute.xlu2 %363  ;;  %v369_v52 = vrot.slane %v3176_v28, 4  ;;  %v2417_v15 = vld [vmem:[#allocation3 + $0xd8] sm:$0xf] }
 0x10a   : > { %v671_v59 = vsel %vm302_vm0, %v662_v53, %v663_v56  ;;  %689 = vst [vmem:[#allocation3 + $0x114] sm:$0xff] %v674_v58  ;;  %v372_v63 = vrot.slane %v3185_v60, 4  ;;  %v2677_v58 = vld [vmem:[#allocation3 + $0xdc] sm:$0xf]  ;;  %v2418_v19 = vor.u32 %v2678_v57, %v2417_v15  ;;  %v959_v15 = vld [vmem:[%s3489_s5 + $0x8] sm:$0xff] }
 0x10b   : > { %v672_v0 = vsel %vm667_vm10, %v3140_v39, %v671_v59  ;;  %v2660_v2 = vld [vmem:[#allocation3 + $0x50] sm:$0xf0]  ;;  %v2347_v4 = vld [vmem:[#allocation3 + $0x54] sm:$0xf0]  ;;  %v2419_v59 = vld [vmem:[#allocation3 + $0xe4] sm:$0xf0]  ;;  %967 = vperm.xlu2 %2755, %v959_v15  }
 0x10c   : > { %687 = vst [vmem:[#allocation3 + $0x108] sm:$0xff] %v672_v0  ;;  %v2346_v8 = vor.u32 %v2660_v2, %v2345_v61  ;;  %v2350_v11 = vor.u32 %v2659_v62, %v2347_v4  ;;  %v386_v16 = vsel %vm375_vm11, %v3185_v60, %v372_v63  ;;  %v2377_v57 = vld [vmem:[#allocation3 + $0x80] sm:$0xf] }
 0x10d   : > { %v422_v20 = vpop.permute.xlu1 %421  ;;  %402 = vst.msk [vmem:[#allocation3 + $0x2c] sm:$0xf] %vm317_vm3, %v386_v16 }
 0x10e   : > { %1281 = vmatpush.bf16.msra.mxu0 %v2346_v8  ;;  %1323 = vmatpush.bf16.msrb.mxu3 %v2350_v11  ;;  %v436_v17 = vrot.slane %v422_v20, 4 }
 0x10f   : > { %v420_v39 = vpop.permute.xlu0 %419 }
 0x110   : > { %v446_v21 = vsel %vm444_vm9, %v422_v20, %v436_v17  ;;  %v435_v22 = vrot.slane %v420_v39, 4  ;;  %v2422_v20 = vor.u32 %v2677_v58, %v2419_v59  ;;  %v2798_v58 = vmov 1  }
 0x111   : > { %465 = vst.msk [vmem:[#allocation3 + $0x38] sm:$0xf] %vm317_vm3, %v446_v21  ;;  %v2684_v7 = vld [vmem:[#allocation3 + $0x110] sm:$0xf0]  ;;  %v2443_v23 = vld [vmem:[#allocation3 + $0x114] sm:$0xf0]  ;;  %2756 = vset.pattern.permute.xlu0 %v2798_v58 }
 0x112   : > { %v443_v24 = vsel %vm302_vm0, %v435_v22, %v436_v17  ;;  %v2675_v21 = vld [vmem:[#allocation3 + $0xc8] sm:$0xf0] }
 0x113   : > { %v445_v25 = vsel %vm444_vm9, %v420_v39, %v443_v24  ;;  %v2441_v26 = vld [vmem:[#allocation3 + $0x108] sm:$0xf]  ;;  %v2683_v27 = vld [vmem:[#allocation3 + $0x10c] sm:$0xf]  ;;  %v2405_v39 = vld [vmem:[#allocation3 + $0xc0] sm:$0xf] }
 0x114   : > { %464 = vst [vmem:[#allocation3 + $0x30] sm:$0xff] %v445_v25  ;;  %v2442_v3 = vor.u32 %v2684_v7, %v2441_v26  ;;  %v2446_v29 = vor.u32 %v2683_v27, %v2443_v23  ;;  %v2407_v23 = vld [vmem:[#allocation3 + $0xcc] sm:$0xf0]  ;;  %v2673_v27 = vld [vmem:[#allocation3 + $0xb8] sm:$0xf0] }
 0x115   : > { %v643_v30 = vpop.permute.xlu1 %642  ;;  %v2401_v26 = vld [vmem:[#allocation3 + $0xb0] sm:$0xf] }
 0x116   : > { %1295 = vmatpush.bf16.msra.mxu1 %v2442_v3  ;;  %1337 = vmatpush.bf16.msra.mxu2 %v2446_v29  ;;  %v658_v33 = vrot.slane %v643_v30, 4  ;;  %v2406_v29 = vor.u32 %v2675_v21, %v2405_v39 }
 0x117   : > { %v426_v34 = vpop.permute.xlu0 %425 }
 0x118   : > { %v666_v37 = vsel %vm302_vm0, %v658_v33, %v659_v10  ;;  %v438_v38 = vrot.slane %v426_v34, 4  ;;  %v2703_v10 = vld [vmem:[#allocation3 + $0x1a8] sm:$0xf0] }
 0x119   : > { %v668_v40 = vsel %vm667_vm10, %v643_v30, %v666_v37  ;;  %v2647_v30 = vld [vmem:[%s3487_s3 + $0x4] sm:$0xf]  ;;  %v354_v37 = vpop.permute.xlu2 %353 }
 0x11a   : > { %683 = vst [vmem:[#allocation3 + $0xf0] sm:$0xff] %v668_v40  ;;  %v447_v6 = vsel %vm302_vm0, %v437_v31, %v438_v38  ;;  %v449_v41 = vsel %vm444_vm9, %v426_v34, %v438_v38  ;;  %v2299_v31 = vld [vmem:[%s3487_s3 + $0xc] sm:$0xf0]  ;;  %v2521_v38 = vld [vmem:[#allocation3 + $0x1a0] sm:$0xf] }
 0x11b   : > { %v448_v42 = vsel %vm444_vm9, %v3157_v12, %v447_v6  ;;  %467 = vst.msk [vmem:[#allocation3 + $0x44] sm:$0xf] %vm317_vm3, %v449_v41  ;;  %v2333_v9 = vld [vmem:[#allocation3 + $0x30] sm:$0xf]  ;;  %v2656_v14 = vld [vmem:[#allocation3 + $0x34] sm:$0xf] }
 0x11c   : > { %466 = vst [vmem:[#allocation3 + $0x3c] sm:$0xff] %v448_v42  ;;  %v3245_v41 = vld [vmem:[%s3489_s5] sm:$0xff] }
 0x11d   : > { %v649_v44 = vpop.permute.xlu1 %648  ;;  %v2670_v42 = vld [vmem:[#allocation3 + $0xa0] sm:$0xf0]  ;;  %962 = vperm.xlu1 %2754, %v3245_v41   ;;  %1422 = vperm.xlu0 %2756, %v3245_v41  }
 0x11e   : > { %v661_v13 = vrot.slane %v649_v44, 4  ;;  %686 = vst.msk [vmem:[#allocation3 + $0x104] sm:$0xf] %vm317_vm3, %v649_v44  ;;  %v3247_v44 = vor.u32 %v2647_v30, %v2299_v31  ;;  %v2341_v31 = vld [vmem:[#allocation3 + $0x38] sm:$0xf] }
 0x11f   : > { %v647_v45 = vpop.permute.xlu0 %646 }
 0x120   : > { %v660_v46 = vrot.slane %v647_v45, 4 }
 0x121   : > { %v2429_v0 = vld [vmem:[#allocation3 + $0xf0] sm:$0xf]  ;;  %v2680_v2 = vld [vmem:[#allocation3 + $0xf4] sm:$0xf] }
 0x122   : > { %v669_v47 = vsel %vm302_vm0, %v660_v46, %v661_v13  ;;  %v615_v13 = vld [vmem:[#allocation2 + $0x2c] sm:$0xf]  ;;  %v367_v46 = vrot.slane %v354_v37, 4 }
 0x123   : > { %v670_v48 = vsel %vm667_vm10, %v647_v45, %v669_v47  ;;  %v2657_v49 = vld [vmem:[#allocation3 + $0x38] sm:$0xf0]  ;;  %v2335_v50 = vld [vmem:[#allocation3 + $0x3c] sm:$0xf0]  ;;  %v2402_v47 = vor.u32 %v2673_v27, %v2401_v26  ;;  %623 = vst.msk [vmem:[#allocation3 + $0xe0] sm:$0xf] %vm317_vm3, %v615_v13 }
 0x124   : > { %685 = vst [vmem:[#allocation3 + $0xfc] sm:$0xff] %v670_v48  ;;  %v2334_v18 = vor.u32 %v2657_v49, %v2333_v9  ;;  %v2338_v12 = vor.u32 %v2656_v14, %v2335_v50  ;;  %v617_v45 = vld [vmem:[#allocation2 + $0x3c] sm:$0xf]  ;;  %v2522_v9 = vor.u32 %v2703_v10, %v2521_v38  ;;  %v2389_v48 = vld [vmem:[#allocation3 + $0x98] sm:$0xf]  ;;  %v2799_v10 = vmov 2  }
 0x125   : > { %v362_v51 = vpop.permute.xlu1 %361  ;;  %v2509_v14 = vld [vmem:[#allocation3 + $0x188] sm:$0xf]  ;;  %v2700_v50 = vld [vmem:[#allocation3 + $0x190] sm:$0xf0]  ;;  %625 = vst.msk [vmem:[#allocation3 + $0xec] sm:$0xf] %vm317_vm3, %v617_v45  ;;  %2757 = vset.pattern.permute.xlu1 %v2798_v58  ;;  %2758 = vset.pattern.permute.xlu2 %v2799_v10 }
 0x126   : > { %1282 = vmatpush.bf16.msra.mxu0 %v2334_v18  ;;  %1324 = vmatpush.bf16.msrb.mxu3 %v2338_v12  ;;  %v371_v53 = vrot.slane %v362_v51, 4  ;;  %v2390_v12 = vor.u32 %v2670_v42, %v2389_v48  ;;  %v2698_v26 = vld [vmem:[#allocation3 + $0x184] sm:$0xf]  ;;  %v2503_v27 = vld [vmem:[#allocation3 + $0x18c] sm:$0xf0] }
 0x127   : > { %v360_v54 = vpop.permute.xlu0 %359  ;;  %1426 = vperm.xlu1 %2757, %v959_v15   ;;  %v2506_v30 = vor.u32 %v2698_v26, %v2503_v27  ;;  %v2655_v38 = vld [vmem:[#allocation3 + $0x28] sm:$0xf0]  ;;  %1436 = vperm.xlu2 %2758, %v3245_v41   ;;  %v2461_v42 = vld [vmem:[#allocation3 + $0x128] sm:$0xf]  ;;  %v2688_v13 = vld [vmem:[#allocation3 + $0x130] sm:$0xf0] }
 0x128   : > { %v384_v43 = vsel %vm302_vm0, %v371_v53, %v372_v63  ;;  %v370_v55 = vrot.slane %v360_v54, 4  ;;  %2762 = vset.pattern.permute.xlu0 %v2799_v10  ;;  %v2449_v48 = vld [vmem:[#allocation3 + $0x110] sm:$0xf]  ;;  %v2437_v41 = vld [vmem:[#allocation3 + $0xf8] sm:$0xf] }
 0x129   : > { %v385_v56 = vsel %vm375_vm11, %v362_v51, %v384_v43  ;;  %v611_v51 = vld [vmem:[#allocation2 + $0xc] sm:$0xf]  ;;  %v613_v43 = vld [vmem:[#allocation2 + $0x1c] sm:$0xf] }
 0x12a   : > { %401 = vst [vmem:[#allocation3 + $0x24] sm:$0xff] %v385_v56  ;;  %v381_v61 = vsel %vm302_vm0, %v369_v52, %v370_v55  ;;  %v383_v62 = vsel %vm375_vm11, %v360_v54, %v370_v55  ;;  %v2510_v54 = vor.u32 %v2700_v50, %v2509_v14  ;;  %v2667_v56 = vld [vmem:[#allocation3 + $0x88] sm:$0xf0]  ;;  %v2682_v50 = vld [vmem:[#allocation3 + $0x100] sm:$0xf0] }
 0x12b   : > { %v382_v4 = vsel %vm375_vm11, %v3176_v28, %v381_v61  ;;  %400 = vst.msk [vmem:[#allocation3 + $0x20] sm:$0xf] %vm317_vm3, %v383_v62  ;;  %v2681_v60 = vld [vmem:[#allocation3 + $0xf8] sm:$0xf0]  ;;  %v2431_v63 = vld [vmem:[#allocation3 + $0xfc] sm:$0xf0]  ;;  %v2378_v59 = vor.u32 %v2667_v56, %v2377_v57 }
 0x12c   : > { %399 = vst [vmem:[#allocation3 + $0x18] sm:$0xff] %v382_v4  ;;  %v2430_v5 = vor.u32 %v2681_v60, %v2429_v0  ;;  %v2434_v8 = vor.u32 %v2680_v2, %v2431_v63  ;;  %v2674_v28 = vld [vmem:[#allocation3 + $0xc4] sm:$0xf]  ;;  %v2664_v61 = vld [vmem:[#allocation3 + $0x70] sm:$0xf0] }
 0x12d   : > { %v352_v11 = vpop.permute.xlu1 %351  ;;  %v2410_v35 = vor.u32 %v2674_v28, %v2407_v23  ;;  %619 = vst.msk [vmem:[#allocation3 + $0xc8] sm:$0xf] %vm317_vm3, %v611_v51  ;;  %v2365_v62 = vld [vmem:[#allocation3 + $0x68] sm:$0xf]  ;;  %v2497_v0 = vld [vmem:[#allocation3 + $0x170] sm:$0xf]  ;;  %v2438_v51 = vor.u32 %v2682_v50, %v2437_v41 }
 0x12e   : > { %1296 = vmatpush.bf16.msra.mxu1 %v2430_v5  ;;  %1338 = vmatpush.bf16.msra.mxu2 %v2434_v8  ;;  %v366_v16 = vrot.slane %v352_v11, 4  ;;  %621 = vst.msk [vmem:[#allocation3 + $0xd4] sm:$0xf] %vm317_vm3, %v613_v43  ;;  %v2697_v2 = vld [vmem:[#allocation3 + $0x178] sm:$0xf0]  ;;  %v2366_v5 = vor.u32 %v2664_v61, %v2365_v62 }
 0x12f   : > { %v350_v17 = vpop.permute.xlu0 %349  ;;  %v2701_v4 = vld [vmem:[#allocation3 + $0x19c] sm:$0xf]  ;;  %v2515_v60 = vld [vmem:[#allocation3 + $0x1a4] sm:$0xf0]  ;;  %v2498_v28 = vor.u32 %v2697_v2, %v2497_v0  ;;  %2759 = vset.pattern.permute.xlu1 %v2799_v10  ;;  %2761 = vset.pattern.permute.xlu2 %v2798_v58 }
 0x130   : > { %v377_v22 = vsel %vm375_vm11, %v352_v11, %v366_v16  ;;  %v365_v7 = vrot.slane %v350_v17, 4  ;;  %v2661_v63 = vld [vmem:[#allocation3 + $0x58] sm:$0xf0]  ;;  %v2297_v11 = vld [vmem:[%s3487_s3] sm:$0xf]  ;;  %1440 = vperm.xlu1 %2759, %v959_v15  }
 0x131   : > { %396 = vst.msk [vmem:[#allocation3 + $0x8] sm:$0xf] %vm317_vm3, %v377_v22  ;;  %v2654_v24 = vld [vmem:[#allocation3 + $0x20] sm:$0xf0]  ;;  %v2323_v25 = vld [vmem:[#allocation3 + $0x24] sm:$0xf0]  ;;  %v2518_v22 = vor.u32 %v2701_v4, %v2515_v60 }
 0x132   : > { %v374_v3 = vsel %vm302_vm0, %v365_v7, %v366_v16  ;;  %1297 = vmatpush.bf16.msra.mxu1 %v2418_v19  ;;  %1339 = vmatpush.bf16.msra.mxu2 %v2422_v20  ;;  %v2648_v16 = vld [vmem:[%s3487_s3 + $0x8] sm:$0xf0]  ;;  %v2353_v7 = vld [vmem:[#allocation3 + $0x50] sm:$0xf] }
 0x133   : > { %v376_v33 = vsel %vm375_vm11, %v350_v17, %v374_v3  ;;  %v2321_v34 = vld [vmem:[#allocation3 + $0x18] sm:$0xf]  ;;  %v2653_v36 = vld [vmem:[#allocation3 + $0x1c] sm:$0xf]  ;;  %v2298_v23 = vor.u32 %v2648_v16, %v2297_v11  ;;  %v2694_v3 = vld [vmem:[#allocation3 + $0x160] sm:$0xf0] }
 0x134   : > { %395 = vst [vmem:[#allocation3] sm:$0xff] %v376_v33  ;;  %v2322_v40 = vor.u32 %v2654_v24, %v2321_v34  ;;  %v2326_v6 = vor.u32 %v2653_v36, %v2323_v25  ;;  %v2485_v24 = vld [vmem:[#allocation3 + $0x158] sm:$0xf]  ;;  %v2354_v25 = vor.u32 %v2661_v63, %v2353_v7  ;;  %v2473_v36 = vld [vmem:[#allocation3 + $0x140] sm:$0xf] }
 0x135   : > { %v2486_v33 = vor.u32 %v2694_v3, %v2485_v24 }
 0x136   : > { %1283 = vmatpush.bf16.msra.mxu0 %v2322_v40  ;;  %1298 = vmatpush.bf16.msra.mxu1 %v2406_v29  ;;  %v2658_v29 = vld [vmem:[#allocation3 + $0x40] sm:$0xf0] }
 0x137   : > { %1325 = vmatpush.bf16.msrb.mxu3 %v2326_v6  ;;  %1340 = vmatpush.bf16.msra.mxu2 %v2410_v35  ;;  %v356_v49 = vpop.permute.xlu0 %355  ;;  %v2342_v34 = vor.u32 %v2658_v29, %v2341_v31  ;;  %v2691_v35 = vld [vmem:[#allocation3 + $0x148] sm:$0xf0] }
 0x138   : > { %v368_v18 = vrot.slane %v356_v49, 4  ;;  %v2474_v40 = vor.u32 %v2691_v35, %v2473_v36  ;;  %2760 = vset.pattern.permute.xlu1 %v2789_v1 }
 0x139   : > { %1299 = vmatmul.bf16.vlgmr.msra.gmra.mxu1 %v3247_v44 }
 0x13a   : > { %1361 = vmatpush.bf16.msrb.mxu1 %v2402_v47  ;;  %v378_v52 = vsel %vm302_vm0, %v367_v46, %v368_v18  ;;  %v380_v53 = vsel %vm375_vm11, %v356_v49, %v368_v18  ;;  %1341 = vmatmul.bf16.vlgmr.msra.gmra.mxu2 %v3247_v44  ;;  %v2317_v46 = vld [vmem:[#allocation3 + $0x8] sm:$0xf]  ;;  %v2462_v47 = vor.u32 %v2688_v13, %v2461_v42  ;;  %v2685_v49 = vld [vmem:[#allocation3 + $0x118] sm:$0xf0]  ;;  %v2425_v18 = vld [vmem:[#allocation3 + $0xe0] sm:$0xf] }
 0x13b   : > { %1395 = vmatpush.bf16.msrb.mxu2 %v2522_v9  ;;  %v379_v55 = vsel %vm375_vm11, %v354_v37, %v378_v52  ;;  %398 = vst.msk [vmem:[#allocation3 + $0x14] sm:$0xf] %vm317_vm3, %v380_v53  ;;  %v2309_v8 = vld [vmem:[#allocation3] sm:$0xf]  ;;  %v2650_v20 = vld [vmem:[#allocation3 + $0x4] sm:$0xf]  ;;  %v2450_v14 = vor.u32 %v2685_v49, %v2449_v48 }
 0x13c   : > { %397 = vst [vmem:[#allocation3 + $0xc] sm:$0xff] %v379_v55  ;;  %v2329_v37 = vld [vmem:[#allocation3 + $0x20] sm:$0xf]  ;;  %v2413_v53 = vld [vmem:[#allocation3 + $0xc8] sm:$0xf] }
 0x13d   : > { %v2330_v6 = vor.u32 %v2655_v38, %v2329_v37 }
 0x13e   : > { %1362 = vmatpush.bf16.msrb.mxu1 %v2390_v12  ;;  %v2679_v12 = vld [vmem:[#allocation3 + $0xe8] sm:$0xf0] }
 0x13f   : > { %1396 = vmatpush.bf16.msrb.mxu2 %v2510_v54  ;;  %v2426_v52 = vor.u32 %v2679_v12, %v2425_v18  ;;  %v2676_v54 = vld [vmem:[#allocation3 + $0xd0] sm:$0xf0] }
 0x140   : > { %v2414_v1 = vor.u32 %v2676_v54, %v2413_v53 }
 0x142   : > { %1363 = vmatpush.bf16.msrb.mxu1 %v2378_v59  ;;  %v2652_v45 = vld [vmem:[#allocation3 + $0x10] sm:$0xf0] }
 0x143   : > { %v2651_v19 = vld [vmem:[#allocation3 + $0x8] sm:$0xf0]  ;;  %v2311_v17 = vld [vmem:[#allocation3 + $0xc] sm:$0xf0]  ;;  %v2318_v9 = vor.u32 %v2652_v45, %v2317_v46 }
 0x144   : > { %v2310_v39 = vor.u32 %v2651_v19, %v2309_v8  ;;  %v2314_v21 = vor.u32 %v2650_v20, %v2311_v17 }
 0x146   : > { %1364 = vmatpush.bf16.msrb.mxu1 %v2366_v5  ;;  %1284 = vmatpush.bf16.msra.mxu0 %v2310_v39 }
 0x147   : > { %1326 = vmatpush.bf16.msrb.mxu3 %v2314_v21 }
 0x149   : > { %1285 = vmatmul.bf16.vlgmr.msra.gmra.mxu0 %v2298_v23 }
 0x14a   : > { %1353 = vmatpush.bf16.msrb.mxu0 %v2518_v22  ;;  %1365 = vmatpush.bf16.msrb.mxu1 %v2354_v25 }
 0x14b   : > { %1375 = vmatpush.bf16.msra.mxu3 %v2498_v28  ;;  %2525 = vmatmul.msk.bf16.vlgmr.msrb.gmra.mxu2 %vm1273_vm12, %v3209_v32  ;;  %v300_v28 = vld [vmem:[%s3484_s0] sm:$0x7] }
 0x14c   : > { %1327 = vmatmul.bf16.vlgmr.msrb.gmra.mxu3 %v2298_v23  ;;  %v3289_v29 = vperm.slane %v300_v28, 0  ;;  %v3291_v31 = vperm.slane %v300_v28, 1 }
 0x14e   : > { %1354 = vmatpush.bf16.msrb.mxu0 %v2506_v30  ;;  %1366 = vmatpush.bf16.msrb.mxu1 %v2342_v34 }
 0x14f   : > { %1376 = vmatpush.bf16.msra.mxu3 %v2486_v33 }
 0x152   : > { %1367 = vmatpush.bf16.msrb.mxu1 %v2330_v6 }
 0x153   : > { %1377 = vmatpush.bf16.msra.mxu3 %v2474_v40 }
 0x156   : > { %1368 = vmatpush.bf16.msrb.mxu1 %v2318_v9 }
 0x157   : > { %1378 = vmatpush.bf16.msra.mxu3 %v2462_v47 }
 0x159   : > { %1369 = vmatmul.bf16.vlgmr.msrb.gmra.mxu1 %v2298_v23  ;;  %2524 = vmatmul.msk.bf16.vlgmr.msrb.gmra.mxu0 %vm1273_vm12, %v3209_v32 }
 0x15b   : > { %1379 = vmatpush.bf16.msra.mxu3 %v2450_v14 }
 0x15f   : > { %1380 = vmatpush.bf16.msra.mxu3 %v2438_v51 }
 0x163   : > { %1381 = vmatpush.bf16.msra.mxu3 %v2426_v52 }
 0x165   : > { %v3280_v32 = vpop.permute.xlu2 %967 }
 0x167   : > { %1382 = vmatpush.bf16.msra.mxu3 %v2414_v1 }
 0x16a   : > { %1383 = vmatmul.bf16.vlgmr.msra.gmra.mxu3 %v3247_v44 }
 0x181   : > { %v1437_v24 = vpop.permute.xlu2 %1436 }
 0x182   : > { %v1314_v43 = vpop.f32.mrf.mxu3 }
 0x18a   : > { %v1316_v55 = vpop.f32.mrf.mxu3 }
 0x18f   : > { %v963_v56 = vpop.permute.xlu1 %962  ;;  %v1423_v20 = vpop.permute.xlu0 %1422 }
 0x199   : > { %v3283_v39 = vpop.permute.xlu1 %1426 }
 0x1a2   : > { %v1441_v6 = vpop.permute.xlu1 %1440 }
 0x1b6   : > { %v1300_v15 = vpop.f32.mrf.mxu1 }
 0x1bd   : > { %v1342_v0 = vpop.f32.mrf.mxu2 }
 0x1be   : > { %v1302_v63 = vpop.f32.mrf.mxu1 }
 0x1c5   : > { %v1344_v23 = vpop.f32.mrf.mxu2 }
 0x1c6   : > { %v1286_v57 = vpop.f32.mrf.mxu0 }
 0x1c7   : > { %v1287_v58 = vadd.f32 %v1286_v57, %v963_v56 }
 0x1c9   : > { %v1301_v59 = vadd.f32 %v1300_v15, %v1287_v58 }
 0x1cb   : > { %v1315_v62 = vadd.f32 %v1314_v43, %v1301_v59 }
 0x1cd   : > { %v1409_v8 = vmul.f32 0.01, %v1315_v62  ;;  %vm1403_vm13 = vcmp.ge.f32.partialorder %v1315_v62, 0.0 }
 0x1ce   : > { %v1288_v2 = vpop.f32.mrf.mxu0  ;;  %v1398_v50 = vpop.f32.mrf.mxu2 }
 0x1cf   : > { %v1328_v61 = vpop.f32.mrf.mxu3  ;;  %v1289_v60 = vadd.f32 %v1288_v2, %v3280_v32  ;;  %v1415_v19 = vsel %vm1403_vm13, %v1315_v62, %v1409_v8 }
 0x1d0   : > { %v1329_v4 = vadd.f32 %v1328_v61, %v963_v56  ;;  %v1429_v7 = vmul.f32 %v1423_v20, %v1415_v19 }
 0x1d1   : > { %v1303_v5 = vadd.f32 %v1302_v63, %v1289_v60 }
 0x1d2   : > { %v1343_v44 = vadd.f32 %v1342_v0, %v1329_v4  ;;  %v1443_v10 = vadd.f32 %v1437_v24, %v1429_v7 }
 0x1d3   : > { %v1317_v16 = vadd.f32 %v1316_v55, %v1303_v5 }
 0x1d4   : > { %v1456_v37 = vmul.f32 %v3289_v29, %v1443_v10 }
 0x1d5   : > { %v1412_v25 = vmul.f32 0.01, %v1317_v16  ;;  %vm1406_vm15 = vcmp.ge.f32.partialorder %v1317_v16, 0.0 }
 0x1d6   : > { %v1356_v17 = vpop.f32.mrf.mxu0  ;;  %v1370_v45 = vpop.f32.mrf.mxu1 }
 0x1d7   : > { %v1330_v11 = vpop.f32.mrf.mxu3  ;;  %v1357_v22 = vadd.f32 %v1356_v17, %v1343_v44  ;;  %v1418_v33 = vsel %vm1406_vm15, %v1317_v16, %v1412_v25  ;;  %v1371_v49 = vadd.f32 %v1370_v45, %v963_v56  ;;  %v3310_v56 = vperm.slane %v300_v28, 2  ;;  %v1400_v61 = vpop.f32.mrf.mxu2 }
 0x1d8   : > { %v1331_v21 = vadd.f32 %v1330_v11, %v3280_v32  ;;  %v1432_v38 = vmul.f32 %v3283_v39, %v1418_v33 }
 0x1d9   : > { %vm1404_vm14 = vcmp.ge.f32.partialorder %v1357_v22, 0.0  ;;  %v1410_v26 = vmul.f32 0.01, %v1357_v22 }
 0x1da   : > { %v1345_v27 = vadd.f32 %v1344_v23, %v1331_v21  ;;  %v1446_v47 = vadd.f32 %v1441_v6, %v1432_v38 }
 0x1db   : > { %v1416_v3 = vsel %vm1404_vm14, %v1357_v22, %v1410_v26 }
 0x1dc   : > { %v1430_v30 = vmul.f32 %v1423_v20, %v1416_v3  ;;  %v1459_v14 = vmul.f32 %v3289_v29, %v1446_v47 }
 0x1de   : > { %v1444_v34 = vadd.f32 %v1437_v24, %v1430_v30  ;;  %v1358_v36 = vpop.f32.mrf.mxu0  ;;  %v1372_v54 = vpop.f32.mrf.mxu1 }
 0x1df   : > { %v1359_v35 = vadd.f32 %v1358_v36, %v1345_v27  ;;  %v1373_v43 = vadd.f32 %v1372_v54, %v3280_v32 }
 0x1e0   : > { %v1457_v40 = vmul.f32 %v3291_v31, %v1444_v34 }
 0x1e1   : > { %vm1407_vm1 = vcmp.ge.f32.partialorder %v1359_v35, 0.0  ;;  %v1413_v42 = vmul.f32 0.01, %v1359_v35 }
 0x1e2   : > { %v1462_v13 = vpack.c.bf16 %v1457_v40, %v1456_v37 }
 0x1e3   : > { %v1419_v46 = vsel %vm1407_vm1, %v1359_v35, %v1413_v42 }
 0x1e4   : > { %1466 = vst [vmem:[#allocation2 + $0x4] sm:$0xff] %v1462_v13  ;;  %v1433_v9 = vmul.f32 %v3283_v39, %v1419_v46  ;;  %1688 = vrot.lane.b32.xlu2 %v1462_v13, %s2790_s10  ;;  %1656 = vrot.lane.b32.xlu0 %v1462_v13, %s2794_s14 }
 0x1e5   : > { %1624 = vrot.lane.b32.xlu1 %v1462_v13, %s2796_s16  ;;  %1612 = vst [vmem:[#allocation3 + $0x60] sm:$0xff] %v1462_v13 }
 0x1e6   : > { %v1447_v48 = vadd.f32 %v1441_v6, %v1433_v9 }
 0x1e8   : > { %v1460_v41 = vmul.f32 %v3291_v31, %v1447_v48 }
 0x1ea   : > { %v1464_v12 = vpack.c.bf16 %v1460_v41, %v1459_v14 }
 0x1eb   : > { %v3302_v52 = vld [vmem:[#allocation2] sm:$0xff] }
 0x1ec   : > { %1468 = vst [vmem:[#allocation2 + $0x14] sm:$0xff] %v1464_v12  ;;  %1582 = vrot.lane.b32.xlu2 %v3302_v52, %s2791_s11  ;;  %1548 = vrot.lane.b32.xlu0 %v3302_v52, %s2792_s12 }
 0x1ed   : > { %v1384_v18 = vpop.f32.mrf.mxu3  ;;  %1720 = vrot.lane.b32.xlu1 %v1462_v13, %s2793_s13  ;;  %1614 = vst [vmem:[#allocation3 + $0x6c] sm:$0xff] %v1464_v12 }
 0x1ee   : > { %v1385_v51 = vadd.f32 %v1384_v18, %v1371_v49 }
 0x1f0   : > { %v1399_v53 = vadd.f32 %v1398_v50, %v1385_v51 }
 0x1f2   : > { %vm1405_vm2 = vcmp.ge.f32.partialorder %v1399_v53, 0.0  ;;  %v1411_v1 = vmul.f32 0.01, %v1399_v53 }
 0x1f4   : > { %v1417_v55 = vsel %vm1405_vm2, %v1399_v53, %v1411_v1  ;;  %1660 = vrot.lane.b32.xlu2 %v1464_v12, %s2794_s14 }
 0x1f5   : > { %v1431_v15 = vmul.f32 %v1423_v20, %v1417_v55  ;;  %v1386_v57 = vpop.f32.mrf.mxu3  ;;  %1692 = vrot.lane.b32.xlu1 %v1464_v12, %s2790_s10  ;;  %v1576_v20 = vld [vmem:[#allocation2 + $0x10] sm:$0xff] }
 0x1f6   : > { %v1387_v58 = vadd.f32 %v1386_v57, %v1373_v43 }
 0x1f7   : > { %v1445_v59 = vadd.f32 %v1437_v24, %v1431_v15 }
 0x1f8   : > { %v1401_v62 = vadd.f32 %v1400_v61, %v1387_v58 }
 0x1f9   : > { %v1458_v0 = vmul.f32 %v3310_v56, %v1445_v59 }
 0x1fa   : > { %vm1408_vm13 = vcmp.ge.f32.partialorder %v1401_v62, 0.0  ;;  %v1414_v2 = vmul.f32 0.01, %v1401_v62 }
 0x1fb   : > { %v1463_v4 = vpack.c.bf16 %v1458_v0, %v1458_v0 }
 0x1fc   : > { %v1420_v60 = vsel %vm1408_vm13, %v1401_v62, %v1414_v2 }
 0x1fd   : > { %1467 = vst.msk [vmem:[#allocation2 + $0xc] sm:$0xf] %vm317_vm3, %v1463_v4  ;;  %v1434_v32 = vmul.f32 %v3283_v39, %v1420_v60 }
 0x1ff   : > { %v1448_v63 = vadd.f32 %v1441_v6, %v1434_v32 }
 0x201   : > { %v1461_v5 = vmul.f32 %v3310_v56, %v1448_v63 }
 0x203   : > { %v1465_v8 = vpack.c.bf16 %v1461_v5, %v1461_v5 }
 0x204   : > { %v1681_v44 = vld [vmem:[#allocation2 + $0xc] sm:$0xf] }
 0x205   : > { %v1649_v11 = vld [vmem:[#allocation2 + $0xc] sm:$0xf]  ;;  %1469 = vst.msk [vmem:[#allocation2 + $0x1c] sm:$0xf] %vm317_vm3, %v1465_v8  ;;  %1690 = vrot.lane.b32.xlu0 %v1681_v44, %s2790_s10 }
 0x206   : > { %v1617_v16 = vld [vmem:[#allocation2 + $0xc] sm:$0xf]  ;;  %1658 = vrot.lane.b32.xlu1 %v1649_v11, %s2794_s14 }
 0x207   : > { %1626 = vrot.lane.b32.xlu2 %v1617_v16, %s2796_s16  ;;  %v1609_v19 = vld [vmem:[#allocation2 + $0xc] sm:$0xf] }
 0x208   : > { %1613 = vst.msk [vmem:[#allocation3 + $0x68] sm:$0xf] %vm317_vm3, %v1609_v19  ;;  %v1575_v39 = vld [vmem:[#allocation2 + $0x8] sm:$0xff] }
 0x209   : > { %v1713_v21 = vld [vmem:[#allocation2 + $0xc] sm:$0xf] }
 0x20c   : > { %v1611_v17 = vld [vmem:[#allocation2 + $0x1c] sm:$0xf] }
 0x20d   : > { %1628 = vrot.lane.b32.xlu0 %v1464_v12, %s2796_s16  ;;  %1615 = vst.msk [vmem:[#allocation3 + $0x74] sm:$0xf] %vm317_vm3, %v1611_v17  ;;  %v1619_v22 = vld [vmem:[#allocation2 + $0x1c] sm:$0xf] }
 0x20e   : > { %1586 = vrot.lane.b32.xlu1 %v1576_v20, %s2791_s11  ;;  %v1683_v7 = vld [vmem:[#allocation2 + $0x1c] sm:$0xf] }
 0x20f   : > { %1552 = vrot.lane.b32.xlu2 %v1576_v20, %s2792_s12  ;;  %v1651_v28 = vld [vmem:[#allocation2 + $0x1c] sm:$0xf] }
 0x210   : > { %v1715_v23 = vld [vmem:[#allocation2 + $0x1c] sm:$0xf] }
 0x211   : > { %v1577_v24 = vld [vmem:[#allocation2 + $0x18] sm:$0xff] }
 0x215   : > { %1584 = vrot.lane.b32.xlu0 %v1575_v39, %s2791_s11 }
 0x216   : > { %1550 = vrot.lane.b32.xlu1 %v1575_v39, %s2792_s12 }
 0x217   : > { %1722 = vrot.lane.b32.xlu2 %v1713_v21, %s2793_s13 }
 0x21d   : > { %1724 = vrot.lane.b32.xlu0 %v1464_v12, %s2793_s13 }
 0x21e   : > { %1630 = vrot.lane.b32.xlu1 %v1619_v22, %s2796_s16 }
 0x21f   : > { %1694 = vrot.lane.b32.xlu2 %v1683_v7, %s2790_s10 }
 0x225   : > { %1516 = vrot.lane.b32.xlu0 %v1575_v39, %s2795_s15 }
 0x226   : > { %1518 = vrot.lane.b32.xlu1 %v1576_v20, %s2795_s15 }
 0x227   : > { %1514 = vrot.lane.b32.xlu2 %v3302_v52, %s2795_s15 }
 0x22d   : > { %1662 = vrot.lane.b32.xlu0 %v1651_v28, %s2794_s14 }
 0x22e   : > { %1726 = vrot.lane.b32.xlu1 %v1715_v23, %s2793_s13 }
 0x22f   : > { %1588 = vrot.lane.b32.xlu2 %v1577_v24, %s2791_s11 }
 0x235   : > { %1480 = vrot.lane.b32.xlu0 %v3302_v52, %s2797_s17 }
 0x236   : > { %1482 = vrot.lane.b32.xlu1 %v1575_v39, %s2797_s17 }
 0x237   : > { %1520 = vrot.lane.b32.xlu2 %v1577_v24, %s2795_s15 }
 0x23d   : > { %1554 = vrot.lane.b32.xlu0 %v1577_v24, %s2792_s12 }
 0x23e   : > { %v1689_v25 = vpop.permute.xlu2 %1688 }
 0x23f   : > { %1484 = vrot.lane.b32.xlu2 %v1576_v20, %s2797_s17  ;;  %v1696_v49 = vrot.slane %v1689_v25, 4 }
 0x245   : > { %1486 = vrot.lane.b32.xlu0 %v1577_v24, %s2797_s17 }
 0x246   : > { %v3347_v26 = vpop.permute.xlu2 %1582 }
 0x247   : > { %v1590_v63 = vrot.slane %v3347_v26, 4 }
 0x24e   : > { %v3349_v27 = vpop.permute.xlu2 %1660 }
 0x256   : > { %v1657_v35 = vpop.permute.xlu0 %1656 }
 0x257   : > { %v1625_v3 = vpop.permute.xlu1 %1624  ;;  %v1664_v14 = vrot.slane %v1657_v35, 4 }
 0x258   : > { %v1632_v30 = vrot.slane %v1625_v3, 4 }
 0x25e   : > { %v1549_v40 = vpop.permute.xlu0 %1548 }
 0x25f   : > { %v1721_v37 = vpop.permute.xlu1 %1720  ;;  %v1556_v5 = vrot.slane %v1549_v40, 4 }
 0x260   : > { %v1728_v13 = vrot.slane %v1721_v37, 4 }
 0x261   : > { %v1627_v10 = vpop.permute.xlu2 %1626 }
 0x262   : > { %v1633_v33 = vrot.slane %v1627_v10, 4  ;;  %1645 = vst.msk [vmem:[#allocation3 + $0x80] sm:$0xf] %vm317_vm3, %v1627_v10 }
 0x264   : > { %v1636_v34 = vsel %vm302_vm0, %v1632_v30, %v1633_v33 }
 0x265   : > { %v1637_v36 = vsel %vm667_vm10, %v1625_v3, %v1636_v34 }
 0x266   : > { %1644 = vst [vmem:[#allocation3 + $0x78] sm:$0xff] %v1637_v36 }
 0x267   : > { %v1693_v6 = vpop.permute.xlu1 %1692 }
 0x268   : > { %v1698_v12 = vrot.slane %v1693_v6, 4 }
 0x269   : > { %v3354_v38 = vpop.permute.xlu2 %1552 }
 0x271   : > { %v1723_v42 = vpop.permute.xlu2 %1722 }
 0x272   : > { %v1729_v45 = vrot.slane %v1723_v42, 4  ;;  %1741 = vst.msk [vmem:[#allocation3 + $0xc8] sm:$0xf] %vm317_vm3, %v1723_v42 }
 0x274   : > { %v1732_v46 = vsel %vm302_vm0, %v1728_v13, %v1729_v45 }
 0x275   : > { %v1733_v47 = vsel %vm862_vm7, %v1721_v37, %v1732_v46 }
 0x276   : > { %1740 = vst [vmem:[#allocation3 + $0xc0] sm:$0xff] %v1733_v47 }
 0x277   : > { %v1691_v9 = vpop.permute.xlu0 %1690 }
 0x278   : > { %v1659_v48 = vpop.permute.xlu1 %1658  ;;  %v1697_v41 = vrot.slane %v1691_v9, 4  ;;  %1709 = vst.msk [vmem:[#allocation3 + $0xb0] sm:$0xf] %vm317_vm3, %v1691_v9 }
 0x279   : > { %v1665_v50 = vrot.slane %v1659_v48, 4  ;;  %v1695_v18 = vpop.permute.xlu2 %1694  ;;  %1677 = vst.msk [vmem:[#allocation3 + $0x98] sm:$0xf] %vm317_vm3, %v1659_v48 }
 0x27a   : > { %v1699_v51 = vrot.slane %v1695_v18, 4  ;;  %v1700_v52 = vsel %vm302_vm0, %v1696_v49, %v1697_v41  ;;  %1711 = vst.msk [vmem:[#allocation3 + $0xbc] sm:$0xf] %vm317_vm3, %v1695_v18  ;;  %v1666_v41 = vrot.slane %v3349_v27, 4 }
 0x27b   : > { %v1668_v53 = vsel %vm302_vm0, %v1664_v14, %v1665_v50  ;;  %v1701_v54 = vsel %vm797_vm4, %v1689_v25, %v1700_v52 }
 0x27c   : > { %v1669_v1 = vsel %vm732_vm8, %v1657_v35, %v1668_v53  ;;  %v1702_v43 = vsel %vm302_vm0, %v1698_v12, %v1699_v51  ;;  %1708 = vst [vmem:[#allocation3 + $0xa8] sm:$0xff] %v1701_v54 }
 0x27d   : > { %v1703_v55 = vsel %vm797_vm4, %v1693_v6, %v1702_v43  ;;  %1676 = vst [vmem:[#allocation3 + $0x90] sm:$0xff] %v1669_v1  ;;  %vm1945_vm4 = vcmask 130048  }
 0x27e   : > { %1710 = vst [vmem:[#allocation3 + $0xb4] sm:$0xff] %v1703_v55 }
 0x27f   : > { %v1629_v15 = vpop.permute.xlu0 %1628 }
 0x280   : > { %v1587_v57 = vpop.permute.xlu1 %1586 }
 0x281   : > { %v1515_v58 = vpop.permute.xlu2 %1514  ;;  %v1592_v16 = vrot.slane %v1587_v57, 4 }
 0x282   : > { %v1522_v6 = vrot.slane %v1515_v58, 4 }
 0x283   : > { %v2620_v59 = vld [vmem:[#allocation3 + $0xa8] sm:$0xf]  ;;  %v2727_v61 = vld [vmem:[#allocation3 + $0xac] sm:$0xf] }
 0x285   : > { %v2728_v62 = vld [vmem:[#allocation3 + $0xb0] sm:$0xf0]  ;;  %v2622_v0 = vld [vmem:[#allocation3 + $0xb4] sm:$0xf0] }
 0x286   : > { %v2621_v2 = vor.u32 %v2728_v62, %v2620_v59  ;;  %v2625_v4 = vor.u32 %v2727_v61, %v2622_v0  ;;  %v2729_v59 = vld [vmem:[#allocation3 + $0xb8] sm:$0xf0]  ;;  %v2724_v0 = vld [vmem:[#allocation3 + $0x94] sm:$0xf] }
 0x287   : > { %v1585_v60 = vpop.permute.xlu0 %1584 }
 0x288   : > { %v1551_v32 = vpop.permute.xlu1 %1550  ;;  %v1591_v8 = vrot.slane %v1585_v60, 4  ;;  %1949 = vmatpush.bf16.msra.mxu0 %v2621_v2  ;;  %1977 = vmatpush.bf16.msra.mxu1 %v2625_v4  ;;  %v2632_v2 = vld [vmem:[#allocation3 + $0xc0] sm:$0xf]  ;;  %v2730_v4 = vld [vmem:[#allocation3 + $0xc4] sm:$0xf] }
 0x289   : > { %v1557_v44 = vrot.slane %v1551_v32, 4  ;;  %v1589_v11 = vpop.permute.xlu2 %1588 }
 0x28a   : > { %v1593_v19 = vrot.slane %v1589_v11, 4  ;;  %v1594_v20 = vsel %vm302_vm0, %v1590_v63, %v1591_v8  ;;  %v1596_v17 = vsel %vm582_vm5, %v1585_v60, %v1591_v8  ;;  %v2530_v60 = vld [vmem:[%s3488_s4 + $0x8] sm:$0xf0] }
 0x28b   : > { %v1560_v39 = vsel %vm302_vm0, %v1556_v5, %v1557_v44  ;;  %v1595_v21 = vsel %vm582_vm5, %v3347_v26, %v1594_v20  ;;  %1605 = vst.msk [vmem:[#allocation3 + $0x50] sm:$0xf] %vm317_vm3, %v1596_v17  ;;  %v1562_v7 = vsel %vm513_vm6, %v1551_v32, %v1557_v44  ;;  %v1634_v26 = vrot.slane %v1629_v15, 4 }
 0x28c   : > { %v1561_v22 = vsel %vm513_vm6, %v1549_v40, %v1560_v39  ;;  %v1597_v28 = vsel %vm302_vm0, %v1592_v16, %v1593_v19  ;;  %1604 = vst [vmem:[#allocation3 + $0x48] sm:$0xff] %v1595_v21  ;;  %v1599_v24 = vsel %vm582_vm5, %v1589_v11, %v1593_v19  ;;  %v2596_v21 = vld [vmem:[#allocation3 + $0x78] sm:$0xf] }
 0x28d   : > { %v1598_v23 = vsel %vm582_vm5, %v1587_v57, %v1597_v28  ;;  %1570 = vst [vmem:[#allocation3 + $0x30] sm:$0xff] %v1561_v22  ;;  %v2608_v57 = vld [vmem:[#allocation3 + $0x90] sm:$0xf] }
 0x28e   : > { %1571 = vst.msk [vmem:[#allocation3 + $0x38] sm:$0xf] %vm317_vm3, %v1562_v7  ;;  %v1558_v7 = vrot.slane %v3354_v38, 4 }
 0x28f   : > { %1606 = vst [vmem:[#allocation3 + $0x54] sm:$0xff] %v1598_v23  ;;  %v1725_v25 = vpop.permute.xlu0 %1724  ;;  %v2721_v23 = vld [vmem:[#allocation3 + $0x7c] sm:$0xf] }
 0x290   : > { %v1631_v3 = vpop.permute.xlu1 %1630  ;;  %1607 = vst.msk [vmem:[#allocation3 + $0x5c] sm:$0xf] %vm317_vm3, %v1599_v24  ;;  %v1730_v50 = vrot.slane %v1725_v25, 4 }
 0x291   : > { %v1635_v10 = vrot.slane %v1631_v3, 4  ;;  %v1521_v30 = vpop.permute.xlu2 %1520  ;;  %1647 = vst.msk [vmem:[#allocation3 + $0x8c] sm:$0xf] %vm317_vm3, %v1631_v3  ;;  %v1780_v3 = vld [vmem:[%s3490_s6] sm:$0xff] }
 0x292   : > { %v1525_v33 = vrot.slane %v1521_v30, 4  ;;  %1784 = vperm.xlu1 %2760, %v1780_v3   ;;  %2066 = vperm.xlu0 %2762, %v1780_v3  }
 0x293   : > { %v1638_v34 = vsel %vm302_vm0, %v1634_v26, %v1635_v10  ;;  %2052 = vperm.xlu2 %2761, %v1780_v3  }
 0x294   : > { %v1639_v36 = vsel %vm667_vm10, %v1629_v15, %v1638_v34  ;;  %v1531_v35 = vsel %vm444_vm9, %v1521_v30, %v1525_v33  ;;  %v2586_v34 = vld [vmem:[#allocation3 + $0x6c] sm:$0xf0] }
 0x295   : > { %1646 = vst [vmem:[#allocation3 + $0x84] sm:$0xff] %v1639_v36  ;;  %v2616_v36 = vld [vmem:[#allocation3 + $0x98] sm:$0xf] }
 0x296   : > { %1539 = vst.msk [vmem:[#allocation3 + $0x2c] sm:$0xf] %vm317_vm3, %v1531_v35 }
 0x297   : > { %v1517_v37 = vpop.permute.xlu0 %1516 }
 0x298   : > { %v1519_v40 = vpop.permute.xlu1 %1518  ;;  %v1523_v42 = vrot.slane %v1517_v37, 4 }
 0x299   : > { %v1524_v13 = vrot.slane %v1519_v40, 4 }
 0x29a   : > { %v1526_v45 = vsel %vm302_vm0, %v1522_v6, %v1523_v42  ;;  %v1528_v46 = vsel %vm444_vm9, %v1517_v37, %v1523_v42 }
 0x29b   : > { %v1529_v47 = vsel %vm302_vm0, %v1524_v13, %v1525_v33  ;;  %v1527_v9 = vsel %vm444_vm9, %v1515_v58, %v1526_v45  ;;  %1537 = vst.msk [vmem:[#allocation3 + $0x20] sm:$0xf] %vm317_vm3, %v1528_v46  ;;  %v2628_v58 = vld [vmem:[#allocation3 + $0xb0] sm:$0xf]  ;;  %v2719_v33 = vld [vmem:[#allocation3 + $0x68] sm:$0xf0] }
 0x29c   : > { %v1530_v48 = vsel %vm444_vm9, %v1519_v40, %v1529_v47  ;;  %1536 = vst [vmem:[#allocation3 + $0x18] sm:$0xff] %v1527_v9  ;;  %v2722_v17 = vld [vmem:[#allocation3 + $0x80] sm:$0xf0]  ;;  %v2598_v39 = vld [vmem:[#allocation3 + $0x84] sm:$0xf0]  ;;  %v2629_v22 = vor.u32 %v2729_v59, %v2628_v58 }
 0x29d   : > { %1538 = vst [vmem:[#allocation3 + $0x24] sm:$0xff] %v1530_v48  ;;  %v2597_v10 = vor.u32 %v2722_v17, %v2596_v21  ;;  %v2601_v30 = vor.u32 %v2721_v23, %v2598_v39  ;;  %v2584_v40 = vld [vmem:[#allocation3 + $0x60] sm:$0xf]  ;;  %v2718_v13 = vld [vmem:[#allocation3 + $0x64] sm:$0xf] }
 0x29e   : > { %v2723_v45 = vld [vmem:[#allocation3 + $0x88] sm:$0xf0]  ;;  %v2585_v46 = vor.u32 %v2719_v33, %v2584_v40  ;;  %v2589_v47 = vor.u32 %v2718_v13, %v2586_v34  ;;  %v2572_v9 = vld [vmem:[#allocation3 + $0x48] sm:$0xf]  ;;  %v2604_v48 = vld [vmem:[#allocation3 + $0x80] sm:$0xf] }
 0x29f   : > { %v1663_v49 = vpop.permute.xlu0 %1662  ;;  %v2712_v58 = vld [vmem:[#allocation3 + $0x34] sm:$0xf]  ;;  %v2711_v34 = vld [vmem:[#allocation3 + $0x28] sm:$0xf0] }
 0x2a0   : > { %v1727_v14 = vpop.permute.xlu1 %1726  ;;  %v1667_v18 = vrot.slane %v1663_v49, 4  ;;  %1679 = vst.msk [vmem:[#allocation3 + $0xa4] sm:$0xf] %vm317_vm3, %v1663_v49  ;;  %v1485_v49 = vpop.permute.xlu2 %1484 }
 0x2a1   : > { %v1731_v12 = vrot.slane %v1727_v14, 4  ;;  %1743 = vst.msk [vmem:[#allocation3 + $0xd4] sm:$0xf] %vm317_vm3, %v1727_v14  ;;  %v2716_v14 = vld [vmem:[#allocation3 + $0x50] sm:$0xf0] }
 0x2a2   : > { %v1670_v51 = vsel %vm302_vm0, %v1666_v41, %v1667_v18  ;;  %v2715_v41 = vld [vmem:[#allocation3 + $0x4c] sm:$0xf]  ;;  %v2556_v17 = vld [vmem:[#allocation3 + $0x20] sm:$0xf] }
 0x2a3   : > { %v1734_v52 = vsel %vm302_vm0, %v1730_v50, %v1731_v12  ;;  %v1671_v53 = vsel %vm732_vm8, %v3349_v27, %v1670_v51  ;;  %v2704_v27 = vld [vmem:[%s3488_s4 + $0x4] sm:$0xf]  ;;  %v2605_v50 = vor.u32 %v2723_v45, %v2604_v48  ;;  %v2720_v12 = vld [vmem:[#allocation3 + $0x70] sm:$0xf0]  ;;  %v1490_v51 = vrot.slane %v1485_v49, 4 }
 0x2a4   : > { %v1735_v54 = vsel %vm862_vm7, %v1725_v25, %v1734_v52  ;;  %1678 = vst [vmem:[#allocation3 + $0x9c] sm:$0xff] %v1671_v53  ;;  %v3412_v25 = vor.u32 %v2704_v27, %v2530_v60  ;;  %v2573_v53 = vor.u32 %v2716_v14, %v2572_v9  ;;  %v2548_v60 = vld [vmem:[#allocation3 + $0x18] sm:$0xf]  ;;  %v2079_v48 = vlaneseq }
 0x2a5   : > { %1742 = vst [vmem:[#allocation3 + $0xcc] sm:$0xff] %v1735_v54 }
 0x2a7   : > { %v1481_v1 = vpop.permute.xlu0 %1480  ;;  %v2726_v24 = vld [vmem:[#allocation3 + $0xa0] sm:$0xf0] }
 0x2a8   : > { %v1483_v43 = vpop.permute.xlu1 %1482  ;;  %v1488_v55 = vrot.slane %v1481_v1, 4  ;;  %v2617_v6 = vor.u32 %v2726_v24, %v2616_v36  ;;  %v2557_v36 = vor.u32 %v2711_v34, %v2556_v17 }
 0x2a9   : > { %v1489_v15 = vrot.slane %v1483_v43, 4 }
 0x2ab   : > { %v1492_v61 = vsel %vm302_vm0, %v1488_v55, %v1489_v15  ;;  %v1494_v62 = vsel %vm375_vm11, %v1483_v43, %v1489_v15  ;;  %v2725_v63 = vld [vmem:[#allocation3 + $0x98] sm:$0xf0]  ;;  %v2610_v5 = vld [vmem:[#allocation3 + $0x9c] sm:$0xf0]  ;;  %v2580_v43 = vld [vmem:[#allocation3 + $0x50] sm:$0xf] }
 0x2ac   : > { %v1493_v32 = vsel %vm375_vm11, %v1481_v1, %v1492_v61  ;;  %1503 = vst.msk [vmem:[#allocation3 + $0x8] sm:$0xf] %vm317_vm3, %v1494_v62  ;;  %v2609_v8 = vor.u32 %v2725_v63, %v2608_v57  ;;  %v2613_v44 = vor.u32 %v2724_v0, %v2610_v5  ;;  %v2731_v11 = vld [vmem:[#allocation3 + $0xc8] sm:$0xf0]  ;;  %v2634_v16 = vld [vmem:[#allocation3 + $0xcc] sm:$0xf0] }
 0x2ad   : > { %1502 = vst [vmem:[#allocation3] sm:$0xff] %v1493_v32  ;;  %v2633_v19 = vor.u32 %v2731_v11, %v2632_v2  ;;  %v2637_v20 = vor.u32 %v2730_v4, %v2634_v16  ;;  %v2592_v1 = vld [vmem:[#allocation3 + $0x68] sm:$0xf]  ;;  %v2560_v57 = vld [vmem:[#allocation3 + $0x30] sm:$0xf] }
 0x2ae   : > { %1950 = vmatpush.bf16.msra.mxu0 %v2609_v8  ;;  %1978 = vmatpush.bf16.msra.mxu1 %v2613_v44  ;;  %v2593_v59 = vor.u32 %v2720_v12, %v2592_v1  ;;  %v2717_v61 = vld [vmem:[#allocation3 + $0x58] sm:$0xf0]  ;;  %v2710_v32 = vld [vmem:[#allocation3 + $0x20] sm:$0xf0]  ;;  %v2550_v5 = vld [vmem:[#allocation3 + $0x24] sm:$0xf0] }
 0x2af   : > { %v1555_v28 = vpop.permute.xlu0 %1554  ;;  %1970 = vmatpush.bf16.msra.mxu2 %v2633_v19  ;;  %1998 = vmatpush.bf16.msrb.mxu3 %v2637_v20  ;;  %v2709_v63 = vld [vmem:[#allocation3 + $0x1c] sm:$0xf]  ;;  %v2581_v8 = vor.u32 %v2717_v61, %v2580_v43  ;;  %v2549_v11 = vor.u32 %v2710_v32, %v2548_v60  ;;  %v2568_v19 = vld [vmem:[#allocation3 + $0x38] sm:$0xf]  ;;  %v2528_v20 = vld [vmem:[%s3488_s4] sm:$0xf] }
 0x2b0   : > { %v1559_v26 = vrot.slane %v1555_v28, 4  ;;  %v2553_v16 = vor.u32 %v2709_v63, %v2550_v5 }
 0x2b2   : > { %v1563_v35 = vsel %vm302_vm0, %v1558_v7, %v1559_v26  ;;  %v1565_v37 = vsel %vm513_vm6, %v1555_v28, %v1559_v26  ;;  %1951 = vmatpush.bf16.msra.mxu0 %v2597_v10  ;;  %1979 = vmatpush.bf16.msra.mxu1 %v2601_v30  ;;  %v2705_v7 = vld [vmem:[%s3488_s4 + $0x4] sm:$0xf0] }
 0x2b3   : > { %2005 = vmatpush.bf16.msrb.mxu2 %v2629_v22  ;;  %v1564_v42 = vsel %vm513_vm6, %v3354_v38, %v1563_v35  ;;  %1573 = vst.msk [vmem:[#allocation3 + $0x44] sm:$0xf] %vm317_vm3, %v1565_v37  ;;  %2643 = vmatmul.msk.bf16.vlgmr.msrb.gmra.mxu3 %vm1945_vm4, %v3412_v25  ;;  %v2574_v38 = vld [vmem:[#allocation3 + $0x54] sm:$0xf0]  ;;  %v2732_v22 = vld [vmem:[#allocation3 + $0xd0] sm:$0xf0]  ;;  %v2529_v33 = vor.u32 %v2705_v7, %v2528_v20 }
 0x2b4   : > { %2642 = vmatmul.msk.bf16.vlgmr.msra.gmra.mxu2 %vm1945_vm4, %v3412_v25  ;;  %1572 = vst [vmem:[#allocation3 + $0x3c] sm:$0xff] %v1564_v42  ;;  %v2577_v54 = vor.u32 %v2715_v41, %v2574_v38  ;;  %v2536_v39 = vld [vmem:[#allocation3] sm:$0xf]  ;;  %v2706_v23 = vld [vmem:[#allocation3 + $0x4] sm:$0xf] }
 0x2b5   : > { %v2640_v10 = vld [vmem:[#allocation3 + $0xc8] sm:$0xf] }
 0x2b6   : > { %1952 = vmatpush.bf16.msra.mxu0 %v2585_v46  ;;  %1980 = vmatpush.bf16.msra.mxu1 %v2589_v47  ;;  %v2641_v30 = vor.u32 %v2732_v22, %v2640_v10  ;;  %v2544_v37 = vld [vmem:[#allocation3 + $0x8] sm:$0xf] }
 0x2b7   : > { %2006 = vmatpush.bf16.msrb.mxu2 %v2617_v6  ;;  %v1487_v18 = vpop.permute.xlu0 %1486 }
 0x2b8   : > { %v1491_v52 = vrot.slane %v1487_v18, 4 }
 0x2ba   : > { %v1495_v55 = vsel %vm302_vm0, %v1490_v51, %v1491_v52  ;;  %v1497_v15 = vsel %vm375_vm11, %v1487_v18, %v1491_v52  ;;  %1953 = vmatpush.bf16.msra.mxu0 %v2573_v53  ;;  %1981 = vmatpush.bf16.msra.mxu1 %v2577_v54  ;;  %v2714_v44 = vld [vmem:[#allocation3 + $0x40] sm:$0xf0] }
 0x2bb   : > { %2007 = vmatpush.bf16.msrb.mxu2 %v2605_v50  ;;  %v1496_v62 = vsel %vm375_vm11, %v1485_v49, %v1495_v55  ;;  %1505 = vst.msk [vmem:[#allocation3 + $0x14] sm:$0xf] %vm317_vm3, %v1497_v15  ;;  %v2713_v0 = vld [vmem:[#allocation3 + $0x38] sm:$0xf0]  ;;  %v2562_v2 = vld [vmem:[#allocation3 + $0x3c] sm:$0xf0]  ;;  %v2569_v21 = vor.u32 %v2714_v44, %v2568_v19 }
 0x2bc   : > { %1504 = vst [vmem:[#allocation3 + $0xc] sm:$0xff] %v1496_v62  ;;  %v2561_v4 = vor.u32 %v2713_v0, %v2560_v57  ;;  %v2565_v27 = vor.u32 %v2712_v58, %v2562_v2  ;;  %v2080_v50 = vshrl.u32 %v2079_v48, 7 }
 0x2be   : > { %1954 = vmatpush.bf16.msra.mxu0 %v2561_v4  ;;  %1982 = vmatpush.bf16.msra.mxu1 %v2565_v27  ;;  %vm2082_vm6 = vcmp.lt.s32.totalorder %v2080_v50, 4 }
 0x2bf   : > { %2008 = vmatpush.bf16.msrb.mxu2 %v2593_v59 }
 0x2c2   : > { %1955 = vmatpush.bf16.msra.mxu0 %v2549_v11  ;;  %1983 = vmatpush.bf16.msra.mxu1 %v2553_v16  ;;  %v2708_v35 = vld [vmem:[#allocation3 + $0x10] sm:$0xf0] }
 0x2c3   : > { %2009 = vmatpush.bf16.msrb.mxu2 %v2581_v8  ;;  %v2707_v28 = vld [vmem:[#allocation3 + $0x8] sm:$0xf0]  ;;  %v2538_v24 = vld [vmem:[#allocation3 + $0xc] sm:$0xf0]  ;;  %v2545_v40 = vor.u32 %v2708_v35, %v2544_v37 }
 0x2c4   : > { %v2537_v3 = vor.u32 %v2707_v28, %v2536_v39  ;;  %v2541_v26 = vor.u32 %v2706_v23, %v2538_v24 }
 0x2c6   : > { %1956 = vmatpush.bf16.msra.mxu0 %v2537_v3  ;;  %1984 = vmatpush.bf16.msra.mxu1 %v2541_v26  ;;  %v2800_v26 = vmov -inf  }
 0x2c7   : > { %2010 = vmatpush.bf16.msrb.mxu2 %v2569_v21  ;;  %v2109_v10 = vsel %vm1273_vm12, -1e+30, %v2800_v26 }
 0x2c9   : > { %1957 = vmatmul.bf16.vlgmr.msra.gmra.mxu0 %v2529_v33  ;;  %1985 = vmatmul.bf16.vlgmr.msra.gmra.mxu1 %v2529_v33 }
 0x2ca   : > { %2026 = vmatpush.bf16.msrb.mxu0 %v2641_v30 }
 0x2cb   : > { %2011 = vmatpush.bf16.msrb.mxu2 %v2557_v36 }
 0x2cf   : > { %2012 = vmatpush.bf16.msrb.mxu2 %v2545_v40 }
 0x2d2   : > { %2013 = vmatmul.bf16.vlgmr.msrb.gmra.mxu2 %v2529_v33 }
 0x2d9   : > { %2644 = vmatmul.msk.bf16.vlgmr.msrb.gmra.mxu0 %vm1945_vm4, %v3412_v25 }
 0x2ed   : > { %v2053_v51 = vpop.permute.xlu2 %2052 }
 0x304   : > { %v1785_v46 = vpop.permute.xlu1 %1784  ;;  %v2067_v53 = vpop.permute.xlu0 %2066 }
 0x336   : > { %v2000_v42 = vpop.f32.mrf.mxu3 }
 0x337   : > { %v1972_v6 = vpop.f32.mrf.mxu2 }
 0x33e   : > { %v2002_v45 = vpop.f32.mrf.mxu3 }
 0x33f   : > { %v1974_v13 = vpop.f32.mrf.mxu2 }
 0x346   : > { %v1958_v47 = vpop.f32.mrf.mxu0  ;;  %v1986_v9 = vpop.f32.mrf.mxu1 }
 0x347   : > { %v1959_v49 = vadd.f32 %v1958_v47, %v1785_v46  ;;  %v1987_v14 = vadd.f32 %v1986_v9, %v1785_v46 }
 0x349   : > { %v1973_v41 = vadd.f32 %v1972_v6, %v1959_v49  ;;  %v2001_v38 = vadd.f32 %v2000_v42, %v1987_v14 }
 0x34b   : > { %v2039_v18 = vmul.f32 0.01, %v1973_v41  ;;  %v2040_v12 = vmul.f32 0.01, %v2001_v38  ;;  %vm2033_vm0 = vcmp.ge.f32.partialorder %v1973_v41, 0.0  ;;  %vm2034_vm5 = vcmp.ge.f32.partialorder %v2001_v38, 0.0 }
 0x34d   : > { %v2045_v52 = vsel %vm2033_vm0, %v1973_v41, %v2039_v18  ;;  %v2046_v25 = vsel %vm2034_vm5, %v2001_v38, %v2040_v12 }
 0x34e   : > { %v2059_v54 = vmul.f32 %v2053_v51, %v2045_v52  ;;  %v2060_v1 = vmul.f32 %v2053_v51, %v2046_v25  ;;  %v1960_v43 = vpop.f32.mrf.mxu0  ;;  %v1988_v55 = vpop.f32.mrf.mxu1 }
 0x350   : > { %v2073_v15 = vadd.f32 %v2067_v53, %v2059_v54  ;;  %v2074_v57 = vadd.f32 %v2067_v53, %v2060_v1 }
 0x352   : > { %v2088_v58 = vsel %vm2082_vm6, %v2073_v15, -1e+30  ;;  %v2089_v59 = vsel %vm2082_vm6, %v2074_v57, -1e+30 }
 0x353   : > { %v2094_v62 = vmax.f32 %v2088_v58, -1e+30  ;;  %v2101_v0 = vmax.f32 %v2089_v59, -1e+30 }
 0x355   : > { %v2014_v61 = vpop.f32.mrf.mxu2  ;;  %v2095_v4 = vrot.slane %v2094_v62, 4  ;;  %v2102_v27 = vrot.slane %v2101_v0, 4 }
 0x356   : > { %v2015_v2 = vadd.f32 %v2014_v61, %v1785_v46  ;;  %v2028_v60 = vpop.f32.mrf.mxu0 }
 0x357   : > { %v2096_v32 = vmax.f32 %v2094_v62, %v2095_v4  ;;  %v2103_v63 = vmax.f32 %v2101_v0, %v2102_v27 }
 0x358   : > { %v2029_v5 = vadd.f32 %v2028_v60, %v2015_v2 }
 0x359   : > { %v2097_v8 = vrot.slane %v2096_v32, 2  ;;  %v2104_v44 = vrot.slane %v2103_v63, 2 }
 0x35a   : > { %vm2035_vm7 = vcmp.ge.f32.partialorder %v2029_v5, 0.0  ;;  %v2041_v11 = vmul.f32 0.01, %v2029_v5 }
 0x35b   : > { %v2098_v19 = vmax.f32 %v2096_v32, %v2097_v8  ;;  %v2105_v20 = vmax.f32 %v2103_v63, %v2104_v44 }
 0x35c   : > { %v2047_v17 = vsel %vm2035_vm7, %v2029_v5, %v2041_v11 }
 0x35d   : > { %v2016_v16 = vpop.f32.mrf.mxu2  ;;  %v2061_v39 = vmul.f32 %v2053_v51, %v2047_v17  ;;  %v2099_v21 = vrot.slane %v2098_v19, 1  ;;  %v2106_v22 = vrot.slane %v2105_v20, 1 }
 0x35e   : > { %v2030_v28 = vpop.f32.mrf.mxu0 }
 0x35f   : > { %v2075_v7 = vadd.f32 %v2067_v53, %v2061_v39  ;;  %v2100_v23 = vmax.f32 %v2098_v19, %v2099_v21  ;;  %v2107_v24 = vmax.f32 %v2105_v20, %v2106_v22 }
 0x361   : > { %v2090_v3 = vsel %vm2082_vm6, %v2075_v7, -1e+30  ;;  %v2117_v30 = vsub.f32 %v2088_v58, %v2100_v23  ;;  %v2118_v33 = vsub.f32 %v2089_v59, %v2107_v24  ;;  %v2120_v34 = vsub.f32 -1e+30, %v2100_v23 }
 0x362   : > { %v2121_v36 = vsub.f32 -1e+30, %v2107_v24  ;;  %v2108_v35 = vsel %vm1273_vm12, %v2090_v3, -inf }
 0x363   : > { %v2123_v37 = vmul.f32 1.442695, %v2117_v30  ;;  %v2125_v40 = vmul.f32 1.442695, %v2118_v33  ;;  %v2129_v6 = vmul.f32 1.442695, %v2120_v34  ;;  %v2110_v42 = vmax.f32 %v2108_v35, %v2109_v10 }
 0x364   : > { %v2131_v13 = vmul.f32 1.442695, %v2121_v36 }
 0x365   : > { %2763 = vpow2.f32 %v2123_v37  ;;  %v2111_v45 = vrot.slane %v2110_v42, 4 }
 0x366   : > { %2765 = vpow2.f32 %v2125_v40 }
 0x367   : > { %2767 = vpow2.f32 %v2129_v6  ;;  %v2112_v46 = vmax.f32 %v2110_v42, %v2111_v45 }
 0x368   : > { %2769 = vpow2.f32 %v2131_v13 }
 0x369   : > { %v2113_v47 = vrot.slane %v2112_v46, 2 }
 0x36b   : > { %v3443_v9 = vpop.eup %2763  ;;  %v2114_v48 = vmax.f32 %v2112_v46, %v2113_v47 }
 0x36c   : > { %v3445_v49 = vpop.eup %2765 }
 0x36d   : > { %v3447_v14 = vpop.eup %2767  ;;  %v2115_v41 = vrot.slane %v2114_v48, 1 }
 0x36e   : > { %v3449_v38 = vpop.eup %2769  ;;  %v2135_v50 = vadd.f32 %v3447_v14, %v3443_v9 }
 0x36f   : > { %v2142_v18 = vadd.f32 %v3449_v38, %v3445_v49  ;;  %v2116_v12 = vmax.f32 %v2114_v48, %v2115_v41 }
 0x370   : > { %v2136_v51 = vrot.slane %v2135_v50, 4 }
 0x371   : > { %v2143_v52 = vrot.slane %v2142_v18, 4  ;;  %v2119_v25 = vsub.f32 %v2090_v3, %v2116_v12  ;;  %v2122_v53 = vsub.f32 -1e+30, %v2116_v12 }
 0x372   : > { %v2137_v54 = vadd.f32 %v2136_v51, %v2135_v50 }
 0x373   : > { %v2144_v1 = vadd.f32 %v2143_v52, %v2142_v18  ;;  %v2127_v43 = vmul.f32 1.442695, %v2119_v25  ;;  %v2133_v55 = vmul.f32 1.442695, %v2122_v53 }
 0x374   : > { %v2138_v15 = vrot.slane %v2137_v54, 2 }
 0x375   : > { %v2145_v57 = vrot.slane %v2144_v1, 2  ;;  %2771 = vpow2.f32 %v2127_v43 }
 0x376   : > { %v2139_v58 = vadd.f32 %v2138_v15, %v2137_v54  ;;  %2773 = vpow2.f32 %v2133_v55 }
 0x377   : > { %v2146_v59 = vadd.f32 %v2145_v57, %v2144_v1 }
 0x378   : > { %v2140_v61 = vrot.slane %v2139_v58, 1 }
 0x379   : > { %v2147_v62 = vrot.slane %v2146_v59, 1 }
 0x37a   : > { %v2141_v0 = vadd.f32 %v2140_v61, %v2139_v58 }
 0x37b   : > { %v3455_v2 = vpop.eup %2771  ;;  %v2148_v4 = vadd.f32 %v2147_v62, %v2146_v59 }
 0x37c   : > { %v3457_v27 = vpop.eup %2773  ;;  %2775 = vrcp.f32 %v2141_v0  ;;  %v2149_v60 = vsel %vm1273_vm12, %v3455_v2, 0.0  ;;  %v2167_v39 = vand.u32 2147483647, %v2141_v0  ;;  %v2169_v21 = vand.u32 2147483648, %v2141_v0 }
 0x37d   : > { %2777 = vrcp.f32 %v2148_v4  ;;  %v2150_v32 = vsel %vm1273_vm12, %v3457_v27, 0.0  ;;  %v2184_v28 = vand.u32 2147483648, %v2148_v4  ;;  %v2182_v3 = vand.u32 2147483647, %v2148_v4 }
 0x37e   : > { %v2151_v63 = vadd.f32 %v2150_v32, %v2149_v60  ;;  %vm2163_vm10 = vweird.f32 %v2141_v0  ;;  %v2170_v30 = vor.u32 1.1754944e-38, %v2169_v21  ;;  %vm2178_vm12 = vweird.f32 %v2148_v4 }
 0x37f   : > { %vm2168_vm14 = vcmp.eq.f32.partialorder %v2167_v39, 8.507059e+37  ;;  %v2185_v36 = vor.u32 1.1754944e-38, %v2184_v28  ;;  %vm2183_vm1 = vcmp.eq.f32.partialorder %v2182_v3, 8.507059e+37 }
 0x380   : > { %v2152_v5 = vrot.slane %v2151_v63, 4 }
 0x382   : > { %v2776_v8 = vpop.eup %2775  ;;  %v2153_v16 = vadd.f32 %v2152_v5, %v2151_v63 }
 0x383   : > { %v2778_v44 = vpop.eup %2777  ;;  %v2159_v11 = vmul.f32 %v2776_v8, %v2141_v0  ;;  %vm2164_vm8 = vweird.f32 %v2776_v8 }
 0x384   : > { %v2174_v19 = vmul.f32 %v2778_v44, %v2148_v4  ;;  %v2154_v17 = vrot.slane %v2153_v16, 2  ;;  %vm2179_vm9 = vweird.f32 %v2778_v44  ;;  %vm2165_vm11 = vmor %vm2163_vm10, %vm2164_vm8 }
 0x385   : > { %v2160_v20 = vsub.f32 1.0, %v2159_v11  ;;  %vm2180_vm15 = vmor %vm2178_vm12, %vm2179_vm9 }
 0x386   : > { %v2175_v22 = vsub.f32 1.0, %v2174_v19  ;;  %v2155_v23 = vadd.f32 %v2154_v17, %v2153_v16 }
 0x387   : > { %v2161_v7 = vmul.f32 %v2776_v8, %v2160_v20 }
 0x388   : > { %v2176_v24 = vmul.f32 %v2778_v44, %v2175_v22  ;;  %v2156_v10 = vrot.slane %v2155_v23, 1 }
 0x389   : > { %v2162_v26 = vadd.f32 %v2776_v8, %v2161_v7 }
 0x38a   : > { %v2177_v33 = vadd.f32 %v2778_v44, %v2176_v24  ;;  %v2157_v35 = vadd.f32 %v2156_v10, %v2155_v23 }
 0x38b   : > { %v2166_v34 = vsel %vm2165_vm11, %v2776_v8, %v2162_v26 }
 0x38c   : > { %v2171_v37 = vsel %vm2168_vm14, %v2170_v30, %v2166_v34  ;;  %v2181_v40 = vsel %vm2180_vm15, %v2778_v44, %v2177_v33  ;;  %2779 = vrcp.f32 %v2157_v35  ;;  %v2197_v52 = vand.u32 2147483647, %v2157_v35 }
 0x38d   : > { %v2172_v6 = vmul.f32 %v3443_v9, %v2171_v37  ;;  %v2186_v42 = vsel %vm2183_vm1, %v2185_v36, %v2181_v40  ;;  %v2203_v13 = vmul.f32 %v3447_v14, %v2171_v37  ;;  %vm2193_vm13 = vweird.f32 %v2157_v35 }
 0x38e   : > { %v2187_v45 = vmul.f32 %v3445_v49, %v2186_v42  ;;  %v2204_v46 = vmul.f32 %v3449_v38, %v2186_v42  ;;  %v2199_v38 = vand.u32 2147483648, %v2157_v35  ;;  %vm2198_vm0 = vcmp.eq.f32.partialorder %v2197_v52, 8.507059e+37 }
 0x38f   : > { %v2206_v47 = vmul.f32 %v2172_v6, %v3289_v29  ;;  %v2209_v48 = vmul.f32 %v2203_v13, %v3289_v29 }
 0x390   : > { %v2207_v41 = vmul.f32 %v2187_v45, %v3291_v31  ;;  %v2210_v50 = vmul.f32 %v2204_v46, %v3291_v31  ;;  %v2200_v25 = vor.u32 1.1754944e-38, %v2199_v38 }
 0x392   : > { %v2212_v9 = vpack.c.bf16 %v2207_v41, %v2206_v47  ;;  %v2214_v18 = vpack.c.bf16 %v2210_v50, %v2209_v48  ;;  %v2780_v14 = vpop.eup %2779 }
 0x393   : > { %v2189_v12 = vmul.f32 %v2780_v14, %v2157_v35  ;;  %vm2194_vm2 = vweird.f32 %v2780_v14 }
 0x394   : > { %2216 = vst [vmem:[%s298_s29] sm:$0xff] %v2212_v9  ;;  %vm2195_vm4 = vmor %vm2193_vm13, %vm2194_vm2 }
 0x395   : > { %2218 = vst [vmem:[%s298_s29 + $0xc] sm:$0xff] %v2214_v18  ;;  %v2190_v49 = vsub.f32 1.0, %v2189_v12 }
 0x397   : > { %v2191_v51 = vmul.f32 %v2780_v14, %v2190_v49 }
 0x399   : > { %v2192_v29 = vadd.f32 %v2780_v14, %v2191_v51 }
 0x39b   : > { %v2196_v31 = vsel %vm2195_vm4, %v2780_v14, %v2192_v29 }
 0x39c   : > { %v2201_v53 = vsel %vm2198_vm0, %v2200_v25, %v2196_v31 }
 0x39d   : > { %v2202_v54 = vmul.f32 %v3455_v2, %v2201_v53  ;;  %v2205_v1 = vmul.f32 %v3457_v27, %v2201_v53 }
 0x39f   : > { %v2208_v43 = vmul.f32 %v2202_v54, %v3310_v56  ;;  %v2211_v55 = vmul.f32 %v2205_v1, %v3310_v56 }
 0x3a1   : > { %v2213_v15 = vpack.c.bf16 %v2208_v43, %v2208_v43  ;;  %v2215_v57 = vpack.c.bf16 %v2211_v55, %v2211_v55 }
 0x3a3   : > { %2217 = vst.msk [vmem:[%s298_s29 + $0x8] sm:$0xf] %vm317_vm3, %v2213_v15 }
 0x3a4   : > { %2219 = vst.msk [vmem:[%s298_s29 + $0x14] sm:$0xf] %vm317_vm3, %v2215_v57 }
 0x3a5 PF: > { %s17_s24 = sadd.s32 1, %s2787_s24  }
 0x3a6   : > { %p14_p4 = scmp.ge.s32.totalorder %s17_s24, 4  }
 0x3a8   :  { %16 = sbr.rel (!%p14_p4) target bundleno = 1 (0x1), region = 81 }

// kernel: wnet_forward.19
= control target key start
LH: loop header
LB: loop body
LE: loop exit
PB: predicated region body
PF: predicated region fallthrough
CT: control target
= control target key end

     0   :  { %s2887_s30 = smov 0   ;;  %s3518_s0 = inlined_call_operand.vmem [shape: f32[1,288], index: 0, kind: input, shape index: {}]   ;;  %s3519_s1 = inlined_call_operand.vmem [shape: bf16[2,16,288], index: 1, kind: input, shape index: {}]   ;;  %s3520_s2 = inlined_call_operand.vmem [shape: bf16[2,16,288], index: 2, kind: input, shape index: {}]   ;;  %s3521_s3 = inlined_call_operand.vmem [shape: bf16[16,288], index: 3, kind: input, shape index: {}]   ;;  %s3522_s4 = inlined_call_operand.vmem [shape: bf16[16,144], index: 4, kind: input, shape index: {}]   ;;  %s3523_s5 = inlined_call_operand.vmem [shape: f32[16,3], index: 5, kind: input, shape index: {}]   ;;  %s3524_s6 = inlined_call_operand.vmem [shape: f32[16,3], index: 6, kind: input, shape index: {}]   ;;  %s3525_s7 = inlined_call_operand.vmem [shape: bf16[2,16], index: 7, kind: input, shape index: {}]   ;;  %s3526_s8 = inlined_call_operand.vmem [shape: f32[2,1], index: 8, kind: input, shape index: {}]   ;;  %s3527_s9 = inlined_call_operand.vmem [shape: f32[2,2,288], index: 9, kind: output, shape index: {}]  }
   0x1 LB: > { %s2323_s10 = sadd.s32 4294967295, %s2824_s30   ;;  %p2327_p0 = scmp.ge.s32.totalorder %s2824_s30, 1  ;;  %s2824_s30 = sphi %s2887_s30, %s19_s30  }
   0x2   : > { %p297_p1 = scmp.lt.s32.totalorder %s2824_s30, 3 }
   0x4   : > { %p298_p2 = pnand %p2327_p0, %p297_p1 }
   0x5   : > { %p338_p3 = scmp.lt.s32.totalorder (!%p298_p2), %s2323_s10, 1  ;;  %s2827_s18 = smov (!%p298_p2), 110  }
   0x6   : > { %301 = sbr.rel (%p298_p2) target bundleno = 1040 (0x410), region = 56  ;;  %s2828_s19 = smov (!%p298_p2), 1  }
   0x7   : > { %s2829_s20 = smov (!%p298_p2), 17   ;;  %s2830_s21 = smov (!%p298_p2), 111  }
   0x8   : > { %s2831_s22 = smov (!%p298_p2), 109   ;;  %s2832_s23 = smov (!%p298_p2), 18  }
   0x9   : > { %s2833_s24 = smov (!%p298_p2), 127   ;;  %s2834_s25 = smov (!%p298_p2), 19  }
   0xb   : > { %vm356_vm0 = vcmask 1043456   ;;  %vm357_vm1 = vcmask 416772   ;;  %v2826_v1 = vmov 0   ;;  %s3535_s10 = smov (!%p338_p3, %s2323_s10), 1  ;;  %vm371_vm3 = vcmask 257024  }
   0xc   : > { %vm2896_vm2 = vmor %vm357_vm1, %vm356_vm0  ;;  %364 = vst [vmem:[#allocation2 + $0x30] sm:$0xff] %v2826_v1  ;;  %2793 = vset.pattern.permute.xlu1 %v2826_v1  ;;  %2794 = vset.pattern.permute.xlu2 %v2826_v1  ;;  %s2772_s11 = smul.u32 24, %s3535_s10  ;;  %vm851_vm4 = vcmask 900096   ;;  %vm636_vm5 = vcmask 7168   ;;  %vm567_vm6 = vcmask 138240   ;;  %vm786_vm7 = vcmask 908288  }
   0xd   : > { %365 = vst.msk [vmem:[#allocation2 + $0x38] sm:$0xff] %vm2896_vm2, %v2826_v1  ;;  %vm916_vm8 = vcmask 891904   ;;  %vm498_vm9 = vcmask 146432   ;;  %vm721_vm10 = vcmask 1039360   ;;  %vm429_vm11 = vcmask 154624  }
   0xe   : > { %355 = vst [vmem:[#allocation2] sm:$0xff] %v2826_v1  ;;  %s347_s14 = scalar_lea.vmem %s3520_s2, %s2772_s11  ;;  %s342_s17 = scalar_lea.vmem %s3519_s1, %s2772_s11  ;;  %vm1327_vm12 = vcmask 261120  }
   0xf   : > { %359 = vst.msk [vmem:[#allocation2 + $0x8] sm:$0xff] %vm2896_vm2, %v2826_v1  ;;  %v2920_v2 = vld [vmem:[%s347_s14 + $0xc] sm:$0xff]  ;;  %v2923_v3 = vld [vmem:[%s347_s14] sm:$0xff]  ;;  %v378_v4 = vld [vmem:[%s347_s14 + $0x14] sm:$0xf]  ;;  %s2773_s11 = smul.u32 6, %s3535_s10 }
  0x10   : > { %360 = vst [vmem:[#allocation2 + $0x10] sm:$0xff] %v2826_v1  ;;  %834 = vrot.lane.b32.xlu2 %v2923_v3, %s2827_s18  ;;  %v376_v5 = vld [vmem:[%s347_s14 + $0x8] sm:$0xf]  ;;  %v2935_v6 = vld [vmem:[%s342_s17 + $0xc] sm:$0xff]  ;;  %v2938_v7 = vld [vmem:[%s342_s17] sm:$0xff] }
  0x11   : > { %361 = vst.msk [vmem:[#allocation2 + $0x18] sm:$0xff] %vm2896_vm2, %v2826_v1  ;;  %v367_v8 = vld [vmem:[%s342_s17 + $0x8] sm:$0xf]  ;;  %v369_v11 = vld [vmem:[%s342_s17 + $0x14] sm:$0xf] }
  0x12   : > { %362 = vst [vmem:[#allocation2 + $0x20] sm:$0xff] %v2826_v1 }
  0x13   : > { %381 = vst [vmem:[#allocation2 + $0x34] sm:$0xff] %v2920_v2 }
  0x14   : > { %363 = vst.msk [vmem:[#allocation2 + $0x28] sm:$0xff] %vm2896_vm2, %v2826_v1 }
  0x15   : > { %379 = vst [vmem:[#allocation2 + $0x24] sm:$0xff] %v2923_v3 }
  0x16   : > { %382 = vst.msk [vmem:[#allocation2 + $0x3c] sm:$0xf] %vm371_vm3, %v378_v4 }
  0x17   : > { %380 = vst.msk [vmem:[#allocation2 + $0x2c] sm:$0xf] %vm371_vm3, %v376_v5 }
  0x18   : > { %373 = vst [vmem:[#allocation2 + $0x14] sm:$0xff] %v2935_v6 }
  0x19   : > { %370 = vst [vmem:[#allocation2 + $0x4] sm:$0xff] %v2938_v7 }
  0x1a   : > { %v2943_v9 = vld [vmem:[#allocation2 + $0x30] sm:$0xff]  ;;  %372 = vst.msk [vmem:[#allocation2 + $0xc] sm:$0xf] %vm371_vm3, %v367_v8 }
  0x1b   : > { %623 = vrot.lane.b32.xlu1 %v2943_v9, %s2828_s19  ;;  %374 = vst.msk [vmem:[#allocation2 + $0x1c] sm:$0xf] %vm371_vm3, %v369_v11 }
  0x1c   : > { %v2948_v10 = vld [vmem:[#allocation2 + $0x20] sm:$0xff] }
  0x1d   : > { %619 = vrot.lane.b32.xlu0 %v2948_v10, %s2828_s19  ;;  %v2954_v13 = vld [vmem:[#allocation2 + $0x38] sm:$0xff] }
  0x1e   : > { %v815_v12 = vld [vmem:[#allocation2 + $0x2c] sm:$0xf]  ;;  %v817_v16 = vld [vmem:[#allocation2 + $0x3c] sm:$0xf] }
  0x1f   : > { %836 = vrot.lane.b32.xlu2 %v815_v12, %s2827_s18  ;;  %v2956_v14 = vld [vmem:[#allocation2 + $0x28] sm:$0xff]  ;;  %v2973_v18 = vld [vmem:[#allocation2 + $0x10] sm:$0xff]  ;;  %v752_v22 = vld [vmem:[#allocation2 + $0x3c] sm:$0xf] }
  0x20   : > { %v2960_v15 = vld [vmem:[#allocation2] sm:$0xff]  ;;  %v750_v23 = vld [vmem:[#allocation2 + $0x2c] sm:$0xf]  ;;  %v882_v25 = vld [vmem:[#allocation2 + $0x3c] sm:$0xf] }
  0x21   : > { %v2975_v19 = vld [vmem:[#allocation2 + $0x8] sm:$0xff]  ;;  %v687_v40 = vld [vmem:[#allocation2 + $0x3c] sm:$0xf] }
  0x22   : > { %v2967_v17 = vld [vmem:[#allocation2 + $0x18] sm:$0xff]  ;;  %v811_v20 = vld [vmem:[#allocation2 + $0xc] sm:$0xf] }
  0x23   : > { %625 = vrot.lane.b32.xlu1 %v2954_v13, %s2828_s19  ;;  %v813_v21 = vld [vmem:[#allocation2 + $0x1c] sm:$0xf]  ;;  %v880_v24 = vld [vmem:[#allocation2 + $0x2c] sm:$0xf] }
  0x24   : > { %v748_v26 = vld [vmem:[#allocation2 + $0x1c] sm:$0xf]  ;;  %v746_v28 = vld [vmem:[#allocation2 + $0xc] sm:$0xf] }
  0x25   : > { %621 = vrot.lane.b32.xlu0 %v2956_v14, %s2828_s19  ;;  %v876_v29 = vld [vmem:[#allocation2 + $0xc] sm:$0xf]  ;;  %v878_v36 = vld [vmem:[#allocation2 + $0x1c] sm:$0xf] }
  0x26   : > { %v685_v44 = vld [vmem:[#allocation2 + $0x2c] sm:$0xf] }
  0x27   : > { %611 = vrot.lane.b32.xlu2 %v2960_v15, %s2828_s19  ;;  %v681_v59 = vld [vmem:[#allocation2 + $0xc] sm:$0xf] }
  0x2b   : > { %840 = vrot.lane.b32.xlu1 %v817_v16, %s2827_s18 }
  0x2d   : > { %838 = vrot.lane.b32.xlu0 %v2920_v2, %s2827_s18 }
  0x2f   : > { %617 = vrot.lane.b32.xlu2 %v2967_v17, %s2828_s19 }
  0x33   : > { %615 = vrot.lane.b32.xlu1 %v2973_v18, %s2828_s19 }
  0x35   : > { %613 = vrot.lane.b32.xlu0 %v2975_v19, %s2828_s19 }
  0x37   : > { %830 = vrot.lane.b32.xlu2 %v2935_v6, %s2827_s18 }
  0x3b   : > { %828 = vrot.lane.b32.xlu1 %v811_v20, %s2827_s18 }
  0x3d   : > { %826 = vrot.lane.b32.xlu0 %v2938_v7, %s2827_s18 }
  0x3f   : > { %552 = vrot.lane.b32.xlu2 %v2956_v14, %s2829_s20 }
  0x43   : > { %550 = vrot.lane.b32.xlu1 %v2948_v10, %s2829_s20 }
  0x45   : > { %832 = vrot.lane.b32.xlu0 %v813_v21, %s2827_s18 }
  0x47   : > { %769 = vrot.lane.b32.xlu2 %v2923_v3, %s2830_s21 }
  0x4b   : > { %556 = vrot.lane.b32.xlu1 %v2954_v13, %s2829_s20 }
  0x4d   : > { %554 = vrot.lane.b32.xlu0 %v2943_v9, %s2829_s20 }
  0x4f   : > { %775 = vrot.lane.b32.xlu2 %v752_v22, %s2830_s21 }
  0x53   : > { %773 = vrot.lane.b32.xlu1 %v2920_v2, %s2830_s21 }
  0x55   : > { %771 = vrot.lane.b32.xlu0 %v750_v23, %s2830_s21 }
  0x57   : > { %903 = vrot.lane.b32.xlu2 %v2920_v2, %s2831_s22 }
  0x5b   : > { %901 = vrot.lane.b32.xlu1 %v880_v24, %s2831_s22 }
  0x5d   : > { %899 = vrot.lane.b32.xlu0 %v2923_v3, %s2831_s22 }
  0x5f   : > { %544 = vrot.lane.b32.xlu2 %v2975_v19, %s2829_s20 }
  0x63   : > { %542 = vrot.lane.b32.xlu1 %v2960_v15, %s2829_s20 }
  0x65   : > { %905 = vrot.lane.b32.xlu0 %v882_v25, %s2831_s22 }
  0x67   : > { %761 = vrot.lane.b32.xlu2 %v2938_v7, %s2830_s21 }
  0x6a   : > { %v835_v27 = vpop.permute.xlu2 %834 }
  0x6b   : > { %548 = vrot.lane.b32.xlu1 %v2967_v17, %s2829_s20  ;;  %v846_v30 = vrot.slane %v835_v27, 4 }
  0x6d   : > { %546 = vrot.lane.b32.xlu0 %v2973_v18, %s2829_s20 }
  0x6f   : > { %767 = vrot.lane.b32.xlu2 %v748_v26, %s2830_s21  ;;  %v683_v26 = vld [vmem:[#allocation2 + $0x1c] sm:$0xf] }
  0x73   : > { %765 = vrot.lane.b32.xlu1 %v2935_v6, %s2830_s21 }
  0x75   : > { %763 = vrot.lane.b32.xlu0 %v746_v28, %s2830_s21 }
  0x77   : > { %895 = vrot.lane.b32.xlu2 %v2935_v6, %s2831_s22 }
  0x79   : > { %v837_v31 = vpop.permute.xlu2 %836 }
  0x7a   : > { %v847_v32 = vrot.slane %v837_v31, 4  ;;  %872 = vst.msk [vmem:[#allocation3 + $0x170] sm:$0xf] %vm371_vm3, %v837_v31 }
  0x7b   : > { %893 = vrot.lane.b32.xlu1 %v876_v29, %s2831_s22 }
  0x7c   : > { %v855_v33 = vsel %vm356_vm0, %v846_v30, %v847_v32 }
  0x7d   : > { %891 = vrot.lane.b32.xlu0 %v2938_v7, %s2831_s22  ;;  %v856_v34 = vsel %vm851_vm4, %v835_v27, %v855_v33 }
  0x7e   : > { %871 = vst [vmem:[#allocation3 + $0x168] sm:$0xff] %v856_v34 }
  0x7f   : > { %483 = vrot.lane.b32.xlu2 %v2956_v14, %s2832_s23 }
  0x81   : > { %v3031_v35 = vpop.permute.xlu2 %611 }
  0x82   : > { %v627_v22 = vrot.slane %v3031_v35, 4 }
  0x83   : > { %481 = vrot.lane.b32.xlu1 %v2948_v10, %s2832_s23 }
  0x85   : > { %897 = vrot.lane.b32.xlu0 %v878_v36, %s2831_s22 }
  0x87   : > { %704 = vrot.lane.b32.xlu2 %v2923_v3, %s2833_s24 }
  0x89   : > { %v3038_v37 = vpop.permute.xlu2 %617 }
  0x8a   : > { %v630_v38 = vrot.slane %v3038_v37, 4 }
  0x8b   : > { %487 = vrot.lane.b32.xlu1 %v2954_v13, %s2832_s23 }
  0x8c   : > { %v641_v39 = vsel %vm636_vm5, %v3038_v37, %v630_v38 }
  0x8d   : > { %485 = vrot.lane.b32.xlu0 %v2943_v9, %s2832_s23  ;;  %v624_v41 = vpop.permute.xlu1 %623  ;;  %659 = vst.msk [vmem:[#allocation3 + $0xa4] sm:$0xf] %vm371_vm3, %v641_v39 }
  0x8e   : > { %v633_v45 = vrot.slane %v624_v41, 4 }
  0x8f   : > { %v620_v42 = vpop.permute.xlu0 %619  ;;  %710 = vrot.lane.b32.xlu2 %v687_v40, %s2833_s24 }
  0x90   : > { %v631_v49 = vrot.slane %v620_v42, 4 }
  0x91   : > { %v3051_v43 = vpop.permute.xlu2 %830 }
  0x93   : > { %708 = vrot.lane.b32.xlu1 %v2920_v2, %s2833_s24 }
  0x95   : > { %706 = vrot.lane.b32.xlu0 %v685_v44, %s2833_s24  ;;  %v626_v46 = vpop.permute.xlu1 %625 }
  0x96   : > { %v634_v47 = vrot.slane %v626_v46, 4 }
  0x97   : > { %v622_v48 = vpop.permute.xlu0 %621  ;;  %477 = vrot.lane.b32.xlu2 %v2973_v18, %s2832_s23 }
  0x98   : > { %v645_v50 = vsel %vm356_vm0, %v633_v45, %v634_v47  ;;  %v647_v51 = vsel %vm636_vm5, %v626_v46, %v634_v47  ;;  %v632_v52 = vrot.slane %v622_v48, 4  ;;  %v844_v47 = vrot.slane %v3051_v43, 4 }
  0x99   : > { %v646_v53 = vsel %vm636_vm5, %v624_v41, %v645_v50  ;;  %663 = vst.msk [vmem:[#allocation3 + $0xbc] sm:$0xf] %vm371_vm3, %v647_v51  ;;  %v3062_v54 = vpop.permute.xlu2 %552 }
  0x9a   : > { %662 = vst [vmem:[#allocation3 + $0xb4] sm:$0xff] %v646_v53  ;;  %v642_v55 = vsel %vm356_vm0, %v631_v49, %v632_v52  ;;  %v644_v56 = vsel %vm636_vm5, %v622_v48, %v632_v52  ;;  %v563_v58 = vrot.slane %v3062_v54, 4 }
  0x9b   : > { %v643_v57 = vsel %vm636_vm5, %v620_v42, %v642_v55  ;;  %661 = vst.msk [vmem:[#allocation3 + $0xb0] sm:$0xf] %vm371_vm3, %v644_v56  ;;  %475 = vrot.lane.b32.xlu1 %v2975_v19, %s2832_s23 }
  0x9c   : > { %660 = vst [vmem:[#allocation3 + $0xa8] sm:$0xff] %v643_v57  ;;  %v575_v62 = vsel %vm567_vm6, %v3062_v54, %v563_v58 }
  0x9d   : > { %473 = vrot.lane.b32.xlu0 %v2960_v15, %s2832_s23  ;;  %v841_v60 = vpop.permute.xlu1 %840  ;;  %592 = vst.msk [vmem:[#allocation3 + $0x80] sm:$0xf] %vm371_vm3, %v575_v62 }
  0x9e   : > { %v849_v61 = vrot.slane %v841_v60, 4  ;;  %874 = vst.msk [vmem:[#allocation3 + $0x17c] sm:$0xf] %vm371_vm3, %v841_v60 }
  0x9f   : > { %v839_v63 = vpop.permute.xlu0 %838  ;;  %698 = vrot.lane.b32.xlu2 %v681_v59, %s2833_s24 }
  0xa0   : > { %v848_v0 = vrot.slane %v839_v63, 4 }
  0xa1   : > { %v2711_v2 = vld [vmem:[#allocation3 + $0xb0] sm:$0xf0]  ;;  %v2431_v3 = vld [vmem:[#allocation3 + $0xb4] sm:$0xf0]  ;;  %v3080_v4 = vpop.permute.xlu2 %769 }
  0xa2   : > { %v857_v5 = vsel %vm356_vm0, %v848_v0, %v849_v61 }
  0xa3   : > { %v858_v8 = vsel %vm851_vm4, %v839_v63, %v857_v5  ;;  %696 = vrot.lane.b32.xlu1 %v2938_v7, %s2833_s24  ;;  %v2429_v11 = vld [vmem:[#allocation3 + $0xa8] sm:$0xf]  ;;  %v2710_v12 = vld [vmem:[#allocation3 + $0xac] sm:$0xf] }
  0xa4   : > { %873 = vst [vmem:[#allocation3 + $0x174] sm:$0xff] %v858_v8  ;;  %v2430_v16 = vor.u32 %v2711_v2, %v2429_v11  ;;  %v2434_v20 = vor.u32 %v2710_v12, %v2431_v3  ;;  %v781_v2 = vrot.slane %v3080_v4, 4 }
  0xa5   : > { %479 = vrot.lane.b32.xlu0 %v2967_v17, %s2832_s23  ;;  %v616_v21 = vpop.permute.xlu1 %615 }
  0xa6   : > { %1331 = vmatpush.bf16.msra.mxu0 %v2430_v16  ;;  %1373 = vmatpush.bf16.msra.mxu3 %v2434_v20  ;;  %v629_v23 = vrot.slane %v616_v21, 4 }
  0xa7   : > { %v614_v24 = vpop.permute.xlu0 %613  ;;  %411 = vrot.lane.b32.xlu2 %v2948_v10, %s2834_s25  ;;  %v2525_v10 = vld [vmem:[#allocation3 + $0x168] sm:$0xf] }
  0xa8   : > { %v628_v7 = vrot.slane %v614_v24, 4  ;;  %v639_v25 = vsel %vm356_vm0, %v629_v23, %v630_v38 }
  0xa9   : > { %v640_v27 = vsel %vm636_vm5, %v616_v21, %v639_v25  ;;  %v3095_v28 = vpop.permute.xlu2 %775 }
  0xaa   : > { %v635_v29 = vsel %vm356_vm0, %v627_v22, %v628_v7  ;;  %v638_v30 = vsel %vm636_vm5, %v614_v24, %v628_v7  ;;  %658 = vst [vmem:[#allocation3 + $0x9c] sm:$0xff] %v640_v27  ;;  %v784_v63 = vrot.slane %v3095_v28, 4 }
  0xab   : > { %v637_v31 = vsel %vm636_vm5, %v3031_v35, %v635_v29  ;;  %657 = vst.msk [vmem:[#allocation3 + $0x98] sm:$0xf] %vm371_vm3, %v638_v30  ;;  %702 = vrot.lane.b32.xlu1 %v683_v26, %s2833_s24  ;;  %v2735_v32 = vld [vmem:[#allocation3 + $0x170] sm:$0xf0] }
  0xac   : > { %656 = vst [vmem:[#allocation3 + $0x90] sm:$0xff] %v637_v31  ;;  %v2526_v33 = vor.u32 %v2735_v32, %v2525_v10 }
  0xad   : > { %700 = vrot.lane.b32.xlu0 %v2935_v6, %s2833_s24  ;;  %v829_v34 = vpop.permute.xlu1 %828  ;;  %809 = vst.msk [vmem:[#allocation3 + $0x14c] sm:$0xf] %vm371_vm3, %v3095_v28 }
  0xae   : > { %1345 = vmatpush.bf16.msra.mxu1 %v2526_v33  ;;  %v843_v36 = vrot.slane %v829_v34, 4  ;;  %868 = vst.msk [vmem:[#allocation3 + $0x158] sm:$0xf] %vm371_vm3, %v829_v34 }
  0xaf   : > { %v827_v35 = vpop.permute.xlu0 %826  ;;  %417 = vrot.lane.b32.xlu2 %v2954_v13, %s2834_s25 }
  0xb0   : > { %v842_v37 = vrot.slane %v827_v35, 4 }
  0xb1   : > { %v2708_v38 = vld [vmem:[#allocation3 + $0x98] sm:$0xf0]  ;;  %v2419_v39 = vld [vmem:[#allocation3 + $0x9c] sm:$0xf0]  ;;  %v3110_v40 = vpop.permute.xlu2 %903 }
  0xb2   : > { %v850_v41 = vsel %vm356_vm0, %v842_v37, %v843_v36  ;;  %v913_v36 = vrot.slane %v3110_v40, 4 }
  0xb3   : > { %v852_v6 = vsel %vm851_vm4, %v827_v35, %v850_v41  ;;  %415 = vrot.lane.b32.xlu1 %v2943_v9, %s2834_s25  ;;  %v2417_v42 = vld [vmem:[#allocation3 + $0x90] sm:$0xf]  ;;  %v2707_v44 = vld [vmem:[#allocation3 + $0x94] sm:$0xf] }
  0xb4   : > { %867 = vst [vmem:[#allocation3 + $0x150] sm:$0xff] %v852_v6  ;;  %v2418_v45 = vor.u32 %v2708_v38, %v2417_v42  ;;  %v2422_v46 = vor.u32 %v2707_v44, %v2419_v39 }
  0xb5   : > { %413 = vrot.lane.b32.xlu0 %v2956_v14, %s2834_s25  ;;  %v551_v13 = vpop.permute.xlu1 %550 }
  0xb6   : > { %1332 = vmatpush.bf16.msra.mxu0 %v2418_v45  ;;  %1374 = vmatpush.bf16.msra.mxu3 %v2422_v46  ;;  %v562_v48 = vrot.slane %v551_v13, 4 }
  0xb7   : > { %v833_v49 = vpop.permute.xlu0 %832  ;;  %407 = vrot.lane.b32.xlu2 %v2973_v18, %s2834_s25 }
  0xb8   : > { %v845_v50 = vrot.slane %v833_v49, 4  ;;  %870 = vst.msk [vmem:[#allocation3 + $0x164] sm:$0xf] %vm371_vm3, %v833_v49  ;;  %v573_v9 = vsel %vm356_vm0, %v562_v48, %v563_v58 }
  0xb9   : > { %v574_v51 = vsel %vm567_vm6, %v551_v13, %v573_v9  ;;  %v3126_v14 = vpop.permute.xlu2 %544 }
  0xba   : > { %v853_v52 = vsel %vm356_vm0, %v844_v47, %v845_v50  ;;  %591 = vst [vmem:[#allocation3 + $0x78] sm:$0xff] %v574_v51  ;;  %v559_v18 = vrot.slane %v3126_v14, 4 }
  0xbb   : > { %v854_v53 = vsel %vm851_vm4, %v3051_v43, %v853_v52  ;;  %405 = vrot.lane.b32.xlu1 %v2975_v19, %s2834_s25  ;;  %v2513_v60 = vld [vmem:[#allocation3 + $0x150] sm:$0xf] }
  0xbc   : > { %869 = vst [vmem:[#allocation3 + $0x15c] sm:$0xff] %v854_v53  ;;  %v569_v56 = vsel %vm567_vm6, %v3126_v14, %v559_v18 }
  0xbd   : > { %403 = vrot.lane.b32.xlu0 %v2960_v15, %s2834_s25  ;;  %v557_v54 = vpop.permute.xlu1 %556  ;;  %588 = vst.msk [vmem:[#allocation3 + $0x68] sm:$0xf] %vm371_vm3, %v569_v56 }
  0xbe   : > { %v565_v55 = vrot.slane %v557_v54, 4 }
  0xbf   : > { %v555_v57 = vpop.permute.xlu0 %554 }
  0xc0   : > { %v578_v43 = vsel %vm567_vm6, %v557_v54, %v565_v55  ;;  %v564_v58 = vrot.slane %v555_v57, 4 }
  0xc1   : > { %594 = vst.msk [vmem:[#allocation3 + $0x8c] sm:$0xf] %vm371_vm3, %v578_v43  ;;  %v3143_v19 = vpop.permute.xlu2 %761  ;;  %v2704_v21 = vld [vmem:[#allocation3 + $0x7c] sm:$0xf] }
  0xc2   : > { %v576_v59 = vsel %vm356_vm0, %v564_v58, %v565_v55  ;;  %v777_v55 = vrot.slane %v3143_v19, 4 }
  0xc3   : > { %v577_v15 = vsel %vm567_vm6, %v555_v57, %v576_v59  ;;  %v2732_v61 = vld [vmem:[#allocation3 + $0x158] sm:$0xf0] }
  0xc4   : > { %593 = vst [vmem:[#allocation3 + $0x84] sm:$0xff] %v577_v15  ;;  %v2514_v62 = vor.u32 %v2732_v61, %v2513_v60 }
  0xc5   : > { %409 = vrot.lane.b32.xlu0 %v2967_v17, %s2834_s25  ;;  %v774_v0 = vpop.permute.xlu1 %773  ;;  %v2405_v17 = vld [vmem:[#allocation3 + $0x78] sm:$0xf] }
  0xc6   : > { %1346 = vmatpush.bf16.msra.mxu1 %v2514_v62  ;;  %v783_v3 = vrot.slane %v774_v0, 4 }
  0xc7   : > { %v772_v5 = vpop.permute.xlu0 %771 }
  0xc8   : > { %v782_v8 = vrot.slane %v772_v5, 4  ;;  %807 = vst.msk [vmem:[#allocation3 + $0x140] sm:$0xf] %vm371_vm3, %v772_v5  ;;  %v792_v11 = vsel %vm356_vm0, %v783_v3, %v784_v63 }
  0xc9   : > { %v793_v12 = vsel %vm786_vm7, %v774_v0, %v792_v11  ;;  %v3154_v16 = vpop.permute.xlu2 %767 }
  0xca   : > { %v790_v20 = vsel %vm356_vm0, %v781_v2, %v782_v8  ;;  %808 = vst [vmem:[#allocation3 + $0x144] sm:$0xff] %v793_v12 }
  0xcb   : > { %v791_v22 = vsel %vm786_vm7, %v3080_v4, %v790_v20  ;;  %v2705_v23 = vld [vmem:[#allocation3 + $0x80] sm:$0xf0]  ;;  %v2407_v24 = vld [vmem:[#allocation3 + $0x84] sm:$0xf0]  ;;  %805 = vst.msk [vmem:[#allocation3 + $0x134] sm:$0xf] %vm371_vm3, %v3154_v16 }
  0xcc   : > { %806 = vst [vmem:[#allocation3 + $0x138] sm:$0xff] %v791_v22  ;;  %v2406_v7 = vor.u32 %v2705_v23, %v2405_v17  ;;  %v2410_v25 = vor.u32 %v2704_v21, %v2407_v24 }
  0xcd   : > { %v902_v26 = vpop.permute.xlu1 %901 }
  0xce   : > { %1333 = vmatpush.bf16.msra.mxu0 %v2406_v7  ;;  %1375 = vmatpush.bf16.msra.mxu3 %v2410_v25  ;;  %v912_v27 = vrot.slane %v902_v26, 4  ;;  %937 = vst.msk [vmem:[#allocation3 + $0x1a0] sm:$0xf] %vm371_vm3, %v902_v26 }
  0xcf   : > { %v900_v28 = vpop.permute.xlu0 %899 }
  0xd0   : > { %v911_v29 = vrot.slane %v900_v28, 4 }
  0xd1   : > { %v2729_v30 = vld [vmem:[#allocation3 + $0x140] sm:$0xf0]  ;;  %v3162_v31 = vpop.permute.xlu2 %895 }
  0xd2   : > { %v920_v4 = vsel %vm356_vm0, %v911_v29, %v912_v27  ;;  %v909_v7 = vrot.slane %v3162_v31, 4 }
  0xd3   : > { %v921_v10 = vsel %vm916_vm8, %v900_v28, %v920_v4  ;;  %v2501_v32 = vld [vmem:[#allocation3 + $0x138] sm:$0xf] }
  0xd4   : > { %936 = vst [vmem:[#allocation3 + $0x198] sm:$0xff] %v921_v10  ;;  %v2502_v33 = vor.u32 %v2729_v30, %v2501_v32 }
  0xd5   : > { %v543_v34 = vpop.permute.xlu1 %542 }
  0xd6   : > { %1347 = vmatpush.bf16.msra.mxu1 %v2502_v33  ;;  %v558_v35 = vrot.slane %v543_v34, 4 }
  0xd7   : > { %v906_v37 = vpop.permute.xlu0 %905 }
  0xd8   : > { %v914_v38 = vrot.slane %v906_v37, 4  ;;  %939 = vst.msk [vmem:[#allocation3 + $0x1ac] sm:$0xf] %vm371_vm3, %v906_v37  ;;  %v566_v39 = vsel %vm356_vm0, %v558_v35, %v559_v18  ;;  %v780_v18 = vrot.slane %v3154_v16, 4 }
  0xd9   : > { %v568_v41 = vsel %vm567_vm6, %v543_v34, %v566_v39  ;;  %v3172_v6 = vpop.permute.xlu2 %483  ;;  %v2527_v39 = vld [vmem:[#allocation3 + $0x174] sm:$0xf0] }
  0xda   : > { %v922_v42 = vsel %vm356_vm0, %v913_v36, %v914_v38  ;;  %587 = vst [vmem:[#allocation3 + $0x60] sm:$0xff] %v568_v41  ;;  %v494_v45 = vrot.slane %v3172_v6, 4 }
  0xdb   : > { %v923_v44 = vsel %vm916_vm8, %v3110_v40, %v922_v42  ;;  %v2549_v14 = vld [vmem:[#allocation3 + $0x198] sm:$0xf] }
  0xdc   : > { %938 = vst [vmem:[#allocation3 + $0x1a4] sm:$0xff] %v923_v44  ;;  %v506_v47 = vsel %vm498_vm9, %v3172_v6, %v494_v45 }
  0xdd   : > { %v549_v46 = vpop.permute.xlu1 %548  ;;  %523 = vst.msk [vmem:[#allocation3 + $0x50] sm:$0xf] %vm371_vm3, %v506_v47 }
  0xde   : > { %v561_v13 = vrot.slane %v549_v46, 4 }
  0xdf   : > { %v547_v48 = vpop.permute.xlu0 %546 }
  0xe0   : > { %v560_v49 = vrot.slane %v547_v48, 4  ;;  %v572_v50 = vsel %vm567_vm6, %v549_v46, %v561_v13 }
  0xe1   : > { %590 = vst.msk [vmem:[#allocation3 + $0x74] sm:$0xf] %vm371_vm3, %v572_v50  ;;  %v3183_v9 = vpop.permute.xlu2 %704  ;;  %v2393_v61 = vld [vmem:[#allocation3 + $0x60] sm:$0xf]  ;;  %v2701_v62 = vld [vmem:[#allocation3 + $0x64] sm:$0xf] }
  0xe2   : > { %v570_v40 = vsel %vm356_vm0, %v560_v49, %v561_v13  ;;  %v716_v47 = vrot.slane %v3183_v9, 4  ;;  %v2515_v49 = vld [vmem:[#allocation3 + $0x15c] sm:$0xf0] }
  0xe3   : > { %v571_v51 = vsel %vm567_vm6, %v547_v48, %v570_v40  ;;  %v2741_v52 = vld [vmem:[#allocation3 + $0x1a0] sm:$0xf0] }
  0xe4   : > { %589 = vst [vmem:[#allocation3 + $0x6c] sm:$0xff] %v571_v51  ;;  %v2550_v53 = vor.u32 %v2741_v52, %v2549_v14  ;;  %v668_v40 = vld [vmem:[#allocation2 + $0x24] sm:$0xff]  ;;  %v2731_v52 = vld [vmem:[#allocation3 + $0x154] sm:$0xf] }
  0xe5   : > { %v766_v54 = vpop.permute.xlu1 %765  ;;  %676 = vst [vmem:[#allocation3 + $0xd8] sm:$0xff] %v668_v40 }
  0xe6   : > { %1365 = vmatpush.bf16.msra.mxu2 %v2550_v53  ;;  %v779_v56 = vrot.slane %v766_v54, 4  ;;  %v670_v53 = vld [vmem:[#allocation2 + $0x34] sm:$0xff] }
  0xe7   : > { %v764_v57 = vpop.permute.xlu0 %763  ;;  %678 = vst [vmem:[#allocation3 + $0xe4] sm:$0xff] %v670_v53 }
  0xe8   : > { %v778_v43 = vrot.slane %v764_v57, 4  ;;  %803 = vst.msk [vmem:[#allocation3 + $0x128] sm:$0xf] %vm371_vm3, %v764_v57  ;;  %v788_v58 = vsel %vm356_vm0, %v779_v56, %v780_v18  ;;  %v2503_v56 = vld [vmem:[#allocation3 + $0x144] sm:$0xf0] }
  0xe9   : > { %v789_v59 = vsel %vm786_vm7, %v766_v54, %v788_v58  ;;  %v3192_v15 = vpop.permute.xlu2 %710  ;;  %v2518_v54 = vor.u32 %v2731_v52, %v2515_v49 }
  0xea   : > { %v785_v60 = vsel %vm356_vm0, %v777_v55, %v778_v43  ;;  %804 = vst [vmem:[#allocation3 + $0x12c] sm:$0xff] %v789_v59  ;;  %v719_v44 = vrot.slane %v3192_v15, 4  ;;  %v2728_v55 = vld [vmem:[#allocation3 + $0x13c] sm:$0xf] }
  0xeb   : > { %v787_v63 = vsel %vm786_vm7, %v3143_v19, %v785_v60  ;;  %v2702_v0 = vld [vmem:[#allocation3 + $0x68] sm:$0xf0]  ;;  %v2395_v2 = vld [vmem:[#allocation3 + $0x6c] sm:$0xf0]  ;;  %744 = vst.msk [vmem:[#allocation3 + $0x11c] sm:$0xf] %vm371_vm3, %v3192_v15 }
  0xec   : > { %802 = vst [vmem:[#allocation3 + $0x120] sm:$0xff] %v787_v63  ;;  %v2394_v3 = vor.u32 %v2702_v0, %v2393_v61  ;;  %v2398_v5 = vor.u32 %v2701_v62, %v2395_v2  ;;  %v664_v63 = vld [vmem:[#allocation2 + $0x4] sm:$0xff] }
  0xed   : > { %v894_v8 = vpop.permute.xlu1 %893  ;;  %672 = vst [vmem:[#allocation3 + $0xc0] sm:$0xff] %v664_v63 }
  0xee   : > { %1334 = vmatpush.bf16.msra.mxu0 %v2394_v3  ;;  %1376 = vmatpush.bf16.msra.mxu3 %v2398_v5  ;;  %v908_v11 = vrot.slane %v894_v8, 4  ;;  %933 = vst.msk [vmem:[#allocation3 + $0x188] sm:$0xf] %vm371_vm3, %v894_v8  ;;  %v666_v5 = vld [vmem:[#allocation2 + $0x14] sm:$0xff]  ;;  %v2506_v8 = vor.u32 %v2728_v55, %v2503_v56 }
  0xef   : > { %v892_v12 = vpop.permute.xlu0 %891  ;;  %674 = vst [vmem:[#allocation3 + $0xcc] sm:$0xff] %v666_v5 }
  0xf0   : > { %v907_v16 = vrot.slane %v892_v12, 4 }
  0xf1   : > { %v2726_v20 = vld [vmem:[#allocation3 + $0x128] sm:$0xf0]  ;;  %v3200_v17 = vpop.permute.xlu2 %477 }
  0xf2   : > { %v915_v19 = vsel %vm356_vm0, %v907_v16, %v908_v11  ;;  %v2491_v16 = vld [vmem:[#allocation3 + $0x12c] sm:$0xf0] }
  0xf3   : > { %v917_v21 = vsel %vm916_vm8, %v892_v12, %v915_v19  ;;  %v2489_v22 = vld [vmem:[#allocation3 + $0x120] sm:$0xf]  ;;  %v2725_v12 = vld [vmem:[#allocation3 + $0x124] sm:$0xf] }
  0xf4   : > { %932 = vst [vmem:[#allocation3 + $0x180] sm:$0xff] %v917_v21  ;;  %v2490_v23 = vor.u32 %v2726_v20, %v2489_v22  ;;  %v2494_v22 = vor.u32 %v2725_v12, %v2491_v16 }
  0xf5   : > { %v482_v24 = vpop.permute.xlu1 %481 }
  0xf6   : > { %1348 = vmatpush.bf16.msra.mxu1 %v2490_v23  ;;  %v493_v25 = vrot.slane %v482_v24, 4 }
  0xf7   : > { %v898_v26 = vpop.permute.xlu0 %897 }
  0xf8   : > { %v910_v27 = vrot.slane %v898_v26, 4  ;;  %935 = vst.msk [vmem:[#allocation3 + $0x194] sm:$0xf] %vm371_vm3, %v898_v26  ;;  %v504_v28 = vsel %vm356_vm0, %v493_v25, %v494_v45  ;;  %v2734_v45 = vld [vmem:[#allocation3 + $0x16c] sm:$0xf] }
  0xf9   : > { %v505_v29 = vsel %vm498_vm9, %v482_v24, %v504_v28  ;;  %v3208_v30 = vpop.permute.xlu2 %698  ;;  %v2530_v46 = vor.u32 %v2734_v45, %v2527_v39 }
  0xfa   : > { %v918_v4 = vsel %vm356_vm0, %v909_v7, %v910_v27  ;;  %522 = vst [vmem:[#allocation3 + $0x48] sm:$0xff] %v505_v29  ;;  %v713_v29 = vrot.slane %v3208_v30, 4 }
  0xfb   : > { %v919_v10 = vsel %vm916_vm8, %v3162_v31, %v918_v4  ;;  %738 = vst.msk [vmem:[#allocation3 + $0xf8] sm:$0xf] %vm371_vm3, %v3208_v30  ;;  %v2537_v31 = vld [vmem:[#allocation3 + $0x180] sm:$0xf] }
  0xfc   : > { %934 = vst [vmem:[#allocation3 + $0x18c] sm:$0xff] %v919_v10 }
  0xfd   : > { %v488_v32 = vpop.permute.xlu1 %487 }
  0xfe   : > { %v496_v33 = vrot.slane %v488_v32, 4 }
  0xff   : > { %v486_v34 = vpop.permute.xlu0 %485 }
 0x100   : > { %v495_v36 = vrot.slane %v486_v34, 4  ;;  %v509_v35 = vsel %vm498_vm9, %v488_v32, %v496_v33  ;;  %v2341_v32 = vld [vmem:[%s3521_s3 + $0x8] sm:$0xf] }
 0x101   : > { %525 = vst.msk [vmem:[#allocation3 + $0x5c] sm:$0xf] %vm371_vm3, %v509_v35  ;;  %v3217_v37 = vpop.permute.xlu2 %411  ;;  %v2381_v58 = vld [vmem:[#allocation3 + $0x48] sm:$0xf]  ;;  %v2698_v59 = vld [vmem:[#allocation3 + $0x4c] sm:$0xf] }
 0x102   : > { %v507_v38 = vsel %vm356_vm0, %v495_v36, %v496_v33  ;;  %v491_v33 = vrot.slane %v3200_v17, 4  ;;  %v2688_v35 = vld [vmem:[%s3521_s3 + $0x10] sm:$0xf0]  ;;  %v423_v53 = vrot.slane %v3217_v37, 4 }
 0x103   : > { %v508_v41 = vsel %vm498_vm9, %v486_v34, %v507_v38  ;;  %v2738_v6 = vld [vmem:[#allocation3 + $0x188] sm:$0xf0]  ;;  %v3250_v39 = vor.u32 %v2688_v35, %v2341_v32  ;;  %v2335_v32 = vld [vmem:[%s3521_s3 + $0xc] sm:$0xf0] }
 0x104   : > { %524 = vst [vmem:[#allocation3 + $0x54] sm:$0xff] %v508_v41  ;;  %v2538_v42 = vor.u32 %v2738_v6, %v2537_v31 }
 0x105   : > { %v709_v13 = vpop.permute.xlu1 %708 }
 0x106   : > { %1366 = vmatpush.bf16.msra.mxu2 %v2538_v42  ;;  %v718_v48 = vrot.slane %v709_v13, 4 }
 0x107   : > { %v707_v50 = vpop.permute.xlu0 %706 }
 0x108   : > { %v717_v51 = vrot.slane %v707_v50, 4  ;;  %742 = vst.msk [vmem:[#allocation3 + $0x110] sm:$0xf] %vm371_vm3, %v707_v50  ;;  %v727_v14 = vsel %vm356_vm0, %v718_v48, %v719_v44 }
 0x109   : > { %v728_v18 = vsel %vm721_vm10, %v709_v13, %v727_v14  ;;  %v3226_v57 = vpop.permute.xlu2 %417  ;;  %2559 = vmatmul.msk.bf16.vlgmr.msra.gmra.mxu2 %vm1327_vm12, %v3250_v39 }
 0x10a   : > { %1387 = vmatpush.bf16.msrb.mxu2 %v2530_v46  ;;  %v725_v43 = vsel %vm356_vm0, %v716_v47, %v717_v51  ;;  %743 = vst [vmem:[#allocation3 + $0x114] sm:$0xff] %v728_v18  ;;  %v426_v15 = vrot.slane %v3226_v57, 4 }
 0x10b   : > { %v726_v60 = vsel %vm721_vm10, %v3183_v9, %v725_v43  ;;  %v2699_v61 = vld [vmem:[#allocation3 + $0x50] sm:$0xf0]  ;;  %v2383_v62 = vld [vmem:[#allocation3 + $0x54] sm:$0xf0] }
 0x10c   : > { %741 = vst [vmem:[#allocation3 + $0x108] sm:$0xff] %v726_v60  ;;  %v2382_v0 = vor.u32 %v2699_v61, %v2381_v58  ;;  %v2386_v2 = vor.u32 %v2698_v59, %v2383_v62  ;;  %v440_v3 = vsel %vm429_vm11, %v3226_v57, %v426_v15  ;;  %v2453_v58 = vld [vmem:[#allocation3 + $0xd8] sm:$0xf]  ;;  %v2717_v59 = vld [vmem:[#allocation3 + $0xe0] sm:$0xf0] }
 0x10d   : > { %v476_v11 = vpop.permute.xlu1 %475  ;;  %456 = vst.msk [vmem:[#allocation3 + $0x2c] sm:$0xf] %vm371_vm3, %v440_v3  ;;  %v2716_v60 = vld [vmem:[#allocation3 + $0xdc] sm:$0xf]  ;;  %v2455_v61 = vld [vmem:[#allocation3 + $0xe4] sm:$0xf0]  ;;  %v2454_v12 = vor.u32 %v2717_v59, %v2453_v58 }
 0x10e   : > { %1388 = vmatpush.bf16.msrb.mxu2 %v2518_v54  ;;  %1335 = vmatpush.bf16.msra.mxu0 %v2382_v0  ;;  %v490_v9 = vrot.slane %v476_v11, 4  ;;  %v2458_v16 = vor.u32 %v2716_v60, %v2455_v61  ;;  %v1013_v58 = vld [vmem:[%s3523_s5 + $0x8] sm:$0xff]  ;;  %v2413_v59 = vld [vmem:[#allocation3 + $0x80] sm:$0xf]  ;;  %v2835_v60 = vmov 1  }
 0x10f   : > { %1377 = vmatpush.bf16.msra.mxu3 %v2386_v2  ;;  %v474_v20 = vpop.permute.xlu0 %473  ;;  %2795 = vset.pattern.permute.xlu0 %v2835_v60 }
 0x110   : > { %v500_v19 = vsel %vm498_vm9, %v476_v11, %v490_v9  ;;  %v489_v21 = vrot.slane %v474_v20, 4  ;;  %1021 = vperm.xlu2 %2794, %v1013_v58  }
 0x111   : > { %519 = vst.msk [vmem:[#allocation3 + $0x38] sm:$0xf] %vm371_vm3, %v500_v19  ;;  %v2723_v23 = vld [vmem:[#allocation3 + $0x110] sm:$0xf0]  ;;  %v2479_v24 = vld [vmem:[#allocation3 + $0x114] sm:$0xf0] }
 0x112   : > { %1389 = vmatpush.bf16.msrb.mxu2 %v2506_v8  ;;  %v497_v7 = vsel %vm356_vm0, %v489_v21, %v490_v9  ;;  %v2441_v19 = vld [vmem:[#allocation3 + $0xc0] sm:$0xf]  ;;  %v2714_v21 = vld [vmem:[#allocation3 + $0xc8] sm:$0xf0] }
 0x113   : > { %v499_v25 = vsel %vm498_vm9, %v474_v20, %v497_v7  ;;  %v2477_v26 = vld [vmem:[#allocation3 + $0x108] sm:$0xf]  ;;  %v2722_v27 = vld [vmem:[#allocation3 + $0x10c] sm:$0xf] }
 0x114   : > { %518 = vst [vmem:[#allocation3 + $0x30] sm:$0xff] %v499_v25  ;;  %v2478_v28 = vor.u32 %v2723_v23, %v2477_v26  ;;  %v2482_v4 = vor.u32 %v2722_v27, %v2479_v24  ;;  %v2443_v24 = vld [vmem:[#allocation3 + $0xcc] sm:$0xf0]  ;;  %v2712_v27 = vld [vmem:[#allocation3 + $0xb8] sm:$0xf0] }
 0x115   : > { %v697_v10 = vpop.permute.xlu1 %696  ;;  %v2437_v26 = vld [vmem:[#allocation3 + $0xb0] sm:$0xf] }
 0x116   : > { %1390 = vmatpush.bf16.msrb.mxu2 %v2494_v22  ;;  %1349 = vmatpush.bf16.msra.mxu1 %v2478_v28  ;;  %v712_v34 = vrot.slane %v697_v10, 4 }
 0x117   : > { %v480_v36 = vpop.permute.xlu0 %479 }
 0x118   : > { %v720_v38 = vsel %vm356_vm0, %v712_v34, %v713_v29  ;;  %v492_v30 = vrot.slane %v480_v36, 4  ;;  %v2442_v29 = vor.u32 %v2714_v21, %v2441_v19  ;;  %v2740_v21 = vld [vmem:[#allocation3 + $0x19c] sm:$0xf] }
 0x119   : > { %v722_v41 = vsel %vm721_vm10, %v697_v10, %v720_v38  ;;  %v2686_v10 = vld [vmem:[%s3521_s3 + $0x4] sm:$0xf]  ;;  %v408_v38 = vpop.permute.xlu2 %407 }
 0x11a   : > { %1391 = vmatpush.bf16.msrb.mxu2 %v2482_v4  ;;  %737 = vst [vmem:[#allocation3 + $0xf0] sm:$0xff] %v722_v41  ;;  %v501_v31 = vsel %vm356_vm0, %v491_v33, %v492_v30  ;;  %v503_v6 = vsel %vm498_vm9, %v480_v36, %v492_v30  ;;  %v2557_v4 = vld [vmem:[#allocation3 + $0x1a0] sm:$0xf]  ;;  %v2742_v30 = vld [vmem:[#allocation3 + $0x1a8] sm:$0xf0] }
 0x11b   : > { %v502_v42 = vsel %vm498_vm9, %v3200_v17, %v501_v31  ;;  %521 = vst.msk [vmem:[#allocation3 + $0x44] sm:$0xf] %vm371_vm3, %v503_v6  ;;  %v2369_v48 = vld [vmem:[#allocation3 + $0x30] sm:$0xf]  ;;  %v2695_v40 = vld [vmem:[#allocation3 + $0x34] sm:$0xf] }
 0x11c   : > { %520 = vst [vmem:[#allocation3 + $0x3c] sm:$0xff] %v502_v42  ;;  %v3286_v6 = vld [vmem:[%s3523_s5] sm:$0xff] }
 0x11d   : > { %v703_v44 = vpop.permute.xlu1 %702  ;;  %v2709_v42 = vld [vmem:[#allocation3 + $0xa0] sm:$0xf0]  ;;  %1016 = vperm.xlu1 %2793, %v3286_v6   ;;  %1476 = vperm.xlu0 %2795, %v3286_v6  }
 0x11e   : > { %v715_v45 = vrot.slane %v703_v44, 4  ;;  %740 = vst.msk [vmem:[#allocation3 + $0x104] sm:$0xf] %vm371_vm3, %v703_v44  ;;  %v3288_v44 = vor.u32 %v2686_v10, %v2335_v32  ;;  %v2377_v32 = vld [vmem:[#allocation3 + $0x38] sm:$0xf] }
 0x11f   : > { %v701_v46 = vpop.permute.xlu0 %700 }
 0x120   : > { %v714_v13 = vrot.slane %v701_v46, 4 }
 0x121   : > { %v2465_v0 = vld [vmem:[#allocation3 + $0xf0] sm:$0xf]  ;;  %v2719_v2 = vld [vmem:[#allocation3 + $0xf4] sm:$0xf] }
 0x122   : > { %v723_v47 = vsel %vm356_vm0, %v714_v13, %v715_v45  ;;  %v669_v45 = vld [vmem:[#allocation2 + $0x2c] sm:$0xf]  ;;  %v421_v13 = vrot.slane %v408_v38, 4 }
 0x123   : > { %v724_v49 = vsel %vm721_vm10, %v701_v46, %v723_v47  ;;  %v2696_v50 = vld [vmem:[#allocation3 + $0x38] sm:$0xf0]  ;;  %v2371_v51 = vld [vmem:[#allocation3 + $0x3c] sm:$0xf0]  ;;  %v2438_v47 = vor.u32 %v2712_v27, %v2437_v26  ;;  %677 = vst.msk [vmem:[#allocation3 + $0xe0] sm:$0xf] %vm371_vm3, %v669_v45 }
 0x124   : > { %739 = vst [vmem:[#allocation3 + $0xfc] sm:$0xff] %v724_v49  ;;  %v2370_v14 = vor.u32 %v2696_v50, %v2369_v48  ;;  %v2374_v17 = vor.u32 %v2695_v40, %v2371_v51  ;;  %v671_v46 = vld [vmem:[#allocation2 + $0x3c] sm:$0xf]  ;;  %v2558_v48 = vor.u32 %v2742_v30, %v2557_v4  ;;  %v2425_v49 = vld [vmem:[#allocation3 + $0x98] sm:$0xf]  ;;  %v2836_v4 = vmov 2  }
 0x125   : > { %v416_v52 = vpop.permute.xlu1 %415  ;;  %v2545_v40 = vld [vmem:[#allocation3 + $0x188] sm:$0xf]  ;;  %v2739_v51 = vld [vmem:[#allocation3 + $0x190] sm:$0xf0]  ;;  %679 = vst.msk [vmem:[#allocation3 + $0xec] sm:$0xf] %vm371_vm3, %v671_v46  ;;  %2796 = vset.pattern.permute.xlu1 %v2835_v60  ;;  %2797 = vset.pattern.permute.xlu2 %v2836_v4 }
 0x126   : > { %1336 = vmatpush.bf16.msra.mxu0 %v2370_v14  ;;  %1378 = vmatpush.bf16.msra.mxu3 %v2374_v17  ;;  %v425_v18 = vrot.slane %v416_v52, 4  ;;  %v2426_v17 = vor.u32 %v2709_v42, %v2425_v49  ;;  %v2521_v26 = vld [vmem:[#allocation3 + $0x158] sm:$0xf]  ;;  %v2733_v27 = vld [vmem:[#allocation3 + $0x160] sm:$0xf0] }
 0x127   : > { %v414_v54 = vpop.permute.xlu0 %413  ;;  %1480 = vperm.xlu1 %2796, %v1013_v58   ;;  %v2694_v30 = vld [vmem:[#allocation3 + $0x28] sm:$0xf0]  ;;  %1490 = vperm.xlu2 %2797, %v3286_v6   ;;  %v2497_v42 = vld [vmem:[#allocation3 + $0x128] sm:$0xf]  ;;  %v2727_v45 = vld [vmem:[#allocation3 + $0x130] sm:$0xf0] }
 0x128   : > { %v438_v55 = vsel %vm356_vm0, %v425_v18, %v426_v15  ;;  %v424_v56 = vrot.slane %v414_v54, 4  ;;  %v2485_v49 = vld [vmem:[#allocation3 + $0x110] sm:$0xf]  ;;  %v2721_v6 = vld [vmem:[#allocation3 + $0x100] sm:$0xf0] }
 0x129   : > { %v439_v43 = vsel %vm429_vm11, %v416_v52, %v438_v55  ;;  %v665_v52 = vld [vmem:[#allocation2 + $0xc] sm:$0xf]  ;;  %v667_v55 = vld [vmem:[#allocation2 + $0x1c] sm:$0xf] }
 0x12a   : > { %455 = vst [vmem:[#allocation3 + $0x24] sm:$0xff] %v439_v43  ;;  %v435_v62 = vsel %vm356_vm0, %v423_v53, %v424_v56  ;;  %v437_v63 = vsel %vm429_vm11, %v414_v54, %v424_v56  ;;  %v2546_v54 = vor.u32 %v2739_v51, %v2545_v40  ;;  %v2706_v43 = vld [vmem:[#allocation3 + $0x88] sm:$0xf0]  ;;  %v2473_v51 = vld [vmem:[#allocation3 + $0xf8] sm:$0xf] }
 0x12b   : > { %v436_v3 = vsel %vm429_vm11, %v3217_v37, %v435_v62  ;;  %454 = vst.msk [vmem:[#allocation3 + $0x20] sm:$0xf] %vm371_vm3, %v437_v63  ;;  %v2720_v57 = vld [vmem:[#allocation3 + $0xf8] sm:$0xf0]  ;;  %v2467_v15 = vld [vmem:[#allocation3 + $0xfc] sm:$0xf0]  ;;  %v2414_v61 = vor.u32 %v2706_v43, %v2413_v59 }
 0x12c   : > { %453 = vst [vmem:[#allocation3 + $0x18] sm:$0xff] %v436_v3  ;;  %v2466_v5 = vor.u32 %v2720_v57, %v2465_v0  ;;  %v2470_v8 = vor.u32 %v2719_v2, %v2467_v15  ;;  %v2713_v37 = vld [vmem:[#allocation3 + $0xc4] sm:$0xf]  ;;  %v2703_v62 = vld [vmem:[#allocation3 + $0x70] sm:$0xf0] }
 0x12d   : > { %v406_v11 = vpop.permute.xlu1 %405  ;;  %v2446_v35 = vor.u32 %v2713_v37, %v2443_v24  ;;  %673 = vst.msk [vmem:[#allocation3 + $0xc8] sm:$0xf] %vm371_vm3, %v665_v52  ;;  %v2533_v63 = vld [vmem:[#allocation3 + $0x170] sm:$0xf]  ;;  %v2736_v0 = vld [vmem:[#allocation3 + $0x178] sm:$0xf0]  ;;  %v2474_v52 = vor.u32 %v2721_v6, %v2473_v51 }
 0x12e   : > { %1350 = vmatpush.bf16.msra.mxu1 %v2466_v5  ;;  %1392 = vmatpush.bf16.msrb.mxu2 %v2470_v8  ;;  %v420_v9 = vrot.slane %v406_v11, 4  ;;  %675 = vst.msk [vmem:[#allocation3 + $0xd4] sm:$0xf] %vm371_vm3, %v667_v55  ;;  %v2401_v2 = vld [vmem:[#allocation3 + $0x68] sm:$0xf]  ;;  %v2534_v37 = vor.u32 %v2736_v0, %v2533_v63 }
 0x12f   : > { %v404_v20 = vpop.permute.xlu0 %403  ;;  %v2551_v3 = vld [vmem:[#allocation3 + $0x1a4] sm:$0xf0]  ;;  %v2700_v57 = vld [vmem:[#allocation3 + $0x58] sm:$0xf0]  ;;  %v2402_v15 = vor.u32 %v2703_v62, %v2401_v2  ;;  %v2333_v8 = vld [vmem:[%s3521_s3] sm:$0xf]  ;;  %2798 = vset.pattern.permute.xlu1 %v2836_v4  ;;  %2800 = vset.pattern.permute.xlu2 %v2826_v1 }
 0x130   : > { %v431_v22 = vsel %vm429_vm11, %v406_v11, %v420_v9  ;;  %v419_v23 = vrot.slane %v404_v20, 4  ;;  %v2687_v11 = vld [vmem:[%s3521_s3 + $0x8] sm:$0xf0]  ;;  %1494 = vperm.xlu1 %2798, %v1013_v58  }
 0x131   : > { %450 = vst.msk [vmem:[#allocation3 + $0x8] sm:$0xf] %vm371_vm3, %v431_v22  ;;  %v2693_v7 = vld [vmem:[#allocation3 + $0x20] sm:$0xf0]  ;;  %v2359_v25 = vld [vmem:[#allocation3 + $0x24] sm:$0xf0]  ;;  %v2554_v22 = vor.u32 %v2740_v21, %v2551_v3  ;;  %v2334_v24 = vor.u32 %v2687_v11, %v2333_v8 }
 0x132   : > { %v428_v28 = vsel %vm356_vm0, %v419_v23, %v420_v9  ;;  %1351 = vmatpush.bf16.msra.mxu1 %v2454_v12  ;;  %1393 = vmatpush.bf16.msrb.mxu2 %v2458_v16  ;;  %v2389_v23 = vld [vmem:[#allocation3 + $0x50] sm:$0xf] }
 0x133   : > { %v430_v33 = vsel %vm429_vm11, %v404_v20, %v428_v28  ;;  %v2357_v34 = vld [vmem:[#allocation3 + $0x18] sm:$0xf]  ;;  %v2692_v36 = vld [vmem:[#allocation3 + $0x1c] sm:$0xf]  ;;  %v2697_v28 = vld [vmem:[#allocation3 + $0x40] sm:$0xf0] }
 0x134   : > { %449 = vst [vmem:[#allocation3] sm:$0xff] %v430_v33  ;;  %v2358_v41 = vor.u32 %v2693_v7, %v2357_v34  ;;  %v2362_v31 = vor.u32 %v2692_v36, %v2359_v25  ;;  %v2390_v7 = vor.u32 %v2700_v57, %v2389_v23  ;;  %v2539_v25 = vld [vmem:[#allocation3 + $0x18c] sm:$0xf0]  ;;  %v2522_v33 = vor.u32 %v2733_v27, %v2521_v26  ;;  %v2509_v36 = vld [vmem:[#allocation3 + $0x140] sm:$0xf] }
 0x135   : > { %v2378_v34 = vor.u32 %v2697_v28, %v2377_v32 }
 0x136   : > { %1337 = vmatpush.bf16.msra.mxu0 %v2358_v41  ;;  %1352 = vmatpush.bf16.msra.mxu1 %v2442_v29  ;;  %v2737_v29 = vld [vmem:[#allocation3 + $0x184] sm:$0xf] }
 0x137   : > { %1379 = vmatpush.bf16.msra.mxu3 %v2362_v31  ;;  %1394 = vmatpush.bf16.msrb.mxu2 %v2446_v35  ;;  %v410_v50 = vpop.permute.xlu0 %409  ;;  %v2542_v10 = vor.u32 %v2737_v29, %v2539_v25  ;;  %v2730_v35 = vld [vmem:[#allocation3 + $0x148] sm:$0xf0] }
 0x138   : > { %v422_v14 = vrot.slane %v410_v50, 4  ;;  %v2510_v41 = vor.u32 %v2730_v35, %v2509_v36  ;;  %2799 = vset.pattern.permute.xlu1 %v2826_v1 }
 0x139   : > { %1353 = vmatmul.bf16.vlgmr.msra.gmra.mxu1 %v3288_v44 }
 0x13a   : > { %1415 = vmatpush.bf16.msrb.mxu1 %v2438_v47  ;;  %v432_v53 = vsel %vm356_vm0, %v421_v13, %v422_v14  ;;  %v434_v18 = vsel %vm429_vm11, %v410_v50, %v422_v14  ;;  %1395 = vmatmul.bf16.vlgmr.msrb.gmra.mxu2 %v3288_v44  ;;  %v2353_v13 = vld [vmem:[#allocation3 + $0x8] sm:$0xf]  ;;  %v2498_v47 = vor.u32 %v2727_v45, %v2497_v42  ;;  %v2724_v50 = vld [vmem:[#allocation3 + $0x118] sm:$0xf0]  ;;  %v2461_v14 = vld [vmem:[#allocation3 + $0xe0] sm:$0xf] }
 0x13b   : > { %1449 = vmatpush.bf16.msra.mxu2 %v2558_v48  ;;  %v433_v56 = vsel %vm429_vm11, %v408_v38, %v432_v53  ;;  %452 = vst.msk [vmem:[#allocation3 + $0x14] sm:$0xf] %vm371_vm3, %v434_v18  ;;  %v2345_v5 = vld [vmem:[#allocation3] sm:$0xf]  ;;  %v2689_v12 = vld [vmem:[#allocation3 + $0x4] sm:$0xf]  ;;  %v2486_v40 = vor.u32 %v2724_v50, %v2485_v49 }
 0x13c   : > { %451 = vst [vmem:[#allocation3 + $0xc] sm:$0xff] %v433_v56  ;;  %v2365_v38 = vld [vmem:[#allocation3 + $0x20] sm:$0xf]  ;;  %v2449_v18 = vld [vmem:[#allocation3 + $0xc8] sm:$0xf] }
 0x13d   : > { %v2366_v31 = vor.u32 %v2694_v30, %v2365_v38 }
 0x13e   : > { %1416 = vmatpush.bf16.msrb.mxu1 %v2426_v17  ;;  %v2718_v17 = vld [vmem:[#allocation3 + $0xe8] sm:$0xf0] }
 0x13f   : > { %1450 = vmatpush.bf16.msra.mxu2 %v2546_v54  ;;  %v2462_v53 = vor.u32 %v2718_v17, %v2461_v14  ;;  %v2715_v54 = vld [vmem:[#allocation3 + $0xd0] sm:$0xf0] }
 0x140   : > { %v2450_v55 = vor.u32 %v2715_v54, %v2449_v18 }
 0x142   : > { %1417 = vmatpush.bf16.msrb.mxu1 %v2414_v61  ;;  %v2691_v46 = vld [vmem:[#allocation3 + $0x10] sm:$0xf0] }
 0x143   : > { %v2690_v9 = vld [vmem:[#allocation3 + $0x8] sm:$0xf0]  ;;  %v2347_v16 = vld [vmem:[#allocation3 + $0xc] sm:$0xf0]  ;;  %v2354_v48 = vor.u32 %v2691_v46, %v2353_v13 }
 0x144   : > { %v2346_v20 = vor.u32 %v2690_v9, %v2345_v5  ;;  %v2350_v19 = vor.u32 %v2689_v12, %v2347_v16 }
 0x146   : > { %1418 = vmatpush.bf16.msrb.mxu1 %v2402_v15  ;;  %1338 = vmatpush.bf16.msra.mxu0 %v2346_v20 }
 0x147   : > { %1380 = vmatpush.bf16.msra.mxu3 %v2350_v19 }
 0x149   : > { %1339 = vmatmul.bf16.vlgmr.msra.gmra.mxu0 %v2334_v24 }
 0x14a   : > { %1407 = vmatpush.bf16.msrb.mxu0 %v2554_v22  ;;  %1419 = vmatpush.bf16.msrb.mxu1 %v2390_v7  ;;  %v3332_v7 = vld [vmem:[%s3518_s0] sm:$0x7] }
 0x14b   : > { %1429 = vmatpush.bf16.msrb.mxu3 %v2534_v37  ;;  %2561 = vmatmul.msk.bf16.vlgmr.msra.gmra.mxu2 %vm1327_vm12, %v3250_v39  ;;  %v1504_v32 = vperm.slane %v3332_v7, 0  ;;  %v1505_v36 = vperm.slane %v3332_v7, 1 }
 0x14c   : > { %1381 = vmatmul.bf16.vlgmr.msra.gmra.mxu3 %v2334_v24 }
 0x14e   : > { %1408 = vmatpush.bf16.msrb.mxu0 %v2542_v10  ;;  %1420 = vmatpush.bf16.msrb.mxu1 %v2378_v34 }
 0x14f   : > { %1430 = vmatpush.bf16.msrb.mxu3 %v2522_v33 }
 0x152   : > { %1421 = vmatpush.bf16.msrb.mxu1 %v2366_v31 }
 0x153   : > { %1431 = vmatpush.bf16.msrb.mxu3 %v2510_v41 }
 0x156   : > { %1422 = vmatpush.bf16.msrb.mxu1 %v2354_v48 }
 0x157   : > { %1432 = vmatpush.bf16.msrb.mxu3 %v2498_v47 }
 0x159   : > { %1423 = vmatmul.bf16.vlgmr.msrb.gmra.mxu1 %v2334_v24  ;;  %2560 = vmatmul.msk.bf16.vlgmr.msrb.gmra.mxu0 %vm1327_vm12, %v3250_v39 }
 0x15b   : > { %1433 = vmatpush.bf16.msrb.mxu3 %v2486_v40 }
 0x15f   : > { %1434 = vmatpush.bf16.msrb.mxu3 %v2474_v52 }
 0x163   : > { %1435 = vmatpush.bf16.msrb.mxu3 %v2462_v53 }
 0x167   : > { %1436 = vmatpush.bf16.msrb.mxu3 %v2450_v55 }
 0x16a   : > { %1437 = vmatmul.bf16.vlgmr.msrb.gmra.mxu3 %v3288_v44  ;;  %v3323_v39 = vpop.permute.xlu2 %1021 }
 0x181   : > { %v1491_v26 = vpop.permute.xlu2 %1490 }
 0x18c   : > { %v1368_v56 = vpop.f32.mrf.mxu2 }
 0x18f   : > { %v1017_v58 = vpop.permute.xlu1 %1016  ;;  %v1477_v19 = vpop.permute.xlu0 %1476 }
 0x194   : > { %v1370_v43 = vpop.f32.mrf.mxu2 }
 0x199   : > { %v3326_v22 = vpop.permute.xlu1 %1480 }
 0x1a2   : > { %v1495_v46 = vpop.permute.xlu1 %1494 }
 0x1b6   : > { %v1354_v59 = vpop.f32.mrf.mxu1 }
 0x1bd   : > { %v1396_v3 = vpop.f32.mrf.mxu2 }
 0x1be   : > { %v1356_v8 = vpop.f32.mrf.mxu1 }
 0x1c5   : > { %v1398_v25 = vpop.f32.mrf.mxu2 }
 0x1c6   : > { %v1340_v61 = vpop.f32.mrf.mxu0 }
 0x1c7   : > { %v1341_v62 = vadd.f32 %v1340_v61, %v1017_v58 }
 0x1c9   : > { %v1355_v63 = vadd.f32 %v1354_v59, %v1341_v62  ;;  %v1506_v62 = vperm.slane %v3332_v7, 2 }
 0x1cb   : > { %v1369_v2 = vadd.f32 %v1368_v56, %v1355_v63 }
 0x1cd   : > { %v1463_v9 = vmul.f32 0.01, %v1369_v2  ;;  %vm1457_vm13 = vcmp.ge.f32.partialorder %v1369_v2, 0.0 }
 0x1ce   : > { %v1342_v57 = vpop.f32.mrf.mxu0  ;;  %v1452_v52 = vpop.f32.mrf.mxu2 }
 0x1cf   : > { %v1382_v0 = vpop.f32.mrf.mxu3  ;;  %v1343_v5 = vadd.f32 %v1342_v57, %v3323_v39  ;;  %v1469_v20 = vsel %vm1457_vm13, %v1369_v2, %v1463_v9 }
 0x1d0   : > { %v1383_v15 = vadd.f32 %v1382_v0, %v1017_v58  ;;  %v1483_v24 = vmul.f32 %v1477_v19, %v1469_v20 }
 0x1d1   : > { %v1357_v11 = vadd.f32 %v1356_v8, %v1343_v5 }
 0x1d2   : > { %v1397_v44 = vadd.f32 %v1396_v3, %v1383_v15  ;;  %v1497_v33 = vadd.f32 %v1491_v26, %v1483_v24 }
 0x1d3   : > { %v1371_v16 = vadd.f32 %v1370_v43, %v1357_v11 }
 0x1d4   : > { %v1510_v31 = vmul.f32 %v1504_v32, %v1497_v33 }
 0x1d5   : > { %v1466_v27 = vmul.f32 0.01, %v1371_v16  ;;  %vm1460_vm15 = vcmp.ge.f32.partialorder %v1371_v16, 0.0 }
 0x1d6   : > { %v1410_v21 = vpop.f32.mrf.mxu0  ;;  %v1424_v48 = vpop.f32.mrf.mxu1 }
 0x1d7   : > { %v1384_v12 = vpop.f32.mrf.mxu3  ;;  %v1411_v37 = vadd.f32 %v1410_v21, %v1397_v44  ;;  %v1472_v35 = vsel %vm1460_vm15, %v1371_v16, %v1466_v27  ;;  %v1425_v6 = vadd.f32 %v1424_v48, %v1017_v58  ;;  %v1454_v57 = vpop.f32.mrf.mxu2 }
 0x1d8   : > { %v1385_v23 = vadd.f32 %v1384_v12, %v3323_v39  ;;  %v1486_v42 = vmul.f32 %v3326_v22, %v1472_v35 }
 0x1d9   : > { %vm1458_vm14 = vcmp.ge.f32.partialorder %v1411_v37, 0.0  ;;  %v1464_v28 = vmul.f32 0.01, %v1411_v37 }
 0x1da   : > { %v1399_v29 = vadd.f32 %v1398_v25, %v1385_v23  ;;  %v1500_v50 = vadd.f32 %v1495_v46, %v1486_v42 }
 0x1db   : > { %v1470_v10 = vsel %vm1458_vm14, %v1411_v37, %v1464_v28 }
 0x1dc   : > { %v1484_v34 = vmul.f32 %v1477_v19, %v1470_v10  ;;  %v1513_v14 = vmul.f32 %v1504_v32, %v1500_v50  ;;  %v3383_v10 = vld [vmem:[%s3524_s6] sm:$0xff] }
 0x1de   : > { %v1498_v38 = vadd.f32 %v1491_v26, %v1484_v34  ;;  %v1412_v30 = vpop.f32.mrf.mxu0  ;;  %v1426_v43 = vpop.f32.mrf.mxu1 }
 0x1df   : > { %v1413_v41 = vadd.f32 %v1412_v30, %v1399_v29  ;;  %v1427_v59 = vadd.f32 %v1426_v43, %v3323_v39 }
 0x1e0   : > { %v1511_v45 = vmul.f32 %v1505_v36, %v1498_v38 }
 0x1e1   : > { %vm1461_vm1 = vcmp.ge.f32.partialorder %v1413_v41, 0.0  ;;  %v1467_v13 = vmul.f32 0.01, %v1413_v41 }
 0x1e2   : > { %v1516_v47 = vpack.c.bf16 %v1511_v45, %v1510_v31 }
 0x1e3   : > { %v1473_v49 = vsel %vm1461_vm1, %v1413_v41, %v1467_v13  ;;  %vm2251_vm1 = vcmask 1043458  }
 0x1e4   : > { %1520 = vst [vmem:[#allocation2 + $0x4] sm:$0xff] %v1516_v47  ;;  %v1487_v40 = vmul.f32 %v3326_v22, %v1473_v49  ;;  %1742 = vrot.lane.b32.xlu2 %v1516_v47, %s2827_s18  ;;  %1710 = vrot.lane.b32.xlu0 %v1516_v47, %s2830_s21 }
 0x1e5   : > { %1678 = vrot.lane.b32.xlu1 %v1516_v47, %s2833_s24  ;;  %1666 = vst [vmem:[#allocation3 + $0x60] sm:$0xff] %v1516_v47 }
 0x1e6   : > { %v1501_v51 = vadd.f32 %v1495_v46, %v1487_v40 }
 0x1e8   : > { %v1514_v17 = vmul.f32 %v1505_v36, %v1501_v51 }
 0x1ea   : > { %v1518_v18 = vpack.c.bf16 %v1514_v17, %v1513_v14 }
 0x1eb   : > { %v3341_v55 = vld [vmem:[#allocation2] sm:$0xff] }
 0x1ec   : > { %1522 = vst [vmem:[#allocation2 + $0x14] sm:$0xff] %v1518_v18  ;;  %1636 = vrot.lane.b32.xlu2 %v3341_v55, %s2828_s19  ;;  %1602 = vrot.lane.b32.xlu0 %v3341_v55, %s2829_s20 }
 0x1ed   : > { %v1438_v53 = vpop.f32.mrf.mxu3  ;;  %1774 = vrot.lane.b32.xlu1 %v1516_v47, %s2831_s22  ;;  %1668 = vst [vmem:[#allocation3 + $0x6c] sm:$0xff] %v1518_v18 }
 0x1ee   : > { %v1439_v54 = vadd.f32 %v1438_v53, %v1425_v6 }
 0x1f0   : > { %v1453_v56 = vadd.f32 %v1452_v52, %v1439_v54 }
 0x1f2   : > { %vm1459_vm2 = vcmp.ge.f32.partialorder %v1453_v56, 0.0  ;;  %v1465_v58 = vmul.f32 0.01, %v1453_v56 }
 0x1f3   : > { %v1630_v37 = vld [vmem:[#allocation2 + $0x10] sm:$0xff] }
 0x1f4   : > { %v1471_v61 = vsel %vm1459_vm2, %v1453_v56, %v1465_v58  ;;  %1714 = vrot.lane.b32.xlu2 %v1518_v18, %s2830_s21 }
 0x1f5   : > { %v1485_v63 = vmul.f32 %v1477_v19, %v1471_v61  ;;  %v1440_v0 = vpop.f32.mrf.mxu3  ;;  %1746 = vrot.lane.b32.xlu1 %v1518_v18, %s2827_s18 }
 0x1f6   : > { %v1441_v2 = vadd.f32 %v1440_v0, %v1427_v59 }
 0x1f7   : > { %v1499_v3 = vadd.f32 %v1491_v26, %v1485_v63 }
 0x1f8   : > { %v1455_v15 = vadd.f32 %v1454_v57, %v1441_v2 }
 0x1f9   : > { %v1512_v5 = vmul.f32 %v1506_v62, %v1499_v3 }
 0x1fa   : > { %vm1462_vm12 = vcmp.ge.f32.partialorder %v1455_v15, 0.0  ;;  %v1468_v8 = vmul.f32 0.01, %v1455_v15 }
 0x1fb   : > { %v1517_v11 = vpack.c.bf16 %v1512_v5, %v1512_v5 }
 0x1fc   : > { %v1474_v9 = vsel %vm1462_vm12, %v1455_v15, %v1468_v8 }
 0x1fd   : > { %1521 = vst.msk [vmem:[#allocation2 + $0xc] sm:$0xf] %vm371_vm3, %v1517_v11  ;;  %v1488_v39 = vmul.f32 %v3326_v22, %v1474_v9 }
 0x1ff   : > { %v1502_v44 = vadd.f32 %v1495_v46, %v1488_v39 }
 0x201   : > { %v1515_v12 = vmul.f32 %v1506_v62, %v1502_v44 }
 0x203   : > { %v1519_v16 = vpack.c.bf16 %v1515_v12, %v1515_v12 }
 0x204   : > { %v1735_v20 = vld [vmem:[#allocation2 + $0xc] sm:$0xf] }
 0x205   : > { %v1703_v19 = vld [vmem:[#allocation2 + $0xc] sm:$0xf]  ;;  %1523 = vst.msk [vmem:[#allocation2 + $0x1c] sm:$0xf] %vm371_vm3, %v1519_v16  ;;  %1744 = vrot.lane.b32.xlu0 %v1735_v20, %s2827_s18 }
 0x206   : > { %v1671_v21 = vld [vmem:[#allocation2 + $0xc] sm:$0xf]  ;;  %1712 = vrot.lane.b32.xlu1 %v1703_v19, %s2830_s21 }
 0x207   : > { %1680 = vrot.lane.b32.xlu2 %v1671_v21, %s2833_s24  ;;  %v1663_v23 = vld [vmem:[#allocation2 + $0xc] sm:$0xf] }
 0x208   : > { %1667 = vst.msk [vmem:[#allocation3 + $0x68] sm:$0xf] %vm371_vm3, %v1663_v23  ;;  %v1629_v24 = vld [vmem:[#allocation2 + $0x8] sm:$0xff] }
 0x209   : > { %v1767_v7 = vld [vmem:[#allocation2 + $0xc] sm:$0xf] }
 0x20c   : > { %v1665_v22 = vld [vmem:[#allocation2 + $0x1c] sm:$0xf] }
 0x20d   : > { %1682 = vrot.lane.b32.xlu0 %v1518_v18, %s2833_s24  ;;  %1669 = vst.msk [vmem:[#allocation3 + $0x74] sm:$0xf] %vm371_vm3, %v1665_v22  ;;  %v1673_v25 = vld [vmem:[#allocation2 + $0x1c] sm:$0xf] }
 0x20e   : > { %1640 = vrot.lane.b32.xlu1 %v1630_v37, %s2828_s19  ;;  %v1737_v26 = vld [vmem:[#allocation2 + $0x1c] sm:$0xf] }
 0x20f   : > { %1606 = vrot.lane.b32.xlu2 %v1630_v37, %s2829_s20  ;;  %v1705_v27 = vld [vmem:[#allocation2 + $0x1c] sm:$0xf] }
 0x210   : > { %v1769_v28 = vld [vmem:[#allocation2 + $0x1c] sm:$0xf] }
 0x211   : > { %v1631_v29 = vld [vmem:[#allocation2 + $0x18] sm:$0xff] }
 0x215   : > { %1638 = vrot.lane.b32.xlu0 %v1629_v24, %s2828_s19 }
 0x216   : > { %1604 = vrot.lane.b32.xlu1 %v1629_v24, %s2829_s20 }
 0x217   : > { %1776 = vrot.lane.b32.xlu2 %v1767_v7, %s2831_s22 }
 0x21d   : > { %1778 = vrot.lane.b32.xlu0 %v1518_v18, %s2831_s22 }
 0x21e   : > { %1684 = vrot.lane.b32.xlu1 %v1673_v25, %s2833_s24 }
 0x21f   : > { %1748 = vrot.lane.b32.xlu2 %v1737_v26, %s2827_s18  ;;  %s352_s18 = scalar_lea.vmem %s3527_s9, %s2773_s11 }
 0x225   : > { %1570 = vrot.lane.b32.xlu0 %v1629_v24, %s2832_s23 }
 0x226   : > { %1572 = vrot.lane.b32.xlu1 %v1630_v37, %s2832_s23 }
 0x227   : > { %1568 = vrot.lane.b32.xlu2 %v3341_v55, %s2832_s23 }
 0x22d   : > { %1716 = vrot.lane.b32.xlu0 %v1705_v27, %s2830_s21 }
 0x22e   : > { %1780 = vrot.lane.b32.xlu1 %v1769_v28, %s2831_s22 }
 0x22f   : > { %1642 = vrot.lane.b32.xlu2 %v1631_v29, %s2828_s19 }
 0x235   : > { %1534 = vrot.lane.b32.xlu0 %v3341_v55, %s2834_s25 }
 0x236   : > { %1536 = vrot.lane.b32.xlu1 %v1629_v24, %s2834_s25 }
 0x237   : > { %1574 = vrot.lane.b32.xlu2 %v1631_v29, %s2832_s23 }
 0x23d   : > { %1608 = vrot.lane.b32.xlu0 %v1631_v29, %s2829_s20 }
 0x23e   : > { %1838 = vperm.xlu1 %2799, %v3383_v10   ;;  %v1743_v32 = vpop.permute.xlu2 %1742 }
 0x23f   : > { %1538 = vrot.lane.b32.xlu2 %v1630_v37, %s2834_s25  ;;  %v1750_v14 = vrot.slane %v1743_v32, 4 }
 0x245   : > { %1540 = vrot.lane.b32.xlu0 %v1631_v29, %s2834_s25 }
 0x246   : > { %2801 = vset.pattern.permute.xlu1 %v2835_v60  ;;  %v3391_v33 = vpop.permute.xlu2 %1636 }
 0x247   : > { %v1644_v44 = vrot.slane %v3391_v33, 4 }
 0x24d   : > { %2106 = vperm.xlu0 %2795, %v3383_v10  }
 0x24e   : > { %v3394_v34 = vpop.permute.xlu2 %1714 }
 0x255   : > { %2803 = vset.pattern.permute.xlu0 %v2836_v4 }
 0x256   : > { %v1711_v42 = vpop.permute.xlu0 %1710 }
 0x257   : > { %v1679_v36 = vpop.permute.xlu1 %1678  ;;  %v1718_v17 = vrot.slane %v1711_v42, 4 }
 0x258   : > { %v1686_v38 = vrot.slane %v1679_v36, 4 }
 0x25e   : > { %v1603_v46 = vpop.permute.xlu0 %1602 }
 0x25f   : > { %v1775_v60 = vpop.permute.xlu1 %1774  ;;  %v1610_v12 = vrot.slane %v1603_v46, 4 }
 0x260   : > { %v1782_v48 = vrot.slane %v1775_v60, 4 }
 0x261   : > { %v1681_v35 = vpop.permute.xlu2 %1680 }
 0x262   : > { %v1687_v30 = vrot.slane %v1681_v35, 4  ;;  %1699 = vst.msk [vmem:[#allocation3 + $0x80] sm:$0xf] %vm371_vm3, %v1681_v35 }
 0x264   : > { %v1690_v41 = vsel %vm356_vm0, %v1686_v38, %v1687_v30 }
 0x265   : > { %v1691_v31 = vsel %vm721_vm10, %v1679_v36, %v1690_v41 }
 0x266   : > { %1698 = vst [vmem:[#allocation3 + $0x78] sm:$0xff] %v1691_v31 }
 0x267   : > { %v1747_v13 = vpop.permute.xlu1 %1746 }
 0x268   : > { %v1752_v54 = vrot.slane %v1747_v13, 4 }
 0x269   : > { %v3399_v45 = vpop.permute.xlu2 %1606 }
 0x271   : > { %v1777_v47 = vpop.permute.xlu2 %1776 }
 0x272   : > { %v1783_v49 = vrot.slane %v1777_v47, 4  ;;  %1795 = vst.msk [vmem:[#allocation3 + $0xc8] sm:$0xf] %vm371_vm3, %v1777_v47 }
 0x274   : > { %v1786_v50 = vsel %vm356_vm0, %v1782_v48, %v1783_v49 }
 0x275   : > { %v1787_v40 = vsel %vm916_vm8, %v1775_v60, %v1786_v50 }
 0x276   : > { %1794 = vst [vmem:[#allocation3 + $0xc0] sm:$0xff] %v1787_v40 }
 0x277   : > { %v1745_v51 = vpop.permute.xlu0 %1744 }
 0x278   : > { %v1713_v6 = vpop.permute.xlu1 %1712  ;;  %v1751_v52 = vrot.slane %v1745_v51, 4  ;;  %1763 = vst.msk [vmem:[#allocation3 + $0xb0] sm:$0xf] %vm371_vm3, %v1745_v51 }
 0x279   : > { %v1719_v53 = vrot.slane %v1713_v6, 4  ;;  %v1749_v18 = vpop.permute.xlu2 %1748  ;;  %1731 = vst.msk [vmem:[#allocation3 + $0x98] sm:$0xf] %vm371_vm3, %v1713_v6 }
 0x27a   : > { %v1753_v55 = vrot.slane %v1749_v18, 4  ;;  %v1754_v56 = vsel %vm356_vm0, %v1750_v14, %v1751_v52  ;;  %1765 = vst.msk [vmem:[#allocation3 + $0xbc] sm:$0xf] %vm371_vm3, %v1749_v18  ;;  %v1720_v52 = vrot.slane %v3394_v34, 4 }
 0x27b   : > { %v1722_v43 = vsel %vm356_vm0, %v1718_v17, %v1719_v53  ;;  %v1755_v58 = vsel %vm851_vm4, %v1743_v32, %v1754_v56 }
 0x27c   : > { %v1723_v59 = vsel %vm786_vm7, %v1711_v42, %v1722_v43  ;;  %v1756_v61 = vsel %vm356_vm0, %v1752_v54, %v1753_v55  ;;  %1762 = vst [vmem:[#allocation3 + $0xa8] sm:$0xff] %v1755_v58 }
 0x27d   : > { %v1757_v62 = vsel %vm851_vm4, %v1747_v13, %v1756_v61  ;;  %1730 = vst [vmem:[#allocation3 + $0x90] sm:$0xff] %v1723_v59  ;;  %vm1999_vm4 = vcmask 130048  }
 0x27e   : > { %1764 = vst [vmem:[#allocation3 + $0xb4] sm:$0xff] %v1757_v62 }
 0x27f   : > { %v1683_v63 = vpop.permute.xlu0 %1682 }
 0x280   : > { %v1641_v0 = vpop.permute.xlu1 %1640 }
 0x281   : > { %v1569_v2 = vpop.permute.xlu2 %1568  ;;  %v1646_v21 = vrot.slane %v1641_v0, 4 }
 0x282   : > { %v1576_v13 = vrot.slane %v1569_v2, 4 }
 0x283   : > { %v2656_v3 = vld [vmem:[#allocation3 + $0xa8] sm:$0xf]  ;;  %v2766_v57 = vld [vmem:[#allocation3 + $0xac] sm:$0xf] }
 0x285   : > { %v2767_v15 = vld [vmem:[#allocation3 + $0xb0] sm:$0xf0]  ;;  %v2658_v5 = vld [vmem:[#allocation3 + $0xb4] sm:$0xf0] }
 0x286   : > { %v2657_v8 = vor.u32 %v2767_v15, %v2656_v3  ;;  %v2661_v11 = vor.u32 %v2766_v57, %v2658_v5  ;;  %v2768_v3 = vld [vmem:[#allocation3 + $0xb8] sm:$0xf0]  ;;  %v2763_v5 = vld [vmem:[#allocation3 + $0x94] sm:$0xf] }
 0x287   : > { %v1639_v9 = vpop.permute.xlu0 %1638 }
 0x288   : > { %v1605_v39 = vpop.permute.xlu1 %1604  ;;  %v1645_v16 = vrot.slane %v1639_v9, 4  ;;  %2003 = vmatpush.bf16.msra.mxu0 %v2657_v8  ;;  %2031 = vmatpush.bf16.msra.mxu1 %v2661_v11  ;;  %v2668_v8 = vld [vmem:[#allocation3 + $0xc0] sm:$0xf]  ;;  %v2769_v11 = vld [vmem:[#allocation3 + $0xc4] sm:$0xf] }
 0x289   : > { %v1611_v20 = vrot.slane %v1605_v39, 4  ;;  %v1643_v19 = vpop.permute.xlu2 %1642 }
 0x28a   : > { %v1647_v23 = vrot.slane %v1643_v19, 4  ;;  %v1648_v37 = vsel %vm356_vm0, %v1644_v44, %v1645_v16  ;;  %v1650_v22 = vsel %vm636_vm5, %v1639_v9, %v1645_v16  ;;  %v2566_v9 = vld [vmem:[%s3522_s4 + $0x8] sm:$0xf0] }
 0x28b   : > { %v1614_v24 = vsel %vm356_vm0, %v1610_v12, %v1611_v20  ;;  %v1649_v7 = vsel %vm636_vm5, %v3391_v33, %v1648_v37  ;;  %1659 = vst.msk [vmem:[#allocation3 + $0x50] sm:$0xf] %vm371_vm3, %v1650_v22  ;;  %v1616_v26 = vsel %vm567_vm6, %v1605_v39, %v1611_v20  ;;  %v1688_v33 = vrot.slane %v1683_v63, 4 }
 0x28c   : > { %v1615_v25 = vsel %vm567_vm6, %v1603_v46, %v1614_v24  ;;  %v1651_v27 = vsel %vm356_vm0, %v1646_v21, %v1647_v23  ;;  %1658 = vst [vmem:[#allocation3 + $0x48] sm:$0xff] %v1649_v7  ;;  %v1653_v29 = vsel %vm636_vm5, %v1643_v19, %v1647_v23  ;;  %v1612_v7 = vrot.slane %v3399_v45, 4 }
 0x28d   : > { %v1652_v28 = vsel %vm636_vm5, %v1641_v0, %v1651_v27  ;;  %1624 = vst [vmem:[#allocation3 + $0x30] sm:$0xff] %v1615_v25  ;;  %v2644_v0 = vld [vmem:[#allocation3 + $0x90] sm:$0xf]  ;;  %v2632_v27 = vld [vmem:[#allocation3 + $0x78] sm:$0xf] }
 0x28e   : > { %1625 = vst.msk [vmem:[#allocation3 + $0x38] sm:$0xf] %vm371_vm3, %v1616_v26 }
 0x28f   : > { %1660 = vst [vmem:[#allocation3 + $0x54] sm:$0xff] %v1652_v28  ;;  %v1779_v32 = vpop.permute.xlu0 %1778  ;;  %v2760_v28 = vld [vmem:[#allocation3 + $0x7c] sm:$0xf] }
 0x290   : > { %v1685_v36 = vpop.permute.xlu1 %1684  ;;  %1661 = vst.msk [vmem:[#allocation3 + $0x5c] sm:$0xf] %vm371_vm3, %v1653_v29  ;;  %v1784_v53 = vrot.slane %v1779_v32, 4 }
 0x291   : > { %v1689_v35 = vrot.slane %v1685_v36, 4  ;;  %v1575_v38 = vpop.permute.xlu2 %1574  ;;  %1701 = vst.msk [vmem:[#allocation3 + $0x8c] sm:$0xf] %vm371_vm3, %v1685_v36 }
 0x292   : > { %v1579_v30 = vrot.slane %v1575_v38, 4 }
 0x293   : > { %v1692_v41 = vsel %vm356_vm0, %v1688_v33, %v1689_v35 }
 0x294   : > { %v1693_v31 = vsel %vm721_vm10, %v1683_v63, %v1692_v41  ;;  %v1585_v42 = vsel %vm498_vm9, %v1575_v38, %v1579_v30  ;;  %v2758_v38 = vld [vmem:[#allocation3 + $0x68] sm:$0xf0]  ;;  %v2652_v41 = vld [vmem:[#allocation3 + $0x98] sm:$0xf] }
 0x295   : > { %1700 = vst [vmem:[#allocation3 + $0x84] sm:$0xff] %v1693_v31 }
 0x296   : > { %1593 = vst.msk [vmem:[#allocation3 + $0x2c] sm:$0xf] %vm371_vm3, %v1585_v42 }
 0x297   : > { %v1571_v60 = vpop.permute.xlu0 %1570 }
 0x298   : > { %v1573_v46 = vpop.permute.xlu1 %1572  ;;  %v1577_v47 = vrot.slane %v1571_v60, 4 }
 0x299   : > { %v1578_v48 = vrot.slane %v1573_v46, 4 }
 0x29a   : > { %v1580_v49 = vsel %vm356_vm0, %v1576_v13, %v1577_v47  ;;  %v1582_v50 = vsel %vm498_vm9, %v1571_v60, %v1577_v47  ;;  %v2620_v60 = vld [vmem:[#allocation3 + $0x60] sm:$0xf]  ;;  %v2757_v47 = vld [vmem:[#allocation3 + $0x64] sm:$0xf] }
 0x29b   : > { %v1583_v40 = vsel %vm356_vm0, %v1578_v48, %v1579_v30  ;;  %v1581_v51 = vsel %vm498_vm9, %v1569_v2, %v1580_v49  ;;  %1591 = vst.msk [vmem:[#allocation3 + $0x20] sm:$0xf] %vm371_vm3, %v1582_v50  ;;  %v2664_v2 = vld [vmem:[#allocation3 + $0xb0] sm:$0xf]  ;;  %v2762_v48 = vld [vmem:[#allocation3 + $0x88] sm:$0xf0]  ;;  %v2621_v49 = vor.u32 %v2758_v38, %v2620_v60 }
 0x29c   : > { %v1584_v6 = vsel %vm498_vm9, %v1573_v46, %v1583_v40  ;;  %1590 = vst [vmem:[#allocation3 + $0x18] sm:$0xff] %v1581_v51  ;;  %v2761_v22 = vld [vmem:[#allocation3 + $0x80] sm:$0xf0]  ;;  %v2634_v24 = vld [vmem:[#allocation3 + $0x84] sm:$0xf0]  ;;  %v2665_v25 = vor.u32 %v2768_v3, %v2664_v2 }
 0x29d   : > { %1592 = vst [vmem:[#allocation3 + $0x24] sm:$0xff] %v1584_v6  ;;  %v2633_v33 = vor.u32 %v2761_v22, %v2632_v27  ;;  %v2637_v35 = vor.u32 %v2760_v28, %v2634_v24  ;;  %v2622_v30 = vld [vmem:[#allocation3 + $0x6c] sm:$0xf0]  ;;  %v2608_v40 = vld [vmem:[#allocation3 + $0x48] sm:$0xf]  ;;  %v1539_v6 = vpop.permute.xlu2 %1538 }
 0x29e   : > { %v2625_v50 = vor.u32 %v2757_v47, %v2622_v30  ;;  %v2640_v51 = vld [vmem:[#allocation3 + $0x80] sm:$0xf]  ;;  %v2751_v2 = vld [vmem:[#allocation3 + $0x34] sm:$0xf] }
 0x29f   : > { %v1717_v14 = vpop.permute.xlu0 %1716 }
 0x2a0   : > { %v1781_v17 = vpop.permute.xlu1 %1780  ;;  %v1721_v18 = vrot.slane %v1717_v14, 4  ;;  %1733 = vst.msk [vmem:[#allocation3 + $0xa4] sm:$0xf] %vm371_vm3, %v1717_v14  ;;  %v2755_v14 = vld [vmem:[#allocation3 + $0x50] sm:$0xf0] }
 0x2a1   : > { %v1785_v54 = vrot.slane %v1781_v17, 4  ;;  %1797 = vst.msk [vmem:[#allocation3 + $0xd4] sm:$0xf] %vm371_vm3, %v1781_v17  ;;  %v2754_v17 = vld [vmem:[#allocation3 + $0x4c] sm:$0xf] }
 0x2a2   : > { %v1724_v55 = vsel %vm356_vm0, %v1720_v52, %v1721_v18  ;;  %v2641_v52 = vor.u32 %v2762_v48, %v2640_v51  ;;  %v2759_v18 = vld [vmem:[#allocation3 + $0x70] sm:$0xf0]  ;;  %v2592_v22 = vld [vmem:[#allocation3 + $0x20] sm:$0xf] }
 0x2a3   : > { %v1788_v56 = vsel %vm356_vm0, %v1784_v53, %v1785_v54  ;;  %v1725_v43 = vsel %vm786_vm7, %v3394_v34, %v1724_v55  ;;  %v2743_v34 = vld [vmem:[%s3522_s4 + $0x4] sm:$0xf]  ;;  %v1544_v54 = vrot.slane %v1539_v6, 4 }
 0x2a4   : > { %v1789_v58 = vsel %vm916_vm8, %v1779_v32, %v1788_v56  ;;  %1732 = vst [vmem:[#allocation3 + $0x9c] sm:$0xff] %v1725_v43  ;;  %v3457_v32 = vor.u32 %v2743_v34, %v2566_v9  ;;  %v2609_v56 = vor.u32 %v2755_v14, %v2608_v40  ;;  %v2584_v9 = vld [vmem:[#allocation3 + $0x18] sm:$0xf] }
 0x2a5   : > { %1796 = vst [vmem:[#allocation3 + $0xcc] sm:$0xff] %v1789_v58  ;;  %v2628_v58 = vld [vmem:[#allocation3 + $0x68] sm:$0xf] }
 0x2a6   : > { %v2629_v3 = vor.u32 %v2759_v18, %v2628_v58 }
 0x2a7   : > { %v1535_v59 = vpop.permute.xlu0 %1534  ;;  %v2765_v29 = vld [vmem:[#allocation3 + $0xa0] sm:$0xf0] }
 0x2a8   : > { %v1537_v61 = vpop.permute.xlu1 %1536  ;;  %v1542_v62 = vrot.slane %v1535_v59, 4  ;;  %v2653_v46 = vor.u32 %v2765_v29, %v2652_v41  ;;  %v2750_v41 = vld [vmem:[#allocation3 + $0x28] sm:$0xf0] }
 0x2a9   : > { %v1543_v63 = vrot.slane %v1537_v61, 4 }
 0x2ab   : > { %v1546_v57 = vsel %vm356_vm0, %v1542_v62, %v1543_v63  ;;  %v1548_v15 = vsel %vm429_vm11, %v1537_v61, %v1543_v63  ;;  %v2764_v44 = vld [vmem:[#allocation3 + $0x98] sm:$0xf0]  ;;  %v2646_v12 = vld [vmem:[#allocation3 + $0x9c] sm:$0xf0]  ;;  %v1835_v61 = vld [vmem:[%s3524_s6 + $0x8] sm:$0xff] }
 0x2ac   : > { %v1547_v39 = vsel %vm429_vm11, %v1535_v59, %v1546_v57  ;;  %1557 = vst.msk [vmem:[#allocation3 + $0x8] sm:$0xf] %vm371_vm3, %v1548_v15  ;;  %v2645_v16 = vor.u32 %v2764_v44, %v2644_v0  ;;  %v2649_v20 = vor.u32 %v2763_v5, %v2646_v12  ;;  %v2770_v19 = vld [vmem:[#allocation3 + $0xc8] sm:$0xf0]  ;;  %v2670_v21 = vld [vmem:[#allocation3 + $0xcc] sm:$0xf0]  ;;  %2110 = vperm.xlu1 %2801, %v1835_v61  }
 0x2ad   : > { %1556 = vst [vmem:[#allocation3] sm:$0xff] %v1547_v39  ;;  %v2669_v23 = vor.u32 %v2770_v19, %v2668_v8  ;;  %v2673_v37 = vor.u32 %v2769_v11, %v2670_v21  ;;  %v2616_v59 = vld [vmem:[#allocation3 + $0x50] sm:$0xf]  ;;  %v2756_v57 = vld [vmem:[#allocation3 + $0x58] sm:$0xf0]  ;;  %2124 = vperm.xlu0 %2803, %v1835_v61   ;;  %1843 = vperm.xlu2 %2800, %v1835_v61  }
 0x2ae   : > { %2004 = vmatpush.bf16.msra.mxu0 %v2645_v16  ;;  %2032 = vmatpush.bf16.msra.mxu1 %v2649_v20  ;;  %v2596_v0 = vld [vmem:[#allocation3 + $0x30] sm:$0xf]  ;;  %v2749_v39 = vld [vmem:[#allocation3 + $0x20] sm:$0xf0]  ;;  %v2748_v44 = vld [vmem:[#allocation3 + $0x1c] sm:$0xf]  ;;  %v2617_v16 = vor.u32 %v2756_v57, %v2616_v59 }
 0x2af   : > { %v1609_v26 = vpop.permute.xlu0 %1608  ;;  %2024 = vmatpush.bf16.msrb.mxu2 %v2669_v23  ;;  %2052 = vmatpush.bf16.msra.mxu3 %v2673_v37  ;;  %v2586_v12 = vld [vmem:[#allocation3 + $0x24] sm:$0xf0]  ;;  %v2585_v19 = vor.u32 %v2749_v39, %v2584_v9  ;;  %v2604_v23 = vld [vmem:[#allocation3 + $0x38] sm:$0xf]  ;;  %v2564_v37 = vld [vmem:[%s3522_s4] sm:$0xf] }
 0x2b0   : > { %v1613_v36 = vrot.slane %v1609_v26, 4  ;;  %v2589_v21 = vor.u32 %v2748_v44, %v2586_v12 }
 0x2b2   : > { %v1617_v31 = vsel %vm356_vm0, %v1612_v7, %v1613_v36  ;;  %v1619_v42 = vsel %vm567_vm6, %v1609_v26, %v1613_v36  ;;  %2005 = vmatpush.bf16.msra.mxu0 %v2633_v33  ;;  %2033 = vmatpush.bf16.msra.mxu1 %v2637_v35  ;;  %v2744_v26 = vld [vmem:[%s3522_s4 + $0x4] sm:$0xf0] }
 0x2b3   : > { %2059 = vmatpush.bf16.msra.mxu2 %v2665_v25  ;;  %v1618_v13 = vsel %vm567_vm6, %v3399_v45, %v1617_v31  ;;  %1627 = vst.msk [vmem:[#allocation3 + $0x44] sm:$0xf] %vm371_vm3, %v1619_v42  ;;  %2679 = vmatmul.msk.bf16.vlgmr.msra.gmra.mxu3 %vm1999_vm4, %v3457_v32  ;;  %v2610_v45 = vld [vmem:[#allocation3 + $0x54] sm:$0xf0]  ;;  %v2771_v25 = vld [vmem:[#allocation3 + $0xd0] sm:$0xf0]  ;;  %v2565_v30 = vor.u32 %v2744_v26, %v2564_v37 }
 0x2b4   : > { %2678 = vmatmul.msk.bf16.vlgmr.msrb.gmra.mxu2 %vm1999_vm4, %v3457_v32  ;;  %1626 = vst [vmem:[#allocation3 + $0x3c] sm:$0xff] %v1618_v13  ;;  %v2613_v43 = vor.u32 %v2754_v17, %v2610_v45  ;;  %v2572_v24 = vld [vmem:[#allocation3] sm:$0xf]  ;;  %v2745_v28 = vld [vmem:[#allocation3 + $0x4] sm:$0xf]  ;;  %2804 = vset.pattern.permute.xlu1 %v2826_v1  ;;  %v2593_v31 = vor.u32 %v2750_v41, %v2592_v22  ;;  %v1839_v13 = vpop.permute.xlu1 %1838 }
 0x2b5   : > { %2805 = vset.pattern.permute.xlu0 %v2826_v1  ;;  %v2676_v35 = vld [vmem:[#allocation3 + $0xc8] sm:$0xf]  ;;  %2802 = vset.pattern.permute.xlu2 %v2836_v4 }
 0x2b6   : > { %2006 = vmatpush.bf16.msra.mxu0 %v2621_v49  ;;  %2034 = vmatpush.bf16.msra.mxu1 %v2625_v50  ;;  %v2677_v38 = vor.u32 %v2771_v25, %v2676_v35  ;;  %v2580_v1 = vld [vmem:[#allocation3 + $0x8] sm:$0xf] }
 0x2b7   : > { %2060 = vmatpush.bf16.msra.mxu2 %v2653_v46  ;;  %v1541_v53 = vpop.permute.xlu0 %1540  ;;  %2120 = vperm.xlu2 %2802, %v3383_v10  }
 0x2b8   : > { %v1545_v55 = vrot.slane %v1541_v53, 4 }
 0x2ba   : > { %v1549_v62 = vsel %vm356_vm0, %v1544_v54, %v1545_v55  ;;  %v1551_v63 = vsel %vm429_vm11, %v1541_v53, %v1545_v55  ;;  %2007 = vmatpush.bf16.msra.mxu0 %v2609_v56  ;;  %2035 = vmatpush.bf16.msra.mxu1 %v2613_v43  ;;  %v2753_v20 = vld [vmem:[#allocation3 + $0x40] sm:$0xf0]  ;;  %v2137_v53 = vld [vmem:[%s3526_s8] sm:$0x3] }
 0x2bb   : > { %2061 = vmatpush.bf16.msra.mxu2 %v2641_v52  ;;  %v1550_v15 = vsel %vm429_vm11, %v1539_v6, %v1549_v62  ;;  %1559 = vst.msk [vmem:[#allocation3 + $0x14] sm:$0xf] %vm371_vm3, %v1551_v63  ;;  %v2752_v5 = vld [vmem:[#allocation3 + $0x38] sm:$0xf0]  ;;  %v2598_v8 = vld [vmem:[#allocation3 + $0x3c] sm:$0xf0]  ;;  %v2605_v7 = vor.u32 %v2753_v20, %v2604_v23  ;;  %2140 = vperm.xlu1 %2804, %v2137_v53  }
 0x2bc   : > { %1558 = vst [vmem:[#allocation3 + $0xc] sm:$0xff] %v1550_v15  ;;  %v2597_v11 = vor.u32 %v2752_v5, %v2596_v0  ;;  %v2601_v34 = vor.u32 %v2751_v2, %v2598_v8 }
 0x2be   : > { %2008 = vmatpush.bf16.msra.mxu0 %v2597_v11  ;;  %2036 = vmatpush.bf16.msra.mxu1 %v2601_v34 }
 0x2bf   : > { %2062 = vmatpush.bf16.msra.mxu2 %v2629_v3  ;;  %v2107_v14 = vpop.permute.xlu0 %2106 }
 0x2c2   : > { %2009 = vmatpush.bf16.msra.mxu0 %v2585_v19  ;;  %2037 = vmatpush.bf16.msra.mxu1 %v2589_v21  ;;  %v2747_v42 = vld [vmem:[#allocation3 + $0x10] sm:$0xf0] }
 0x2c3   : > { %2063 = vmatpush.bf16.msra.mxu2 %v2617_v16  ;;  %v2746_v27 = vld [vmem:[#allocation3 + $0x8] sm:$0xf0]  ;;  %v2574_v29 = vld [vmem:[#allocation3 + $0xc] sm:$0xf0]  ;;  %v2581_v60 = vor.u32 %v2747_v42, %v2580_v1 }
 0x2c4   : > { %v2573_v36 = vor.u32 %v2746_v27, %v2572_v24  ;;  %v2577_v33 = vor.u32 %v2745_v28, %v2574_v29  ;;  %v2133_v24 = vld [vmem:[%s3525_s7] sm:$0x1] }
 0x2c6   : > { %2010 = vmatpush.bf16.msra.mxu0 %v2573_v36  ;;  %2038 = vmatpush.bf16.msra.mxu1 %v2577_v33 }
 0x2c7   : > { %2064 = vmatpush.bf16.msra.mxu2 %v2605_v7 }
 0x2c9   : > { %2011 = vmatmul.bf16.vlgmr.msra.gmra.mxu0 %v2565_v30  ;;  %2039 = vmatmul.bf16.vlgmr.msra.gmra.mxu1 %v2565_v30 }
 0x2ca   : > { %2080 = vmatpush.bf16.msrb.mxu0 %v2677_v38 }
 0x2cb   : > { %2065 = vmatpush.bf16.msra.mxu2 %v2593_v31 }
 0x2cf   : > { %2066 = vmatpush.bf16.msra.mxu2 %v2581_v60 }
 0x2d2   : > { %2067 = vmatmul.bf16.vlgmr.msra.gmra.mxu2 %v2565_v30 }
 0x2d9   : > { %2680 = vmatmul.msk.bf16.vlgmr.msrb.gmra.mxu0 %vm1999_vm4, %v3457_v32 }
 0x307   : > { %v1844_v6 = vpop.permute.xlu2 %1843 }
 0x311   : > { %v2121_v15 = vpop.permute.xlu2 %2120 }
 0x31e   : > { %v2111_v2 = vpop.permute.xlu1 %2110 }
 0x31f   : > { %v2125_v11 = vpop.permute.xlu0 %2124 }
 0x32d   : > { %v2141_v41 = vpop.permute.xlu1 %2140 }
 0x336   : > { %v2054_v46 = vpop.f32.mrf.mxu3 }
 0x337   : > { %v2026_v4 = vpop.f32.mrf.mxu2 }
 0x33e   : > { %v2056_v52 = vpop.f32.mrf.mxu3 }
 0x33f   : > { %v2028_v51 = vpop.f32.mrf.mxu2 }
 0x346   : > { %v2012_v47 = vpop.f32.mrf.mxu0  ;;  %v2040_v10 = vpop.f32.mrf.mxu1 }
 0x347   : > { %v2013_v48 = vadd.f32 %v2012_v47, %v1839_v13  ;;  %v2041_v49 = vadd.f32 %v2040_v10, %v1839_v13 }
 0x349   : > { %v2027_v50 = vadd.f32 %v2026_v4, %v2013_v48  ;;  %v2055_v40 = vadd.f32 %v2054_v46, %v2041_v49 }
 0x34b   : > { %v2093_v17 = vmul.f32 0.01, %v2027_v50  ;;  %v2094_v45 = vmul.f32 0.01, %v2055_v40  ;;  %vm2088_vm3 = vcmp.ge.f32.partialorder %v2055_v40, 0.0  ;;  %vm2087_vm5 = vcmp.ge.f32.partialorder %v2027_v50, 0.0 }
 0x34d   : > { %v2099_v43 = vsel %vm2087_vm5, %v2027_v50, %v2093_v17  ;;  %v2100_v58 = vsel %vm2088_vm3, %v2055_v40, %v2094_v45  ;;  %vm2247_vm3 = vcmask 1041408  }
 0x34e   : > { %v2014_v32 = vpop.f32.mrf.mxu0  ;;  %v2042_v18 = vpop.f32.mrf.mxu1  ;;  %v2113_v3 = vmul.f32 %v2107_v14, %v2099_v43  ;;  %v2114_v57 = vmul.f32 %v2107_v14, %v2100_v58  ;;  %vm2252_vm5 = vmor %vm2251_vm1, %vm2247_vm3 }
 0x34f   : > { %v2015_v54 = vadd.f32 %v2014_v32, %v1844_v6  ;;  %v2043_v55 = vadd.f32 %v2042_v18, %v1844_v6 }
 0x350   : > { %v2127_v12 = vadd.f32 %v2121_v15, %v2113_v3  ;;  %v2128_v16 = vadd.f32 %v2121_v15, %v2114_v57 }
 0x351   : > { %v2029_v56 = vadd.f32 %v2028_v51, %v2015_v54  ;;  %v2057_v59 = vadd.f32 %v2056_v52, %v2043_v55 }
 0x353   : > { %v2096_v62 = vmul.f32 0.01, %v2029_v56  ;;  %vm2091_vm6 = vcmp.ge.f32.partialorder %v2057_v59, 0.0  ;;  %v2097_v63 = vmul.f32 0.01, %v2057_v59  ;;  %vm2090_vm7 = vcmp.ge.f32.partialorder %v2029_v56, 0.0 }
 0x355   : > { %v2068_v61 = vpop.f32.mrf.mxu2  ;;  %v2102_v5 = vsel %vm2090_vm7, %v2029_v56, %v2096_v62  ;;  %v2103_v8 = vsel %vm2091_vm6, %v2057_v59, %v2097_v63 }
 0x356   : > { %v2069_v0 = vadd.f32 %v2068_v61, %v1839_v13  ;;  %v2116_v34 = vmul.f32 %v2111_v2, %v2102_v5  ;;  %v2117_v9 = vmul.f32 %v2111_v2, %v2103_v8  ;;  %v2082_v39 = vpop.f32.mrf.mxu0 }
 0x358   : > { %v2083_v44 = vadd.f32 %v2082_v39, %v2069_v0  ;;  %v2130_v20 = vadd.f32 %v2125_v11, %v2116_v34  ;;  %v2131_v19 = vadd.f32 %v2125_v11, %v2117_v9 }
 0x35a   : > { %v2134_v21 = vpack.c.bf16 %v2130_v20, %v2127_v12  ;;  %v2135_v23 = vpack.c.bf16 %v2131_v19, %v2128_v16  ;;  %v2095_v22 = vmul.f32 0.01, %v2083_v44  ;;  %vm2089_vm8 = vcmp.ge.f32.partialorder %v2083_v44, 0.0 }
 0x35c   : > { %2153 = vmatpush.bf16.msrb.mxu3 %v2134_v21  ;;  %2166 = vmatpush.bf16.msra.mxu0 %v2135_v23  ;;  %v2101_v26 = vsel %vm2089_vm8, %v2083_v44, %v2095_v22  ;;  %vm2253_vm8 = vcmask 259076  }
 0x35d   : > { %v2070_v37 = vpop.f32.mrf.mxu2  ;;  %v2115_v29 = vmul.f32 %v2107_v14, %v2101_v26 }
 0x35e   : > { %v2071_v7 = vadd.f32 %v2070_v37, %v1844_v6  ;;  %v2084_v25 = vpop.f32.mrf.mxu0 }
 0x35f   : > { %2681 = vmatmul.msk.bf16.vlgmr.msrb.gmra.mxu3 %vm1999_vm4, %v2133_v24  ;;  %2682 = vmatmul.msk.bf16.vlgmr.msra.gmra.mxu0 %vm1999_vm4, %v2133_v24  ;;  %v2129_v35 = vadd.f32 %v2121_v15, %v2115_v29 }
 0x360   : > { %v2085_v27 = vadd.f32 %v2084_v25, %v2071_v7 }
 0x362   : > { %vm2092_vm9 = vcmp.ge.f32.partialorder %v2085_v27, 0.0  ;;  %v2098_v28 = vmul.f32 0.01, %v2085_v27 }
 0x364   : > { %v2104_v36 = vsel %vm2092_vm9, %v2085_v27, %v2098_v28 }
 0x365   : > { %v2118_v33 = vmul.f32 %v2111_v2, %v2104_v36 }
 0x367   : > { %v2132_v38 = vadd.f32 %v2125_v11, %v2118_v33 }
 0x369   : > { %v2136_v30 = vpack.c.bf16 %v2132_v38, %v2129_v35 }
 0x36b   : > { %2179 = vmatpush.bf16.msrb.mxu1 %v2136_v30 }
 0x36e   : > { %2683 = vmatmul.msk.bf16.vlgmr.msrb.gmra.mxu1 %vm1999_vm4, %v2133_v24 }
 0x3dc   : > { %v2168_v31 = vpop.f32.mrf.mxu0 }
 0x3dd   : > { %v2169_v42 = vadd.f32 %v2168_v31, %v2141_v41 }
 0x3df   : > { %v2186_v1 = vsub.f32 0.0, %v2169_v42 }
 0x3e1   : > { %v2190_v60 = vmul.f32 1.442695, %v2186_v1 }
 0x3e2   : > { %v2155_v4 = vpop.f32.mrf.mxu3 }
 0x3e3   : > { %2806 = vpow2.f32 %v2190_v60  ;;  %v2156_v46 = vadd.f32 %v2155_v4, %v2141_v41 }
 0x3e4   : > { %v2170_v13 = vpop.f32.mrf.mxu0 }
 0x3e5   : > { %v2185_v47 = vsub.f32 0.0, %v2156_v46 }
 0x3e7   : > { %v2188_v10 = vmul.f32 1.442695, %v2185_v47 }
 0x3e9   : > { %v2807_v48 = vpop.eup %2806  ;;  %2808 = vpow2.f32 %v2188_v10 }
 0x3ea   : > { %v2195_v49 = vadd.f32 1.0, %v2807_v48  ;;  %v2157_v40 = vpop.f32.mrf.mxu3 }
 0x3eb   : > { %v2181_v50 = vpop.f32.mrf.mxu1 }
 0x3ec   : > { %v2182_v51 = vadd.f32 %v2181_v50, %v2141_v41  ;;  %2810 = vrcp.f32 %v2195_v49  ;;  %vm2217_vm10 = vweird.f32 %v2195_v49  ;;  %v2223_v62 = vand.u32 2147483648, %v2195_v49 }
 0x3ed   : > { %v2221_v2 = vand.u32 2147483647, %v2195_v49 }
 0x3ee   : > { %v2187_v6 = vsub.f32 0.0, %v2182_v51  ;;  %v2224_v5 = vor.u32 1.1754944e-38, %v2223_v62 }
 0x3ef   : > { %v2809_v14 = vpop.eup %2808  ;;  %vm2222_vm2 = vcmp.eq.f32.partialorder %v2221_v2, 8.507059e+37 }
 0x3f0   : > { %v2192_v17 = vmul.f32 1.442695, %v2187_v6  ;;  %v2194_v45 = vadd.f32 1.0, %v2809_v14 }
 0x3f2   : > { %2812 = vpow2.f32 %v2192_v17  ;;  %v2811_v52 = vpop.eup %2810  ;;  %vm2202_vm14 = vweird.f32 %v2194_v45  ;;  %v2208_v8 = vand.u32 2147483648, %v2194_v45  ;;  %v2206_v9 = vand.u32 2147483647, %v2194_v45 }
 0x3f3   : > { %2814 = vrcp.f32 %v2194_v45  ;;  %v2183_v53 = vpop.f32.mrf.mxu1  ;;  %v2213_v32 = vmul.f32 %v2811_v52, %v2195_v49  ;;  %vm2218_vm11 = vweird.f32 %v2811_v52 }
 0x3f4   : > { %vm3496_vm13 = vmor %vm2217_vm10, %vm2218_vm11  ;;  %v2209_v21 = vor.u32 1.1754944e-38, %v2208_v8  ;;  %vm2207_vm7 = vcmp.eq.f32.partialorder %v2206_v9, 8.507059e+37 }
 0x3f5   : > { %v2214_v55 = vsub.f32 1.0, %v2213_v32  ;;  %vm2254_vm11 = vmor %vm2253_vm8, %vm2252_vm5 }
 0x3f7   : > { %v2215_v59 = vmul.f32 %v2811_v52, %v2214_v55 }
 0x3f8   : > { %v2813_v18 = vpop.eup %2812 }
 0x3f9   : > { %v2815_v54 = vpop.eup %2814  ;;  %v2196_v56 = vadd.f32 1.0, %v2813_v18  ;;  %v2216_v0 = vadd.f32 %v2811_v52, %v2215_v59 }
 0x3fa   : > { %v2198_v43 = vmul.f32 %v2815_v54, %v2194_v45  ;;  %vm2203_vm15 = vweird.f32 %v2815_v54 }
 0x3fb   : > { %2816 = vrcp.f32 %v2196_v56  ;;  %v2220_v34 = vsel %vm3496_vm13, %v2811_v52, %v2216_v0  ;;  %v2238_v39 = vand.u32 2147483648, %v2196_v56  ;;  %vm3502_vm12 = vmor %vm2202_vm14, %vm2203_vm15  ;;  %v2236_v16 = vand.u32 2147483647, %v2196_v56 }
 0x3fc   : > { %v2199_v58 = vsub.f32 1.0, %v2198_v43  ;;  %v2225_v19 = vsel %vm2222_vm2, %v2224_v5, %v2220_v34  ;;  %vm2232_vm6 = vweird.f32 %v2196_v56 }
 0x3fd   : > { %v2239_v37 = vor.u32 1.1754944e-38, %v2238_v39  ;;  %vm2237_vm10 = vcmp.eq.f32.partialorder %v2236_v16, 8.507059e+37  ;;  %v2245_v7 = vrot.slane %v2225_v19, 6 }
 0x3fe   : > { %v2200_v61 = vmul.f32 %v2815_v54, %v2199_v58 }
 0x400   : > { %v2201_v15 = vadd.f32 %v2815_v54, %v2200_v61 }
 0x401   : > { %v2817_v63 = vpop.eup %2816 }
 0x402   : > { %v2228_v57 = vmul.f32 %v2817_v63, %v2196_v56  ;;  %vm2233_vm4 = vweird.f32 %v2817_v63  ;;  %v2205_v20 = vsel %vm3502_vm12, %v2815_v54, %v2201_v15 }
 0x403   : > { %vm2234_vm9 = vmor %vm2232_vm6, %vm2233_vm4  ;;  %v2210_v22 = vsel %vm2207_vm7, %v2209_v21, %v2205_v20 }
 0x404   : > { %v2229_v11 = vsub.f32 1.0, %v2228_v57  ;;  %v2248_v27 = vsel %vm2247_vm3, %v2210_v22, %v2245_v7 }
 0x406   : > { %v2230_v12 = vmul.f32 %v2817_v63, %v2229_v11 }
 0x408   : > { %v2231_v23 = vadd.f32 %v2817_v63, %v2230_v12 }
 0x40a   : > { %v2235_v24 = vsel %vm2234_vm9, %v2817_v63, %v2231_v23 }
 0x40b   : > { %v2240_v25 = vsel %vm2237_vm10, %v2239_v37, %v2235_v24 }
 0x40c   : > { %v2246_v26 = vrot.slane %v2240_v25, 4 }
 0x40e   : > { %v2249_v28 = vsel %vm356_vm0, %v2248_v27, %v2246_v26 }
 0x40f   : > { %2255 = vst.msk [vmem:[%s352_s18] sm:$0x3f] %vm2254_vm11, %v2249_v28 }
 0x410 PF: > { %s19_s30 = sadd.s32 1, %s2824_s30  }
 0x411   : > { %p16_p4 = scmp.ge.s32.totalorder %s19_s30, 4  }
 0x413   :  { %18 = sbr.rel (!%p16_p4) target bundleno = 1 (0x1), region = 89 }

</bundles_post_ra>
